<compile_context>
chip_gen: v6e
topology: v6e:2x2x1
jax: 0.10.0
libtpu: 0.0.40
codegen_flags: <defaults>
</compile_context>

<pallas_src>
import functools

import numpy as np
import jax
import jax.numpy as jnp
from jax import lax
from jax.experimental import pallas as pl
from jax.experimental.pallas import tpu as pltpu

TRANSPOSE_OUTPADS = [0, 0, 0, 0, 0, 1, 1]
BN_EPS = 1e-5


# ----------------------------------------------------------------------------
# Pallas kernel: one ConvTranspose1d + folded BatchNorm1d (eval) layer.
# ----------------------------------------------------------------------------
def _tconv_bn_kernel(x_ref, w_ref, sh_ref, o_ref, *,
                     jmax, n_batch, groups, garbage_lanes):
    """
    x_ref:  (M, Cin)        M = n_batch * groups; per-batch rows >= L_in are exact zeros
    w_ref:  (jmax, Cin, D)  D = stride*Cout; tap j holds (BN-scale-folded) W[ci, co, r + j*stride]
                            at lane r*Cout + co
    sh_ref: (1, D)          folded conv bias + BN shift, tiled over the stride phases
    o_ref:  (M, D)          o[n*groups + s, r*Cout + co] == out[n, s*stride + r, co]
    """
    M, D = o_ref.shape
    f32 = jnp.float32

    if jmax > 1:
        # tap j = 1 .. jmax-1: out[row] += x[row - j] @ W_j, realized as a shifted store.
        o_ref[pl.ds(1, M - 1), :] = jnp.dot(
            x_ref[pl.ds(0, M - 1), :], w_ref[1], preferred_element_type=f32)
        o_ref[pl.ds(0, 1), :] = jnp.zeros((1, D), f32)
        for j in range(2, jmax):                     # not taken for this model (jmax <= 2)
            o_ref[pl.ds(j, M - j), :] += jnp.dot(
                x_ref[pl.ds(0, M - j), :], w_ref[j], preferred_element_type=f32)
        acc = o_ref[...] + jnp.dot(x_ref[...], w_ref[0], preferred_element_type=f32)
    else:
        acc = jnp.dot(x_ref[...], w_ref[0], preferred_element_type=f32)

    # BN scale is pre-folded into w_ref; only the additive shift remains.
    o_ref[...] = acc + sh_ref[...]

    # Zero the grouped slots past the true output length: the untrimmed buffer is carried
    # straight into the next layer, whose shifted taps rely on these rows being zero.
    if garbage_lanes > 0:
        lane = lax.broadcasted_iota(jnp.int32, (1, D), 1)
        keep = lane < (D - garbage_lanes)
        for n in range(n_batch):                     # touches exactly one row per batch element
            last = pl.ds((n + 1) * groups - 1, 1)
            o_ref[last, :] = jnp.where(keep, o_ref[last, :], 0.0)


def tconv_bn_layer_pallas(x_buf, l_in, p):
    """x_buf: (N, Lbuf, Cin) float32 with per-batch rows >= l_in zeroed.
    Returns (untrimmed output buffer (N, S*stride, Cout) with rows >= l_out zeroed, l_out)."""
    N, l_buf, cin = x_buf.shape
    stride, K, out_pad = p["stride"], p["K"], p["out_pad"]
    cout, jmax = p["cout"], p["jmax"]
    D = stride * cout
    S = l_in - 1 + -(-(K + out_pad) // stride)       # stride groups computed per batch element
    l_out = (l_in - 1) * stride + K + out_pad
    garbage = S * stride - l_out                     # 0 <= garbage < stride (overrun slots)

    # Bring the carried buffer to exactly S rows per batch. For this model every layer's
    # untrimmed output length already equals the next layer's S, so only the very first
    # layer pads (by one tiny zero row) and no copies happen between layers.
    if l_buf < S:
        x_buf = jnp.pad(x_buf, ((0, 0), (0, S - l_buf), (0, 0)))
    elif l_buf > S:
        x_buf = x_buf[:, :S, :]
    M = N * S

    out = pl.pallas_call(
        functools.partial(_tconv_bn_kernel, jmax=jmax, n_batch=N, groups=S,
                          garbage_lanes=garbage * cout),
        out_shape=jax.ShapeDtypeStruct((M, D), jnp.float32),
        grid=(1,),
        in_specs=[
            pl.BlockSpec((M, cin), lambda i: (0, 0)),
            pl.BlockSpec((jmax, cin, D), lambda i: (0, 0, 0)),
            pl.BlockSpec((1, D), lambda i: (0, 0)),
        ],
        out_specs=pl.BlockSpec((M, D), lambda i: (0, 0)),
        compiler_params=pltpu.CompilerParams(dimension_semantics=("arbitrary",)),
    )(x_buf.reshape(M, cin), p["w_stack"], p["shift"])

    # Row-major reshape (an XLA bitcast): grouped (M, stride*Cout) -> unfolded
    # (N, S*stride, Cout). This IS the next layer's zero-tailed input buffer.
    return out.reshape(N, S * stride, cout), l_out


# ----------------------------------------------------------------------------
# Parameter init + one-time kernel-side layout prep (mirrors WaveRecontructor)
# ----------------------------------------------------------------------------
def init_layer_params(key, cin, cout, k, use_bias):
    kw, kb, kg, kbt, km, kv = jax.random.split(key, 6)
    return dict(
        w=0.1 * jax.random.normal(kw, (cin, cout, k), jnp.float32),
        b=(0.1 * jax.random.normal(kb, (cout,), jnp.float32)
           if use_bias else jnp.zeros((cout,), jnp.float32)),
        gamma=jax.random.uniform(kg, (cout,), jnp.float32, 0.5, 1.5),
        beta=0.1 * jax.random.normal(kbt, (cout,), jnp.float32),
        rmean=0.1 * jax.random.normal(km, (cout,), jnp.float32),
        rvar=jax.random.uniform(kv, (cout,), jnp.float32, 0.5, 1.5),
    )


def prepare_layer(p):
    """Precompute the kernel-side weight layout + folded BN once (was per-forward glue).

    w_stack[j, ci, r*cout + co] = W[ci, co, r + j*stride] * bn_scale[co]   (zero-padded taps)
    shift[r*cout + co]          = (bias[co] - running_mean[co]) * bn_scale[co] + beta[co]
    """
    w, b = p["w"], p["b"]                            # w: (Cin, Cout, K)  (PyTorch layout)
    stride = p["stride"]
    cin, cout, K = w.shape
    jmax = -(-K // stride)                           # taps per stride phase
    kpad = jmax * stride
    w_pad = jnp.pad(w, ((0, 0), (0, 0), (0, kpad - K)))
    w_stack = (w_pad.transpose(2, 0, 1).reshape(jmax, stride, cin, cout)
               .transpose(0, 2, 1, 3).reshape(jmax, cin, stride * cout))
    scale = p["gamma"] / jnp.sqrt(p["rvar"] + BN_EPS)
    shift = (b - p["rmean"]) * scale + p["beta"]
    scale_t = jnp.tile(scale, stride)                # per-lane BN scale over the D lanes
    shift_t = jnp.tile(shift, stride)
    q = dict(p)
    q.update(K=K, cin=cin, cout=cout, jmax=jmax,
             w_stack=(w_stack * scale_t[None, None, :]).astype(jnp.float32),
             shift=shift_t[None, :].astype(jnp.float32))
    return q


def build_wave_reconstructor(key, in_channel, out_channel, kernels, strides, use_bias):
    out_k, out_s, out_p = kernels[0], strides[0], TRANSPOSE_OUTPADS[0]
    hidden_cfg = list(zip(reversed(kernels[1:]),
                          reversed(strides[1:]),
                          reversed(TRANSPOSE_OUTPADS[1:len(kernels)])))
    layers = []
    for i, (k, s, op) in enumerate(hidden_cfg):
        p = init_layer_params(jax.random.fold_in(key, i), in_channel, in_channel, k, use_bias)
        p.update(stride=s, out_pad=op)
        layers.append(prepare_layer(p))
    p = init_layer_params(jax.random.fold_in(key, 1000), in_channel, out_channel, out_k, use_bias)
    p.update(stride=out_s, out_pad=out_p)
    layers.append(prepare_layer(p))
    return layers


def wave_reconstructor_forward(hidden_states, layers):
    x = jnp.transpose(hidden_states, (0, 2, 1))      # NCL -> NLC (the only real transpose)
    l_valid = x.shape[1]
    for p in layers:
        x, l_valid = tconv_bn_layer_pallas(x, l_valid, p)
    x = x[:, :l_valid, :]                            # no-op for this config (already exact)
    return jnp.transpose(x, (0, 2, 1))               # NLC -> NCL (PyTorch output layout)


# ----------------------------------------------------------------------------
# Pure-JAX reference (explicit scatter-add transposed conv) for verification.
# ----------------------------------------------------------------------------
def tconv_bn_layer_ref(x, p):
    w, b = p["w"], p["b"]
    stride, out_pad = p["stride"], p["out_pad"]
    N, L, Cin = x.shape
    _, Cout, K = w.shape
    Lout = (L - 1) * stride + K + out_pad
    out = jnp.zeros((N, Lout, Cout), jnp.float32)
    for k in range(K):
        contrib = jnp.einsum("nlc,cd->nld", x, w[:, :, k],
                             precision=lax.Precision.HIGHEST)
        out = out.at[:, k:k + (L - 1) * stride + 1:stride, :].add(contrib)
    out = out + b[None, None, :]
    scale = p["gamma"] / jnp.sqrt(p["rvar"] + BN_EPS)
    return (out - p["rmean"]) * scale + p["beta"]


def wave_reconstructor_forward_ref(x_ncl, layers):
    x = jnp.transpose(x_ncl, (0, 2, 1))
    for p in layers:
        x = tconv_bn_layer_ref(x, p)
    return jnp.transpose(x, (0, 2, 1))


if __name__ == "__main__":
    in_channel, out_channel = 32, 1
    kernels = [10, 3, 3, 3, 3, 2, 2]
    strides = [5, 2, 2, 2, 2, 2, 2]
    use_bias = True
    N, L = 2, 8

    key = jax.random.PRNGKey(0)
    layers = build_wave_reconstructor(jax.random.fold_in(key, 1),
                                      in_channel, out_channel, kernels, strides, use_bias)
    hidden_states = jax.random.normal(jax.random.fold_in(key, 2),
                                      (N, in_channel, L), jnp.float32)

    fwd = jax.jit(lambda h: wave_reconstructor_forward(h, layers))
    wave = jax.block_until_ready(fwd(hidden_states))

    # correctness check vs. pure-JAX reference
    wave_ref = wave_reconstructor_forward_ref(hidden_states, layers)
    np.testing.assert_allclose(np.asarray(wave), np.asarray(wave_ref),
                               rtol=5e-2, atol=5e-2)

    exp_len = L
    for p in layers:
        exp_len = (exp_len - 1) * p["stride"] + p["w"].shape[2] + p["out_pad"]
    assert wave.shape == (N, out_channel, exp_len), wave.shape

    print("KERNEL_OK")
</pallas_src>

<mosaic_0001>
module attributes {stable_mosaic.version = 11 : i64} {
  func.func @_tconv_bn_kernel(%arg0: i32, %arg1: memref<18x32xf32, #tpu.memory_space<vmem>>, %arg2: memref<1x32x64xf32, #tpu.memory_space<vmem>>, %arg3: memref<1x64xf32, #tpu.memory_space<vmem>>, %arg4: memref<18x64xf32, #tpu.memory_space<vmem>>) attributes {dimension_semantics = [#tpu.dimension_semantics<arbitrary>], iteration_bounds = array<i64: 1>, scalar_prefetch = 0 : i64, scratch_operands = 0 : i64, tpu.core_type = #tpu.core_type<tc>, window_params = [{pipeline_mode = #tpu.pipeline_mode<synchronous>, transform_indices = @transform_0, window_bounds = array<i64: 18, 32>}, {pipeline_mode = #tpu.pipeline_mode<synchronous>, transform_indices = @transform_1, window_bounds = array<i64: 1, 32, 64>}, {pipeline_mode = #tpu.pipeline_mode<synchronous>, transform_indices = @transform_2, window_bounds = array<i64: 1, 64>}, {pipeline_mode = #tpu.pipeline_mode<synchronous>, transform_indices = @transform_3, window_bounds = array<i64: 18, 64>}]} {
    %c0 = arith.constant 0 : index
    %c0_0 = arith.constant 0 : index
    %0 = vector.load %arg1[%c0, %c0_0] : memref<18x32xf32, #tpu.memory_space<vmem>>, vector<18x32xf32>
    %c0_1 = arith.constant 0 : index
    %c0_2 = arith.constant 0 : index
    %c0_3 = arith.constant 0 : index
    %1 = vector.load %arg2[%c0_1, %c0_2, %c0_3] : memref<1x32x64xf32, #tpu.memory_space<vmem>>, vector<1x32x64xf32>
    %2 = vector.shape_cast %1 : vector<1x32x64xf32> to vector<32x64xf32>
    %cst = arith.constant dense<0.000000e+00> : vector<18x64xf32>
    %3 = tpu.matmul %0, %2, %cst {dimension_numbers = #tpu.dot_dimension_numbers<[1], [0], [0], [1], [0, 0, 1, 1], [], []>} : vector<18x32xf32>, vector<32x64xf32>, vector<18x64xf32> -> vector<18x64xf32>
    %c0_4 = arith.constant 0 : index
    %c0_5 = arith.constant 0 : index
    %4 = vector.load %arg3[%c0_4, %c0_5] : memref<1x64xf32, #tpu.memory_space<vmem>>, vector<1x64xf32>
    %5 = vector.broadcast %4 : vector<1x64xf32> to vector<18x64xf32>
    %6 = arith.addf %3, %5 : vector<18x64xf32>
    %c0_6 = arith.constant 0 : index
    %c0_7 = arith.constant 0 : index
    %7 = vector.load %arg4[%c0_6, %c0_7] : memref<18x64xf32, #tpu.memory_space<vmem>>, vector<18x64xf32>
    tpu.vector_store %arg4[%c0_6, %c0_7], %6 {strides = array<i32>} : memref<18x64xf32, #tpu.memory_space<vmem>>, vector<18x64xf32>,
    %8 = tpu.iota {dimensions = array<i32: 1>} : vector<1x64xi32>
    %c32_i32 = arith.constant 32 : i32
    %9 = vector.broadcast %c32_i32 : i32 to vector<1x64xi32>
    %10 = arith.cmpi slt, %8, %9 : vector<1x64xi32>
    %c8 = arith.constant 8 : index
    %c0_8 = arith.constant 0 : index
    %11 = vector.load %arg4[%c8, %c0_8] : memref<18x64xf32, #tpu.memory_space<vmem>>, vector<1x64xf32>
    %cst_9 = arith.constant 0.000000e+00 : f32
    %12 = vector.broadcast %cst_9 : f32 to vector<1x64xf32>
    %13 = arith.select %10, %11, %12 : vector<1x64xi1>, vector<1x64xf32>
    %c8_10 = arith.constant 8 : index
    %c0_11 = arith.constant 0 : index
    %14 = vector.load %arg4[%c8_10, %c0_11] : memref<18x64xf32, #tpu.memory_space<vmem>>, vector<1x64xf32>
    tpu.vector_store %arg4[%c8_10, %c0_11], %13 {strides = array<i32>} : memref<18x64xf32, #tpu.memory_space<vmem>>, vector<1x64xf32>,
    %c17 = arith.constant 17 : index
    %c0_12 = arith.constant 0 : index
    %15 = vector.load %arg4[%c17, %c0_12] : memref<18x64xf32, #tpu.memory_space<vmem>>, vector<1x64xf32>
    %cst_13 = arith.constant 0.000000e+00 : f32
    %16 = vector.broadcast %cst_13 : f32 to vector<1x64xf32>
    %17 = arith.select %10, %15, %16 : vector<1x64xi1>, vector<1x64xf32>
    %c17_14 = arith.constant 17 : index
    %c0_15 = arith.constant 0 : index
    %18 = vector.load %arg4[%c17_14, %c0_15] : memref<18x64xf32, #tpu.memory_space<vmem>>, vector<1x64xf32>
    tpu.vector_store %arg4[%c17_14, %c0_15], %17 {strides = array<i32>} : memref<18x64xf32, #tpu.memory_space<vmem>>, vector<1x64xf32>,
    return
  }
  func.func @transform_0(%arg0: i32) -> (i32, i32) {
    %c0_i32 = arith.constant 0 : i32
    %c0_i32_0 = arith.constant 0 : i32
    %c0_i32_1 = arith.constant 0 : i32
    return %c0_i32, %c0_i32_0 : i32, i32
  }
  func.func @transform_1(%arg0: i32) -> (i32, i32, i32) {
    %c0_i32 = arith.constant 0 : i32
    %c0_i32_0 = arith.constant 0 : i32
    %c0_i32_1 = arith.constant 0 : i32
    %c0_i32_2 = arith.constant 0 : i32
    return %c0_i32, %c0_i32_0, %c0_i32_1 : i32, i32, i32
  }
  func.func @transform_2(%arg0: i32) -> (i32, i32) {
    %c0_i32 = arith.constant 0 : i32
    %c0_i32_0 = arith.constant 0 : i32
    %c0_i32_1 = arith.constant 0 : i32
    return %c0_i32, %c0_i32_0 : i32, i32
  }
  func.func @transform_3(%arg0: i32) -> (i32, i32) {
    %c0_i32 = arith.constant 0 : i32
    %c0_i32_0 = arith.constant 0 : i32
    %c0_i32_1 = arith.constant 0 : i32
    return %c0_i32, %c0_i32_0 : i32, i32
  }
}

module attributes {stable_mosaic.version = 11 : i64} {
  func.func @_tconv_bn_kernel(%arg0: i32, %arg1: memref<36x32xf32, #tpu.memory_space<vmem>>, %arg2: memref<1x32x64xf32, #tpu.memory_space<vmem>>, %arg3: memref<1x64xf32, #tpu.memory_space<vmem>>, %arg4: memref<36x64xf32, #tpu.memory_space<vmem>>) attributes {dimension_semantics = [#tpu.dimension_semantics<arbitrary>], iteration_bounds = array<i64: 1>, scalar_prefetch = 0 : i64, scratch_operands = 0 : i64, tpu.core_type = #tpu.core_type<tc>, window_params = [{pipeline_mode = #tpu.pipeline_mode<synchronous>, transform_indices = @transform_0, window_bounds = array<i64: 36, 32>}, {pipeline_mode = #tpu.pipeline_mode<synchronous>, transform_indices = @transform_1, window_bounds = array<i64: 1, 32, 64>}, {pipeline_mode = #tpu.pipeline_mode<synchronous>, transform_indices = @transform_2, window_bounds = array<i64: 1, 64>}, {pipeline_mode = #tpu.pipeline_mode<synchronous>, transform_indices = @transform_3, window_bounds = array<i64: 36, 64>}]} {
    %c0 = arith.constant 0 : index
    %c0_0 = arith.constant 0 : index
    %0 = vector.load %arg1[%c0, %c0_0] : memref<36x32xf32, #tpu.memory_space<vmem>>, vector<36x32xf32>
    %c0_1 = arith.constant 0 : index
    %c0_2 = arith.constant 0 : index
    %c0_3 = arith.constant 0 : index
    %1 = vector.load %arg2[%c0_1, %c0_2, %c0_3] : memref<1x32x64xf32, #tpu.memory_space<vmem>>, vector<1x32x64xf32>
    %2 = vector.shape_cast %1 : vector<1x32x64xf32> to vector<32x64xf32>
    %cst = arith.constant dense<0.000000e+00> : vector<36x64xf32>
    %3 = tpu.matmul %0, %2, %cst {dimension_numbers = #tpu.dot_dimension_numbers<[1], [0], [0], [1], [0, 0, 1, 1], [], []>} : vector<36x32xf32>, vector<32x64xf32>, vector<36x64xf32> -> vector<36x64xf32>
    %c0_4 = arith.constant 0 : index
    %c0_5 = arith.constant 0 : index
    %4 = vector.load %arg3[%c0_4, %c0_5] : memref<1x64xf32, #tpu.memory_space<vmem>>, vector<1x64xf32>
    %5 = vector.broadcast %4 : vector<1x64xf32> to vector<36x64xf32>
    %6 = arith.addf %3, %5 : vector<36x64xf32>
    %c0_6 = arith.constant 0 : index
    %c0_7 = arith.constant 0 : index
    %7 = vector.load %arg4[%c0_6, %c0_7] : memref<36x64xf32, #tpu.memory_space<vmem>>, vector<36x64xf32>
    tpu.vector_store %arg4[%c0_6, %c0_7], %6 {strides = array<i32>} : memref<36x64xf32, #tpu.memory_space<vmem>>, vector<36x64xf32>,
    %8 = tpu.iota {dimensions = array<i32: 1>} : vector<1x64xi32>
    %c32_i32 = arith.constant 32 : i32
    %9 = vector.broadcast %c32_i32 : i32 to vector<1x64xi32>
    %10 = arith.cmpi slt, %8, %9 : vector<1x64xi32>
    %c17 = arith.constant 17 : index
    %c0_8 = arith.constant 0 : index
    %11 = vector.load %arg4[%c17, %c0_8] : memref<36x64xf32, #tpu.memory_space<vmem>>, vector<1x64xf32>
    %cst_9 = arith.constant 0.000000e+00 : f32
    %12 = vector.broadcast %cst_9 : f32 to vector<1x64xf32>
    %13 = arith.select %10, %11, %12 : vector<1x64xi1>, vector<1x64xf32>
    %c17_10 = arith.constant 17 : index
    %c0_11 = arith.constant 0 : index
    %14 = vector.load %arg4[%c17_10, %c0_11] : memref<36x64xf32, #tpu.memory_space<vmem>>, vector<1x64xf32>
    tpu.vector_store %arg4[%c17_10, %c0_11], %13 {strides = array<i32>} : memref<36x64xf32, #tpu.memory_space<vmem>>, vector<1x64xf32>,
    %c35 = arith.constant 35 : index
    %c0_12 = arith.constant 0 : index
    %15 = vector.load %arg4[%c35, %c0_12] : memref<36x64xf32, #tpu.memory_space<vmem>>, vector<1x64xf32>
    %cst_13 = arith.constant 0.000000e+00 : f32
    %16 = vector.broadcast %cst_13 : f32 to vector<1x64xf32>
    %17 = arith.select %10, %15, %16 : vector<1x64xi1>, vector<1x64xf32>
    %c35_14 = arith.constant 35 : index
    %c0_15 = arith.constant 0 : index
    %18 = vector.load %arg4[%c35_14, %c0_15] : memref<36x64xf32, #tpu.memory_space<vmem>>, vector<1x64xf32>
    tpu.vector_store %arg4[%c35_14, %c0_15], %17 {strides = array<i32>} : memref<36x64xf32, #tpu.memory_space<vmem>>, vector<1x64xf32>,
    return
  }
  func.func @transform_0(%arg0: i32) -> (i32, i32) {
    %c0_i32 = arith.constant 0 : i32
    %c0_i32_0 = arith.constant 0 : i32
    %c0_i32_1 = arith.constant 0 : i32
    return %c0_i32, %c0_i32_0 : i32, i32
  }
  func.func @transform_1(%arg0: i32) -> (i32, i32, i32) {
    %c0_i32 = arith.constant 0 : i32
    %c0_i32_0 = arith.constant 0 : i32
    %c0_i32_1 = arith.constant 0 : i32
    %c0_i32_2 = arith.constant 0 : i32
    return %c0_i32, %c0_i32_0, %c0_i32_1 : i32, i32, i32
  }
  func.func @transform_2(%arg0: i32) -> (i32, i32) {
    %c0_i32 = arith.constant 0 : i32
    %c0_i32_0 = arith.constant 0 : i32
    %c0_i32_1 = arith.constant 0 : i32
    return %c0_i32, %c0_i32_0 : i32, i32
  }
  func.func @transform_3(%arg0: i32) -> (i32, i32) {
    %c0_i32 = arith.constant 0 : i32
    %c0_i32_0 = arith.constant 0 : i32
    %c0_i32_1 = arith.constant 0 : i32
    return %c0_i32, %c0_i32_0 : i32, i32
  }
}

module attributes {stable_mosaic.version = 11 : i64} {
  func.func @_tconv_bn_kernel(%arg0: i32, %arg1: memref<72x32xf32, #tpu.memory_space<vmem>>, %arg2: memref<2x32x64xf32, #tpu.memory_space<vmem>>, %arg3: memref<1x64xf32, #tpu.memory_space<vmem>>, %arg4: memref<72x64xf32, #tpu.memory_space<vmem>>) attributes {dimension_semantics = [#tpu.dimension_semantics<arbitrary>], iteration_bounds = array<i64: 1>, scalar_prefetch = 0 : i64, scratch_operands = 0 : i64, tpu.core_type = #tpu.core_type<tc>, window_params = [{pipeline_mode = #tpu.pipeline_mode<synchronous>, transform_indices = @transform_0, window_bounds = array<i64: 72, 32>}, {pipeline_mode = #tpu.pipeline_mode<synchronous>, transform_indices = @transform_1, window_bounds = array<i64: 2, 32, 64>}, {pipeline_mode = #tpu.pipeline_mode<synchronous>, transform_indices = @transform_2, window_bounds = array<i64: 1, 64>}, {pipeline_mode = #tpu.pipeline_mode<synchronous>, transform_indices = @transform_3, window_bounds = array<i64: 72, 64>}]} {
    %c0 = arith.constant 0 : index
    %c0_0 = arith.constant 0 : index
    %0 = vector.load %arg1[%c0, %c0_0] : memref<72x32xf32, #tpu.memory_space<vmem>>, vector<71x32xf32>
    %c1 = arith.constant 1 : index
    %c0_1 = arith.constant 0 : index
    %c0_2 = arith.constant 0 : index
    %1 = vector.load %arg2[%c1, %c0_1, %c0_2] : memref<2x32x64xf32, #tpu.memory_space<vmem>>, vector<1x32x64xf32>
    %2 = vector.shape_cast %1 : vector<1x32x64xf32> to vector<32x64xf32>
    %cst = arith.constant dense<0.000000e+00> : vector<71x64xf32>
    %3 = tpu.matmul %0, %2, %cst {dimension_numbers = #tpu.dot_dimension_numbers<[1], [0], [0], [1], [0, 0, 1, 1], [], []>} : vector<71x32xf32>, vector<32x64xf32>, vector<71x64xf32> -> vector<71x64xf32>
    %c1_3 = arith.constant 1 : index
    %c0_4 = arith.constant 0 : index
    %4 = vector.load %arg4[%c1_3, %c0_4] : memref<72x64xf32, #tpu.memory_space<vmem>>, vector<71x64xf32>
    tpu.vector_store %arg4[%c1_3, %c0_4], %3 {strides = array<i32>} : memref<72x64xf32, #tpu.memory_space<vmem>>, vector<71x64xf32>,
    %cst_5 = arith.constant 0.000000e+00 : f32
    %5 = vector.broadcast %cst_5 : f32 to vector<1x64xf32>
    %c0_6 = arith.constant 0 : index
    %c0_7 = arith.constant 0 : index
    %6 = vector.load %arg4[%c0_6, %c0_7] : memref<72x64xf32, #tpu.memory_space<vmem>>, vector<1x64xf32>
    tpu.vector_store %arg4[%c0_6, %c0_7], %5 {strides = array<i32>} : memref<72x64xf32, #tpu.memory_space<vmem>>, vector<1x64xf32>,
    %c0_8 = arith.constant 0 : index
    %c0_9 = arith.constant 0 : index
    %7 = vector.load %arg4[%c0_8, %c0_9] : memref<72x64xf32, #tpu.memory_space<vmem>>, vector<72x64xf32>
    %c0_10 = arith.constant 0 : index
    %c0_11 = arith.constant 0 : index
    %8 = vector.load %arg1[%c0_10, %c0_11] : memref<72x32xf32, #tpu.memory_space<vmem>>, vector<72x32xf32>
    %c0_12 = arith.constant 0 : index
    %c0_13 = arith.constant 0 : index
    %c0_14 = arith.constant 0 : index
    %9 = vector.load %arg2[%c0_12, %c0_13, %c0_14] : memref<2x32x64xf32, #tpu.memory_space<vmem>>, vector<1x32x64xf32>
    %10 = vector.shape_cast %9 : vector<1x32x64xf32> to vector<32x64xf32>
    %cst_15 = arith.constant dense<0.000000e+00> : vector<72x64xf32>
    %11 = tpu.matmul %8, %10, %cst_15 {dimension_numbers = #tpu.dot_dimension_numbers<[1], [0], [0], [1], [0, 0, 1, 1], [], []>} : vector<72x32xf32>, vector<32x64xf32>, vector<72x64xf32> -> vector<72x64xf32>
    %12 = arith.addf %7, %11 : vector<72x64xf32>
    %c0_16 = arith.constant 0 : index
    %c0_17 = arith.constant 0 : index
    %13 = vector.load %arg3[%c0_16, %c0_17] : memref<1x64xf32, #tpu.memory_space<vmem>>, vector<1x64xf32>
    %14 = vector.broadcast %13 : vector<1x64xf32> to vector<72x64xf32>
    %15 = arith.addf %12, %14 : vector<72x64xf32>
    %c0_18 = arith.constant 0 : index
    %c0_19 = arith.constant 0 : index
    %16 = vector.load %arg4[%c0_18, %c0_19] : memref<72x64xf32, #tpu.memory_space<vmem>>, vector<72x64xf32>
    tpu.vector_store %arg4[%c0_18, %c0_19], %15 {strides = array<i32>} : memref<72x64xf32, #tpu.memory_space<vmem>>, vector<72x64xf32>,
    %17 = tpu.iota {dimensions = array<i32: 1>} : vector<1x64xi32>
    %c32_i32 = arith.constant 32 : i32
    %18 = vector.broadcast %c32_i32 : i32 to vector<1x64xi32>
    %19 = arith.cmpi slt, %17, %18 : vector<1x64xi32>
    %c35 = arith.constant 35 : index
    %c0_20 = arith.constant 0 : index
    %20 = vector.load %arg4[%c35, %c0_20] : memref<72x64xf32, #tpu.memory_space<vmem>>, vector<1x64xf32>
    %cst_21 = arith.constant 0.000000e+00 : f32
    %21 = vector.broadcast %cst_21 : f32 to vector<1x64xf32>
    %22 = arith.select %19, %20, %21 : vector<1x64xi1>, vector<1x64xf32>
    %c35_22 = arith.constant 35 : index
    %c0_23 = arith.constant 0 : index
    %23 = vector.load %arg4[%c35_22, %c0_23] : memref<72x64xf32, #tpu.memory_space<vmem>>, vector<1x64xf32>
    tpu.vector_store %arg4[%c35_22, %c0_23], %22 {strides = array<i32>} : memref<72x64xf32, #tpu.memory_space<vmem>>, vector<1x64xf32>,
    %c71 = arith.constant 71 : index
    %c0_24 = arith.constant 0 : index
    %24 = vector.load %arg4[%c71, %c0_24] : memref<72x64xf32, #tpu.memory_space<vmem>>, vector<1x64xf32>
    %cst_25 = arith.constant 0.000000e+00 : f32
    %25 = vector.broadcast %cst_25 : f32 to vector<1x64xf32>
    %26 = arith.select %19, %24, %25 : vector<1x64xi1>, vector<1x64xf32>
    %c71_26 = arith.constant 71 : index
    %c0_27 = arith.constant 0 : index
    %27 = vector.load %arg4[%c71_26, %c0_27] : memref<72x64xf32, #tpu.memory_space<vmem>>, vector<1x64xf32>
    tpu.vector_store %arg4[%c71_26, %c0_27], %26 {strides = array<i32>} : memref<72x64xf32, #tpu.memory_space<vmem>>, vector<1x64xf32>,
    return
  }
  func.func @transform_0(%arg0: i32) -> (i32, i32) {
    %c0_i32 = arith.constant 0 : i32
    %c0_i32_0 = arith.constant 0 : i32
    %c0_i32_1 = arith.constant 0 : i32
    return %c0_i32, %c0_i32_0 : i32, i32
  }
  func.func @transform_1(%arg0: i32) -> (i32, i32, i32) {
    %c0_i32 = arith.constant 0 : i32
    %c0_i32_0 = arith.constant 0 : i32
    %c0_i32_1 = arith.constant 0 : i32
    %c0_i32_2 = arith.constant 0 : i32
    return %c0_i32, %c0_i32_0, %c0_i32_1 : i32, i32, i32
  }
  func.func @transform_2(%arg0: i32) -> (i32, i32) {
    %c0_i32 = arith.constant 0 : i32
    %c0_i32_0 = arith.constant 0 : i32
    %c0_i32_1 = arith.constant 0 : i32
    return %c0_i32, %c0_i32_0 : i32, i32
  }
  func.func @transform_3(%arg0: i32) -> (i32, i32) {
    %c0_i32 = arith.constant 0 : i32
    %c0_i32_0 = arith.constant 0 : i32
    %c0_i32_1 = arith.constant 0 : i32
    return %c0_i32, %c0_i32_0 : i32, i32
  }
}

module attributes {stable_mosaic.version = 11 : i64} {
  func.func @_tconv_bn_kernel(%arg0: i32, %arg1: memref<144x32xf32, #tpu.memory_space<vmem>>, %arg2: memref<2x32x64xf32, #tpu.memory_space<vmem>>, %arg3: memref<1x64xf32, #tpu.memory_space<vmem>>, %arg4: memref<144x64xf32, #tpu.memory_space<vmem>>) attributes {dimension_semantics = [#tpu.dimension_semantics<arbitrary>], iteration_bounds = array<i64: 1>, scalar_prefetch = 0 : i64, scratch_operands = 0 : i64, tpu.core_type = #tpu.core_type<tc>, window_params = [{pipeline_mode = #tpu.pipeline_mode<synchronous>, transform_indices = @transform_0, window_bounds = array<i64: 144, 32>}, {pipeline_mode = #tpu.pipeline_mode<synchronous>, transform_indices = @transform_1, window_bounds = array<i64: 2, 32, 64>}, {pipeline_mode = #tpu.pipeline_mode<synchronous>, transform_indices = @transform_2, window_bounds = array<i64: 1, 64>}, {pipeline_mode = #tpu.pipeline_mode<synchronous>, transform_indices = @transform_3, window_bounds = array<i64: 144, 64>}]} {
    %c0 = arith.constant 0 : index
    %c0_0 = arith.constant 0 : index
    %0 = vector.load %arg1[%c0, %c0_0] : memref<144x32xf32, #tpu.memory_space<vmem>>, vector<143x32xf32>
    %c1 = arith.constant 1 : index
    %c0_1 = arith.constant 0 : index
    %c0_2 = arith.constant 0 : index
    %1 = vector.load %arg2[%c1, %c0_1, %c0_2] : memref<2x32x64xf32, #tpu.memory_space<vmem>>, vector<1x32x64xf32>
    %2 = vector.shape_cast %1 : vector<1x32x64xf32> to vector<32x64xf32>
    %cst = arith.constant dense<0.000000e+00> : vector<143x64xf32>
    %3 = tpu.matmul %0, %2, %cst {dimension_numbers = #tpu.dot_dimension_numbers<[1], [0], [0], [1], [0, 0, 1, 1], [], []>} : vector<143x32xf32>, vector<32x64xf32>, vector<143x64xf32> -> vector<143x64xf32>
    %c1_3 = arith.constant 1 : index
    %c0_4 = arith.constant 0 : index
    %4 = vector.load %arg4[%c1_3, %c0_4] : memref<144x64xf32, #tpu.memory_space<vmem>>, vector<143x64xf32>
    tpu.vector_store %arg4[%c1_3, %c0_4], %3 {strides = array<i32>} : memref<144x64xf32, #tpu.memory_space<vmem>>, vector<143x64xf32>,
    %cst_5 = arith.constant 0.000000e+00 : f32
    %5 = vector.broadcast %cst_5 : f32 to vector<1x64xf32>
    %c0_6 = arith.constant 0 : index
    %c0_7 = arith.constant 0 : index
    %6 = vector.load %arg4[%c0_6, %c0_7] : memref<144x64xf32, #tpu.memory_space<vmem>>, vector<1x64xf32>
    tpu.vector_store %arg4[%c0_6, %c0_7], %5 {strides = array<i32>} : memref<144x64xf32, #tpu.memory_space<vmem>>, vector<1x64xf32>,
    %c0_8 = arith.constant 0 : index
    %c0_9 = arith.constant 0 : index
    %7 = vector.load %arg4[%c0_8, %c0_9] : memref<144x64xf32, #tpu.memory_space<vmem>>, vector<144x64xf32>
    %c0_10 = arith.constant 0 : index
    %c0_11 = arith.constant 0 : index
    %8 = vector.load %arg1[%c0_10, %c0_11] : memref<144x32xf32, #tpu.memory_space<vmem>>, vector<144x32xf32>
    %c0_12 = arith.constant 0 : index
    %c0_13 = arith.constant 0 : index
    %c0_14 = arith.constant 0 : index
    %9 = vector.load %arg2[%c0_12, %c0_13, %c0_14] : memref<2x32x64xf32, #tpu.memory_space<vmem>>, vector<1x32x64xf32>
    %10 = vector.shape_cast %9 : vector<1x32x64xf32> to vector<32x64xf32>
    %cst_15 = arith.constant dense<0.000000e+00> : vector<144x64xf32>
    %11 = tpu.matmul %8, %10, %cst_15 {dimension_numbers = #tpu.dot_dimension_numbers<[1], [0], [0], [1], [0, 0, 1, 1], [], []>} : vector<144x32xf32>, vector<32x64xf32>, vector<144x64xf32> -> vector<144x64xf32>
    %12 = arith.addf %7, %11 : vector<144x64xf32>
    %c0_16 = arith.constant 0 : index
    %c0_17 = arith.constant 0 : index
    %13 = vector.load %arg3[%c0_16, %c0_17] : memref<1x64xf32, #tpu.memory_space<vmem>>, vector<1x64xf32>
    %14 = vector.broadcast %13 : vector<1x64xf32> to vector<144x64xf32>
    %15 = arith.addf %12, %14 : vector<144x64xf32>
    %c0_18 = arith.constant 0 : index
    %c0_19 = arith.constant 0 : index
    %16 = vector.load %arg4[%c0_18, %c0_19] : memref<144x64xf32, #tpu.memory_space<vmem>>, vector<144x64xf32>
    tpu.vector_store %arg4[%c0_18, %c0_19], %15 {strides = array<i32>} : memref<144x64xf32, #tpu.memory_space<vmem>>, vector<144x64xf32>,
    %17 = tpu.iota {dimensions = array<i32: 1>} : vector<1x64xi32>
    %c32_i32 = arith.constant 32 : i32
    %18 = vector.broadcast %c32_i32 : i32 to vector<1x64xi32>
    %19 = arith.cmpi slt, %17, %18 : vector<1x64xi32>
    %c71 = arith.constant 71 : index
    %c0_20 = arith.constant 0 : index
    %20 = vector.load %arg4[%c71, %c0_20] : memref<144x64xf32, #tpu.memory_space<vmem>>, vector<1x64xf32>
    %cst_21 = arith.constant 0.000000e+00 : f32
    %21 = vector.broadcast %cst_21 : f32 to vector<1x64xf32>
    %22 = arith.select %19, %20, %21 : vector<1x64xi1>, vector<1x64xf32>
    %c71_22 = arith.constant 71 : index
    %c0_23 = arith.constant 0 : index
    %23 = vector.load %arg4[%c71_22, %c0_23] : memref<144x64xf32, #tpu.memory_space<vmem>>, vector<1x64xf32>
    tpu.vector_store %arg4[%c71_22, %c0_23], %22 {strides = array<i32>} : memref<144x64xf32, #tpu.memory_space<vmem>>, vector<1x64xf32>,
    %c143 = arith.constant 143 : index
    %c0_24 = arith.constant 0 : index
    %24 = vector.load %arg4[%c143, %c0_24] : memref<144x64xf32, #tpu.memory_space<vmem>>, vector<1x64xf32>
    %cst_25 = arith.constant 0.000000e+00 : f32
    %25 = vector.broadcast %cst_25 : f32 to vector<1x64xf32>
    %26 = arith.select %19, %24, %25 : vector<1x64xi1>, vector<1x64xf32>
    %c143_26 = arith.constant 143 : index
    %c0_27 = arith.constant 0 : index
    %27 = vector.load %arg4[%c143_26, %c0_27] : memref<144x64xf32, #tpu.memory_space<vmem>>, vector<1x64xf32>
    tpu.vector_store %arg4[%c143_26, %c0_27], %26 {strides = array<i32>} : memref<144x64xf32, #tpu.memory_space<vmem>>, vector<1x64xf32>,
    return
  }
  func.func @transform_0(%arg0: i32) -> (i32, i32) {
    %c0_i32 = arith.constant 0 : i32
    %c0_i32_0 = arith.constant 0 : i32
    %c0_i32_1 = arith.constant 0 : i32
    return %c0_i32, %c0_i32_0 : i32, i32
  }
  func.func @transform_1(%arg0: i32) -> (i32, i32, i32) {
    %c0_i32 = arith.constant 0 : i32
    %c0_i32_0 = arith.constant 0 : i32
    %c0_i32_1 = arith.constant 0 : i32
    %c0_i32_2 = arith.constant 0 : i32
    return %c0_i32, %c0_i32_0, %c0_i32_1 : i32, i32, i32
  }
  func.func @transform_2(%arg0: i32) -> (i32, i32) {
    %c0_i32 = arith.constant 0 : i32
    %c0_i32_0 = arith.constant 0 : i32
    %c0_i32_1 = arith.constant 0 : i32
    return %c0_i32, %c0_i32_0 : i32, i32
  }
  func.func @transform_3(%arg0: i32) -> (i32, i32) {
    %c0_i32 = arith.constant 0 : i32
    %c0_i32_0 = arith.constant 0 : i32
    %c0_i32_1 = arith.constant 0 : i32
    return %c0_i32, %c0_i32_0 : i32, i32
  }
}

module attributes {stable_mosaic.version = 11 : i64} {
  func.func @_tconv_bn_kernel(%arg0: i32, %arg1: memref<288x32xf32, #tpu.memory_space<vmem>>, %arg2: memref<2x32x64xf32, #tpu.memory_space<vmem>>, %arg3: memref<1x64xf32, #tpu.memory_space<vmem>>, %arg4: memref<288x64xf32, #tpu.memory_space<vmem>>) attributes {dimension_semantics = [#tpu.dimension_semantics<arbitrary>], iteration_bounds = array<i64: 1>, scalar_prefetch = 0 : i64, scratch_operands = 0 : i64, tpu.core_type = #tpu.core_type<tc>, window_params = [{pipeline_mode = #tpu.pipeline_mode<synchronous>, transform_indices = @transform_0, window_bounds = array<i64: 288, 32>}, {pipeline_mode = #tpu.pipeline_mode<synchronous>, transform_indices = @transform_1, window_bounds = array<i64: 2, 32, 64>}, {pipeline_mode = #tpu.pipeline_mode<synchronous>, transform_indices = @transform_2, window_bounds = array<i64: 1, 64>}, {pipeline_mode = #tpu.pipeline_mode<synchronous>, transform_indices = @transform_3, window_bounds = array<i64: 288, 64>}]} {
    %c0 = arith.constant 0 : index
    %c0_0 = arith.constant 0 : index
    %0 = vector.load %arg1[%c0, %c0_0] : memref<288x32xf32, #tpu.memory_space<vmem>>, vector<287x32xf32>
    %c1 = arith.constant 1 : index
    %c0_1 = arith.constant 0 : index
    %c0_2 = arith.constant 0 : index
    %1 = vector.load %arg2[%c1, %c0_1, %c0_2] : memref<2x32x64xf32, #tpu.memory_space<vmem>>, vector<1x32x64xf32>
    %2 = vector.shape_cast %1 : vector<1x32x64xf32> to vector<32x64xf32>
    %cst = arith.constant dense<0.000000e+00> : vector<287x64xf32>
    %3 = tpu.matmul %0, %2, %cst {dimension_numbers = #tpu.dot_dimension_numbers<[1], [0], [0], [1], [0, 0, 1, 1], [], []>} : vector<287x32xf32>, vector<32x64xf32>, vector<287x64xf32> -> vector<287x64xf32>
    %c1_3 = arith.constant 1 : index
    %c0_4 = arith.constant 0 : index
    %4 = vector.load %arg4[%c1_3, %c0_4] : memref<288x64xf32, #tpu.memory_space<vmem>>, vector<287x64xf32>
    tpu.vector_store %arg4[%c1_3, %c0_4], %3 {strides = array<i32>} : memref<288x64xf32, #tpu.memory_space<vmem>>, vector<287x64xf32>,
    %cst_5 = arith.constant 0.000000e+00 : f32
    %5 = vector.broadcast %cst_5 : f32 to vector<1x64xf32>
    %c0_6 = arith.constant 0 : index
    %c0_7 = arith.constant 0 : index
    %6 = vector.load %arg4[%c0_6, %c0_7] : memref<288x64xf32, #tpu.memory_space<vmem>>, vector<1x64xf32>
    tpu.vector_store %arg4[%c0_6, %c0_7], %5 {strides = array<i32>} : memref<288x64xf32, #tpu.memory_space<vmem>>, vector<1x64xf32>,
    %c0_8 = arith.constant 0 : index
    %c0_9 = arith.constant 0 : index
    %7 = vector.load %arg4[%c0_8, %c0_9] : memref<288x64xf32, #tpu.memory_space<vmem>>, vector<288x64xf32>
    %c0_10 = arith.constant 0 : index
    %c0_11 = arith.constant 0 : index
    %8 = vector.load %arg1[%c0_10, %c0_11] : memref<288x32xf32, #tpu.memory_space<vmem>>, vector<288x32xf32>
    %c0_12 = arith.constant 0 : index
    %c0_13 = arith.constant 0 : index
    %c0_14 = arith.constant 0 : index
    %9 = vector.load %arg2[%c0_12, %c0_13, %c0_14] : memref<2x32x64xf32, #tpu.memory_space<vmem>>, vector<1x32x64xf32>
    %10 = vector.shape_cast %9 : vector<1x32x64xf32> to vector<32x64xf32>
    %cst_15 = arith.constant dense<0.000000e+00> : vector<288x64xf32>
    %11 = tpu.matmul %8, %10, %cst_15 {dimension_numbers = #tpu.dot_dimension_numbers<[1], [0], [0], [1], [0, 0, 1, 1], [], []>} : vector<288x32xf32>, vector<32x64xf32>, vector<288x64xf32> -> vector<288x64xf32>
    %12 = arith.addf %7, %11 : vector<288x64xf32>
    %c0_16 = arith.constant 0 : index
    %c0_17 = arith.constant 0 : index
    %13 = vector.load %arg3[%c0_16, %c0_17] : memref<1x64xf32, #tpu.memory_space<vmem>>, vector<1x64xf32>
    %14 = vector.broadcast %13 : vector<1x64xf32> to vector<288x64xf32>
    %15 = arith.addf %12, %14 : vector<288x64xf32>
    %c0_18 = arith.constant 0 : index
    %c0_19 = arith.constant 0 : index
    %16 = vector.load %arg4[%c0_18, %c0_19] : memref<288x64xf32, #tpu.memory_space<vmem>>, vector<288x64xf32>
    tpu.vector_store %arg4[%c0_18, %c0_19], %15 {strides = array<i32>} : memref<288x64xf32, #tpu.memory_space<vmem>>, vector<288x64xf32>,
    %17 = tpu.iota {dimensions = array<i32: 1>} : vector<1x64xi32>
    %c32_i32 = arith.constant 32 : i32
    %18 = vector.broadcast %c32_i32 : i32 to vector<1x64xi32>
    %19 = arith.cmpi slt, %17, %18 : vector<1x64xi32>
    %c143 = arith.constant 143 : index
    %c0_20 = arith.constant 0 : index
    %20 = vector.load %arg4[%c143, %c0_20] : memref<288x64xf32, #tpu.memory_space<vmem>>, vector<1x64xf32>
    %cst_21 = arith.constant 0.000000e+00 : f32
    %21 = vector.broadcast %cst_21 : f32 to vector<1x64xf32>
    %22 = arith.select %19, %20, %21 : vector<1x64xi1>, vector<1x64xf32>
    %c143_22 = arith.constant 143 : index
    %c0_23 = arith.constant 0 : index
    %23 = vector.load %arg4[%c143_22, %c0_23] : memref<288x64xf32, #tpu.memory_space<vmem>>, vector<1x64xf32>
    tpu.vector_store %arg4[%c143_22, %c0_23], %22 {strides = array<i32>} : memref<288x64xf32, #tpu.memory_space<vmem>>, vector<1x64xf32>,
    %c287 = arith.constant 287 : index
    %c0_24 = arith.constant 0 : index
    %24 = vector.load %arg4[%c287, %c0_24] : memref<288x64xf32, #tpu.memory_space<vmem>>, vector<1x64xf32>
    %cst_25 = arith.constant 0.000000e+00 : f32
    %25 = vector.broadcast %cst_25 : f32 to vector<1x64xf32>
    %26 = arith.select %19, %24, %25 : vector<1x64xi1>, vector<1x64xf32>
    %c287_26 = arith.constant 287 : index
    %c0_27 = arith.constant 0 : index
    %27 = vector.load %arg4[%c287_26, %c0_27] : memref<288x64xf32, #tpu.memory_space<vmem>>, vector<1x64xf32>
    tpu.vector_store %arg4[%c287_26, %c0_27], %26 {strides = array<i32>} : memref<288x64xf32, #tpu.memory_space<vmem>>, vector<1x64xf32>,
    return
  }
  func.func @transform_0(%arg0: i32) -> (i32, i32) {
    %c0_i32 = arith.constant 0 : i32
    %c0_i32_0 = arith.constant 0 : i32
    %c0_i32_1 = arith.constant 0 : i32
    return %c0_i32, %c0_i32_0 : i32, i32
  }
  func.func @transform_1(%arg0: i32) -> (i32, i32, i32) {
    %c0_i32 = arith.constant 0 : i32
    %c0_i32_0 = arith.constant 0 : i32
    %c0_i32_1 = arith.constant 0 : i32
    %c0_i32_2 = arith.constant 0 : i32
    return %c0_i32, %c0_i32_0, %c0_i32_1 : i32, i32, i32
  }
  func.func @transform_2(%arg0: i32) -> (i32, i32) {
    %c0_i32 = arith.constant 0 : i32
    %c0_i32_0 = arith.constant 0 : i32
    %c0_i32_1 = arith.constant 0 : i32
    return %c0_i32, %c0_i32_0 : i32, i32
  }
  func.func @transform_3(%arg0: i32) -> (i32, i32) {
    %c0_i32 = arith.constant 0 : i32
    %c0_i32_0 = arith.constant 0 : i32
    %c0_i32_1 = arith.constant 0 : i32
    return %c0_i32, %c0_i32_0 : i32, i32
  }
}

module attributes {stable_mosaic.version = 11 : i64} {
  func.func @_tconv_bn_kernel(%arg0: i32, %arg1: memref<576x32xf32, #tpu.memory_space<vmem>>, %arg2: memref<2x32x64xf32, #tpu.memory_space<vmem>>, %arg3: memref<1x64xf32, #tpu.memory_space<vmem>>, %arg4: memref<576x64xf32, #tpu.memory_space<vmem>>) attributes {dimension_semantics = [#tpu.dimension_semantics<arbitrary>], iteration_bounds = array<i64: 1>, scalar_prefetch = 0 : i64, scratch_operands = 0 : i64, tpu.core_type = #tpu.core_type<tc>, window_params = [{pipeline_mode = #tpu.pipeline_mode<synchronous>, transform_indices = @transform_0, window_bounds = array<i64: 576, 32>}, {pipeline_mode = #tpu.pipeline_mode<synchronous>, transform_indices = @transform_1, window_bounds = array<i64: 2, 32, 64>}, {pipeline_mode = #tpu.pipeline_mode<synchronous>, transform_indices = @transform_2, window_bounds = array<i64: 1, 64>}, {pipeline_mode = #tpu.pipeline_mode<synchronous>, transform_indices = @transform_3, window_bounds = array<i64: 576, 64>}]} {
    %c0 = arith.constant 0 : index
    %c0_0 = arith.constant 0 : index
    %0 = vector.load %arg1[%c0, %c0_0] : memref<576x32xf32, #tpu.memory_space<vmem>>, vector<575x32xf32>
    %c1 = arith.constant 1 : index
    %c0_1 = arith.constant 0 : index
    %c0_2 = arith.constant 0 : index
    %1 = vector.load %arg2[%c1, %c0_1, %c0_2] : memref<2x32x64xf32, #tpu.memory_space<vmem>>, vector<1x32x64xf32>
    %2 = vector.shape_cast %1 : vector<1x32x64xf32> to vector<32x64xf32>
    %cst = arith.constant dense<0.000000e+00> : vector<575x64xf32>
    %3 = tpu.matmul %0, %2, %cst {dimension_numbers = #tpu.dot_dimension_numbers<[1], [0], [0], [1], [0, 0, 1, 1], [], []>} : vector<575x32xf32>, vector<32x64xf32>, vector<575x64xf32> -> vector<575x64xf32>
    %c1_3 = arith.constant 1 : index
    %c0_4 = arith.constant 0 : index
    %4 = vector.load %arg4[%c1_3, %c0_4] : memref<576x64xf32, #tpu.memory_space<vmem>>, vector<575x64xf32>
    tpu.vector_store %arg4[%c1_3, %c0_4], %3 {strides = array<i32>} : memref<576x64xf32, #tpu.memory_space<vmem>>, vector<575x64xf32>,
    %cst_5 = arith.constant 0.000000e+00 : f32
    %5 = vector.broadcast %cst_5 : f32 to vector<1x64xf32>
    %c0_6 = arith.constant 0 : index
    %c0_7 = arith.constant 0 : index
    %6 = vector.load %arg4[%c0_6, %c0_7] : memref<576x64xf32, #tpu.memory_space<vmem>>, vector<1x64xf32>
    tpu.vector_store %arg4[%c0_6, %c0_7], %5 {strides = array<i32>} : memref<576x64xf32, #tpu.memory_space<vmem>>, vector<1x64xf32>,
    %c0_8 = arith.constant 0 : index
    %c0_9 = arith.constant 0 : index
    %7 = vector.load %arg4[%c0_8, %c0_9] : memref<576x64xf32, #tpu.memory_space<vmem>>, vector<576x64xf32>
    %c0_10 = arith.constant 0 : index
    %c0_11 = arith.constant 0 : index
    %8 = vector.load %arg1[%c0_10, %c0_11] : memref<576x32xf32, #tpu.memory_space<vmem>>, vector<576x32xf32>
    %c0_12 = arith.constant 0 : index
    %c0_13 = arith.constant 0 : index
    %c0_14 = arith.constant 0 : index
    %9 = vector.load %arg2[%c0_12, %c0_13, %c0_14] : memref<2x32x64xf32, #tpu.memory_space<vmem>>, vector<1x32x64xf32>
    %10 = vector.shape_cast %9 : vector<1x32x64xf32> to vector<32x64xf32>
    %cst_15 = arith.constant dense<0.000000e+00> : vector<576x64xf32>
    %11 = tpu.matmul %8, %10, %cst_15 {dimension_numbers = #tpu.dot_dimension_numbers<[1], [0], [0], [1], [0, 0, 1, 1], [], []>} : vector<576x32xf32>, vector<32x64xf32>, vector<576x64xf32> -> vector<576x64xf32>
    %12 = arith.addf %7, %11 : vector<576x64xf32>
    %c0_16 = arith.constant 0 : index
    %c0_17 = arith.constant 0 : index
    %13 = vector.load %arg3[%c0_16, %c0_17] : memref<1x64xf32, #tpu.memory_space<vmem>>, vector<1x64xf32>
    %14 = vector.broadcast %13 : vector<1x64xf32> to vector<576x64xf32>
    %15 = arith.addf %12, %14 : vector<576x64xf32>
    %c0_18 = arith.constant 0 : index
    %c0_19 = arith.constant 0 : index
    %16 = vector.load %arg4[%c0_18, %c0_19] : memref<576x64xf32, #tpu.memory_space<vmem>>, vector<576x64xf32>
    tpu.vector_store %arg4[%c0_18, %c0_19], %15 {strides = array<i32>} : memref<576x64xf32, #tpu.memory_space<vmem>>, vector<576x64xf32>,
    %17 = tpu.iota {dimensions = array<i32: 1>} : vector<1x64xi32>
    %c32_i32 = arith.constant 32 : i32
    %18 = vector.broadcast %c32_i32 : i32 to vector<1x64xi32>
    %19 = arith.cmpi slt, %17, %18 : vector<1x64xi32>
    %c287 = arith.constant 287 : index
    %c0_20 = arith.constant 0 : index
    %20 = vector.load %arg4[%c287, %c0_20] : memref<576x64xf32, #tpu.memory_space<vmem>>, vector<1x64xf32>
    %cst_21 = arith.constant 0.000000e+00 : f32
    %21 = vector.broadcast %cst_21 : f32 to vector<1x64xf32>
    %22 = arith.select %19, %20, %21 : vector<1x64xi1>, vector<1x64xf32>
    %c287_22 = arith.constant 287 : index
    %c0_23 = arith.constant 0 : index
    %23 = vector.load %arg4[%c287_22, %c0_23] : memref<576x64xf32, #tpu.memory_space<vmem>>, vector<1x64xf32>
    tpu.vector_store %arg4[%c287_22, %c0_23], %22 {strides = array<i32>} : memref<576x64xf32, #tpu.memory_space<vmem>>, vector<1x64xf32>,
    %c575 = arith.constant 575 : index
    %c0_24 = arith.constant 0 : index
    %24 = vector.load %arg4[%c575, %c0_24] : memref<576x64xf32, #tpu.memory_space<vmem>>, vector<1x64xf32>
    %cst_25 = arith.constant 0.000000e+00 : f32
    %25 = vector.broadcast %cst_25 : f32 to vector<1x64xf32>
    %26 = arith.select %19, %24, %25 : vector<1x64xi1>, vector<1x64xf32>
    %c575_26 = arith.constant 575 : index
    %c0_27 = arith.constant 0 : index
    %27 = vector.load %arg4[%c575_26, %c0_27] : memref<576x64xf32, #tpu.memory_space<vmem>>, vector<1x64xf32>
    tpu.vector_store %arg4[%c575_26, %c0_27], %26 {strides = array<i32>} : memref<576x64xf32, #tpu.memory_space<vmem>>, vector<1x64xf32>,
    return
  }
  func.func @transform_0(%arg0: i32) -> (i32, i32) {
    %c0_i32 = arith.constant 0 : i32
    %c0_i32_0 = arith.constant 0 : i32
    %c0_i32_1 = arith.constant 0 : i32
    return %c0_i32, %c0_i32_0 : i32, i32
  }
  func.func @transform_1(%arg0: i32) -> (i32, i32, i32) {
    %c0_i32 = arith.constant 0 : i32
    %c0_i32_0 = arith.constant 0 : i32
    %c0_i32_1 = arith.constant 0 : i32
    %c0_i32_2 = arith.constant 0 : i32
    return %c0_i32, %c0_i32_0, %c0_i32_1 : i32, i32, i32
  }
  func.func @transform_2(%arg0: i32) -> (i32, i32) {
    %c0_i32 = arith.constant 0 : i32
    %c0_i32_0 = arith.constant 0 : i32
    %c0_i32_1 = arith.constant 0 : i32
    return %c0_i32, %c0_i32_0 : i32, i32
  }
  func.func @transform_3(%arg0: i32) -> (i32, i32) {
    %c0_i32 = arith.constant 0 : i32
    %c0_i32_0 = arith.constant 0 : i32
    %c0_i32_1 = arith.constant 0 : i32
    return %c0_i32, %c0_i32_0 : i32, i32
  }
}

module attributes {stable_mosaic.version = 11 : i64} {
  func.func @_tconv_bn_kernel(%arg0: i32, %arg1: memref<1152x32xf32, #tpu.memory_space<vmem>>, %arg2: memref<2x32x5xf32, #tpu.memory_space<vmem>>, %arg3: memref<1x5xf32, #tpu.memory_space<vmem>>, %arg4: memref<1152x5xf32, #tpu.memory_space<vmem>>) attributes {dimension_semantics = [#tpu.dimension_semantics<arbitrary>], iteration_bounds = array<i64: 1>, scalar_prefetch = 0 : i64, scratch_operands = 0 : i64, tpu.core_type = #tpu.core_type<tc>, window_params = [{pipeline_mode = #tpu.pipeline_mode<synchronous>, transform_indices = @transform_0, window_bounds = array<i64: 1152, 32>}, {pipeline_mode = #tpu.pipeline_mode<synchronous>, transform_indices = @transform_1, window_bounds = array<i64: 2, 32, 5>}, {pipeline_mode = #tpu.pipeline_mode<synchronous>, transform_indices = @transform_2, window_bounds = array<i64: 1, 5>}, {pipeline_mode = #tpu.pipeline_mode<synchronous>, transform_indices = @transform_3, window_bounds = array<i64: 1152, 5>}]} {
    %c0 = arith.constant 0 : index
    %c0_0 = arith.constant 0 : index
    %0 = vector.load %arg1[%c0, %c0_0] : memref<1152x32xf32, #tpu.memory_space<vmem>>, vector<1151x32xf32>
    %c1 = arith.constant 1 : index
    %c0_1 = arith.constant 0 : index
    %c0_2 = arith.constant 0 : index
    %1 = vector.load %arg2[%c1, %c0_1, %c0_2] : memref<2x32x5xf32, #tpu.memory_space<vmem>>, vector<1x32x5xf32>
    %2 = vector.shape_cast %1 : vector<1x32x5xf32> to vector<32x5xf32>
    %cst = arith.constant dense<0.000000e+00> : vector<1151x5xf32>
    %3 = tpu.matmul %0, %2, %cst {dimension_numbers = #tpu.dot_dimension_numbers<[1], [0], [0], [1], [0, 0, 1, 1], [], []>} : vector<1151x32xf32>, vector<32x5xf32>, vector<1151x5xf32> -> vector<1151x5xf32>
    %c1_3 = arith.constant 1 : index
    %c0_4 = arith.constant 0 : index
    %4 = vector.load %arg4[%c1_3, %c0_4] : memref<1152x5xf32, #tpu.memory_space<vmem>>, vector<1151x5xf32>
    tpu.vector_store %arg4[%c1_3, %c0_4], %3 {strides = array<i32>} : memref<1152x5xf32, #tpu.memory_space<vmem>>, vector<1151x5xf32>,
    %cst_5 = arith.constant 0.000000e+00 : f32
    %5 = vector.broadcast %cst_5 : f32 to vector<1x5xf32>
    %c0_6 = arith.constant 0 : index
    %c0_7 = arith.constant 0 : index
    %6 = vector.load %arg4[%c0_6, %c0_7] : memref<1152x5xf32, #tpu.memory_space<vmem>>, vector<1x5xf32>
    tpu.vector_store %arg4[%c0_6, %c0_7], %5 {strides = array<i32>} : memref<1152x5xf32, #tpu.memory_space<vmem>>, vector<1x5xf32>,
    %c0_8 = arith.constant 0 : index
    %c0_9 = arith.constant 0 : index
    %7 = vector.load %arg4[%c0_8, %c0_9] : memref<1152x5xf32, #tpu.memory_space<vmem>>, vector<1152x5xf32>
    %c0_10 = arith.constant 0 : index
    %c0_11 = arith.constant 0 : index
    %8 = vector.load %arg1[%c0_10, %c0_11] : memref<1152x32xf32, #tpu.memory_space<vmem>>, vector<1152x32xf32>
    %c0_12 = arith.constant 0 : index
    %c0_13 = arith.constant 0 : index
    %c0_14 = arith.constant 0 : index
    %9 = vector.load %arg2[%c0_12, %c0_13, %c0_14] : memref<2x32x5xf32, #tpu.memory_space<vmem>>, vector<1x32x5xf32>
    %10 = vector.shape_cast %9 : vector<1x32x5xf32> to vector<32x5xf32>
    %cst_15 = arith.constant dense<0.000000e+00> : vector<1152x5xf32>
    %11 = tpu.matmul %8, %10, %cst_15 {dimension_numbers = #tpu.dot_dimension_numbers<[1], [0], [0], [1], [0, 0, 1, 1], [], []>} : vector<1152x32xf32>, vector<32x5xf32>, vector<1152x5xf32> -> vector<1152x5xf32>
    %12 = arith.addf %7, %11 : vector<1152x5xf32>
    %c0_16 = arith.constant 0 : index
    %c0_17 = arith.constant 0 : index
    %13 = vector.load %arg3[%c0_16, %c0_17] : memref<1x5xf32, #tpu.memory_space<vmem>>, vector<1x5xf32>
    %14 = vector.broadcast %13 : vector<1x5xf32> to vector<1152x5xf32>
    %15 = arith.addf %12, %14 : vector<1152x5xf32>
    %c0_18 = arith.constant 0 : index
    %c0_19 = arith.constant 0 : index
    %16 = vector.load %arg4[%c0_18, %c0_19] : memref<1152x5xf32, #tpu.memory_space<vmem>>, vector<1152x5xf32>
    tpu.vector_store %arg4[%c0_18, %c0_19], %15 {strides = array<i32>} : memref<1152x5xf32, #tpu.memory_space<vmem>>, vector<1152x5xf32>,
    return
  }
  func.func @transform_0(%arg0: i32) -> (i32, i32) {
    %c0_i32 = arith.constant 0 : i32
    %c0_i32_0 = arith.constant 0 : i32
    %c0_i32_1 = arith.constant 0 : i32
    return %c0_i32, %c0_i32_0 : i32, i32
  }
  func.func @transform_1(%arg0: i32) -> (i32, i32, i32) {
    %c0_i32 = arith.constant 0 : i32
    %c0_i32_0 = arith.constant 0 : i32
    %c0_i32_1 = arith.constant 0 : i32
    %c0_i32_2 = arith.constant 0 : i32
    return %c0_i32, %c0_i32_0, %c0_i32_1 : i32, i32, i32
  }
  func.func @transform_2(%arg0: i32) -> (i32, i32) {
    %c0_i32 = arith.constant 0 : i32
    %c0_i32_0 = arith.constant 0 : i32
    %c0_i32_1 = arith.constant 0 : i32
    return %c0_i32, %c0_i32_0 : i32, i32
  }
  func.func @transform_3(%arg0: i32) -> (i32, i32) {
    %c0_i32 = arith.constant 0 : i32
    %c0_i32_0 = arith.constant 0 : i32
    %c0_i32_1 = arith.constant 0 : i32
    return %c0_i32, %c0_i32_0 : i32, i32
  }
}

</mosaic_0001>

<bundles_post_ra>
// kernel: _lambda_.7
= control target key start
LH: loop header
LB: loop body
LE: loop exit
PB: predicated region body
PF: predicated region fallthrough
CT: control target
= control target key end

     0   :  { %v175_v0 = vmov 0.0   ;;  %vm176_vm0 = vmmov 0   ;;  %vm28_vm1 = vcmask 261120   ;;  %vm118_vm2 = vcmask 523264   ;;  %s245_s1 = inlined_call_operand.vmem [shape: f32[1,32,64], index: 1, kind: input, shape index: {}]   ;;  %s246_s0 = inlined_call_operand.vmem [shape: f32[18,32], index: 0, kind: input, shape index: {}]   ;;  %s247_s2 = inlined_call_operand.vmem [shape: f32[1,64], index: 2, kind: input, shape index: {}]   ;;  %s248_s3 = inlined_call_operand.vmem [shape: f32[18,64], index: 3, kind: output, shape index: {}]  }
   0x1   :  { %165 = vmatprep.subr.mxu1 %v175_v0  ;;  %v20_v1 = vld [vmem:[%s245_s1 + $0x18] sm:$0xff]  ;;  %v19_v2 = vld [vmem:[%s245_s1 + $0x10] sm:$0xff]  ;;  %159 = vmatprep.mubr.msk.f32.mxu1 %vm176_vm0, %v175_v0  ;;  %v18_v3 = vld [vmem:[%s245_s1 + $0x8] sm:$0xff]  ;;  %v123_v10 = vlaneseq  ;;  %vm121_vm3 = vcmask 517120   ;;  %vm128_vm5 = vcmask 516096  }
   0x2   :  { %169 = vmatpush3.msra.mxu1 %v20_v1  ;;  %148 = vmatprep.subr.mxu0 %v175_v0  ;;  %v17_v4 = vld [vmem:[%s245_s1] sm:$0xff]  ;;  %v15_v5 = vld [vmem:[%s246_s0 + $0x8] sm:$0xff]  ;;  %v16_v7 = vld [vmem:[%s246_s0 + $0x10] sm:$0x3] }
   0x3   :  { %166 = vmatprep.subr.mxu1 %v175_v0  ;;  %149 = vmatpush3.msra.mxu0 %v20_v1  ;;  %v14_v6 = vld [vmem:[%s246_s0] sm:$0xff]  ;;  %v124_v15 = vand.u32 127, %v123_v10 }
   0x4   :  { %170 = vmatpush3.msra.mxu1 %v19_v2  ;;  %150 = vmatprep.subr.mxu0 %v175_v0  ;;  %v137_v8 = vld [vmem:[%s247_s2] ss:$0 sm:$0xff] }
   0x5   :  { %167 = vmatprep.subr.mxu1 %v175_v0  ;;  %151 = vmatpush3.msra.mxu0 %v19_v2  ;;  %vm125_vm4 = vcmp.lt.s32.totalorder %v124_v15, 32 }
   0x6   :  { %171 = vmatpush3.msra.mxu1 %v18_v3  ;;  %152 = vmatprep.subr.mxu0 %v175_v0 }
   0x7   :  { %168 = vmatprep.subr.mxu1 %v175_v0  ;;  %153 = vmatpush3.msra.mxu0 %v18_v3 }
   0x8   :  { %172 = vmatpush3.msra.mxu1 %v17_v4  ;;  %154 = vmatprep.subr.mxu0 %v175_v0 }
   0x9   :  { %160 = vmatmul.mubr.msk.f32.vlgmr.msra.gmra.mxu1 %vm28_vm1, %v15_v5  ;;  %155 = vmatpush3.msra.mxu0 %v17_v4 }
   0xa   :  { %162 = vmatprep.mubr.msk.f32.mxu1 %vm176_vm0, %v175_v0  ;;  %156 = vmatprep.mubr.msk.f32.mxu0 %vm176_vm0, %v175_v0 }
   0xb   :  { %157 = vmatmul.mubr.msk.f32.vlgmr.msra.gmra.mxu0 %vm28_vm1, %v14_v6 }
   0xd   :  { %163 = vmatmul.mubr.msk.f32.gmra.mxu1 %vm28_vm1, %v16_v7 }
  0xc9   :  { %v109_v9 = vpop.f32.mrf.mxu1 }
  0xca   :  { %v110_v11 = vadd.f32 %v137_v8, %v109_v9 }
  0xcb   :  { %v161_v12 = vpop.f32.mrf.mxu1  ;;  %v104_v13 = vpop.f32.mrf.mxu0 }
  0xcc   :  { %120 = vst.msk [vmem:[%s248_s3 + $0x8] sm:$0xff] %vm118_vm2, %v110_v11  ;;  %v105_v14 = vadd.f32 %v137_v8, %v104_v13 }
  0xcd   :  { %v114_v16 = vpop.f32.mrf.mxu1  ;;  %v158_v17 = vpop.f32.mrf.mxu0 }
  0xce   :  { %v115_v18 = vadd.f32 %v137_v8, %v114_v16  ;;  %119 = vst.msk [vmem:[%s248_s3] sm:$0xff] %vm118_vm2, %v105_v14 }
  0xcf   :  { %v164_v19 = vpop.f32.mrf.mxu1 }
  0xd0   :  { %122 = vst.msk [vmem:[%s248_s3 + $0x10] sm:$0x3] %vm121_vm3, %v115_v18 }
  0xd3   :  { %v126_v20 = vld [vmem:[%s248_s3 + $0x8] sm:$0x1] }
  0xd4   :  { %v127_v21 = vsel %vm125_vm4, %v126_v20, 0.0 }
  0xd5   :  { %129 = vst.msk [vmem:[%s248_s3 + $0x8] sm:$0x1] %vm128_vm5, %v127_v21 }
  0xd7   :  { %v130_v22 = vld [vmem:[%s248_s3 + $0x11] sm:$0x1] }
  0xd8   :  { %v131_v23 = vsel %vm125_vm4, %v130_v22, 0.0 }
  0xd9   :  { %132 = vst.msk [vmem:[%s248_s3 + $0x11] sm:$0x1] %vm128_vm5, %v131_v23 }

// kernel: _lambda_.8
= control target key start
LH: loop header
LB: loop body
LE: loop exit
PB: predicated region body
PF: predicated region fallthrough
CT: control target
= control target key end

     0   :  { %v205_v0 = vmov 0.0   ;;  %vm30_vm0 = vcmask 261120   ;;  %vm206_vm1 = vmmov 0   ;;  %vm136_vm2 = vcmask 523264   ;;  %s293_s1 = inlined_call_operand.vmem [shape: f32[1,32,64], index: 1, kind: input, shape index: {}]   ;;  %s294_s0 = inlined_call_operand.vmem [shape: f32[36,32], index: 0, kind: input, shape index: {}]   ;;  %s295_s2 = inlined_call_operand.vmem [shape: f32[1,64], index: 2, kind: input, shape index: {}]   ;;  %s296_s3 = inlined_call_operand.vmem [shape: f32[36,64], index: 3, kind: output, shape index: {}]  }
   0x1   :  { %172 = vmatprep.subr.mxu0 %v205_v0  ;;  %v22_v1 = vld [vmem:[%s293_s1 + $0x18] sm:$0xff]  ;;  %195 = vmatprep.subr.mxu1 %v205_v0  ;;  %v21_v2 = vld [vmem:[%s293_s1 + $0x10] sm:$0xff]  ;;  %v20_v3 = vld [vmem:[%s293_s1 + $0x8] sm:$0xff]  ;;  %vm141_vm3 = vcmask 519168   ;;  %v143_v21 = vlaneseq  ;;  %vm148_vm5 = vcmask 516096  }
   0x2   :  { %173 = vmatpush3.msra.mxu0 %v22_v1  ;;  %199 = vmatpush3.msra.mxu1 %v22_v1  ;;  %v19_v4 = vld [vmem:[%s293_s1] sm:$0xff]  ;;  %v17_v6 = vld [vmem:[%s294_s0 + $0x18] sm:$0xff]  ;;  %v15_v7 = vld [vmem:[%s294_s0 + $0x8] sm:$0xff] }
   0x3   :  { %174 = vmatprep.subr.mxu0 %v205_v0  ;;  %196 = vmatprep.subr.mxu1 %v205_v0  ;;  %v14_v5 = vld [vmem:[%s294_s0] sm:$0xff]  ;;  %v16_v9 = vld [vmem:[%s294_s0 + $0x10] sm:$0xff]  ;;  %v144_v26 = vand.u32 127, %v143_v21 }
   0x4   :  { %175 = vmatpush3.msra.mxu0 %v21_v2  ;;  %200 = vmatpush3.msra.mxu1 %v21_v2  ;;  %v18_v8 = vld [vmem:[%s294_s0 + $0x20] sm:$0xf] }
   0x5   :  { %176 = vmatprep.subr.mxu0 %v205_v0  ;;  %197 = vmatprep.subr.mxu1 %v205_v0  ;;  %v157_v10 = vld [vmem:[%s295_s2] ss:$0 sm:$0xff]  ;;  %vm145_vm4 = vcmp.lt.s32.totalorder %v144_v26, 32 }
   0x6   :  { %177 = vmatpush3.msra.mxu0 %v20_v3  ;;  %201 = vmatpush3.msra.mxu1 %v20_v3 }
   0x7   :  { %178 = vmatprep.subr.mxu0 %v205_v0  ;;  %180 = vmatprep.mubr.msk.f32.mxu0 %vm206_vm1, %v205_v0 }
   0x8   :  { %179 = vmatpush3.msra.mxu0 %v19_v4  ;;  %198 = vmatprep.subr.mxu1 %v205_v0 }
   0x9   :  { %181 = vmatmul.mubr.msk.f32.vlgmr.msra.gmra.mxu0 %vm30_vm0, %v14_v5  ;;  %202 = vmatpush3.msra.mxu1 %v19_v4 }
   0xa   :  { %189 = vmatprep.mubr.msk.f32.mxu1 %vm206_vm1, %v205_v0  ;;  %183 = vmatprep.mubr.msk.f32.mxu0 %vm206_vm1, %v205_v0 }
   0xb   :  { %190 = vmatmul.mubr.msk.f32.vlgmr.msra.gmra.mxu1 %vm30_vm0, %v17_v6 }
   0xc   :  { %192 = vmatprep.mubr.msk.f32.mxu1 %vm206_vm1, %v205_v0 }
   0xd   :  { %184 = vmatmul.mubr.msk.f32.gmra.mxu0 %vm30_vm0, %v15_v7 }
   0xe   :  { %186 = vmatprep.mubr.msk.f32.mxu0 %vm206_vm1, %v205_v0 }
   0xf   :  { %193 = vmatmul.mubr.msk.f32.gmra.mxu1 %vm30_vm0, %v18_v8 }
  0x11   :  { %187 = vmatmul.mubr.msk.f32.gmra.mxu0 %vm30_vm0, %v16_v9 }
  0xc9   :  { %v112_v11 = vpop.f32.mrf.mxu0 }
  0xca   :  { %v113_v12 = vadd.f32 %v157_v10, %v112_v11 }
  0xcb   :  { %v182_v13 = vpop.f32.mrf.mxu0  ;;  %v127_v14 = vpop.f32.mrf.mxu1 }
  0xcc   :  { %137 = vst.msk [vmem:[%s296_s3] sm:$0xff] %vm136_vm2, %v113_v12  ;;  %v128_v15 = vadd.f32 %v157_v10, %v127_v14 }
  0xcd   :  { %v117_v16 = vpop.f32.mrf.mxu0  ;;  %v191_v17 = vpop.f32.mrf.mxu1 }
  0xce   :  { %140 = vst.msk [vmem:[%s296_s3 + $0x18] sm:$0xff] %vm136_vm2, %v128_v15  ;;  %v118_v18 = vadd.f32 %v157_v10, %v117_v16 }
  0xcf   :  { %v185_v19 = vpop.f32.mrf.mxu0  ;;  %v132_v20 = vpop.f32.mrf.mxu1 }
  0xd0   :  { %138 = vst.msk [vmem:[%s296_s3 + $0x8] sm:$0xff] %vm136_vm2, %v118_v18  ;;  %v133_v22 = vadd.f32 %v157_v10, %v132_v20 }
  0xd1   :  { %v122_v23 = vpop.f32.mrf.mxu0  ;;  %v194_v24 = vpop.f32.mrf.mxu1 }
  0xd2   :  { %142 = vst.msk [vmem:[%s296_s3 + $0x20] sm:$0xf] %vm141_vm3, %v133_v22  ;;  %v123_v25 = vadd.f32 %v157_v10, %v122_v23 }
  0xd3   :  { %v188_v27 = vpop.f32.mrf.mxu0 }
  0xd4   :  { %139 = vst.msk [vmem:[%s296_s3 + $0x10] sm:$0xff] %vm136_vm2, %v123_v25 }
  0xd9   :  { %v150_v28 = vld [vmem:[%s296_s3 + $0x23] sm:$0x1] }
  0xda   :  { %v151_v29 = vsel %vm145_vm4, %v150_v28, 0.0 }
  0xdb   :  { %152 = vst.msk [vmem:[%s296_s3 + $0x23] sm:$0x1] %vm148_vm5, %v151_v29  ;;  %v146_v30 = vld [vmem:[%s296_s3 + $0x11] sm:$0x1] }
  0xdc   :  { %v147_v31 = vsel %vm145_vm4, %v146_v30, 0.0 }
  0xdd   :  { %149 = vst.msk [vmem:[%s296_s3 + $0x11] sm:$0x1] %vm148_vm5, %v147_v31 }

// kernel: _lambda_.9
= control target key start
LH: loop header
LB: loop body
LE: loop exit
PB: predicated region body
PF: predicated region fallthrough
CT: control target
= control target key end

     0   :  { %v506_v0 = vmov 0.0   ;;  %vm507_vm0 = vmmov 0   ;;  %vm28_vm1 = vcmask 261120   ;;  %vm177_vm2 = vcmask 516096   ;;  %s777_s1 = inlined_call_operand.vmem [shape: f32[2,32,64], index: 1, kind: input, shape index: {}]   ;;  %s778_s0 = inlined_call_operand.vmem [shape: f32[72,32], index: 0, kind: input, shape index: {}]   ;;  %s779_s3 = inlined_call_operand.vmem [shape: f32[72,64], index: 3, kind: output, shape index: {}]   ;;  %s780_s2 = inlined_call_operand.vmem [shape: f32[1,64], index: 2, kind: input, shape index: {}]  }
   0x1   :  { %434 = vmatprep.subr.mxu0 %v506_v0  ;;  %v388_v1 = vld [vmem:[%s777_s1 + $0x38] sm:$0xff]  ;;  %v387_v2 = vld [vmem:[%s777_s1 + $0x30] sm:$0xff]  ;;  %469 = vmatprep.subr.mxu1 %v506_v0  ;;  %v386_v4 = vld [vmem:[%s777_s1 + $0x28] sm:$0xff]  ;;  %178 = vst.msk [vmem:[%s779_s3] sm:$0x1] %vm177_vm2, %v506_v0  ;;  %vm166_vm3 = vcmask 523264   ;;  %v372_v59 = vlaneseq }
   0x2   :  { %435 = vmatpush3.msra.mxu0 %v388_v1  ;;  %442 = vmatprep.mubr.msk.f32.mxu0 %vm507_vm0, %v506_v0  ;;  %v200_v3 = vld [vmem:[%s777_s1 + $0x18] sm:$0xff]  ;;  %v199_v5 = vld [vmem:[%s777_s1 + $0x10] sm:$0xff]  ;;  %v198_v6 = vld [vmem:[%s777_s1 + $0x8] sm:$0xff]  ;;  %vm175_vm4 = vcmask 522240  }
   0x3   :  { %436 = vmatprep.subr.mxu0 %v506_v0  ;;  %470 = vmatpush3.msra.mxu1 %v200_v3  ;;  %v385_v7 = vld [vmem:[%s777_s1 + $0x20] sm:$0xff]  ;;  %v15_v10 = vld [vmem:[%s778_s0 + $0x8] sm:$0xff]  ;;  %v16_v11 = vld [vmem:[%s778_s0 + $0x10] sm:$0xff]  ;;  %v373_v3 = vand.u32 127, %v372_v59 }
   0x4   :  { %437 = vmatpush3.msra.mxu0 %v387_v2  ;;  %471 = vmatprep.subr.mxu1 %v506_v0  ;;  %v14_v8 = vld [vmem:[%s778_s0] sm:$0xff]  ;;  %v17_v12 = vld [vmem:[%s778_s0 + $0x18] sm:$0xff]  ;;  %v19_v14 = vld [vmem:[%s778_s0 + $0x28] sm:$0xff] }
   0x5   :  { %438 = vmatprep.subr.mxu0 %v506_v0  ;;  %472 = vmatpush3.msra.mxu1 %v199_v5  ;;  %v197_v9 = vld [vmem:[%s777_s1] sm:$0xff]  ;;  %v20_v15 = vld [vmem:[%s778_s0 + $0x30] sm:$0xff]  ;;  %v21_v16 = vld [vmem:[%s778_s0 + $0x38] sm:$0xff]  ;;  %vm374_vm5 = vcmp.lt.s32.totalorder %v373_v3, 32 }
   0x6   :  { %439 = vmatpush3.msra.mxu0 %v386_v4  ;;  %473 = vmatprep.subr.mxu1 %v506_v0  ;;  %v18_v13 = vld [vmem:[%s778_s0 + $0x20] sm:$0xff] }
   0x7   :  { %440 = vmatprep.subr.mxu0 %v506_v0  ;;  %474 = vmatpush3.msra.mxu1 %v198_v6  ;;  %v22_v17 = vld [vmem:[%s778_s0 + $0x40] sm:$0x7f] }
   0x8   :  { %441 = vmatpush3.msra.mxu0 %v385_v7  ;;  %475 = vmatprep.subr.mxu1 %v506_v0  ;;  %v196_v18 = vld [vmem:[%s778_s0 + $0x40] sm:$0xff] }
   0x9   :  { %443 = vmatmul.mubr.msk.f32.vlgmr.msra.gmra.mxu0 %vm28_vm1, %v14_v8  ;;  %476 = vmatpush3.msra.mxu1 %v197_v9  ;;  %v663_v27 = vld [vmem:[%s780_s2] ss:$0 sm:$0xff] }
   0xa   :  { %445 = vmatprep.mubr.msk.f32.mxu0 %vm507_vm0, %v506_v0  ;;  %477 = vmatprep.mubr.msk.f32.mxu1 %vm507_vm0, %v506_v0 }
   0xb   :  { %478 = vmatmul.mubr.msk.f32.vlgmr.msra.gmra.mxu1 %vm28_vm1, %v14_v8 }
   0xc   :  { %480 = vmatprep.mubr.msk.f32.mxu1 %vm507_vm0, %v506_v0 }
   0xd   :  { %446 = vmatmul.mubr.msk.f32.gmra.mxu0 %vm28_vm1, %v15_v10 }
   0xe   :  { %448 = vmatprep.mubr.msk.f32.mxu0 %vm507_vm0, %v506_v0 }
   0xf   :  { %481 = vmatmul.mubr.msk.f32.gmra.mxu1 %vm28_vm1, %v15_v10 }
  0x10   :  { %483 = vmatprep.mubr.msk.f32.mxu1 %vm507_vm0, %v506_v0 }
  0x11   :  { %449 = vmatmul.mubr.msk.f32.gmra.mxu0 %vm28_vm1, %v16_v11 }
  0x12   :  { %451 = vmatprep.mubr.msk.f32.mxu0 %vm507_vm0, %v506_v0 }
  0x13   :  { %484 = vmatmul.mubr.msk.f32.gmra.mxu1 %vm28_vm1, %v16_v11 }
  0x14   :  { %486 = vmatprep.mubr.msk.f32.mxu1 %vm507_vm0, %v506_v0 }
  0x15   :  { %452 = vmatmul.mubr.msk.f32.gmra.mxu0 %vm28_vm1, %v17_v12 }
  0x16   :  { %454 = vmatprep.mubr.msk.f32.mxu0 %vm507_vm0, %v506_v0 }
  0x17   :  { %487 = vmatmul.mubr.msk.f32.gmra.mxu1 %vm28_vm1, %v17_v12 }
  0x18   :  { %489 = vmatprep.mubr.msk.f32.mxu1 %vm507_vm0, %v506_v0 }
  0x19   :  { %455 = vmatmul.mubr.msk.f32.gmra.mxu0 %vm28_vm1, %v18_v13 }
  0x1a   :  { %457 = vmatprep.mubr.msk.f32.mxu0 %vm507_vm0, %v506_v0 }
  0x1b   :  { %490 = vmatmul.mubr.msk.f32.gmra.mxu1 %vm28_vm1, %v18_v13 }
  0x1c   :  { %492 = vmatprep.mubr.msk.f32.mxu1 %vm507_vm0, %v506_v0 }
  0x1d   :  { %458 = vmatmul.mubr.msk.f32.gmra.mxu0 %vm28_vm1, %v19_v14 }
  0x1e   :  { %460 = vmatprep.mubr.msk.f32.mxu0 %vm507_vm0, %v506_v0 }
  0x1f   :  { %493 = vmatmul.mubr.msk.f32.gmra.mxu1 %vm28_vm1, %v19_v14 }
  0x20   :  { %495 = vmatprep.mubr.msk.f32.mxu1 %vm507_vm0, %v506_v0 }
  0x21   :  { %461 = vmatmul.mubr.msk.f32.gmra.mxu0 %vm28_vm1, %v20_v15 }
  0x22   :  { %463 = vmatprep.mubr.msk.f32.mxu0 %vm507_vm0, %v506_v0 }
  0x23   :  { %496 = vmatmul.mubr.msk.f32.gmra.mxu1 %vm28_vm1, %v20_v15 }
  0x24   :  { %498 = vmatprep.mubr.msk.f32.mxu1 %vm507_vm0, %v506_v0 }
  0x25   :  { %464 = vmatmul.mubr.msk.f32.gmra.mxu0 %vm28_vm1, %v21_v16 }
  0x26   :  { %466 = vmatprep.mubr.msk.f32.mxu0 %vm507_vm0, %v506_v0 }
  0x27   :  { %499 = vmatmul.mubr.msk.f32.gmra.mxu1 %vm28_vm1, %v21_v16 }
  0x28   :  { %501 = vmatprep.mubr.msk.f32.mxu1 %vm507_vm0, %v506_v0 }
  0x29   :  { %467 = vmatmul.mubr.msk.f32.gmra.mxu0 %vm28_vm1, %v22_v17 }
  0x2b   :  { %502 = vmatmul.mubr.msk.f32.gmra.mxu1 %vm28_vm1, %v196_v18 }
  0xc9   :  { %v122_v19 = vpop.f32.mrf.mxu0 }
  0xca   :  { %167 = vst.msk [vmem:[%s779_s3 + $0x1] sm:$0xff] %vm166_vm3, %v122_v19 }
  0xcb   :  { %v444_v20 = vpop.f32.mrf.mxu0  ;;  %v294_v21 = vpop.f32.mrf.mxu1 }
  0xcd   :  { %v127_v22 = vpop.f32.mrf.mxu0  ;;  %v479_v23 = vpop.f32.mrf.mxu1 }
  0xce   :  { %168 = vst.msk [vmem:[%s779_s3 + $0x9] sm:$0xff] %vm166_vm3, %v127_v22 }
  0xcf   :  { %v447_v24 = vpop.f32.mrf.mxu0  ;;  %v299_v25 = vpop.f32.mrf.mxu1 }
  0xd1   :  { %v179_v26 = vld [vmem:[%s779_s3] sm:$0xff]  ;;  %v132_v28 = vpop.f32.mrf.mxu0  ;;  %v482_v29 = vpop.f32.mrf.mxu1 }
  0xd2   :  { %v338_v30 = vadd.f32 %v294_v21, %v179_v26  ;;  %169 = vst.msk [vmem:[%s779_s3 + $0x11] sm:$0xff] %vm166_vm3, %v132_v28 }
  0xd3   :  { %v450_v31 = vpop.f32.mrf.mxu0  ;;  %v304_v32 = vpop.f32.mrf.mxu1 }
  0xd4   :  { %v354_v33 = vadd.f32 %v663_v27, %v338_v30 }
  0xd5   :  { %v180_v34 = vld [vmem:[%s779_s3 + $0x8] sm:$0xff]  ;;  %v137_v35 = vpop.f32.mrf.mxu0  ;;  %v485_v36 = vpop.f32.mrf.mxu1 }
  0xd6   :  { %363 = vst.msk [vmem:[%s779_s3] sm:$0xff] %vm166_vm3, %v354_v33  ;;  %v339_v37 = vadd.f32 %v299_v25, %v180_v34  ;;  %170 = vst.msk [vmem:[%s779_s3 + $0x19] sm:$0xff] %vm166_vm3, %v137_v35 }
  0xd7   :  { %v453_v38 = vpop.f32.mrf.mxu0  ;;  %v309_v39 = vpop.f32.mrf.mxu1 }
  0xd8   :  { %v355_v40 = vadd.f32 %v663_v27, %v339_v37 }
  0xd9   :  { %v181_v41 = vld [vmem:[%s779_s3 + $0x10] sm:$0xff]  ;;  %v142_v42 = vpop.f32.mrf.mxu0  ;;  %v488_v43 = vpop.f32.mrf.mxu1 }
  0xda   :  { %364 = vst.msk [vmem:[%s779_s3 + $0x8] sm:$0xff] %vm166_vm3, %v355_v40  ;;  %v340_v44 = vadd.f32 %v304_v32, %v181_v41  ;;  %171 = vst.msk [vmem:[%s779_s3 + $0x21] sm:$0xff] %vm166_vm3, %v142_v42 }
  0xdb   :  { %v456_v45 = vpop.f32.mrf.mxu0  ;;  %v314_v46 = vpop.f32.mrf.mxu1 }
  0xdc   :  { %v356_v47 = vadd.f32 %v663_v27, %v340_v44 }
  0xdd   :  { %v182_v48 = vld [vmem:[%s779_s3 + $0x18] sm:$0xff]  ;;  %v147_v49 = vpop.f32.mrf.mxu0  ;;  %v491_v50 = vpop.f32.mrf.mxu1 }
  0xde   :  { %365 = vst.msk [vmem:[%s779_s3 + $0x10] sm:$0xff] %vm166_vm3, %v356_v47  ;;  %v341_v51 = vadd.f32 %v309_v39, %v182_v48  ;;  %172 = vst.msk [vmem:[%s779_s3 + $0x29] sm:$0xff] %vm166_vm3, %v147_v49 }
  0xdf   :  { %v459_v52 = vpop.f32.mrf.mxu0  ;;  %v319_v53 = vpop.f32.mrf.mxu1 }
  0xe0   :  { %v357_v54 = vadd.f32 %v663_v27, %v341_v51 }
  0xe1   :  { %v183_v55 = vld [vmem:[%s779_s3 + $0x20] sm:$0xff]  ;;  %v152_v56 = vpop.f32.mrf.mxu0  ;;  %v494_v57 = vpop.f32.mrf.mxu1 }
  0xe2   :  { %366 = vst.msk [vmem:[%s779_s3 + $0x18] sm:$0xff] %vm166_vm3, %v357_v54  ;;  %v342_v58 = vadd.f32 %v314_v46, %v183_v55  ;;  %173 = vst.msk [vmem:[%s779_s3 + $0x31] sm:$0xff] %vm166_vm3, %v152_v56 }
  0xe3   :  { %v462_v60 = vpop.f32.mrf.mxu0  ;;  %v324_v61 = vpop.f32.mrf.mxu1 }
  0xe4   :  { %v358_v62 = vadd.f32 %v663_v27, %v342_v58 }
  0xe5   :  { %v184_v63 = vld [vmem:[%s779_s3 + $0x28] sm:$0xff]  ;;  %v157_v0 = vpop.f32.mrf.mxu0  ;;  %v497_v1 = vpop.f32.mrf.mxu1 }
  0xe6   :  { %367 = vst.msk [vmem:[%s779_s3 + $0x20] sm:$0xff] %vm166_vm3, %v358_v62  ;;  %v343_v2 = vadd.f32 %v319_v53, %v184_v63  ;;  %174 = vst.msk [vmem:[%s779_s3 + $0x39] sm:$0xff] %vm166_vm3, %v157_v0 }
  0xe7   :  { %v465_v4 = vpop.f32.mrf.mxu0  ;;  %v329_v5 = vpop.f32.mrf.mxu1 }
  0xe8   :  { %v359_v6 = vadd.f32 %v663_v27, %v343_v2 }
  0xe9   :  { %v185_v7 = vld [vmem:[%s779_s3 + $0x30] sm:$0xff]  ;;  %v162_v8 = vpop.f32.mrf.mxu0  ;;  %v500_v9 = vpop.f32.mrf.mxu1 }
  0xea   :  { %368 = vst.msk [vmem:[%s779_s3 + $0x28] sm:$0xff] %vm166_vm3, %v359_v6  ;;  %v344_v10 = vadd.f32 %v324_v61, %v185_v7 }
  0xeb   :  { %176 = vst.msk [vmem:[%s779_s3 + $0x41] sm:$0x7f] %vm175_vm4, %v162_v8  ;;  %v468_v11 = vpop.f32.mrf.mxu0  ;;  %v334_v12 = vpop.f32.mrf.mxu1 }
  0xec   :  { %v360_v13 = vadd.f32 %v663_v27, %v344_v10 }
  0xed   :  { %v375_v14 = vld [vmem:[%s779_s3 + $0x23] sm:$0x1]  ;;  %v186_v15 = vld [vmem:[%s779_s3 + $0x38] sm:$0xff]  ;;  %v503_v16 = vpop.f32.mrf.mxu1 }
  0xee   :  { %v376_v17 = vsel %vm374_vm5, %v375_v14, 0.0  ;;  %369 = vst.msk [vmem:[%s779_s3 + $0x30] sm:$0xff] %vm166_vm3, %v360_v13  ;;  %v345_v18 = vadd.f32 %v329_v5, %v186_v15 }
  0xef   :  { %377 = vst.msk [vmem:[%s779_s3 + $0x23] sm:$0x1] %vm177_vm2, %v376_v17 }
  0xf0   :  { %v361_v19 = vadd.f32 %v663_v27, %v345_v18 }
  0xf2   :  { %v187_v20 = vld [vmem:[%s779_s3 + $0x40] sm:$0xff]  ;;  %370 = vst.msk [vmem:[%s779_s3 + $0x38] sm:$0xff] %vm166_vm3, %v361_v19 }
  0xf3   :  { %v346_v21 = vadd.f32 %v334_v12, %v187_v20 }
  0xf5   :  { %v362_v22 = vadd.f32 %v663_v27, %v346_v21 }
  0xf7   :  { %371 = vst.msk [vmem:[%s779_s3 + $0x40] sm:$0xff] %vm166_vm3, %v362_v22 }
  0xfe   :  { %v378_v23 = vld [vmem:[%s779_s3 + $0x47] sm:$0x1] }
  0xff   :  { %v379_v24 = vsel %vm374_vm5, %v378_v23, 0.0 }
 0x100   :  { %380 = vst.msk [vmem:[%s779_s3 + $0x47] sm:$0x1] %vm177_vm2, %v379_v24 }

// kernel: _lambda_.10
= control target key start
LH: loop header
LB: loop body
LE: loop exit
PB: predicated region body
PF: predicated region fallthrough
CT: control target
= control target key end

     0   :  { %vm37_vm0 = vcmask 261120   ;;  %vm267_vm1 = vcmask 516096   ;;  %v748_v27 = vmov 0.0   ;;  %vm247_vm2 = vcmask 523264   ;;  %s1126_s1 = inlined_call_operand.vmem [shape: f32[2,32,64], index: 1, kind: input, shape index: {}]   ;;  %s1127_s0 = inlined_call_operand.vmem [shape: f32[144,32], index: 0, kind: input, shape index: {}]   ;;  %s1128_s3 = inlined_call_operand.vmem [shape: f32[144,64], index: 3, kind: output, shape index: {}]   ;;  %s1129_s2 = inlined_call_operand.vmem [shape: f32[1,64], index: 2, kind: input, shape index: {}]  }
   0x1   :  { %v595_v0 = vld [vmem:[%s1126_s1 + $0x38] sm:$0xff]  ;;  %v594_v1 = vld [vmem:[%s1126_s1 + $0x30] sm:$0xff]  ;;  %v14_v2 = vld [vmem:[%s1127_s0] sm:$0xff]  ;;  %268 = vst.msk [vmem:[%s1128_s3] sm:$0x1] %vm267_vm1, %v748_v27  ;;  %vm265_vm3 = vcmask 522240  }
   0x2   :  { %677 = vmatprep.subr.mxu0 %v595_v0  ;;  %v593_v3 = vld [vmem:[%s1126_s1 + $0x28] sm:$0xff]  ;;  %685 = vmatprep.mubr.msk.f32.mxu0 %vm37_vm0, %v14_v2  ;;  %v308_v4 = vld [vmem:[%s1126_s1 + $0x18] sm:$0xff]  ;;  %v307_v5 = vld [vmem:[%s1126_s1 + $0x10] sm:$0xff] }
   0x3   :  { %678 = vmatpush3.msra.mxu0 %v595_v0  ;;  %712 = vmatprep.subr.mxu1 %v308_v4  ;;  %v592_v6 = vld [vmem:[%s1126_s1 + $0x20] sm:$0xff]  ;;  %v306_v7 = vld [vmem:[%s1126_s1 + $0x8] sm:$0xff]  ;;  %v16_v10 = vld [vmem:[%s1127_s0 + $0x10] sm:$0xff] }
   0x4   :  { %679 = vmatprep.subr.mxu0 %v594_v1  ;;  %713 = vmatpush3.msra.mxu1 %v308_v4  ;;  %v15_v8 = vld [vmem:[%s1127_s0 + $0x8] sm:$0xff]  ;;  %v305_v9 = vld [vmem:[%s1126_s1] sm:$0xff]  ;;  %v17_v11 = vld [vmem:[%s1127_s0 + $0x18] sm:$0xff] }
   0x5   :  { %680 = vmatpush3.msra.mxu0 %v594_v1  ;;  %714 = vmatprep.subr.mxu1 %v307_v5  ;;  %v18_v12 = vld [vmem:[%s1127_s0 + $0x20] sm:$0xff]  ;;  %v19_v13 = vld [vmem:[%s1127_s0 + $0x28] sm:$0xff]  ;;  %v20_v14 = vld [vmem:[%s1127_s0 + $0x30] sm:$0xff] }
   0x6   :  { %681 = vmatprep.subr.mxu0 %v593_v3  ;;  %715 = vmatpush3.msra.mxu1 %v307_v5  ;;  %v21_v15 = vld [vmem:[%s1127_s0 + $0x38] sm:$0xff]  ;;  %v22_v16 = vld [vmem:[%s1127_s0 + $0x40] sm:$0xff]  ;;  %v23_v17 = vld [vmem:[%s1127_s0 + $0x48] sm:$0xff] }
   0x7   :  { %682 = vmatpush3.msra.mxu0 %v593_v3  ;;  %716 = vmatprep.subr.mxu1 %v306_v7  ;;  %v24_v18 = vld [vmem:[%s1127_s0 + $0x50] sm:$0xff]  ;;  %v25_v19 = vld [vmem:[%s1127_s0 + $0x58] sm:$0xff]  ;;  %v26_v20 = vld [vmem:[%s1127_s0 + $0x60] sm:$0xff] }
   0x8   :  { %683 = vmatprep.subr.mxu0 %v592_v6  ;;  %717 = vmatpush3.msra.mxu1 %v306_v7  ;;  %v27_v21 = vld [vmem:[%s1127_s0 + $0x68] sm:$0xff]  ;;  %v28_v22 = vld [vmem:[%s1127_s0 + $0x70] sm:$0xff]  ;;  %v29_v23 = vld [vmem:[%s1127_s0 + $0x78] sm:$0xff] }
   0x9   :  { %684 = vmatpush3.msra.mxu0 %v592_v6  ;;  %718 = vmatprep.subr.mxu1 %v305_v9  ;;  %v30_v24 = vld [vmem:[%s1127_s0 + $0x80] sm:$0xff]  ;;  %v31_v25 = vld [vmem:[%s1127_s0 + $0x88] sm:$0x7f] }
   0xa   :  { %686 = vmatmul.mubr.msk.f32.vlgmr.msra.gmra.mxu0 %vm37_vm0, %v15_v8  ;;  %719 = vmatpush3.msra.mxu1 %v305_v9  ;;  %v304_v26 = vld [vmem:[%s1127_s0 + $0x88] sm:$0xff]  ;;  %v916_v38 = vld [vmem:[%s1129_s2] ss:$0 sm:$0xff] }
   0xb   :  { %688 = vmatprep.mubr.msk.f32.mxu0 %vm37_vm0, %v16_v10  ;;  %720 = vmatprep.mubr.msk.f32.mxu1 %vm37_vm0, %v14_v2 }
   0xc   :  { %721 = vmatmul.mubr.msk.f32.vlgmr.msra.gmra.mxu1 %vm37_vm0, %v15_v8 }
   0xd   :  { %723 = vmatprep.mubr.msk.f32.mxu1 %vm37_vm0, %v16_v10 }
   0xe   :  { %689 = vmatmul.mubr.msk.f32.gmra.mxu0 %vm37_vm0, %v17_v11 }
   0xf   :  { %691 = vmatprep.mubr.msk.f32.mxu0 %vm37_vm0, %v18_v12 }
  0x10   :  { %724 = vmatmul.mubr.msk.f32.gmra.mxu1 %vm37_vm0, %v17_v11 }
  0x11   :  { %726 = vmatprep.mubr.msk.f32.mxu1 %vm37_vm0, %v18_v12 }
  0x12   :  { %692 = vmatmul.mubr.msk.f32.gmra.mxu0 %vm37_vm0, %v19_v13 }
  0x13   :  { %694 = vmatprep.mubr.msk.f32.mxu0 %vm37_vm0, %v20_v14 }
  0x14   :  { %727 = vmatmul.mubr.msk.f32.gmra.mxu1 %vm37_vm0, %v19_v13 }
  0x15   :  { %729 = vmatprep.mubr.msk.f32.mxu1 %vm37_vm0, %v20_v14 }
  0x16   :  { %695 = vmatmul.mubr.msk.f32.gmra.mxu0 %vm37_vm0, %v21_v15 }
  0x17   :  { %697 = vmatprep.mubr.msk.f32.mxu0 %vm37_vm0, %v22_v16 }
  0x18   :  { %730 = vmatmul.mubr.msk.f32.gmra.mxu1 %vm37_vm0, %v21_v15 }
  0x19   :  { %732 = vmatprep.mubr.msk.f32.mxu1 %vm37_vm0, %v22_v16 }
  0x1a   :  { %698 = vmatmul.mubr.msk.f32.gmra.mxu0 %vm37_vm0, %v23_v17 }
  0x1b   :  { %700 = vmatprep.mubr.msk.f32.mxu0 %vm37_vm0, %v24_v18 }
  0x1c   :  { %733 = vmatmul.mubr.msk.f32.gmra.mxu1 %vm37_vm0, %v23_v17 }
  0x1d   :  { %735 = vmatprep.mubr.msk.f32.mxu1 %vm37_vm0, %v24_v18 }
  0x1e   :  { %701 = vmatmul.mubr.msk.f32.gmra.mxu0 %vm37_vm0, %v25_v19 }
  0x1f   :  { %703 = vmatprep.mubr.msk.f32.mxu0 %vm37_vm0, %v26_v20 }
  0x20   :  { %736 = vmatmul.mubr.msk.f32.gmra.mxu1 %vm37_vm0, %v25_v19 }
  0x21   :  { %738 = vmatprep.mubr.msk.f32.mxu1 %vm37_vm0, %v26_v20  ;;  %v579_v20 = vlaneseq }
  0x22   :  { %704 = vmatmul.mubr.msk.f32.gmra.mxu0 %vm37_vm0, %v27_v21 }
  0x23   :  { %706 = vmatprep.mubr.msk.f32.mxu0 %vm37_vm0, %v28_v22 }
  0x24   :  { %739 = vmatmul.mubr.msk.f32.gmra.mxu1 %vm37_vm0, %v27_v21 }
  0x25   :  { %741 = vmatprep.mubr.msk.f32.mxu1 %vm37_vm0, %v28_v22 }
  0x26   :  { %707 = vmatmul.mubr.msk.f32.gmra.mxu0 %vm37_vm0, %v29_v23 }
  0x27   :  { %709 = vmatprep.mubr.msk.f32.mxu0 %vm37_vm0, %v30_v24 }
  0x28   :  { %742 = vmatmul.mubr.msk.f32.gmra.mxu1 %vm37_vm0, %v29_v23 }
  0x29   :  { %744 = vmatprep.mubr.msk.f32.mxu1 %vm37_vm0, %v30_v24 }
  0x2a   :  { %710 = vmatmul.mubr.msk.f32.gmra.mxu0 %vm37_vm0, %v31_v25 }
  0x2c   :  { %745 = vmatmul.mubr.msk.f32.gmra.mxu1 %vm37_vm0, %v304_v26 }
  0xca   :  { %v687_v28 = vpop.f32.mrf.mxu0 }
  0xcb   :  { %249 = vst.msk [vmem:[%s1128_s3 + $0x9] sm:$0xff] %vm247_vm2, %v687_v28 }
  0xcc   :  { %v158_v29 = vpop.f32.mrf.mxu0  ;;  %v722_v30 = vpop.f32.mrf.mxu1 }
  0xcd   :  { %248 = vst.msk [vmem:[%s1128_s3 + $0x1] sm:$0xff] %vm247_vm2, %v158_v29 }
  0xce   :  { %v690_v31 = vpop.f32.mrf.mxu0  ;;  %v429_v32 = vpop.f32.mrf.mxu1 }
  0xcf   :  { %251 = vst.msk [vmem:[%s1128_s3 + $0x19] sm:$0xff] %vm247_vm2, %v690_v31  ;;  %v580_v31 = vand.u32 127, %v579_v20 }
  0xd0   :  { %v168_v33 = vpop.f32.mrf.mxu0  ;;  %v725_v34 = vpop.f32.mrf.mxu1 }
  0xd1   :  { %250 = vst.msk [vmem:[%s1128_s3 + $0x11] sm:$0xff] %vm247_vm2, %v168_v33  ;;  %vm581_vm4 = vcmp.lt.s32.totalorder %v580_v31, 32 }
  0xd2   :  { %v693_v35 = vpop.f32.mrf.mxu0  ;;  %v439_v36 = vpop.f32.mrf.mxu1 }
  0xd3   :  { %253 = vst.msk [vmem:[%s1128_s3 + $0x29] sm:$0xff] %vm247_vm2, %v693_v35 }
  0xd4   :  { %v270_v37 = vld [vmem:[%s1128_s3 + $0x8] sm:$0xff]  ;;  %v178_v39 = vpop.f32.mrf.mxu0  ;;  %v269_v40 = vld [vmem:[%s1128_s3] sm:$0xff]  ;;  %v728_v43 = vpop.f32.mrf.mxu1 }
  0xd5   :  { %v519_v41 = vadd.f32 %v722_v30, %v270_v37  ;;  %252 = vst.msk [vmem:[%s1128_s3 + $0x21] sm:$0xff] %vm247_vm2, %v178_v39  ;;  %v518_v42 = vadd.f32 %v429_v32, %v269_v40 }
  0xd6   :  { %v696_v44 = vpop.f32.mrf.mxu0  ;;  %v449_v47 = vpop.f32.mrf.mxu1 }
  0xd7   :  { %v544_v45 = vadd.f32 %v916_v38, %v519_v41  ;;  %v543_v46 = vadd.f32 %v916_v38, %v518_v42  ;;  %255 = vst.msk [vmem:[%s1128_s3 + $0x39] sm:$0xff] %vm247_vm2, %v696_v44 }
  0xd8   :  { %v272_v48 = vld [vmem:[%s1128_s3 + $0x18] sm:$0xff]  ;;  %v188_v49 = vpop.f32.mrf.mxu0  ;;  %v271_v50 = vld [vmem:[%s1128_s3 + $0x10] sm:$0xff]  ;;  %v731_v53 = vpop.f32.mrf.mxu1 }
  0xd9   :  { %562 = vst.msk [vmem:[%s1128_s3 + $0x8] sm:$0xff] %vm247_vm2, %v544_v45  ;;  %561 = vst.msk [vmem:[%s1128_s3] sm:$0xff] %vm247_vm2, %v543_v46  ;;  %v521_v51 = vadd.f32 %v725_v34, %v272_v48  ;;  %v520_v52 = vadd.f32 %v439_v36, %v271_v50 }
  0xda   :  { %254 = vst.msk [vmem:[%s1128_s3 + $0x31] sm:$0xff] %vm247_vm2, %v188_v49  ;;  %v699_v54 = vpop.f32.mrf.mxu0  ;;  %v459_v57 = vpop.f32.mrf.mxu1 }
  0xdb   :  { %v546_v55 = vadd.f32 %v916_v38, %v521_v51  ;;  %v545_v56 = vadd.f32 %v916_v38, %v520_v52  ;;  %257 = vst.msk [vmem:[%s1128_s3 + $0x49] sm:$0xff] %vm247_vm2, %v699_v54 }
  0xdc   :  { %v274_v58 = vld [vmem:[%s1128_s3 + $0x28] sm:$0xff]  ;;  %v198_v59 = vpop.f32.mrf.mxu0  ;;  %v273_v60 = vld [vmem:[%s1128_s3 + $0x20] sm:$0xff]  ;;  %v734_v63 = vpop.f32.mrf.mxu1 }
  0xdd   :  { %564 = vst.msk [vmem:[%s1128_s3 + $0x18] sm:$0xff] %vm247_vm2, %v546_v55  ;;  %563 = vst.msk [vmem:[%s1128_s3 + $0x10] sm:$0xff] %vm247_vm2, %v545_v56  ;;  %v523_v61 = vadd.f32 %v728_v43, %v274_v58  ;;  %v522_v62 = vadd.f32 %v449_v47, %v273_v60 }
  0xde   :  { %256 = vst.msk [vmem:[%s1128_s3 + $0x41] sm:$0xff] %vm247_vm2, %v198_v59  ;;  %v702_v0 = vpop.f32.mrf.mxu0  ;;  %v469_v3 = vpop.f32.mrf.mxu1 }
  0xdf   :  { %v548_v1 = vadd.f32 %v916_v38, %v523_v61  ;;  %v547_v2 = vadd.f32 %v916_v38, %v522_v62  ;;  %259 = vst.msk [vmem:[%s1128_s3 + $0x59] sm:$0xff] %vm247_vm2, %v702_v0 }
  0xe0   :  { %v208_v5 = vpop.f32.mrf.mxu0  ;;  %v737_v9 = vpop.f32.mrf.mxu1 }
  0xe1   :  { %v276_v4 = vld [vmem:[%s1128_s3 + $0x38] sm:$0xff]  ;;  %v275_v6 = vld [vmem:[%s1128_s3 + $0x30] sm:$0xff]  ;;  %566 = vst.msk [vmem:[%s1128_s3 + $0x28] sm:$0xff] %vm247_vm2, %v548_v1  ;;  %565 = vst.msk [vmem:[%s1128_s3 + $0x20] sm:$0xff] %vm247_vm2, %v547_v2 }
  0xe2   :  { %v525_v7 = vadd.f32 %v731_v53, %v276_v4  ;;  %258 = vst.msk [vmem:[%s1128_s3 + $0x51] sm:$0xff] %vm247_vm2, %v208_v5  ;;  %v524_v8 = vadd.f32 %v459_v57, %v275_v6  ;;  %v705_v10 = vpop.f32.mrf.mxu0  ;;  %v479_v13 = vpop.f32.mrf.mxu1 }
  0xe3   :  { %261 = vst.msk [vmem:[%s1128_s3 + $0x69] sm:$0xff] %vm247_vm2, %v705_v10 }
  0xe4   :  { %v550_v11 = vadd.f32 %v916_v38, %v525_v7  ;;  %v549_v12 = vadd.f32 %v916_v38, %v524_v8  ;;  %v218_v15 = vpop.f32.mrf.mxu0  ;;  %v740_v19 = vpop.f32.mrf.mxu1 }
  0xe5   :  { %v278_v14 = vld [vmem:[%s1128_s3 + $0x48] sm:$0xff]  ;;  %v277_v16 = vld [vmem:[%s1128_s3 + $0x40] sm:$0xff]  ;;  %260 = vst.msk [vmem:[%s1128_s3 + $0x61] sm:$0xff] %vm247_vm2, %v218_v15 }
  0xe6   :  { %568 = vst.msk [vmem:[%s1128_s3 + $0x38] sm:$0xff] %vm247_vm2, %v550_v11  ;;  %567 = vst.msk [vmem:[%s1128_s3 + $0x30] sm:$0xff] %vm247_vm2, %v549_v12  ;;  %v527_v17 = vadd.f32 %v734_v63, %v278_v14  ;;  %v526_v18 = vadd.f32 %v469_v3, %v277_v16  ;;  %v708_v21 = vpop.f32.mrf.mxu0  ;;  %v489_v24 = vpop.f32.mrf.mxu1 }
  0xe7   :  { %263 = vst.msk [vmem:[%s1128_s3 + $0x79] sm:$0xff] %vm247_vm2, %v708_v21 }
  0xe8   :  { %v552_v22 = vadd.f32 %v916_v38, %v527_v17  ;;  %v551_v23 = vadd.f32 %v916_v38, %v526_v18  ;;  %v228_v26 = vpop.f32.mrf.mxu0  ;;  %v743_v30 = vpop.f32.mrf.mxu1 }
  0xe9   :  { %v280_v25 = vld [vmem:[%s1128_s3 + $0x58] sm:$0xff]  ;;  %v279_v27 = vld [vmem:[%s1128_s3 + $0x50] sm:$0xff]  ;;  %262 = vst.msk [vmem:[%s1128_s3 + $0x71] sm:$0xff] %vm247_vm2, %v228_v26 }
  0xea   :  { %570 = vst.msk [vmem:[%s1128_s3 + $0x48] sm:$0xff] %vm247_vm2, %v552_v22  ;;  %569 = vst.msk [vmem:[%s1128_s3 + $0x40] sm:$0xff] %vm247_vm2, %v551_v23  ;;  %v529_v28 = vadd.f32 %v737_v9, %v280_v25  ;;  %v528_v29 = vadd.f32 %v479_v13, %v279_v27  ;;  %v711_v32 = vpop.f32.mrf.mxu0  ;;  %v499_v35 = vpop.f32.mrf.mxu1 }
  0xeb   :  { %266 = vst.msk [vmem:[%s1128_s3 + $0x89] sm:$0x7f] %vm265_vm3, %v711_v32 }
  0xec   :  { %v554_v33 = vadd.f32 %v916_v38, %v529_v28  ;;  %v553_v34 = vadd.f32 %v916_v38, %v528_v29  ;;  %v282_v36 = vld [vmem:[%s1128_s3 + $0x68] sm:$0xff]  ;;  %v238_v37 = vpop.f32.mrf.mxu0  ;;  %v281_v39 = vld [vmem:[%s1128_s3 + $0x60] sm:$0xff]  ;;  %v746_v42 = vpop.f32.mrf.mxu1 }
  0xed   :  { %v531_v40 = vadd.f32 %v740_v19, %v282_v36  ;;  %264 = vst.msk [vmem:[%s1128_s3 + $0x81] sm:$0xff] %vm247_vm2, %v238_v37  ;;  %v530_v41 = vadd.f32 %v489_v24, %v281_v39 }
  0xee   :  { %572 = vst.msk [vmem:[%s1128_s3 + $0x58] sm:$0xff] %vm247_vm2, %v554_v33  ;;  %571 = vst.msk [vmem:[%s1128_s3 + $0x50] sm:$0xff] %vm247_vm2, %v553_v34  ;;  %v509_v51 = vpop.f32.mrf.mxu1 }
  0xef   :  { %v556_v43 = vadd.f32 %v916_v38, %v531_v40  ;;  %v555_v44 = vadd.f32 %v916_v38, %v530_v41 }
  0xf0   :  { %v284_v46 = vld [vmem:[%s1128_s3 + $0x78] sm:$0xff]  ;;  %v283_v47 = vld [vmem:[%s1128_s3 + $0x70] sm:$0xff] }
  0xf1   :  { %v582_v45 = vld [vmem:[%s1128_s3 + $0x47] sm:$0x1]  ;;  %574 = vst.msk [vmem:[%s1128_s3 + $0x68] sm:$0xff] %vm247_vm2, %v556_v43  ;;  %573 = vst.msk [vmem:[%s1128_s3 + $0x60] sm:$0xff] %vm247_vm2, %v555_v44  ;;  %v533_v49 = vadd.f32 %v743_v30, %v284_v46  ;;  %v532_v50 = vadd.f32 %v499_v35, %v283_v47 }
  0xf2   :  { %v583_v48 = vsel %vm581_vm4, %v582_v45, 0.0 }
  0xf3   :  { %584 = vst.msk [vmem:[%s1128_s3 + $0x47] sm:$0x1] %vm267_vm1, %v583_v48  ;;  %v558_v52 = vadd.f32 %v916_v38, %v533_v49  ;;  %v557_v53 = vadd.f32 %v916_v38, %v532_v50 }
  0xf4   :  { %v286_v54 = vld [vmem:[%s1128_s3 + $0x88] sm:$0xff]  ;;  %v285_v55 = vld [vmem:[%s1128_s3 + $0x80] sm:$0xff] }
  0xf5   :  { %576 = vst.msk [vmem:[%s1128_s3 + $0x78] sm:$0xff] %vm247_vm2, %v558_v52  ;;  %575 = vst.msk [vmem:[%s1128_s3 + $0x70] sm:$0xff] %vm247_vm2, %v557_v53  ;;  %v535_v56 = vadd.f32 %v746_v42, %v286_v54  ;;  %v534_v57 = vadd.f32 %v509_v51, %v285_v55 }
  0xf7   :  { %v560_v58 = vadd.f32 %v916_v38, %v535_v56  ;;  %v559_v59 = vadd.f32 %v916_v38, %v534_v57 }
  0xf9   :  { %578 = vst.msk [vmem:[%s1128_s3 + $0x88] sm:$0xff] %vm247_vm2, %v560_v58  ;;  %577 = vst.msk [vmem:[%s1128_s3 + $0x80] sm:$0xff] %vm247_vm2, %v559_v59 }
 0x100   :  { %v585_v60 = vld [vmem:[%s1128_s3 + $0x8f] sm:$0x1] }
 0x101   :  { %v586_v61 = vsel %vm581_vm4, %v585_v60, 0.0 }
 0x102   :  { %587 = vst.msk [vmem:[%s1128_s3 + $0x8f] sm:$0x1] %vm267_vm1, %v586_v61 }

// kernel: _lambda_.11
= control target key start
LH: loop header
LB: loop body
LE: loop exit
PB: predicated region body
PF: predicated region fallthrough
CT: control target
= control target key end

     0   :  { %vm55_vm0 = vcmask 261120   ;;  %vm447_vm1 = vcmask 516096   ;;  %v1288_v44 = vmov 0.0   ;;  %vm409_vm2 = vcmask 523264   ;;  %s1977_s1 = inlined_call_operand.vmem [shape: f32[2,32,64], index: 1, kind: input, shape index: {}]   ;;  %s1978_s0 = inlined_call_operand.vmem [shape: f32[288,32], index: 0, kind: input, shape index: {}]   ;;  %s1979_s3 = inlined_call_operand.vmem [shape: f32[288,64], index: 3, kind: output, shape index: {}]   ;;  %s1980_s2 = inlined_call_operand.vmem [shape: f32[1,64], index: 2, kind: input, shape index: {}]  }
   0x1   :  { %v1009_v0 = vld [vmem:[%s1977_s1 + $0x38] sm:$0xff]  ;;  %v1008_v1 = vld [vmem:[%s1977_s1 + $0x30] sm:$0xff]  ;;  %v14_v2 = vld [vmem:[%s1978_s0] sm:$0xff]  ;;  %448 = vst.msk [vmem:[%s1979_s3] sm:$0x1] %vm447_vm1, %v1288_v44  ;;  %vm445_vm4 = vcmask 522240  }
   0x2   :  { %1163 = vmatprep.subr.mxu0 %v1009_v0  ;;  %v1007_v3 = vld [vmem:[%s1977_s1 + $0x28] sm:$0xff]  ;;  %1171 = vmatprep.mubr.msk.f32.mxu0 %vm55_vm0, %v14_v2  ;;  %v524_v4 = vld [vmem:[%s1977_s1 + $0x18] sm:$0xff]  ;;  %v523_v5 = vld [vmem:[%s1977_s1 + $0x10] sm:$0xff] }
   0x3   :  { %1164 = vmatpush3.msra.mxu0 %v1009_v0  ;;  %1225 = vmatprep.subr.mxu1 %v524_v4  ;;  %v1006_v6 = vld [vmem:[%s1977_s1 + $0x20] sm:$0xff]  ;;  %v522_v7 = vld [vmem:[%s1977_s1 + $0x8] sm:$0xff]  ;;  %v16_v10 = vld [vmem:[%s1978_s0 + $0x10] sm:$0xff] }
   0x4   :  { %1165 = vmatprep.subr.mxu0 %v1008_v1  ;;  %1226 = vmatpush3.msra.mxu1 %v524_v4  ;;  %v15_v8 = vld [vmem:[%s1978_s0 + $0x8] sm:$0xff]  ;;  %v521_v9 = vld [vmem:[%s1977_s1] sm:$0xff]  ;;  %v17_v11 = vld [vmem:[%s1978_s0 + $0x18] sm:$0xff] }
   0x5   :  { %1166 = vmatpush3.msra.mxu0 %v1008_v1  ;;  %1227 = vmatprep.subr.mxu1 %v523_v5  ;;  %v18_v12 = vld [vmem:[%s1978_s0 + $0x20] sm:$0xff]  ;;  %v19_v13 = vld [vmem:[%s1978_s0 + $0x28] sm:$0xff]  ;;  %v20_v14 = vld [vmem:[%s1978_s0 + $0x30] sm:$0xff] }
   0x6   :  { %1167 = vmatprep.subr.mxu0 %v1007_v3  ;;  %1228 = vmatpush3.msra.mxu1 %v523_v5  ;;  %v21_v15 = vld [vmem:[%s1978_s0 + $0x38] sm:$0xff]  ;;  %v22_v16 = vld [vmem:[%s1978_s0 + $0x40] sm:$0xff]  ;;  %v23_v17 = vld [vmem:[%s1978_s0 + $0x48] sm:$0xff] }
   0x7   :  { %1168 = vmatpush3.msra.mxu0 %v1007_v3  ;;  %1229 = vmatprep.subr.mxu1 %v522_v7  ;;  %v24_v18 = vld [vmem:[%s1978_s0 + $0x50] sm:$0xff]  ;;  %v25_v19 = vld [vmem:[%s1978_s0 + $0x58] sm:$0xff]  ;;  %v26_v20 = vld [vmem:[%s1978_s0 + $0x60] sm:$0xff] }
   0x8   :  { %1169 = vmatprep.subr.mxu0 %v1006_v6  ;;  %1230 = vmatpush3.msra.mxu1 %v522_v7  ;;  %v27_v21 = vld [vmem:[%s1978_s0 + $0x68] sm:$0xff]  ;;  %v28_v22 = vld [vmem:[%s1978_s0 + $0x70] sm:$0xff]  ;;  %v29_v23 = vld [vmem:[%s1978_s0 + $0x78] sm:$0xff] }
   0x9   :  { %1170 = vmatpush3.msra.mxu0 %v1006_v6  ;;  %1231 = vmatprep.subr.mxu1 %v521_v9  ;;  %v30_v24 = vld [vmem:[%s1978_s0 + $0x80] sm:$0xff]  ;;  %v31_v25 = vld [vmem:[%s1978_s0 + $0x88] sm:$0xff]  ;;  %v32_v26 = vld [vmem:[%s1978_s0 + $0x90] sm:$0xff] }
   0xa   :  { %1172 = vmatmul.mubr.msk.f32.vlgmr.msra.gmra.mxu0 %vm55_vm0, %v15_v8  ;;  %1232 = vmatpush3.msra.mxu1 %v521_v9  ;;  %v33_v27 = vld [vmem:[%s1978_s0 + $0x98] sm:$0xff]  ;;  %v34_v28 = vld [vmem:[%s1978_s0 + $0xa0] sm:$0xff]  ;;  %v35_v29 = vld [vmem:[%s1978_s0 + $0xa8] sm:$0xff] }
   0xb   :  { %1174 = vmatprep.mubr.msk.f32.mxu0 %vm55_vm0, %v16_v10  ;;  %1233 = vmatprep.mubr.msk.f32.mxu1 %vm55_vm0, %v14_v2  ;;  %v36_v30 = vld [vmem:[%s1978_s0 + $0xb0] sm:$0xff]  ;;  %v37_v31 = vld [vmem:[%s1978_s0 + $0xb8] sm:$0xff]  ;;  %v38_v32 = vld [vmem:[%s1978_s0 + $0xc0] sm:$0xff] }
   0xc   :  { %1234 = vmatmul.mubr.msk.f32.vlgmr.msra.gmra.mxu1 %vm55_vm0, %v15_v8  ;;  %v39_v33 = vld [vmem:[%s1978_s0 + $0xc8] sm:$0xff]  ;;  %v40_v34 = vld [vmem:[%s1978_s0 + $0xd0] sm:$0xff]  ;;  %v41_v35 = vld [vmem:[%s1978_s0 + $0xd8] sm:$0xff] }
   0xd   :  { %1236 = vmatprep.mubr.msk.f32.mxu1 %vm55_vm0, %v16_v10  ;;  %v42_v36 = vld [vmem:[%s1978_s0 + $0xe0] sm:$0xff]  ;;  %v43_v37 = vld [vmem:[%s1978_s0 + $0xe8] sm:$0xff]  ;;  %v44_v38 = vld [vmem:[%s1978_s0 + $0xf0] sm:$0xff] }
   0xe   :  { %1175 = vmatmul.mubr.msk.f32.gmra.mxu0 %vm55_vm0, %v17_v11  ;;  %v45_v39 = vld [vmem:[%s1978_s0 + $0xf8] sm:$0xff]  ;;  %v46_v40 = vld [vmem:[%s1978_s0 + $0x100] sm:$0xff]  ;;  %v47_v41 = vld [vmem:[%s1978_s0 + $0x108] sm:$0xff] }
   0xf   :  { %1177 = vmatprep.mubr.msk.f32.mxu0 %vm55_vm0, %v18_v12  ;;  %v48_v42 = vld [vmem:[%s1978_s0 + $0x110] sm:$0xff]  ;;  %v49_v43 = vld [vmem:[%s1978_s0 + $0x118] sm:$0x7f]  ;;  %v1546_v56 = vld [vmem:[%s1980_s2] ss:$0 sm:$0xff] }
  0x10   :  { %1237 = vmatmul.mubr.msk.f32.gmra.mxu1 %vm55_vm0, %v17_v11  ;;  %v520_v45 = vld [vmem:[%s1978_s0 + $0x118] sm:$0xff] }
  0x11   :  { %1239 = vmatprep.mubr.msk.f32.mxu1 %vm55_vm0, %v18_v12 }
  0x12   :  { %1178 = vmatmul.mubr.msk.f32.gmra.mxu0 %vm55_vm0, %v19_v13 }
  0x13   :  { %1180 = vmatprep.mubr.msk.f32.mxu0 %vm55_vm0, %v20_v14 }
  0x14   :  { %1240 = vmatmul.mubr.msk.f32.gmra.mxu1 %vm55_vm0, %v19_v13 }
  0x15   :  { %1242 = vmatprep.mubr.msk.f32.mxu1 %vm55_vm0, %v20_v14 }
  0x16   :  { %1181 = vmatmul.mubr.msk.f32.gmra.mxu0 %vm55_vm0, %v21_v15 }
  0x17   :  { %1183 = vmatprep.mubr.msk.f32.mxu0 %vm55_vm0, %v22_v16 }
  0x18   :  { %1243 = vmatmul.mubr.msk.f32.gmra.mxu1 %vm55_vm0, %v21_v15 }
  0x19   :  { %1245 = vmatprep.mubr.msk.f32.mxu1 %vm55_vm0, %v22_v16 }
  0x1a   :  { %1184 = vmatmul.mubr.msk.f32.gmra.mxu0 %vm55_vm0, %v23_v17 }
  0x1b   :  { %1186 = vmatprep.mubr.msk.f32.mxu0 %vm55_vm0, %v24_v18 }
  0x1c   :  { %1246 = vmatmul.mubr.msk.f32.gmra.mxu1 %vm55_vm0, %v23_v17 }
  0x1d   :  { %1248 = vmatprep.mubr.msk.f32.mxu1 %vm55_vm0, %v24_v18 }
  0x1e   :  { %1187 = vmatmul.mubr.msk.f32.gmra.mxu0 %vm55_vm0, %v25_v19 }
  0x1f   :  { %1189 = vmatprep.mubr.msk.f32.mxu0 %vm55_vm0, %v26_v20 }
  0x20   :  { %1249 = vmatmul.mubr.msk.f32.gmra.mxu1 %vm55_vm0, %v25_v19 }
  0x21   :  { %1251 = vmatprep.mubr.msk.f32.mxu1 %vm55_vm0, %v26_v20 }
  0x22   :  { %1190 = vmatmul.mubr.msk.f32.gmra.mxu0 %vm55_vm0, %v27_v21 }
  0x23   :  { %1192 = vmatprep.mubr.msk.f32.mxu0 %vm55_vm0, %v28_v22 }
  0x24   :  { %1252 = vmatmul.mubr.msk.f32.gmra.mxu1 %vm55_vm0, %v27_v21 }
  0x25   :  { %1254 = vmatprep.mubr.msk.f32.mxu1 %vm55_vm0, %v28_v22 }
  0x26   :  { %1193 = vmatmul.mubr.msk.f32.gmra.mxu0 %vm55_vm0, %v29_v23 }
  0x27   :  { %1195 = vmatprep.mubr.msk.f32.mxu0 %vm55_vm0, %v30_v24 }
  0x28   :  { %1255 = vmatmul.mubr.msk.f32.gmra.mxu1 %vm55_vm0, %v29_v23 }
  0x29   :  { %1257 = vmatprep.mubr.msk.f32.mxu1 %vm55_vm0, %v30_v24 }
  0x2a   :  { %1196 = vmatmul.mubr.msk.f32.gmra.mxu0 %vm55_vm0, %v31_v25 }
  0x2b   :  { %1198 = vmatprep.mubr.msk.f32.mxu0 %vm55_vm0, %v32_v26 }
  0x2c   :  { %1258 = vmatmul.mubr.msk.f32.gmra.mxu1 %vm55_vm0, %v31_v25 }
  0x2d   :  { %1260 = vmatprep.mubr.msk.f32.mxu1 %vm55_vm0, %v32_v26 }
  0x2e   :  { %1199 = vmatmul.mubr.msk.f32.gmra.mxu0 %vm55_vm0, %v33_v27 }
  0x2f   :  { %1201 = vmatprep.mubr.msk.f32.mxu0 %vm55_vm0, %v34_v28 }
  0x30   :  { %1261 = vmatmul.mubr.msk.f32.gmra.mxu1 %vm55_vm0, %v33_v27 }
  0x31   :  { %1263 = vmatprep.mubr.msk.f32.mxu1 %vm55_vm0, %v34_v28 }
  0x32   :  { %1202 = vmatmul.mubr.msk.f32.gmra.mxu0 %vm55_vm0, %v35_v29 }
  0x33   :  { %1204 = vmatprep.mubr.msk.f32.mxu0 %vm55_vm0, %v36_v30 }
  0x34   :  { %1264 = vmatmul.mubr.msk.f32.gmra.mxu1 %vm55_vm0, %v35_v29 }
  0x35   :  { %1266 = vmatprep.mubr.msk.f32.mxu1 %vm55_vm0, %v36_v30 }
  0x36   :  { %1205 = vmatmul.mubr.msk.f32.gmra.mxu0 %vm55_vm0, %v37_v31 }
  0x37   :  { %1207 = vmatprep.mubr.msk.f32.mxu0 %vm55_vm0, %v38_v32 }
  0x38   :  { %1267 = vmatmul.mubr.msk.f32.gmra.mxu1 %vm55_vm0, %v37_v31 }
  0x39   :  { %1269 = vmatprep.mubr.msk.f32.mxu1 %vm55_vm0, %v38_v32 }
  0x3a   :  { %1208 = vmatmul.mubr.msk.f32.gmra.mxu0 %vm55_vm0, %v39_v33 }
  0x3b   :  { %1210 = vmatprep.mubr.msk.f32.mxu0 %vm55_vm0, %v40_v34 }
  0x3c   :  { %1270 = vmatmul.mubr.msk.f32.gmra.mxu1 %vm55_vm0, %v39_v33 }
  0x3d   :  { %1272 = vmatprep.mubr.msk.f32.mxu1 %vm55_vm0, %v40_v34 }
  0x3e   :  { %1211 = vmatmul.mubr.msk.f32.gmra.mxu0 %vm55_vm0, %v41_v35 }
  0x3f   :  { %1213 = vmatprep.mubr.msk.f32.mxu0 %vm55_vm0, %v42_v36 }
  0x40   :  { %1273 = vmatmul.mubr.msk.f32.gmra.mxu1 %vm55_vm0, %v41_v35 }
  0x41   :  { %1275 = vmatprep.mubr.msk.f32.mxu1 %vm55_vm0, %v42_v36 }
  0x42   :  { %1214 = vmatmul.mubr.msk.f32.gmra.mxu0 %vm55_vm0, %v43_v37 }
  0x43   :  { %1216 = vmatprep.mubr.msk.f32.mxu0 %vm55_vm0, %v44_v38 }
  0x44   :  { %1276 = vmatmul.mubr.msk.f32.gmra.mxu1 %vm55_vm0, %v43_v37 }
  0x45   :  { %1278 = vmatprep.mubr.msk.f32.mxu1 %vm55_vm0, %v44_v38 }
  0x46   :  { %1217 = vmatmul.mubr.msk.f32.gmra.mxu0 %vm55_vm0, %v45_v39 }
  0x47   :  { %1219 = vmatprep.mubr.msk.f32.mxu0 %vm55_vm0, %v46_v40 }
  0x48   :  { %1279 = vmatmul.mubr.msk.f32.gmra.mxu1 %vm55_vm0, %v45_v39 }
  0x49   :  { %1281 = vmatprep.mubr.msk.f32.mxu1 %vm55_vm0, %v46_v40 }
  0x4a   :  { %1220 = vmatmul.mubr.msk.f32.gmra.mxu0 %vm55_vm0, %v47_v41 }
  0x4b   :  { %1222 = vmatprep.mubr.msk.f32.mxu0 %vm55_vm0, %v48_v42 }
  0x4c   :  { %1282 = vmatmul.mubr.msk.f32.gmra.mxu1 %vm55_vm0, %v47_v41 }
  0x4d   :  { %1284 = vmatprep.mubr.msk.f32.mxu1 %vm55_vm0, %v48_v42 }
  0x4e   :  { %1223 = vmatmul.mubr.msk.f32.gmra.mxu0 %vm55_vm0, %v49_v43 }
  0x50   :  { %1285 = vmatmul.mubr.msk.f32.gmra.mxu1 %vm55_vm0, %v520_v45 }
  0xca   :  { %v1173_v46 = vpop.f32.mrf.mxu0 }
  0xcb   :  { %411 = vst.msk [vmem:[%s1979_s3 + $0x9] sm:$0xff] %vm409_vm2, %v1173_v46 }
  0xcc   :  { %v230_v47 = vpop.f32.mrf.mxu0  ;;  %v1235_v48 = vpop.f32.mrf.mxu1 }
  0xcd   :  { %410 = vst.msk [vmem:[%s1979_s3 + $0x1] sm:$0xff] %vm409_vm2, %v230_v47 }
  0xce   :  { %v1176_v49 = vpop.f32.mrf.mxu0  ;;  %v699_v50 = vpop.f32.mrf.mxu1 }
  0xcf   :  { %413 = vst.msk [vmem:[%s1979_s3 + $0x19] sm:$0xff] %vm409_vm2, %v1176_v49 }
  0xd0   :  { %v240_v51 = vpop.f32.mrf.mxu0  ;;  %v1238_v52 = vpop.f32.mrf.mxu1 }
  0xd1   :  { %412 = vst.msk [vmem:[%s1979_s3 + $0x11] sm:$0xff] %vm409_vm2, %v240_v51 }
  0xd2   :  { %v1179_v53 = vpop.f32.mrf.mxu0  ;;  %v709_v54 = vpop.f32.mrf.mxu1 }
  0xd3   :  { %415 = vst.msk [vmem:[%s1979_s3 + $0x29] sm:$0xff] %vm409_vm2, %v1179_v53 }
  0xd4   :  { %v450_v55 = vld [vmem:[%s1979_s3 + $0x8] sm:$0xff]  ;;  %v250_v57 = vpop.f32.mrf.mxu0  ;;  %v449_v58 = vld [vmem:[%s1979_s3] sm:$0xff]  ;;  %v1241_v61 = vpop.f32.mrf.mxu1 }
  0xd5   :  { %v879_v59 = vadd.f32 %v1235_v48, %v450_v55  ;;  %414 = vst.msk [vmem:[%s1979_s3 + $0x21] sm:$0xff] %vm409_vm2, %v250_v57  ;;  %v878_v60 = vadd.f32 %v699_v50, %v449_v58 }
  0xd6   :  { %v1182_v62 = vpop.f32.mrf.mxu0  ;;  %v719_v1 = vpop.f32.mrf.mxu1 }
  0xd7   :  { %v922_v63 = vadd.f32 %v1546_v56, %v879_v59  ;;  %v921_v0 = vadd.f32 %v1546_v56, %v878_v60  ;;  %417 = vst.msk [vmem:[%s1979_s3 + $0x39] sm:$0xff] %vm409_vm2, %v1182_v62 }
  0xd8   :  { %v452_v2 = vld [vmem:[%s1979_s3 + $0x18] sm:$0xff]  ;;  %v260_v3 = vpop.f32.mrf.mxu0  ;;  %v451_v4 = vld [vmem:[%s1979_s3 + $0x10] sm:$0xff]  ;;  %v1244_v7 = vpop.f32.mrf.mxu1 }
  0xd9   :  { %958 = vst.msk [vmem:[%s1979_s3 + $0x8] sm:$0xff] %vm409_vm2, %v922_v63  ;;  %957 = vst.msk [vmem:[%s1979_s3] sm:$0xff] %vm409_vm2, %v921_v0  ;;  %v881_v5 = vadd.f32 %v1238_v52, %v452_v2  ;;  %v880_v6 = vadd.f32 %v709_v54, %v451_v4 }
  0xda   :  { %416 = vst.msk [vmem:[%s1979_s3 + $0x31] sm:$0xff] %vm409_vm2, %v260_v3  ;;  %v1185_v8 = vpop.f32.mrf.mxu0  ;;  %v729_v11 = vpop.f32.mrf.mxu1 }
  0xdb   :  { %v924_v9 = vadd.f32 %v1546_v56, %v881_v5  ;;  %v923_v10 = vadd.f32 %v1546_v56, %v880_v6  ;;  %419 = vst.msk [vmem:[%s1979_s3 + $0x49] sm:$0xff] %vm409_vm2, %v1185_v8 }
  0xdc   :  { %v454_v12 = vld [vmem:[%s1979_s3 + $0x28] sm:$0xff]  ;;  %v270_v13 = vpop.f32.mrf.mxu0  ;;  %v453_v14 = vld [vmem:[%s1979_s3 + $0x20] sm:$0xff]  ;;  %v1247_v17 = vpop.f32.mrf.mxu1 }
  0xdd   :  { %960 = vst.msk [vmem:[%s1979_s3 + $0x18] sm:$0xff] %vm409_vm2, %v924_v9  ;;  %959 = vst.msk [vmem:[%s1979_s3 + $0x10] sm:$0xff] %vm409_vm2, %v923_v10  ;;  %v883_v15 = vadd.f32 %v1241_v61, %v454_v12  ;;  %v882_v16 = vadd.f32 %v719_v1, %v453_v14 }
  0xde   :  { %418 = vst.msk [vmem:[%s1979_s3 + $0x41] sm:$0xff] %vm409_vm2, %v270_v13  ;;  %v1188_v18 = vpop.f32.mrf.mxu0  ;;  %v739_v21 = vpop.f32.mrf.mxu1 }
  0xdf   :  { %v926_v19 = vadd.f32 %v1546_v56, %v883_v15  ;;  %v925_v20 = vadd.f32 %v1546_v56, %v882_v16  ;;  %421 = vst.msk [vmem:[%s1979_s3 + $0x59] sm:$0xff] %vm409_vm2, %v1188_v18  ;;  %v993_v15 = vlaneseq }
  0xe0   :  { %v280_v23 = vpop.f32.mrf.mxu0  ;;  %v1250_v27 = vpop.f32.mrf.mxu1 }
  0xe1   :  { %v456_v22 = vld [vmem:[%s1979_s3 + $0x38] sm:$0xff]  ;;  %v455_v24 = vld [vmem:[%s1979_s3 + $0x30] sm:$0xff]  ;;  %962 = vst.msk [vmem:[%s1979_s3 + $0x28] sm:$0xff] %vm409_vm2, %v926_v19  ;;  %961 = vst.msk [vmem:[%s1979_s3 + $0x20] sm:$0xff] %vm409_vm2, %v925_v20 }
  0xe2   :  { %v885_v25 = vadd.f32 %v1244_v7, %v456_v22  ;;  %420 = vst.msk [vmem:[%s1979_s3 + $0x51] sm:$0xff] %vm409_vm2, %v280_v23  ;;  %v884_v26 = vadd.f32 %v729_v11, %v455_v24  ;;  %v1191_v28 = vpop.f32.mrf.mxu0  ;;  %v749_v31 = vpop.f32.mrf.mxu1 }
  0xe3   :  { %423 = vst.msk [vmem:[%s1979_s3 + $0x69] sm:$0xff] %vm409_vm2, %v1191_v28 }
  0xe4   :  { %v928_v29 = vadd.f32 %v1546_v56, %v885_v25  ;;  %v927_v30 = vadd.f32 %v1546_v56, %v884_v26  ;;  %v290_v33 = vpop.f32.mrf.mxu0  ;;  %v1253_v37 = vpop.f32.mrf.mxu1  ;;  %v1771_v26 = vand.u32 127, %v993_v15 }
  0xe5   :  { %v458_v32 = vld [vmem:[%s1979_s3 + $0x48] sm:$0xff]  ;;  %v457_v34 = vld [vmem:[%s1979_s3 + $0x40] sm:$0xff]  ;;  %422 = vst.msk [vmem:[%s1979_s3 + $0x61] sm:$0xff] %vm409_vm2, %v290_v33 }
  0xe6   :  { %964 = vst.msk [vmem:[%s1979_s3 + $0x38] sm:$0xff] %vm409_vm2, %v928_v29  ;;  %963 = vst.msk [vmem:[%s1979_s3 + $0x30] sm:$0xff] %vm409_vm2, %v927_v30  ;;  %v887_v35 = vadd.f32 %v1247_v17, %v458_v32  ;;  %v886_v36 = vadd.f32 %v739_v21, %v457_v34  ;;  %v1194_v38 = vpop.f32.mrf.mxu0  ;;  %v759_v41 = vpop.f32.mrf.mxu1  ;;  %vm995_vm3 = vcmp.lt.s32.totalorder %v1771_v26, 32 }
  0xe7   :  { %425 = vst.msk [vmem:[%s1979_s3 + $0x79] sm:$0xff] %vm409_vm2, %v1194_v38 }
  0xe8   :  { %v930_v39 = vadd.f32 %v1546_v56, %v887_v35  ;;  %v929_v40 = vadd.f32 %v1546_v56, %v886_v36  ;;  %v300_v43 = vpop.f32.mrf.mxu0  ;;  %v1256_v47 = vpop.f32.mrf.mxu1 }
  0xe9   :  { %v460_v42 = vld [vmem:[%s1979_s3 + $0x58] sm:$0xff]  ;;  %v459_v44 = vld [vmem:[%s1979_s3 + $0x50] sm:$0xff]  ;;  %424 = vst.msk [vmem:[%s1979_s3 + $0x71] sm:$0xff] %vm409_vm2, %v300_v43 }
  0xea   :  { %966 = vst.msk [vmem:[%s1979_s3 + $0x48] sm:$0xff] %vm409_vm2, %v930_v39  ;;  %965 = vst.msk [vmem:[%s1979_s3 + $0x40] sm:$0xff] %vm409_vm2, %v929_v40  ;;  %v889_v45 = vadd.f32 %v1250_v27, %v460_v42  ;;  %v888_v46 = vadd.f32 %v749_v31, %v459_v44  ;;  %v1197_v48 = vpop.f32.mrf.mxu0  ;;  %v769_v51 = vpop.f32.mrf.mxu1 }
  0xeb   :  { %427 = vst.msk [vmem:[%s1979_s3 + $0x89] sm:$0xff] %vm409_vm2, %v1197_v48 }
  0xec   :  { %v932_v49 = vadd.f32 %v1546_v56, %v889_v45  ;;  %v931_v50 = vadd.f32 %v1546_v56, %v888_v46  ;;  %v462_v52 = vld [vmem:[%s1979_s3 + $0x68] sm:$0xff]  ;;  %v310_v53 = vpop.f32.mrf.mxu0  ;;  %v461_v54 = vld [vmem:[%s1979_s3 + $0x60] sm:$0xff]  ;;  %v1259_v58 = vpop.f32.mrf.mxu1 }
  0xed   :  { %v891_v55 = vadd.f32 %v1253_v37, %v462_v52  ;;  %426 = vst.msk [vmem:[%s1979_s3 + $0x81] sm:$0xff] %vm409_vm2, %v310_v53  ;;  %v890_v57 = vadd.f32 %v759_v41, %v461_v54 }
  0xee   :  { %968 = vst.msk [vmem:[%s1979_s3 + $0x58] sm:$0xff] %vm409_vm2, %v932_v49  ;;  %967 = vst.msk [vmem:[%s1979_s3 + $0x50] sm:$0xff] %vm409_vm2, %v931_v50  ;;  %v1200_v59 = vpop.f32.mrf.mxu0  ;;  %v779_v62 = vpop.f32.mrf.mxu1 }
  0xef   :  { %v934_v60 = vadd.f32 %v1546_v56, %v891_v55  ;;  %v933_v61 = vadd.f32 %v1546_v56, %v890_v57  ;;  %429 = vst.msk [vmem:[%s1979_s3 + $0x99] sm:$0xff] %vm409_vm2, %v1200_v59 }
  0xf0   :  { %v464_v63 = vld [vmem:[%s1979_s3 + $0x78] sm:$0xff]  ;;  %v320_v0 = vpop.f32.mrf.mxu0  ;;  %v463_v1 = vld [vmem:[%s1979_s3 + $0x70] sm:$0xff]  ;;  %v1262_v4 = vpop.f32.mrf.mxu1 }
  0xf1   :  { %970 = vst.msk [vmem:[%s1979_s3 + $0x68] sm:$0xff] %vm409_vm2, %v934_v60  ;;  %969 = vst.msk [vmem:[%s1979_s3 + $0x60] sm:$0xff] %vm409_vm2, %v933_v61  ;;  %v893_v2 = vadd.f32 %v1256_v47, %v464_v63  ;;  %v892_v3 = vadd.f32 %v769_v51, %v463_v1 }
  0xf2   :  { %428 = vst.msk [vmem:[%s1979_s3 + $0x91] sm:$0xff] %vm409_vm2, %v320_v0  ;;  %v1203_v5 = vpop.f32.mrf.mxu0  ;;  %v789_v8 = vpop.f32.mrf.mxu1 }
  0xf3   :  { %v936_v6 = vadd.f32 %v1546_v56, %v893_v2  ;;  %v935_v7 = vadd.f32 %v1546_v56, %v892_v3  ;;  %431 = vst.msk [vmem:[%s1979_s3 + $0xa9] sm:$0xff] %vm409_vm2, %v1203_v5 }
  0xf4   :  { %v466_v9 = vld [vmem:[%s1979_s3 + $0x88] sm:$0xff]  ;;  %v330_v10 = vpop.f32.mrf.mxu0  ;;  %v465_v11 = vld [vmem:[%s1979_s3 + $0x80] sm:$0xff]  ;;  %v1265_v14 = vpop.f32.mrf.mxu1 }
  0xf5   :  { %972 = vst.msk [vmem:[%s1979_s3 + $0x78] sm:$0xff] %vm409_vm2, %v936_v6  ;;  %971 = vst.msk [vmem:[%s1979_s3 + $0x70] sm:$0xff] %vm409_vm2, %v935_v7  ;;  %v895_v12 = vadd.f32 %v1259_v58, %v466_v9  ;;  %v894_v13 = vadd.f32 %v779_v62, %v465_v11 }
  0xf6   :  { %430 = vst.msk [vmem:[%s1979_s3 + $0xa1] sm:$0xff] %vm409_vm2, %v330_v10  ;;  %v1206_v16 = vpop.f32.mrf.mxu0  ;;  %v799_v19 = vpop.f32.mrf.mxu1 }
  0xf7   :  { %v938_v17 = vadd.f32 %v1546_v56, %v895_v12  ;;  %v937_v18 = vadd.f32 %v1546_v56, %v894_v13  ;;  %433 = vst.msk [vmem:[%s1979_s3 + $0xb9] sm:$0xff] %vm409_vm2, %v1206_v16 }
  0xf8   :  { %v340_v21 = vpop.f32.mrf.mxu0  ;;  %v1268_v25 = vpop.f32.mrf.mxu1 }
  0xf9   :  { %v468_v20 = vld [vmem:[%s1979_s3 + $0x98] sm:$0xff]  ;;  %v467_v22 = vld [vmem:[%s1979_s3 + $0x90] sm:$0xff]  ;;  %974 = vst.msk [vmem:[%s1979_s3 + $0x88] sm:$0xff] %vm409_vm2, %v938_v17  ;;  %973 = vst.msk [vmem:[%s1979_s3 + $0x80] sm:$0xff] %vm409_vm2, %v937_v18 }
  0xfa   :  { %v897_v23 = vadd.f32 %v1262_v4, %v468_v20  ;;  %432 = vst.msk [vmem:[%s1979_s3 + $0xb1] sm:$0xff] %vm409_vm2, %v340_v21  ;;  %v896_v24 = vadd.f32 %v789_v8, %v467_v22  ;;  %v1209_v27 = vpop.f32.mrf.mxu0  ;;  %v809_v30 = vpop.f32.mrf.mxu1 }
  0xfb   :  { %435 = vst.msk [vmem:[%s1979_s3 + $0xc9] sm:$0xff] %vm409_vm2, %v1209_v27 }
  0xfc   :  { %v940_v28 = vadd.f32 %v1546_v56, %v897_v23  ;;  %v939_v29 = vadd.f32 %v1546_v56, %v896_v24  ;;  %v350_v32 = vpop.f32.mrf.mxu0  ;;  %v1271_v36 = vpop.f32.mrf.mxu1 }
  0xfd   :  { %v470_v31 = vld [vmem:[%s1979_s3 + $0xa8] sm:$0xff]  ;;  %v469_v33 = vld [vmem:[%s1979_s3 + $0xa0] sm:$0xff]  ;;  %434 = vst.msk [vmem:[%s1979_s3 + $0xc1] sm:$0xff] %vm409_vm2, %v350_v32 }
  0xfe   :  { %976 = vst.msk [vmem:[%s1979_s3 + $0x98] sm:$0xff] %vm409_vm2, %v940_v28  ;;  %975 = vst.msk [vmem:[%s1979_s3 + $0x90] sm:$0xff] %vm409_vm2, %v939_v29  ;;  %v899_v34 = vadd.f32 %v1265_v14, %v470_v31  ;;  %v898_v35 = vadd.f32 %v799_v19, %v469_v33  ;;  %v1212_v37 = vpop.f32.mrf.mxu0  ;;  %v819_v40 = vpop.f32.mrf.mxu1 }
  0xff   :  { %437 = vst.msk [vmem:[%s1979_s3 + $0xd9] sm:$0xff] %vm409_vm2, %v1212_v37 }
 0x100   :  { %v942_v38 = vadd.f32 %v1546_v56, %v899_v34  ;;  %v941_v39 = vadd.f32 %v1546_v56, %v898_v35  ;;  %v996_v41 = vld [vmem:[%s1979_s3 + $0x8f] sm:$0x1]  ;;  %v360_v43 = vpop.f32.mrf.mxu0  ;;  %v1274_v48 = vpop.f32.mrf.mxu1 }
 0x101   :  { %v472_v42 = vld [vmem:[%s1979_s3 + $0xb8] sm:$0xff]  ;;  %v471_v44 = vld [vmem:[%s1979_s3 + $0xb0] sm:$0xff]  ;;  %v997_v45 = vsel %vm995_vm3, %v996_v41, 0.0  ;;  %436 = vst.msk [vmem:[%s1979_s3 + $0xd1] sm:$0xff] %vm409_vm2, %v360_v43 }
 0x102   :  { %978 = vst.msk [vmem:[%s1979_s3 + $0xa8] sm:$0xff] %vm409_vm2, %v942_v38  ;;  %977 = vst.msk [vmem:[%s1979_s3 + $0xa0] sm:$0xff] %vm409_vm2, %v941_v39  ;;  %v901_v46 = vadd.f32 %v1268_v25, %v472_v42  ;;  %v900_v47 = vadd.f32 %v809_v30, %v471_v44  ;;  %v1215_v49 = vpop.f32.mrf.mxu0  ;;  %v829_v52 = vpop.f32.mrf.mxu1 }
 0x103   :  { %998 = vst.msk [vmem:[%s1979_s3 + $0x8f] sm:$0x1] %vm447_vm1, %v997_v45 }
 0x104   :  { %v944_v50 = vadd.f32 %v1546_v56, %v901_v46  ;;  %v943_v51 = vadd.f32 %v1546_v56, %v900_v47  ;;  %439 = vst.msk [vmem:[%s1979_s3 + $0xe9] sm:$0xff] %vm409_vm2, %v1215_v49  ;;  %v474_v53 = vld [vmem:[%s1979_s3 + $0xc8] sm:$0xff]  ;;  %v370_v54 = vpop.f32.mrf.mxu0  ;;  %v473_v55 = vld [vmem:[%s1979_s3 + $0xc0] sm:$0xff]  ;;  %v1277_v59 = vpop.f32.mrf.mxu1 }
 0x105   :  { %v903_v57 = vadd.f32 %v1271_v36, %v474_v53  ;;  %438 = vst.msk [vmem:[%s1979_s3 + $0xe1] sm:$0xff] %vm409_vm2, %v370_v54  ;;  %v902_v58 = vadd.f32 %v819_v40, %v473_v55 }
 0x106   :  { %980 = vst.msk [vmem:[%s1979_s3 + $0xb8] sm:$0xff] %vm409_vm2, %v944_v50  ;;  %979 = vst.msk [vmem:[%s1979_s3 + $0xb0] sm:$0xff] %vm409_vm2, %v943_v51  ;;  %v1218_v60 = vpop.f32.mrf.mxu0  ;;  %v839_v63 = vpop.f32.mrf.mxu1 }
 0x107   :  { %v946_v61 = vadd.f32 %v1546_v56, %v903_v57  ;;  %v945_v62 = vadd.f32 %v1546_v56, %v902_v58  ;;  %441 = vst.msk [vmem:[%s1979_s3 + $0xf9] sm:$0xff] %vm409_vm2, %v1218_v60 }
 0x108   :  { %v476_v0 = vld [vmem:[%s1979_s3 + $0xd8] sm:$0xff]  ;;  %v380_v1 = vpop.f32.mrf.mxu0  ;;  %v475_v2 = vld [vmem:[%s1979_s3 + $0xd0] sm:$0xff]  ;;  %v1280_v5 = vpop.f32.mrf.mxu1 }
 0x109   :  { %982 = vst.msk [vmem:[%s1979_s3 + $0xc8] sm:$0xff] %vm409_vm2, %v946_v61  ;;  %981 = vst.msk [vmem:[%s1979_s3 + $0xc0] sm:$0xff] %vm409_vm2, %v945_v62  ;;  %v905_v3 = vadd.f32 %v1274_v48, %v476_v0  ;;  %v904_v4 = vadd.f32 %v829_v52, %v475_v2 }
 0x10a   :  { %440 = vst.msk [vmem:[%s1979_s3 + $0xf1] sm:$0xff] %vm409_vm2, %v380_v1  ;;  %v1221_v6 = vpop.f32.mrf.mxu0  ;;  %v849_v9 = vpop.f32.mrf.mxu1 }
 0x10b   :  { %v948_v7 = vadd.f32 %v1546_v56, %v905_v3  ;;  %v947_v8 = vadd.f32 %v1546_v56, %v904_v4  ;;  %443 = vst.msk [vmem:[%s1979_s3 + $0x109] sm:$0xff] %vm409_vm2, %v1221_v6 }
 0x10c   :  { %v478_v10 = vld [vmem:[%s1979_s3 + $0xe8] sm:$0xff]  ;;  %v390_v11 = vpop.f32.mrf.mxu0  ;;  %v477_v12 = vld [vmem:[%s1979_s3 + $0xe0] sm:$0xff]  ;;  %v1283_v15 = vpop.f32.mrf.mxu1 }
 0x10d   :  { %984 = vst.msk [vmem:[%s1979_s3 + $0xd8] sm:$0xff] %vm409_vm2, %v948_v7  ;;  %983 = vst.msk [vmem:[%s1979_s3 + $0xd0] sm:$0xff] %vm409_vm2, %v947_v8  ;;  %v907_v13 = vadd.f32 %v1277_v59, %v478_v10  ;;  %v906_v14 = vadd.f32 %v839_v63, %v477_v12 }
 0x10e   :  { %442 = vst.msk [vmem:[%s1979_s3 + $0x101] sm:$0xff] %vm409_vm2, %v390_v11  ;;  %v1224_v16 = vpop.f32.mrf.mxu0  ;;  %v859_v19 = vpop.f32.mrf.mxu1 }
 0x10f   :  { %v950_v17 = vadd.f32 %v1546_v56, %v907_v13  ;;  %v949_v18 = vadd.f32 %v1546_v56, %v906_v14  ;;  %446 = vst.msk [vmem:[%s1979_s3 + $0x119] sm:$0x7f] %vm445_vm4, %v1224_v16 }
 0x110   :  { %v400_v21 = vpop.f32.mrf.mxu0  ;;  %v1286_v25 = vpop.f32.mrf.mxu1 }
 0x111   :  { %v480_v20 = vld [vmem:[%s1979_s3 + $0xf8] sm:$0xff]  ;;  %v479_v22 = vld [vmem:[%s1979_s3 + $0xf0] sm:$0xff]  ;;  %986 = vst.msk [vmem:[%s1979_s3 + $0xe8] sm:$0xff] %vm409_vm2, %v950_v17  ;;  %985 = vst.msk [vmem:[%s1979_s3 + $0xe0] sm:$0xff] %vm409_vm2, %v949_v18 }
 0x112   :  { %v909_v23 = vadd.f32 %v1280_v5, %v480_v20  ;;  %444 = vst.msk [vmem:[%s1979_s3 + $0x111] sm:$0xff] %vm409_vm2, %v400_v21  ;;  %v908_v24 = vadd.f32 %v849_v9, %v479_v22  ;;  %v869_v33 = vpop.f32.mrf.mxu1 }
 0x114   :  { %v952_v27 = vadd.f32 %v1546_v56, %v909_v23  ;;  %v951_v28 = vadd.f32 %v1546_v56, %v908_v24 }
 0x115   :  { %v482_v29 = vld [vmem:[%s1979_s3 + $0x108] sm:$0xff]  ;;  %v481_v30 = vld [vmem:[%s1979_s3 + $0x100] sm:$0xff] }
 0x116   :  { %988 = vst.msk [vmem:[%s1979_s3 + $0xf8] sm:$0xff] %vm409_vm2, %v952_v27  ;;  %987 = vst.msk [vmem:[%s1979_s3 + $0xf0] sm:$0xff] %vm409_vm2, %v951_v28  ;;  %v911_v31 = vadd.f32 %v1283_v15, %v482_v29  ;;  %v910_v32 = vadd.f32 %v859_v19, %v481_v30 }
 0x118   :  { %v954_v34 = vadd.f32 %v1546_v56, %v911_v31  ;;  %v953_v35 = vadd.f32 %v1546_v56, %v910_v32 }
 0x119   :  { %v484_v36 = vld [vmem:[%s1979_s3 + $0x118] sm:$0xff]  ;;  %v483_v37 = vld [vmem:[%s1979_s3 + $0x110] sm:$0xff] }
 0x11a   :  { %990 = vst.msk [vmem:[%s1979_s3 + $0x108] sm:$0xff] %vm409_vm2, %v954_v34  ;;  %989 = vst.msk [vmem:[%s1979_s3 + $0x100] sm:$0xff] %vm409_vm2, %v953_v35  ;;  %v913_v38 = vadd.f32 %v1286_v25, %v484_v36  ;;  %v912_v39 = vadd.f32 %v869_v33, %v483_v37 }
 0x11c   :  { %v956_v40 = vadd.f32 %v1546_v56, %v913_v38  ;;  %v955_v41 = vadd.f32 %v1546_v56, %v912_v39 }
 0x11e   :  { %992 = vst.msk [vmem:[%s1979_s3 + $0x118] sm:$0xff] %vm409_vm2, %v956_v40  ;;  %991 = vst.msk [vmem:[%s1979_s3 + $0x110] sm:$0xff] %vm409_vm2, %v955_v41 }
 0x125   :  { %v999_v42 = vld [vmem:[%s1979_s3 + $0x11f] sm:$0x1] }
 0x126   :  { %v1000_v43 = vsel %vm995_vm3, %v999_v42, 0.0 }
 0x127   :  { %1001 = vst.msk [vmem:[%s1979_s3 + $0x11f] sm:$0x1] %vm447_vm1, %v1000_v43 }

// kernel: _lambda_.12
= control target key start
LH: loop header
LB: loop body
LE: loop exit
PB: predicated region body
PF: predicated region fallthrough
CT: control target
= control target key end

     0   :  { %vm91_vm0 = vcmask 261120   ;;  %vm807_vm1 = vcmask 516096   ;;  %v2368_v45 = vmov 0.0   ;;  %vm733_vm2 = vcmask 523264   ;;  %s3669_s1 = inlined_call_operand.vmem [shape: f32[2,32,64], index: 1, kind: input, shape index: {}]   ;;  %s3670_s0 = inlined_call_operand.vmem [shape: f32[576,32], index: 0, kind: input, shape index: {}]   ;;  %s3671_s3 = inlined_call_operand.vmem [shape: f32[576,64], index: 3, kind: output, shape index: {}]   ;;  %s3672_s2 = inlined_call_operand.vmem [shape: f32[1,64], index: 2, kind: input, shape index: {}]  }
   0x1   :  { %v1837_v0 = vld [vmem:[%s3669_s1 + $0x38] sm:$0xff]  ;;  %v1836_v1 = vld [vmem:[%s3669_s1 + $0x30] sm:$0xff]  ;;  %v14_v2 = vld [vmem:[%s3670_s0] sm:$0xff]  ;;  %808 = vst.msk [vmem:[%s3671_s3] sm:$0x1] %vm807_vm1, %v2368_v45  ;;  %vm805_vm4 = vcmask 522240  }
   0x2   :  { %2135 = vmatprep.subr.mxu0 %v1837_v0  ;;  %v1835_v3 = vld [vmem:[%s3669_s1 + $0x28] sm:$0xff]  ;;  %2143 = vmatprep.mubr.msk.f32.mxu0 %vm91_vm0, %v14_v2  ;;  %v956_v4 = vld [vmem:[%s3669_s1 + $0x18] sm:$0xff]  ;;  %v955_v5 = vld [vmem:[%s3669_s1 + $0x10] sm:$0xff] }
   0x3   :  { %2136 = vmatpush3.msra.mxu0 %v1837_v0  ;;  %2251 = vmatprep.subr.mxu1 %v956_v4  ;;  %v1834_v6 = vld [vmem:[%s3669_s1 + $0x20] sm:$0xff]  ;;  %v954_v7 = vld [vmem:[%s3669_s1 + $0x8] sm:$0xff]  ;;  %v16_v10 = vld [vmem:[%s3670_s0 + $0x10] sm:$0xff] }
   0x4   :  { %2137 = vmatprep.subr.mxu0 %v1836_v1  ;;  %2252 = vmatpush3.msra.mxu1 %v956_v4  ;;  %v15_v8 = vld [vmem:[%s3670_s0 + $0x8] sm:$0xff]  ;;  %v953_v9 = vld [vmem:[%s3669_s1] sm:$0xff]  ;;  %v17_v11 = vld [vmem:[%s3670_s0 + $0x18] sm:$0xff] }
   0x5   :  { %2138 = vmatpush3.msra.mxu0 %v1836_v1  ;;  %2253 = vmatprep.subr.mxu1 %v955_v5  ;;  %v18_v12 = vld [vmem:[%s3670_s0 + $0x20] sm:$0xff]  ;;  %v19_v13 = vld [vmem:[%s3670_s0 + $0x28] sm:$0xff]  ;;  %v20_v14 = vld [vmem:[%s3670_s0 + $0x30] sm:$0xff] }
   0x6   :  { %2139 = vmatprep.subr.mxu0 %v1835_v3  ;;  %2254 = vmatpush3.msra.mxu1 %v955_v5  ;;  %v21_v15 = vld [vmem:[%s3670_s0 + $0x38] sm:$0xff]  ;;  %v22_v16 = vld [vmem:[%s3670_s0 + $0x40] sm:$0xff]  ;;  %v23_v17 = vld [vmem:[%s3670_s0 + $0x48] sm:$0xff] }
   0x7   :  { %2140 = vmatpush3.msra.mxu0 %v1835_v3  ;;  %2255 = vmatprep.subr.mxu1 %v954_v7  ;;  %v24_v18 = vld [vmem:[%s3670_s0 + $0x50] sm:$0xff]  ;;  %v25_v19 = vld [vmem:[%s3670_s0 + $0x58] sm:$0xff]  ;;  %v26_v20 = vld [vmem:[%s3670_s0 + $0x60] sm:$0xff] }
   0x8   :  { %2141 = vmatprep.subr.mxu0 %v1834_v6  ;;  %2256 = vmatpush3.msra.mxu1 %v954_v7  ;;  %v27_v21 = vld [vmem:[%s3670_s0 + $0x68] sm:$0xff]  ;;  %v28_v22 = vld [vmem:[%s3670_s0 + $0x70] sm:$0xff]  ;;  %v29_v23 = vld [vmem:[%s3670_s0 + $0x78] sm:$0xff] }
   0x9   :  { %2142 = vmatpush3.msra.mxu0 %v1834_v6  ;;  %2257 = vmatprep.subr.mxu1 %v953_v9  ;;  %v30_v24 = vld [vmem:[%s3670_s0 + $0x80] sm:$0xff]  ;;  %v31_v25 = vld [vmem:[%s3670_s0 + $0x88] sm:$0xff]  ;;  %v32_v26 = vld [vmem:[%s3670_s0 + $0x90] sm:$0xff] }
   0xa   :  { %2144 = vmatmul.mubr.msk.f32.vlgmr.msra.gmra.mxu0 %vm91_vm0, %v15_v8  ;;  %2258 = vmatpush3.msra.mxu1 %v953_v9  ;;  %v33_v27 = vld [vmem:[%s3670_s0 + $0x98] sm:$0xff]  ;;  %v34_v28 = vld [vmem:[%s3670_s0 + $0xa0] sm:$0xff]  ;;  %v35_v29 = vld [vmem:[%s3670_s0 + $0xa8] sm:$0xff] }
   0xb   :  { %2146 = vmatprep.mubr.msk.f32.mxu0 %vm91_vm0, %v16_v10  ;;  %2259 = vmatprep.mubr.msk.f32.mxu1 %vm91_vm0, %v14_v2  ;;  %v36_v30 = vld [vmem:[%s3670_s0 + $0xb0] sm:$0xff]  ;;  %v37_v31 = vld [vmem:[%s3670_s0 + $0xb8] sm:$0xff]  ;;  %v38_v32 = vld [vmem:[%s3670_s0 + $0xc0] sm:$0xff] }
   0xc   :  { %2260 = vmatmul.mubr.msk.f32.vlgmr.msra.gmra.mxu1 %vm91_vm0, %v15_v8  ;;  %v39_v33 = vld [vmem:[%s3670_s0 + $0xc8] sm:$0xff]  ;;  %v40_v34 = vld [vmem:[%s3670_s0 + $0xd0] sm:$0xff]  ;;  %v41_v35 = vld [vmem:[%s3670_s0 + $0xd8] sm:$0xff] }
   0xd   :  { %2262 = vmatprep.mubr.msk.f32.mxu1 %vm91_vm0, %v16_v10  ;;  %v42_v36 = vld [vmem:[%s3670_s0 + $0xe0] sm:$0xff]  ;;  %v43_v37 = vld [vmem:[%s3670_s0 + $0xe8] sm:$0xff]  ;;  %v44_v38 = vld [vmem:[%s3670_s0 + $0xf0] sm:$0xff] }
   0xe   :  { %2147 = vmatmul.mubr.msk.f32.gmra.mxu0 %vm91_vm0, %v17_v11  ;;  %v45_v39 = vld [vmem:[%s3670_s0 + $0xf8] sm:$0xff]  ;;  %v46_v40 = vld [vmem:[%s3670_s0 + $0x100] sm:$0xff]  ;;  %v47_v41 = vld [vmem:[%s3670_s0 + $0x108] sm:$0xff] }
   0xf   :  { %2149 = vmatprep.mubr.msk.f32.mxu0 %vm91_vm0, %v18_v12  ;;  %v48_v42 = vld [vmem:[%s3670_s0 + $0x110] sm:$0xff]  ;;  %v49_v43 = vld [vmem:[%s3670_s0 + $0x118] sm:$0xff]  ;;  %v50_v44 = vld [vmem:[%s3670_s0 + $0x120] sm:$0xff] }
  0x10   :  { %2263 = vmatmul.mubr.msk.f32.gmra.mxu1 %vm91_vm0, %v17_v11  ;;  %v51_v46 = vld [vmem:[%s3670_s0 + $0x128] sm:$0xff]  ;;  %v52_v47 = vld [vmem:[%s3670_s0 + $0x130] sm:$0xff]  ;;  %v53_v48 = vld [vmem:[%s3670_s0 + $0x138] sm:$0xff] }
  0x11   :  { %2265 = vmatprep.mubr.msk.f32.mxu1 %vm91_vm0, %v18_v12  ;;  %v54_v49 = vld [vmem:[%s3670_s0 + $0x140] sm:$0xff]  ;;  %v55_v50 = vld [vmem:[%s3670_s0 + $0x148] sm:$0xff]  ;;  %v56_v51 = vld [vmem:[%s3670_s0 + $0x150] sm:$0xff] }
  0x12   :  { %2150 = vmatmul.mubr.msk.f32.gmra.mxu0 %vm91_vm0, %v19_v13  ;;  %v57_v52 = vld [vmem:[%s3670_s0 + $0x158] sm:$0xff]  ;;  %v58_v53 = vld [vmem:[%s3670_s0 + $0x160] sm:$0xff]  ;;  %v59_v54 = vld [vmem:[%s3670_s0 + $0x168] sm:$0xff] }
  0x13   :  { %2152 = vmatprep.mubr.msk.f32.mxu0 %vm91_vm0, %v20_v14  ;;  %v60_v55 = vld [vmem:[%s3670_s0 + $0x170] sm:$0xff]  ;;  %v61_v56 = vld [vmem:[%s3670_s0 + $0x178] sm:$0xff]  ;;  %v62_v57 = vld [vmem:[%s3670_s0 + $0x180] sm:$0xff] }
  0x14   :  { %2266 = vmatmul.mubr.msk.f32.gmra.mxu1 %vm91_vm0, %v19_v13  ;;  %v63_v58 = vld [vmem:[%s3670_s0 + $0x188] sm:$0xff]  ;;  %v64_v59 = vld [vmem:[%s3670_s0 + $0x190] sm:$0xff]  ;;  %v65_v60 = vld [vmem:[%s3670_s0 + $0x198] sm:$0xff] }
  0x15   :  { %2268 = vmatprep.mubr.msk.f32.mxu1 %vm91_vm0, %v20_v14  ;;  %v66_v61 = vld [vmem:[%s3670_s0 + $0x1a0] sm:$0xff]  ;;  %v67_v62 = vld [vmem:[%s3670_s0 + $0x1a8] sm:$0xff]  ;;  %v68_v63 = vld [vmem:[%s3670_s0 + $0x1b0] sm:$0xff] }
  0x16   :  { %2153 = vmatmul.mubr.msk.f32.gmra.mxu0 %vm91_vm0, %v21_v15  ;;  %v69_v0 = vld [vmem:[%s3670_s0 + $0x1b8] sm:$0xff]  ;;  %v70_v1 = vld [vmem:[%s3670_s0 + $0x1c0] sm:$0xff]  ;;  %v71_v2 = vld [vmem:[%s3670_s0 + $0x1c8] sm:$0xff] }
  0x17   :  { %2155 = vmatprep.mubr.msk.f32.mxu0 %vm91_vm0, %v22_v16  ;;  %v72_v3 = vld [vmem:[%s3670_s0 + $0x1d0] sm:$0xff]  ;;  %v73_v4 = vld [vmem:[%s3670_s0 + $0x1d8] sm:$0xff]  ;;  %v74_v5 = vld [vmem:[%s3670_s0 + $0x1e0] sm:$0xff] }
  0x18   :  { %2269 = vmatmul.mubr.msk.f32.gmra.mxu1 %vm91_vm0, %v21_v15  ;;  %v75_v6 = vld [vmem:[%s3670_s0 + $0x1e8] sm:$0xff]  ;;  %v76_v7 = vld [vmem:[%s3670_s0 + $0x1f0] sm:$0xff]  ;;  %v77_v8 = vld [vmem:[%s3670_s0 + $0x1f8] sm:$0xff] }
  0x19   :  { %2271 = vmatprep.mubr.msk.f32.mxu1 %vm91_vm0, %v22_v16  ;;  %v78_v9 = vld [vmem:[%s3670_s0 + $0x200] sm:$0xff]  ;;  %v79_v10 = vld [vmem:[%s3670_s0 + $0x208] sm:$0xff]  ;;  %v80_v11 = vld [vmem:[%s3670_s0 + $0x210] sm:$0xff] }
  0x1a   :  { %2156 = vmatmul.mubr.msk.f32.gmra.mxu0 %vm91_vm0, %v23_v17  ;;  %v81_v12 = vld [vmem:[%s3670_s0 + $0x218] sm:$0xff]  ;;  %v82_v13 = vld [vmem:[%s3670_s0 + $0x220] sm:$0xff]  ;;  %v83_v14 = vld [vmem:[%s3670_s0 + $0x228] sm:$0xff] }
  0x1b   :  { %2158 = vmatprep.mubr.msk.f32.mxu0 %vm91_vm0, %v24_v18  ;;  %v84_v15 = vld [vmem:[%s3670_s0 + $0x230] sm:$0xff]  ;;  %v85_v16 = vld [vmem:[%s3670_s0 + $0x238] sm:$0x7f] }
  0x1c   :  { %2272 = vmatmul.mubr.msk.f32.gmra.mxu1 %vm91_vm0, %v23_v17  ;;  %v952_v17 = vld [vmem:[%s3670_s0 + $0x238] sm:$0xff] }
  0x1d   :  { %2274 = vmatprep.mubr.msk.f32.mxu1 %vm91_vm0, %v24_v18 }
  0x1e   :  { %2159 = vmatmul.mubr.msk.f32.gmra.mxu0 %vm91_vm0, %v25_v19 }
  0x1f   :  { %2161 = vmatprep.mubr.msk.f32.mxu0 %vm91_vm0, %v26_v20 }
  0x20   :  { %2275 = vmatmul.mubr.msk.f32.gmra.mxu1 %vm91_vm0, %v25_v19 }
  0x21   :  { %2277 = vmatprep.mubr.msk.f32.mxu1 %vm91_vm0, %v26_v20 }
  0x22   :  { %2162 = vmatmul.mubr.msk.f32.gmra.mxu0 %vm91_vm0, %v27_v21 }
  0x23   :  { %2164 = vmatprep.mubr.msk.f32.mxu0 %vm91_vm0, %v28_v22 }
  0x24   :  { %2278 = vmatmul.mubr.msk.f32.gmra.mxu1 %vm91_vm0, %v27_v21 }
  0x25   :  { %2280 = vmatprep.mubr.msk.f32.mxu1 %vm91_vm0, %v28_v22 }
  0x26   :  { %2165 = vmatmul.mubr.msk.f32.gmra.mxu0 %vm91_vm0, %v29_v23 }
  0x27   :  { %2167 = vmatprep.mubr.msk.f32.mxu0 %vm91_vm0, %v30_v24 }
  0x28   :  { %2281 = vmatmul.mubr.msk.f32.gmra.mxu1 %vm91_vm0, %v29_v23 }
  0x29   :  { %2283 = vmatprep.mubr.msk.f32.mxu1 %vm91_vm0, %v30_v24 }
  0x2a   :  { %2168 = vmatmul.mubr.msk.f32.gmra.mxu0 %vm91_vm0, %v31_v25 }
  0x2b   :  { %2170 = vmatprep.mubr.msk.f32.mxu0 %vm91_vm0, %v32_v26 }
  0x2c   :  { %2284 = vmatmul.mubr.msk.f32.gmra.mxu1 %vm91_vm0, %v31_v25 }
  0x2d   :  { %2286 = vmatprep.mubr.msk.f32.mxu1 %vm91_vm0, %v32_v26 }
  0x2e   :  { %2171 = vmatmul.mubr.msk.f32.gmra.mxu0 %vm91_vm0, %v33_v27 }
  0x2f   :  { %2173 = vmatprep.mubr.msk.f32.mxu0 %vm91_vm0, %v34_v28 }
  0x30   :  { %2287 = vmatmul.mubr.msk.f32.gmra.mxu1 %vm91_vm0, %v33_v27 }
  0x31   :  { %2289 = vmatprep.mubr.msk.f32.mxu1 %vm91_vm0, %v34_v28  ;;  %v2806_v28 = vld [vmem:[%s3672_s2] ss:$0 sm:$0xff] }
  0x32   :  { %2174 = vmatmul.mubr.msk.f32.gmra.mxu0 %vm91_vm0, %v35_v29 }
  0x33   :  { %2176 = vmatprep.mubr.msk.f32.mxu0 %vm91_vm0, %v36_v30 }
  0x34   :  { %2290 = vmatmul.mubr.msk.f32.gmra.mxu1 %vm91_vm0, %v35_v29 }
  0x35   :  { %2292 = vmatprep.mubr.msk.f32.mxu1 %vm91_vm0, %v36_v30 }
  0x36   :  { %2177 = vmatmul.mubr.msk.f32.gmra.mxu0 %vm91_vm0, %v37_v31 }
  0x37   :  { %2179 = vmatprep.mubr.msk.f32.mxu0 %vm91_vm0, %v38_v32 }
  0x38   :  { %2293 = vmatmul.mubr.msk.f32.gmra.mxu1 %vm91_vm0, %v37_v31 }
  0x39   :  { %2295 = vmatprep.mubr.msk.f32.mxu1 %vm91_vm0, %v38_v32 }
  0x3a   :  { %2180 = vmatmul.mubr.msk.f32.gmra.mxu0 %vm91_vm0, %v39_v33 }
  0x3b   :  { %2182 = vmatprep.mubr.msk.f32.mxu0 %vm91_vm0, %v40_v34 }
  0x3c   :  { %2296 = vmatmul.mubr.msk.f32.gmra.mxu1 %vm91_vm0, %v39_v33 }
  0x3d   :  { %2298 = vmatprep.mubr.msk.f32.mxu1 %vm91_vm0, %v40_v34 }
  0x3e   :  { %2183 = vmatmul.mubr.msk.f32.gmra.mxu0 %vm91_vm0, %v41_v35 }
  0x3f   :  { %2185 = vmatprep.mubr.msk.f32.mxu0 %vm91_vm0, %v42_v36 }
  0x40   :  { %2299 = vmatmul.mubr.msk.f32.gmra.mxu1 %vm91_vm0, %v41_v35 }
  0x41   :  { %2301 = vmatprep.mubr.msk.f32.mxu1 %vm91_vm0, %v42_v36 }
  0x42   :  { %2186 = vmatmul.mubr.msk.f32.gmra.mxu0 %vm91_vm0, %v43_v37 }
  0x43   :  { %2188 = vmatprep.mubr.msk.f32.mxu0 %vm91_vm0, %v44_v38 }
  0x44   :  { %2302 = vmatmul.mubr.msk.f32.gmra.mxu1 %vm91_vm0, %v43_v37 }
  0x45   :  { %2304 = vmatprep.mubr.msk.f32.mxu1 %vm91_vm0, %v44_v38 }
  0x46   :  { %2189 = vmatmul.mubr.msk.f32.gmra.mxu0 %vm91_vm0, %v45_v39 }
  0x47   :  { %2191 = vmatprep.mubr.msk.f32.mxu0 %vm91_vm0, %v46_v40 }
  0x48   :  { %2305 = vmatmul.mubr.msk.f32.gmra.mxu1 %vm91_vm0, %v45_v39 }
  0x49   :  { %2307 = vmatprep.mubr.msk.f32.mxu1 %vm91_vm0, %v46_v40 }
  0x4a   :  { %2192 = vmatmul.mubr.msk.f32.gmra.mxu0 %vm91_vm0, %v47_v41 }
  0x4b   :  { %2194 = vmatprep.mubr.msk.f32.mxu0 %vm91_vm0, %v48_v42 }
  0x4c   :  { %2308 = vmatmul.mubr.msk.f32.gmra.mxu1 %vm91_vm0, %v47_v41 }
  0x4d   :  { %2310 = vmatprep.mubr.msk.f32.mxu1 %vm91_vm0, %v48_v42 }
  0x4e   :  { %2195 = vmatmul.mubr.msk.f32.gmra.mxu0 %vm91_vm0, %v49_v43 }
  0x4f   :  { %2197 = vmatprep.mubr.msk.f32.mxu0 %vm91_vm0, %v50_v44 }
  0x50   :  { %2311 = vmatmul.mubr.msk.f32.gmra.mxu1 %vm91_vm0, %v49_v43 }
  0x51   :  { %2313 = vmatprep.mubr.msk.f32.mxu1 %vm91_vm0, %v50_v44 }
  0x52   :  { %2198 = vmatmul.mubr.msk.f32.gmra.mxu0 %vm91_vm0, %v51_v46 }
  0x53   :  { %2200 = vmatprep.mubr.msk.f32.mxu0 %vm91_vm0, %v52_v47 }
  0x54   :  { %2314 = vmatmul.mubr.msk.f32.gmra.mxu1 %vm91_vm0, %v51_v46 }
  0x55   :  { %2316 = vmatprep.mubr.msk.f32.mxu1 %vm91_vm0, %v52_v47 }
  0x56   :  { %2201 = vmatmul.mubr.msk.f32.gmra.mxu0 %vm91_vm0, %v53_v48 }
  0x57   :  { %2203 = vmatprep.mubr.msk.f32.mxu0 %vm91_vm0, %v54_v49 }
  0x58   :  { %2317 = vmatmul.mubr.msk.f32.gmra.mxu1 %vm91_vm0, %v53_v48 }
  0x59   :  { %2319 = vmatprep.mubr.msk.f32.mxu1 %vm91_vm0, %v54_v49 }
  0x5a   :  { %2204 = vmatmul.mubr.msk.f32.gmra.mxu0 %vm91_vm0, %v55_v50 }
  0x5b   :  { %2206 = vmatprep.mubr.msk.f32.mxu0 %vm91_vm0, %v56_v51 }
  0x5c   :  { %2320 = vmatmul.mubr.msk.f32.gmra.mxu1 %vm91_vm0, %v55_v50 }
  0x5d   :  { %2322 = vmatprep.mubr.msk.f32.mxu1 %vm91_vm0, %v56_v51 }
  0x5e   :  { %2207 = vmatmul.mubr.msk.f32.gmra.mxu0 %vm91_vm0, %v57_v52 }
  0x5f   :  { %2209 = vmatprep.mubr.msk.f32.mxu0 %vm91_vm0, %v58_v53 }
  0x60   :  { %2323 = vmatmul.mubr.msk.f32.gmra.mxu1 %vm91_vm0, %v57_v52 }
  0x61   :  { %2325 = vmatprep.mubr.msk.f32.mxu1 %vm91_vm0, %v58_v53 }
  0x62   :  { %2210 = vmatmul.mubr.msk.f32.gmra.mxu0 %vm91_vm0, %v59_v54 }
  0x63   :  { %2212 = vmatprep.mubr.msk.f32.mxu0 %vm91_vm0, %v60_v55 }
  0x64   :  { %2326 = vmatmul.mubr.msk.f32.gmra.mxu1 %vm91_vm0, %v59_v54 }
  0x65   :  { %2328 = vmatprep.mubr.msk.f32.mxu1 %vm91_vm0, %v60_v55 }
  0x66   :  { %2213 = vmatmul.mubr.msk.f32.gmra.mxu0 %vm91_vm0, %v61_v56 }
  0x67   :  { %2215 = vmatprep.mubr.msk.f32.mxu0 %vm91_vm0, %v62_v57 }
  0x68   :  { %2329 = vmatmul.mubr.msk.f32.gmra.mxu1 %vm91_vm0, %v61_v56 }
  0x69   :  { %2331 = vmatprep.mubr.msk.f32.mxu1 %vm91_vm0, %v62_v57 }
  0x6a   :  { %2216 = vmatmul.mubr.msk.f32.gmra.mxu0 %vm91_vm0, %v63_v58 }
  0x6b   :  { %2218 = vmatprep.mubr.msk.f32.mxu0 %vm91_vm0, %v64_v59 }
  0x6c   :  { %2332 = vmatmul.mubr.msk.f32.gmra.mxu1 %vm91_vm0, %v63_v58 }
  0x6d   :  { %2334 = vmatprep.mubr.msk.f32.mxu1 %vm91_vm0, %v64_v59 }
  0x6e   :  { %2219 = vmatmul.mubr.msk.f32.gmra.mxu0 %vm91_vm0, %v65_v60 }
  0x6f   :  { %2221 = vmatprep.mubr.msk.f32.mxu0 %vm91_vm0, %v66_v61 }
  0x70   :  { %2335 = vmatmul.mubr.msk.f32.gmra.mxu1 %vm91_vm0, %v65_v60 }
  0x71   :  { %2337 = vmatprep.mubr.msk.f32.mxu1 %vm91_vm0, %v66_v61 }
  0x72   :  { %2222 = vmatmul.mubr.msk.f32.gmra.mxu0 %vm91_vm0, %v67_v62 }
  0x73   :  { %2224 = vmatprep.mubr.msk.f32.mxu0 %vm91_vm0, %v68_v63 }
  0x74   :  { %2338 = vmatmul.mubr.msk.f32.gmra.mxu1 %vm91_vm0, %v67_v62 }
  0x75   :  { %2340 = vmatprep.mubr.msk.f32.mxu1 %vm91_vm0, %v68_v63 }
  0x76   :  { %2225 = vmatmul.mubr.msk.f32.gmra.mxu0 %vm91_vm0, %v69_v0 }
  0x77   :  { %2227 = vmatprep.mubr.msk.f32.mxu0 %vm91_vm0, %v70_v1 }
  0x78   :  { %2341 = vmatmul.mubr.msk.f32.gmra.mxu1 %vm91_vm0, %v69_v0 }
  0x79   :  { %2343 = vmatprep.mubr.msk.f32.mxu1 %vm91_vm0, %v70_v1 }
  0x7a   :  { %2228 = vmatmul.mubr.msk.f32.gmra.mxu0 %vm91_vm0, %v71_v2 }
  0x7b   :  { %2230 = vmatprep.mubr.msk.f32.mxu0 %vm91_vm0, %v72_v3 }
  0x7c   :  { %2344 = vmatmul.mubr.msk.f32.gmra.mxu1 %vm91_vm0, %v71_v2 }
  0x7d   :  { %2346 = vmatprep.mubr.msk.f32.mxu1 %vm91_vm0, %v72_v3 }
  0x7e   :  { %2231 = vmatmul.mubr.msk.f32.gmra.mxu0 %vm91_vm0, %v73_v4 }
  0x7f   :  { %2233 = vmatprep.mubr.msk.f32.mxu0 %vm91_vm0, %v74_v5 }
  0x80   :  { %2347 = vmatmul.mubr.msk.f32.gmra.mxu1 %vm91_vm0, %v73_v4 }
  0x81   :  { %2349 = vmatprep.mubr.msk.f32.mxu1 %vm91_vm0, %v74_v5 }
  0x82   :  { %2234 = vmatmul.mubr.msk.f32.gmra.mxu0 %vm91_vm0, %v75_v6 }
  0x83   :  { %2236 = vmatprep.mubr.msk.f32.mxu0 %vm91_vm0, %v76_v7 }
  0x84   :  { %2350 = vmatmul.mubr.msk.f32.gmra.mxu1 %vm91_vm0, %v75_v6 }
  0x85   :  { %2352 = vmatprep.mubr.msk.f32.mxu1 %vm91_vm0, %v76_v7 }
  0x86   :  { %2237 = vmatmul.mubr.msk.f32.gmra.mxu0 %vm91_vm0, %v77_v8 }
  0x87   :  { %2239 = vmatprep.mubr.msk.f32.mxu0 %vm91_vm0, %v78_v9 }
  0x88   :  { %2353 = vmatmul.mubr.msk.f32.gmra.mxu1 %vm91_vm0, %v77_v8 }
  0x89   :  { %2355 = vmatprep.mubr.msk.f32.mxu1 %vm91_vm0, %v78_v9 }
  0x8a   :  { %2240 = vmatmul.mubr.msk.f32.gmra.mxu0 %vm91_vm0, %v79_v10 }
  0x8b   :  { %2242 = vmatprep.mubr.msk.f32.mxu0 %vm91_vm0, %v80_v11 }
  0x8c   :  { %2356 = vmatmul.mubr.msk.f32.gmra.mxu1 %vm91_vm0, %v79_v10 }
  0x8d   :  { %2358 = vmatprep.mubr.msk.f32.mxu1 %vm91_vm0, %v80_v11 }
  0x8e   :  { %2243 = vmatmul.mubr.msk.f32.gmra.mxu0 %vm91_vm0, %v81_v12 }
  0x8f   :  { %2245 = vmatprep.mubr.msk.f32.mxu0 %vm91_vm0, %v82_v13 }
  0x90   :  { %2359 = vmatmul.mubr.msk.f32.gmra.mxu1 %vm91_vm0, %v81_v12 }
  0x91   :  { %2361 = vmatprep.mubr.msk.f32.mxu1 %vm91_vm0, %v82_v13 }
  0x92   :  { %2246 = vmatmul.mubr.msk.f32.gmra.mxu0 %vm91_vm0, %v83_v14 }
  0x93   :  { %2248 = vmatprep.mubr.msk.f32.mxu0 %vm91_vm0, %v84_v15 }
  0x94   :  { %2362 = vmatmul.mubr.msk.f32.gmra.mxu1 %vm91_vm0, %v83_v14 }
  0x95   :  { %2364 = vmatprep.mubr.msk.f32.mxu1 %vm91_vm0, %v84_v15 }
  0x96   :  { %2249 = vmatmul.mubr.msk.f32.gmra.mxu0 %vm91_vm0, %v85_v16 }
  0x98   :  { %2365 = vmatmul.mubr.msk.f32.gmra.mxu1 %vm91_vm0, %v952_v17 }
  0xca   :  { %v2145_v18 = vpop.f32.mrf.mxu0 }
  0xcb   :  { %735 = vst.msk [vmem:[%s3671_s3 + $0x9] sm:$0xff] %vm733_vm2, %v2145_v18 }
  0xcc   :  { %v374_v19 = vpop.f32.mrf.mxu0  ;;  %v2261_v20 = vpop.f32.mrf.mxu1 }
  0xcd   :  { %734 = vst.msk [vmem:[%s3671_s3 + $0x1] sm:$0xff] %vm733_vm2, %v374_v19 }
  0xce   :  { %v2148_v21 = vpop.f32.mrf.mxu0  ;;  %v1239_v22 = vpop.f32.mrf.mxu1 }
  0xcf   :  { %737 = vst.msk [vmem:[%s3671_s3 + $0x19] sm:$0xff] %vm733_vm2, %v2148_v21 }
  0xd0   :  { %v384_v23 = vpop.f32.mrf.mxu0  ;;  %v2264_v24 = vpop.f32.mrf.mxu1 }
  0xd1   :  { %736 = vst.msk [vmem:[%s3671_s3 + $0x11] sm:$0xff] %vm733_vm2, %v384_v23 }
  0xd2   :  { %v2151_v25 = vpop.f32.mrf.mxu0  ;;  %v1249_v26 = vpop.f32.mrf.mxu1 }
  0xd3   :  { %739 = vst.msk [vmem:[%s3671_s3 + $0x29] sm:$0xff] %vm733_vm2, %v2151_v25 }
  0xd4   :  { %v810_v27 = vld [vmem:[%s3671_s3 + $0x8] sm:$0xff]  ;;  %v394_v29 = vpop.f32.mrf.mxu0  ;;  %v809_v30 = vld [vmem:[%s3671_s3] sm:$0xff]  ;;  %v2267_v33 = vpop.f32.mrf.mxu1 }
  0xd5   :  { %v1599_v31 = vadd.f32 %v2261_v20, %v810_v27  ;;  %738 = vst.msk [vmem:[%s3671_s3 + $0x21] sm:$0xff] %vm733_vm2, %v394_v29  ;;  %v1598_v32 = vadd.f32 %v1239_v22, %v809_v30 }
  0xd6   :  { %v2154_v34 = vpop.f32.mrf.mxu0  ;;  %v1259_v37 = vpop.f32.mrf.mxu1 }
  0xd7   :  { %v1678_v35 = vadd.f32 %v2806_v28, %v1599_v31  ;;  %v1677_v36 = vadd.f32 %v2806_v28, %v1598_v32  ;;  %741 = vst.msk [vmem:[%s3671_s3 + $0x39] sm:$0xff] %vm733_vm2, %v2154_v34 }
  0xd8   :  { %v812_v38 = vld [vmem:[%s3671_s3 + $0x18] sm:$0xff]  ;;  %v404_v39 = vpop.f32.mrf.mxu0  ;;  %v811_v40 = vld [vmem:[%s3671_s3 + $0x10] sm:$0xff]  ;;  %v2270_v43 = vpop.f32.mrf.mxu1 }
  0xd9   :  { %1750 = vst.msk [vmem:[%s3671_s3 + $0x8] sm:$0xff] %vm733_vm2, %v1678_v35  ;;  %1749 = vst.msk [vmem:[%s3671_s3] sm:$0xff] %vm733_vm2, %v1677_v36  ;;  %v1601_v41 = vadd.f32 %v2264_v24, %v812_v38  ;;  %v1600_v42 = vadd.f32 %v1249_v26, %v811_v40 }
  0xda   :  { %740 = vst.msk [vmem:[%s3671_s3 + $0x31] sm:$0xff] %vm733_vm2, %v404_v39  ;;  %v2157_v44 = vpop.f32.mrf.mxu0  ;;  %v1269_v47 = vpop.f32.mrf.mxu1 }
  0xdb   :  { %v1680_v45 = vadd.f32 %v2806_v28, %v1601_v41  ;;  %v1679_v46 = vadd.f32 %v2806_v28, %v1600_v42  ;;  %743 = vst.msk [vmem:[%s3671_s3 + $0x49] sm:$0xff] %vm733_vm2, %v2157_v44 }
  0xdc   :  { %v814_v48 = vld [vmem:[%s3671_s3 + $0x28] sm:$0xff]  ;;  %v414_v49 = vpop.f32.mrf.mxu0  ;;  %v813_v50 = vld [vmem:[%s3671_s3 + $0x20] sm:$0xff]  ;;  %v2273_v53 = vpop.f32.mrf.mxu1 }
  0xdd   :  { %1752 = vst.msk [vmem:[%s3671_s3 + $0x18] sm:$0xff] %vm733_vm2, %v1680_v45  ;;  %1751 = vst.msk [vmem:[%s3671_s3 + $0x10] sm:$0xff] %vm733_vm2, %v1679_v46  ;;  %v1603_v51 = vadd.f32 %v2267_v33, %v814_v48  ;;  %v1602_v52 = vadd.f32 %v1259_v37, %v813_v50 }
  0xde   :  { %742 = vst.msk [vmem:[%s3671_s3 + $0x41] sm:$0xff] %vm733_vm2, %v414_v49  ;;  %v2160_v54 = vpop.f32.mrf.mxu0  ;;  %v1279_v57 = vpop.f32.mrf.mxu1 }
  0xdf   :  { %v1682_v55 = vadd.f32 %v2806_v28, %v1603_v51  ;;  %v1681_v56 = vadd.f32 %v2806_v28, %v1602_v52  ;;  %745 = vst.msk [vmem:[%s3671_s3 + $0x59] sm:$0xff] %vm733_vm2, %v2160_v54 }
  0xe0   :  { %v424_v59 = vpop.f32.mrf.mxu0  ;;  %v2276_v63 = vpop.f32.mrf.mxu1 }
  0xe1   :  { %v816_v58 = vld [vmem:[%s3671_s3 + $0x38] sm:$0xff]  ;;  %v815_v60 = vld [vmem:[%s3671_s3 + $0x30] sm:$0xff]  ;;  %1754 = vst.msk [vmem:[%s3671_s3 + $0x28] sm:$0xff] %vm733_vm2, %v1682_v55  ;;  %1753 = vst.msk [vmem:[%s3671_s3 + $0x20] sm:$0xff] %vm733_vm2, %v1681_v56 }
  0xe2   :  { %v1605_v61 = vadd.f32 %v2270_v43, %v816_v58  ;;  %744 = vst.msk [vmem:[%s3671_s3 + $0x51] sm:$0xff] %vm733_vm2, %v424_v59  ;;  %v1604_v62 = vadd.f32 %v1269_v47, %v815_v60  ;;  %v2163_v0 = vpop.f32.mrf.mxu0  ;;  %v1289_v3 = vpop.f32.mrf.mxu1 }
  0xe3   :  { %747 = vst.msk [vmem:[%s3671_s3 + $0x69] sm:$0xff] %vm733_vm2, %v2163_v0 }
  0xe4   :  { %v1684_v1 = vadd.f32 %v2806_v28, %v1605_v61  ;;  %v1683_v2 = vadd.f32 %v2806_v28, %v1604_v62  ;;  %v434_v5 = vpop.f32.mrf.mxu0  ;;  %v2279_v9 = vpop.f32.mrf.mxu1 }
  0xe5   :  { %v818_v4 = vld [vmem:[%s3671_s3 + $0x48] sm:$0xff]  ;;  %v817_v6 = vld [vmem:[%s3671_s3 + $0x40] sm:$0xff]  ;;  %746 = vst.msk [vmem:[%s3671_s3 + $0x61] sm:$0xff] %vm733_vm2, %v434_v5 }
  0xe6   :  { %1756 = vst.msk [vmem:[%s3671_s3 + $0x38] sm:$0xff] %vm733_vm2, %v1684_v1  ;;  %1755 = vst.msk [vmem:[%s3671_s3 + $0x30] sm:$0xff] %vm733_vm2, %v1683_v2  ;;  %v1607_v7 = vadd.f32 %v2273_v53, %v818_v4  ;;  %v1606_v8 = vadd.f32 %v1279_v57, %v817_v6  ;;  %v2166_v10 = vpop.f32.mrf.mxu0  ;;  %v1299_v13 = vpop.f32.mrf.mxu1 }
  0xe7   :  { %749 = vst.msk [vmem:[%s3671_s3 + $0x79] sm:$0xff] %vm733_vm2, %v2166_v10 }
  0xe8   :  { %v1686_v11 = vadd.f32 %v2806_v28, %v1607_v7  ;;  %v1685_v12 = vadd.f32 %v2806_v28, %v1606_v8  ;;  %v444_v15 = vpop.f32.mrf.mxu0  ;;  %v2282_v19 = vpop.f32.mrf.mxu1 }
  0xe9   :  { %v820_v14 = vld [vmem:[%s3671_s3 + $0x58] sm:$0xff]  ;;  %v819_v16 = vld [vmem:[%s3671_s3 + $0x50] sm:$0xff]  ;;  %748 = vst.msk [vmem:[%s3671_s3 + $0x71] sm:$0xff] %vm733_vm2, %v444_v15 }
  0xea   :  { %1758 = vst.msk [vmem:[%s3671_s3 + $0x48] sm:$0xff] %vm733_vm2, %v1686_v11  ;;  %1757 = vst.msk [vmem:[%s3671_s3 + $0x40] sm:$0xff] %vm733_vm2, %v1685_v12  ;;  %v1609_v17 = vadd.f32 %v2276_v63, %v820_v14  ;;  %v1608_v18 = vadd.f32 %v1289_v3, %v819_v16  ;;  %v2169_v20 = vpop.f32.mrf.mxu0  ;;  %v1309_v23 = vpop.f32.mrf.mxu1 }
  0xeb   :  { %751 = vst.msk [vmem:[%s3671_s3 + $0x89] sm:$0xff] %vm733_vm2, %v2169_v20 }
  0xec   :  { %v1688_v21 = vadd.f32 %v2806_v28, %v1609_v17  ;;  %v1687_v22 = vadd.f32 %v2806_v28, %v1608_v18  ;;  %v822_v24 = vld [vmem:[%s3671_s3 + $0x68] sm:$0xff]  ;;  %v454_v25 = vpop.f32.mrf.mxu0  ;;  %v821_v26 = vld [vmem:[%s3671_s3 + $0x60] sm:$0xff]  ;;  %v2285_v30 = vpop.f32.mrf.mxu1 }
  0xed   :  { %v1611_v27 = vadd.f32 %v2279_v9, %v822_v24  ;;  %750 = vst.msk [vmem:[%s3671_s3 + $0x81] sm:$0xff] %vm733_vm2, %v454_v25  ;;  %v1610_v29 = vadd.f32 %v1299_v13, %v821_v26 }
  0xee   :  { %1760 = vst.msk [vmem:[%s3671_s3 + $0x58] sm:$0xff] %vm733_vm2, %v1688_v21  ;;  %1759 = vst.msk [vmem:[%s3671_s3 + $0x50] sm:$0xff] %vm733_vm2, %v1687_v22  ;;  %v2172_v31 = vpop.f32.mrf.mxu0  ;;  %v1319_v34 = vpop.f32.mrf.mxu1 }
  0xef   :  { %v1690_v32 = vadd.f32 %v2806_v28, %v1611_v27  ;;  %v1689_v33 = vadd.f32 %v2806_v28, %v1610_v29  ;;  %753 = vst.msk [vmem:[%s3671_s3 + $0x99] sm:$0xff] %vm733_vm2, %v2172_v31 }
  0xf0   :  { %v824_v35 = vld [vmem:[%s3671_s3 + $0x78] sm:$0xff]  ;;  %v464_v36 = vpop.f32.mrf.mxu0  ;;  %v823_v37 = vld [vmem:[%s3671_s3 + $0x70] sm:$0xff]  ;;  %v2288_v40 = vpop.f32.mrf.mxu1 }
  0xf1   :  { %1762 = vst.msk [vmem:[%s3671_s3 + $0x68] sm:$0xff] %vm733_vm2, %v1690_v32  ;;  %1761 = vst.msk [vmem:[%s3671_s3 + $0x60] sm:$0xff] %vm733_vm2, %v1689_v33  ;;  %v1613_v38 = vadd.f32 %v2282_v19, %v824_v35  ;;  %v1612_v39 = vadd.f32 %v1309_v23, %v823_v37 }
  0xf2   :  { %752 = vst.msk [vmem:[%s3671_s3 + $0x91] sm:$0xff] %vm733_vm2, %v464_v36  ;;  %v2175_v41 = vpop.f32.mrf.mxu0  ;;  %v1329_v44 = vpop.f32.mrf.mxu1 }
  0xf3   :  { %v1692_v42 = vadd.f32 %v2806_v28, %v1613_v38  ;;  %v1691_v43 = vadd.f32 %v2806_v28, %v1612_v39  ;;  %755 = vst.msk [vmem:[%s3671_s3 + $0xa9] sm:$0xff] %vm733_vm2, %v2175_v41 }
  0xf4   :  { %v826_v45 = vld [vmem:[%s3671_s3 + $0x88] sm:$0xff]  ;;  %v474_v46 = vpop.f32.mrf.mxu0  ;;  %v825_v47 = vld [vmem:[%s3671_s3 + $0x80] sm:$0xff]  ;;  %v2291_v50 = vpop.f32.mrf.mxu1 }
  0xf5   :  { %1764 = vst.msk [vmem:[%s3671_s3 + $0x78] sm:$0xff] %vm733_vm2, %v1692_v42  ;;  %1763 = vst.msk [vmem:[%s3671_s3 + $0x70] sm:$0xff] %vm733_vm2, %v1691_v43  ;;  %v1615_v48 = vadd.f32 %v2285_v30, %v826_v45  ;;  %v1614_v49 = vadd.f32 %v1319_v34, %v825_v47 }
  0xf6   :  { %754 = vst.msk [vmem:[%s3671_s3 + $0xa1] sm:$0xff] %vm733_vm2, %v474_v46  ;;  %v2178_v51 = vpop.f32.mrf.mxu0  ;;  %v1339_v54 = vpop.f32.mrf.mxu1 }
  0xf7   :  { %v1694_v52 = vadd.f32 %v2806_v28, %v1615_v48  ;;  %v1693_v53 = vadd.f32 %v2806_v28, %v1614_v49  ;;  %757 = vst.msk [vmem:[%s3671_s3 + $0xb9] sm:$0xff] %vm733_vm2, %v2178_v51 }
  0xf8   :  { %v484_v56 = vpop.f32.mrf.mxu0  ;;  %v2294_v60 = vpop.f32.mrf.mxu1 }
  0xf9   :  { %v828_v55 = vld [vmem:[%s3671_s3 + $0x98] sm:$0xff]  ;;  %v827_v57 = vld [vmem:[%s3671_s3 + $0x90] sm:$0xff]  ;;  %1766 = vst.msk [vmem:[%s3671_s3 + $0x88] sm:$0xff] %vm733_vm2, %v1694_v52  ;;  %1765 = vst.msk [vmem:[%s3671_s3 + $0x80] sm:$0xff] %vm733_vm2, %v1693_v53 }
  0xfa   :  { %v1617_v58 = vadd.f32 %v2288_v40, %v828_v55  ;;  %756 = vst.msk [vmem:[%s3671_s3 + $0xb1] sm:$0xff] %vm733_vm2, %v484_v56  ;;  %v1616_v59 = vadd.f32 %v1329_v44, %v827_v57  ;;  %v2181_v61 = vpop.f32.mrf.mxu0  ;;  %v1349_v0 = vpop.f32.mrf.mxu1 }
  0xfb   :  { %759 = vst.msk [vmem:[%s3671_s3 + $0xc9] sm:$0xff] %vm733_vm2, %v2181_v61 }
  0xfc   :  { %v1696_v62 = vadd.f32 %v2806_v28, %v1617_v58  ;;  %v1695_v63 = vadd.f32 %v2806_v28, %v1616_v59  ;;  %v494_v2 = vpop.f32.mrf.mxu0  ;;  %v2297_v6 = vpop.f32.mrf.mxu1 }
  0xfd   :  { %v830_v1 = vld [vmem:[%s3671_s3 + $0xa8] sm:$0xff]  ;;  %v829_v3 = vld [vmem:[%s3671_s3 + $0xa0] sm:$0xff]  ;;  %758 = vst.msk [vmem:[%s3671_s3 + $0xc1] sm:$0xff] %vm733_vm2, %v494_v2 }
  0xfe   :  { %1768 = vst.msk [vmem:[%s3671_s3 + $0x98] sm:$0xff] %vm733_vm2, %v1696_v62  ;;  %1767 = vst.msk [vmem:[%s3671_s3 + $0x90] sm:$0xff] %vm733_vm2, %v1695_v63  ;;  %v1619_v4 = vadd.f32 %v2291_v50, %v830_v1  ;;  %v1618_v5 = vadd.f32 %v1339_v54, %v829_v3  ;;  %v2184_v7 = vpop.f32.mrf.mxu0  ;;  %v1359_v10 = vpop.f32.mrf.mxu1 }
  0xff   :  { %761 = vst.msk [vmem:[%s3671_s3 + $0xd9] sm:$0xff] %vm733_vm2, %v2184_v7 }
 0x100   :  { %v1698_v8 = vadd.f32 %v2806_v28, %v1619_v4  ;;  %v1697_v9 = vadd.f32 %v2806_v28, %v1618_v5  ;;  %v504_v12 = vpop.f32.mrf.mxu0  ;;  %v2300_v16 = vpop.f32.mrf.mxu1 }
 0x101   :  { %v832_v11 = vld [vmem:[%s3671_s3 + $0xb8] sm:$0xff]  ;;  %v831_v13 = vld [vmem:[%s3671_s3 + $0xb0] sm:$0xff]  ;;  %760 = vst.msk [vmem:[%s3671_s3 + $0xd1] sm:$0xff] %vm733_vm2, %v504_v12 }
 0x102   :  { %1770 = vst.msk [vmem:[%s3671_s3 + $0xa8] sm:$0xff] %vm733_vm2, %v1698_v8  ;;  %1769 = vst.msk [vmem:[%s3671_s3 + $0xa0] sm:$0xff] %vm733_vm2, %v1697_v9  ;;  %v1621_v14 = vadd.f32 %v2294_v60, %v832_v11  ;;  %v1620_v15 = vadd.f32 %v1349_v0, %v831_v13  ;;  %v2187_v17 = vpop.f32.mrf.mxu0  ;;  %v1369_v20 = vpop.f32.mrf.mxu1 }
 0x103   :  { %763 = vst.msk [vmem:[%s3671_s3 + $0xe9] sm:$0xff] %vm733_vm2, %v2187_v17 }
 0x104   :  { %v1700_v18 = vadd.f32 %v2806_v28, %v1621_v14  ;;  %v1699_v19 = vadd.f32 %v2806_v28, %v1620_v15  ;;  %v834_v21 = vld [vmem:[%s3671_s3 + $0xc8] sm:$0xff]  ;;  %v514_v22 = vpop.f32.mrf.mxu0  ;;  %v833_v23 = vld [vmem:[%s3671_s3 + $0xc0] sm:$0xff]  ;;  %v2303_v26 = vpop.f32.mrf.mxu1  ;;  %v1821_v14 = vlaneseq }
 0x105   :  { %v1623_v24 = vadd.f32 %v2297_v6, %v834_v21  ;;  %762 = vst.msk [vmem:[%s3671_s3 + $0xe1] sm:$0xff] %vm733_vm2, %v514_v22  ;;  %v1622_v25 = vadd.f32 %v1359_v10, %v833_v23 }
 0x106   :  { %1772 = vst.msk [vmem:[%s3671_s3 + $0xb8] sm:$0xff] %vm733_vm2, %v1700_v18  ;;  %1771 = vst.msk [vmem:[%s3671_s3 + $0xb0] sm:$0xff] %vm733_vm2, %v1699_v19  ;;  %v2190_v27 = vpop.f32.mrf.mxu0  ;;  %v1379_v31 = vpop.f32.mrf.mxu1 }
 0x107   :  { %v1702_v29 = vadd.f32 %v2806_v28, %v1623_v24  ;;  %v1701_v30 = vadd.f32 %v2806_v28, %v1622_v25  ;;  %765 = vst.msk [vmem:[%s3671_s3 + $0xf9] sm:$0xff] %vm733_vm2, %v2190_v27  ;;  %v3247_v25 = vand.u32 127, %v1821_v14 }
 0x108   :  { %v836_v32 = vld [vmem:[%s3671_s3 + $0xd8] sm:$0xff]  ;;  %v524_v33 = vpop.f32.mrf.mxu0  ;;  %v835_v34 = vld [vmem:[%s3671_s3 + $0xd0] sm:$0xff]  ;;  %v2306_v37 = vpop.f32.mrf.mxu1 }
 0x109   :  { %1774 = vst.msk [vmem:[%s3671_s3 + $0xc8] sm:$0xff] %vm733_vm2, %v1702_v29  ;;  %1773 = vst.msk [vmem:[%s3671_s3 + $0xc0] sm:$0xff] %vm733_vm2, %v1701_v30  ;;  %v1625_v35 = vadd.f32 %v2300_v16, %v836_v32  ;;  %v1624_v36 = vadd.f32 %v1369_v20, %v835_v34  ;;  %vm1823_vm3 = vcmp.lt.s32.totalorder %v3247_v25, 32 }
 0x10a   :  { %764 = vst.msk [vmem:[%s3671_s3 + $0xf1] sm:$0xff] %vm733_vm2, %v524_v33  ;;  %v2193_v38 = vpop.f32.mrf.mxu0  ;;  %v1389_v41 = vpop.f32.mrf.mxu1 }
 0x10b   :  { %v1704_v39 = vadd.f32 %v2806_v28, %v1625_v35  ;;  %v1703_v40 = vadd.f32 %v2806_v28, %v1624_v36  ;;  %767 = vst.msk [vmem:[%s3671_s3 + $0x109] sm:$0xff] %vm733_vm2, %v2193_v38 }
 0x10c   :  { %v838_v42 = vld [vmem:[%s3671_s3 + $0xe8] sm:$0xff]  ;;  %v534_v43 = vpop.f32.mrf.mxu0  ;;  %v837_v44 = vld [vmem:[%s3671_s3 + $0xe0] sm:$0xff]  ;;  %v2309_v47 = vpop.f32.mrf.mxu1 }
 0x10d   :  { %1776 = vst.msk [vmem:[%s3671_s3 + $0xd8] sm:$0xff] %vm733_vm2, %v1704_v39  ;;  %1775 = vst.msk [vmem:[%s3671_s3 + $0xd0] sm:$0xff] %vm733_vm2, %v1703_v40  ;;  %v1627_v45 = vadd.f32 %v2303_v26, %v838_v42  ;;  %v1626_v46 = vadd.f32 %v1379_v31, %v837_v44 }
 0x10e   :  { %766 = vst.msk [vmem:[%s3671_s3 + $0x101] sm:$0xff] %vm733_vm2, %v534_v43  ;;  %v2196_v48 = vpop.f32.mrf.mxu0  ;;  %v1399_v51 = vpop.f32.mrf.mxu1 }
 0x10f   :  { %v1706_v49 = vadd.f32 %v2806_v28, %v1627_v45  ;;  %v1705_v50 = vadd.f32 %v2806_v28, %v1626_v46  ;;  %769 = vst.msk [vmem:[%s3671_s3 + $0x119] sm:$0xff] %vm733_vm2, %v2196_v48 }
 0x110   :  { %v544_v53 = vpop.f32.mrf.mxu0  ;;  %v2312_v57 = vpop.f32.mrf.mxu1 }
 0x111   :  { %v840_v52 = vld [vmem:[%s3671_s3 + $0xf8] sm:$0xff]  ;;  %v839_v54 = vld [vmem:[%s3671_s3 + $0xf0] sm:$0xff]  ;;  %1778 = vst.msk [vmem:[%s3671_s3 + $0xe8] sm:$0xff] %vm733_vm2, %v1706_v49  ;;  %1777 = vst.msk [vmem:[%s3671_s3 + $0xe0] sm:$0xff] %vm733_vm2, %v1705_v50 }
 0x112   :  { %v1629_v55 = vadd.f32 %v2306_v37, %v840_v52  ;;  %768 = vst.msk [vmem:[%s3671_s3 + $0x111] sm:$0xff] %vm733_vm2, %v544_v53  ;;  %v1628_v56 = vadd.f32 %v1389_v41, %v839_v54  ;;  %v2199_v58 = vpop.f32.mrf.mxu0  ;;  %v1409_v61 = vpop.f32.mrf.mxu1 }
 0x113   :  { %771 = vst.msk [vmem:[%s3671_s3 + $0x129] sm:$0xff] %vm733_vm2, %v2199_v58 }
 0x114   :  { %v1708_v59 = vadd.f32 %v2806_v28, %v1629_v55  ;;  %v1707_v60 = vadd.f32 %v2806_v28, %v1628_v56  ;;  %v554_v63 = vpop.f32.mrf.mxu0  ;;  %v2315_v3 = vpop.f32.mrf.mxu1 }
 0x115   :  { %v842_v62 = vld [vmem:[%s3671_s3 + $0x108] sm:$0xff]  ;;  %v841_v0 = vld [vmem:[%s3671_s3 + $0x100] sm:$0xff]  ;;  %770 = vst.msk [vmem:[%s3671_s3 + $0x121] sm:$0xff] %vm733_vm2, %v554_v63 }
 0x116   :  { %1780 = vst.msk [vmem:[%s3671_s3 + $0xf8] sm:$0xff] %vm733_vm2, %v1708_v59  ;;  %1779 = vst.msk [vmem:[%s3671_s3 + $0xf0] sm:$0xff] %vm733_vm2, %v1707_v60  ;;  %v1631_v1 = vadd.f32 %v2309_v47, %v842_v62  ;;  %v1630_v2 = vadd.f32 %v1399_v51, %v841_v0  ;;  %v2202_v4 = vpop.f32.mrf.mxu0  ;;  %v1419_v7 = vpop.f32.mrf.mxu1 }
 0x117   :  { %773 = vst.msk [vmem:[%s3671_s3 + $0x139] sm:$0xff] %vm733_vm2, %v2202_v4 }
 0x118   :  { %v1710_v5 = vadd.f32 %v2806_v28, %v1631_v1  ;;  %v1709_v6 = vadd.f32 %v2806_v28, %v1630_v2  ;;  %v564_v9 = vpop.f32.mrf.mxu0  ;;  %v2318_v13 = vpop.f32.mrf.mxu1 }
 0x119   :  { %v844_v8 = vld [vmem:[%s3671_s3 + $0x118] sm:$0xff]  ;;  %v843_v10 = vld [vmem:[%s3671_s3 + $0x110] sm:$0xff]  ;;  %772 = vst.msk [vmem:[%s3671_s3 + $0x131] sm:$0xff] %vm733_vm2, %v564_v9 }
 0x11a   :  { %1782 = vst.msk [vmem:[%s3671_s3 + $0x108] sm:$0xff] %vm733_vm2, %v1710_v5  ;;  %1781 = vst.msk [vmem:[%s3671_s3 + $0x100] sm:$0xff] %vm733_vm2, %v1709_v6  ;;  %v1633_v11 = vadd.f32 %v2312_v57, %v844_v8  ;;  %v1632_v12 = vadd.f32 %v1409_v61, %v843_v10  ;;  %v2205_v15 = vpop.f32.mrf.mxu0  ;;  %v1429_v18 = vpop.f32.mrf.mxu1 }
 0x11b   :  { %775 = vst.msk [vmem:[%s3671_s3 + $0x149] sm:$0xff] %vm733_vm2, %v2205_v15 }
 0x11c   :  { %v1712_v16 = vadd.f32 %v2806_v28, %v1633_v11  ;;  %v1711_v17 = vadd.f32 %v2806_v28, %v1632_v12  ;;  %v846_v19 = vld [vmem:[%s3671_s3 + $0x128] sm:$0xff]  ;;  %v574_v20 = vpop.f32.mrf.mxu0  ;;  %v845_v21 = vld [vmem:[%s3671_s3 + $0x120] sm:$0xff]  ;;  %v2321_v24 = vpop.f32.mrf.mxu1 }
 0x11d   :  { %v1635_v22 = vadd.f32 %v2315_v3, %v846_v19  ;;  %774 = vst.msk [vmem:[%s3671_s3 + $0x141] sm:$0xff] %vm733_vm2, %v574_v20  ;;  %v1634_v23 = vadd.f32 %v1419_v7, %v845_v21 }
 0x11e   :  { %1784 = vst.msk [vmem:[%s3671_s3 + $0x118] sm:$0xff] %vm733_vm2, %v1712_v16  ;;  %1783 = vst.msk [vmem:[%s3671_s3 + $0x110] sm:$0xff] %vm733_vm2, %v1711_v17  ;;  %v2208_v26 = vpop.f32.mrf.mxu0  ;;  %v1439_v30 = vpop.f32.mrf.mxu1 }
 0x11f   :  { %v1714_v27 = vadd.f32 %v2806_v28, %v1635_v22  ;;  %v1713_v29 = vadd.f32 %v2806_v28, %v1634_v23  ;;  %777 = vst.msk [vmem:[%s3671_s3 + $0x159] sm:$0xff] %vm733_vm2, %v2208_v26 }
 0x120   :  { %v848_v31 = vld [vmem:[%s3671_s3 + $0x138] sm:$0xff]  ;;  %v584_v32 = vpop.f32.mrf.mxu0  ;;  %v847_v33 = vld [vmem:[%s3671_s3 + $0x130] sm:$0xff]  ;;  %v2324_v36 = vpop.f32.mrf.mxu1 }
 0x121   :  { %1786 = vst.msk [vmem:[%s3671_s3 + $0x128] sm:$0xff] %vm733_vm2, %v1714_v27  ;;  %1785 = vst.msk [vmem:[%s3671_s3 + $0x120] sm:$0xff] %vm733_vm2, %v1713_v29  ;;  %v1637_v34 = vadd.f32 %v2318_v13, %v848_v31  ;;  %v1636_v35 = vadd.f32 %v1429_v18, %v847_v33 }
 0x122   :  { %776 = vst.msk [vmem:[%s3671_s3 + $0x151] sm:$0xff] %vm733_vm2, %v584_v32  ;;  %v2211_v37 = vpop.f32.mrf.mxu0  ;;  %v1449_v40 = vpop.f32.mrf.mxu1 }
 0x123   :  { %v1716_v38 = vadd.f32 %v2806_v28, %v1637_v34  ;;  %v1715_v39 = vadd.f32 %v2806_v28, %v1636_v35  ;;  %779 = vst.msk [vmem:[%s3671_s3 + $0x169] sm:$0xff] %vm733_vm2, %v2211_v37 }
 0x124   :  { %v850_v42 = vld [vmem:[%s3671_s3 + $0x148] sm:$0xff]  ;;  %v594_v43 = vpop.f32.mrf.mxu0  ;;  %v849_v44 = vld [vmem:[%s3671_s3 + $0x140] sm:$0xff]  ;;  %v2327_v48 = vpop.f32.mrf.mxu1 }
 0x125   :  { %v1824_v41 = vld [vmem:[%s3671_s3 + $0x11f] sm:$0x1]  ;;  %1788 = vst.msk [vmem:[%s3671_s3 + $0x138] sm:$0xff] %vm733_vm2, %v1716_v38  ;;  %1787 = vst.msk [vmem:[%s3671_s3 + $0x130] sm:$0xff] %vm733_vm2, %v1715_v39  ;;  %v1639_v46 = vadd.f32 %v2321_v24, %v850_v42  ;;  %v1638_v47 = vadd.f32 %v1439_v30, %v849_v44 }
 0x126   :  { %v1825_v45 = vsel %vm1823_vm3, %v1824_v41, 0.0  ;;  %778 = vst.msk [vmem:[%s3671_s3 + $0x161] sm:$0xff] %vm733_vm2, %v594_v43  ;;  %v2214_v49 = vpop.f32.mrf.mxu0  ;;  %v1459_v52 = vpop.f32.mrf.mxu1 }
 0x127   :  { %1826 = vst.msk [vmem:[%s3671_s3 + $0x11f] sm:$0x1] %vm807_vm1, %v1825_v45  ;;  %v1718_v50 = vadd.f32 %v2806_v28, %v1639_v46  ;;  %v1717_v51 = vadd.f32 %v2806_v28, %v1638_v47 }
 0x128   :  { %781 = vst.msk [vmem:[%s3671_s3 + $0x179] sm:$0xff] %vm733_vm2, %v2214_v49  ;;  %v604_v54 = vpop.f32.mrf.mxu0  ;;  %v2330_v58 = vpop.f32.mrf.mxu1 }
 0x129   :  { %v852_v53 = vld [vmem:[%s3671_s3 + $0x158] sm:$0xff]  ;;  %v851_v55 = vld [vmem:[%s3671_s3 + $0x150] sm:$0xff]  ;;  %1790 = vst.msk [vmem:[%s3671_s3 + $0x148] sm:$0xff] %vm733_vm2, %v1718_v50  ;;  %1789 = vst.msk [vmem:[%s3671_s3 + $0x140] sm:$0xff] %vm733_vm2, %v1717_v51 }
 0x12a   :  { %v1641_v56 = vadd.f32 %v2324_v36, %v852_v53  ;;  %780 = vst.msk [vmem:[%s3671_s3 + $0x171] sm:$0xff] %vm733_vm2, %v604_v54  ;;  %v1640_v57 = vadd.f32 %v1449_v40, %v851_v55  ;;  %v2217_v59 = vpop.f32.mrf.mxu0  ;;  %v1469_v62 = vpop.f32.mrf.mxu1 }
 0x12b   :  { %783 = vst.msk [vmem:[%s3671_s3 + $0x189] sm:$0xff] %vm733_vm2, %v2217_v59 }
 0x12c   :  { %v1720_v60 = vadd.f32 %v2806_v28, %v1641_v56  ;;  %v1719_v61 = vadd.f32 %v2806_v28, %v1640_v57  ;;  %v614_v0 = vpop.f32.mrf.mxu0  ;;  %v2333_v4 = vpop.f32.mrf.mxu1 }
 0x12d   :  { %v854_v63 = vld [vmem:[%s3671_s3 + $0x168] sm:$0xff]  ;;  %v853_v1 = vld [vmem:[%s3671_s3 + $0x160] sm:$0xff]  ;;  %782 = vst.msk [vmem:[%s3671_s3 + $0x181] sm:$0xff] %vm733_vm2, %v614_v0 }
 0x12e   :  { %1792 = vst.msk [vmem:[%s3671_s3 + $0x158] sm:$0xff] %vm733_vm2, %v1720_v60  ;;  %1791 = vst.msk [vmem:[%s3671_s3 + $0x150] sm:$0xff] %vm733_vm2, %v1719_v61  ;;  %v1643_v2 = vadd.f32 %v2327_v48, %v854_v63  ;;  %v1642_v3 = vadd.f32 %v1459_v52, %v853_v1  ;;  %v2220_v5 = vpop.f32.mrf.mxu0  ;;  %v1479_v8 = vpop.f32.mrf.mxu1 }
 0x12f   :  { %785 = vst.msk [vmem:[%s3671_s3 + $0x199] sm:$0xff] %vm733_vm2, %v2220_v5 }
 0x130   :  { %v1722_v6 = vadd.f32 %v2806_v28, %v1643_v2  ;;  %v1721_v7 = vadd.f32 %v2806_v28, %v1642_v3  ;;  %v624_v10 = vpop.f32.mrf.mxu0  ;;  %v2336_v14 = vpop.f32.mrf.mxu1 }
 0x131   :  { %v856_v9 = vld [vmem:[%s3671_s3 + $0x178] sm:$0xff]  ;;  %v855_v11 = vld [vmem:[%s3671_s3 + $0x170] sm:$0xff]  ;;  %784 = vst.msk [vmem:[%s3671_s3 + $0x191] sm:$0xff] %vm733_vm2, %v624_v10 }
 0x132   :  { %1794 = vst.msk [vmem:[%s3671_s3 + $0x168] sm:$0xff] %vm733_vm2, %v1722_v6  ;;  %1793 = vst.msk [vmem:[%s3671_s3 + $0x160] sm:$0xff] %vm733_vm2, %v1721_v7  ;;  %v1645_v12 = vadd.f32 %v2330_v58, %v856_v9  ;;  %v1644_v13 = vadd.f32 %v1469_v62, %v855_v11  ;;  %v2223_v15 = vpop.f32.mrf.mxu0  ;;  %v1489_v18 = vpop.f32.mrf.mxu1 }
 0x133   :  { %787 = vst.msk [vmem:[%s3671_s3 + $0x1a9] sm:$0xff] %vm733_vm2, %v2223_v15 }
 0x134   :  { %v1724_v16 = vadd.f32 %v2806_v28, %v1645_v12  ;;  %v1723_v17 = vadd.f32 %v2806_v28, %v1644_v13  ;;  %v858_v19 = vld [vmem:[%s3671_s3 + $0x188] sm:$0xff]  ;;  %v634_v20 = vpop.f32.mrf.mxu0  ;;  %v857_v21 = vld [vmem:[%s3671_s3 + $0x180] sm:$0xff]  ;;  %v2339_v24 = vpop.f32.mrf.mxu1 }
 0x135   :  { %v1647_v22 = vadd.f32 %v2333_v4, %v858_v19  ;;  %786 = vst.msk [vmem:[%s3671_s3 + $0x1a1] sm:$0xff] %vm733_vm2, %v634_v20  ;;  %v1646_v23 = vadd.f32 %v1479_v8, %v857_v21 }
 0x136   :  { %1796 = vst.msk [vmem:[%s3671_s3 + $0x178] sm:$0xff] %vm733_vm2, %v1724_v16  ;;  %1795 = vst.msk [vmem:[%s3671_s3 + $0x170] sm:$0xff] %vm733_vm2, %v1723_v17  ;;  %v2226_v26 = vpop.f32.mrf.mxu0  ;;  %v1499_v30 = vpop.f32.mrf.mxu1 }
 0x137   :  { %v1726_v27 = vadd.f32 %v2806_v28, %v1647_v22  ;;  %v1725_v29 = vadd.f32 %v2806_v28, %v1646_v23  ;;  %789 = vst.msk [vmem:[%s3671_s3 + $0x1b9] sm:$0xff] %vm733_vm2, %v2226_v26 }
 0x138   :  { %v860_v31 = vld [vmem:[%s3671_s3 + $0x198] sm:$0xff]  ;;  %v644_v32 = vpop.f32.mrf.mxu0  ;;  %v859_v33 = vld [vmem:[%s3671_s3 + $0x190] sm:$0xff]  ;;  %v2342_v36 = vpop.f32.mrf.mxu1 }
 0x139   :  { %1798 = vst.msk [vmem:[%s3671_s3 + $0x188] sm:$0xff] %vm733_vm2, %v1726_v27  ;;  %1797 = vst.msk [vmem:[%s3671_s3 + $0x180] sm:$0xff] %vm733_vm2, %v1725_v29  ;;  %v1649_v34 = vadd.f32 %v2336_v14, %v860_v31  ;;  %v1648_v35 = vadd.f32 %v1489_v18, %v859_v33 }
 0x13a   :  { %788 = vst.msk [vmem:[%s3671_s3 + $0x1b1] sm:$0xff] %vm733_vm2, %v644_v32  ;;  %v2229_v37 = vpop.f32.mrf.mxu0  ;;  %v1509_v40 = vpop.f32.mrf.mxu1 }
 0x13b   :  { %v1728_v38 = vadd.f32 %v2806_v28, %v1649_v34  ;;  %v1727_v39 = vadd.f32 %v2806_v28, %v1648_v35  ;;  %791 = vst.msk [vmem:[%s3671_s3 + $0x1c9] sm:$0xff] %vm733_vm2, %v2229_v37 }
 0x13c   :  { %v862_v41 = vld [vmem:[%s3671_s3 + $0x1a8] sm:$0xff]  ;;  %v654_v42 = vpop.f32.mrf.mxu0  ;;  %v861_v43 = vld [vmem:[%s3671_s3 + $0x1a0] sm:$0xff]  ;;  %v2345_v46 = vpop.f32.mrf.mxu1 }
 0x13d   :  { %1800 = vst.msk [vmem:[%s3671_s3 + $0x198] sm:$0xff] %vm733_vm2, %v1728_v38  ;;  %1799 = vst.msk [vmem:[%s3671_s3 + $0x190] sm:$0xff] %vm733_vm2, %v1727_v39  ;;  %v1651_v44 = vadd.f32 %v2339_v24, %v862_v41  ;;  %v1650_v45 = vadd.f32 %v1499_v30, %v861_v43 }
 0x13e   :  { %790 = vst.msk [vmem:[%s3671_s3 + $0x1c1] sm:$0xff] %vm733_vm2, %v654_v42  ;;  %v2232_v47 = vpop.f32.mrf.mxu0  ;;  %v1519_v50 = vpop.f32.mrf.mxu1 }
 0x13f   :  { %v1730_v48 = vadd.f32 %v2806_v28, %v1651_v44  ;;  %v1729_v49 = vadd.f32 %v2806_v28, %v1650_v45  ;;  %793 = vst.msk [vmem:[%s3671_s3 + $0x1d9] sm:$0xff] %vm733_vm2, %v2232_v47 }
 0x140   :  { %v664_v52 = vpop.f32.mrf.mxu0  ;;  %v2348_v56 = vpop.f32.mrf.mxu1 }
 0x141   :  { %v864_v51 = vld [vmem:[%s3671_s3 + $0x1b8] sm:$0xff]  ;;  %v863_v53 = vld [vmem:[%s3671_s3 + $0x1b0] sm:$0xff]  ;;  %1802 = vst.msk [vmem:[%s3671_s3 + $0x1a8] sm:$0xff] %vm733_vm2, %v1730_v48  ;;  %1801 = vst.msk [vmem:[%s3671_s3 + $0x1a0] sm:$0xff] %vm733_vm2, %v1729_v49 }
 0x142   :  { %v1653_v54 = vadd.f32 %v2342_v36, %v864_v51  ;;  %792 = vst.msk [vmem:[%s3671_s3 + $0x1d1] sm:$0xff] %vm733_vm2, %v664_v52  ;;  %v1652_v55 = vadd.f32 %v1509_v40, %v863_v53  ;;  %v2235_v57 = vpop.f32.mrf.mxu0  ;;  %v1529_v60 = vpop.f32.mrf.mxu1 }
 0x143   :  { %795 = vst.msk [vmem:[%s3671_s3 + $0x1e9] sm:$0xff] %vm733_vm2, %v2235_v57 }
 0x144   :  { %v1732_v58 = vadd.f32 %v2806_v28, %v1653_v54  ;;  %v1731_v59 = vadd.f32 %v2806_v28, %v1652_v55  ;;  %v674_v62 = vpop.f32.mrf.mxu0  ;;  %v2351_v2 = vpop.f32.mrf.mxu1 }
 0x145   :  { %v866_v61 = vld [vmem:[%s3671_s3 + $0x1c8] sm:$0xff]  ;;  %v865_v63 = vld [vmem:[%s3671_s3 + $0x1c0] sm:$0xff]  ;;  %794 = vst.msk [vmem:[%s3671_s3 + $0x1e1] sm:$0xff] %vm733_vm2, %v674_v62 }
 0x146   :  { %1804 = vst.msk [vmem:[%s3671_s3 + $0x1b8] sm:$0xff] %vm733_vm2, %v1732_v58  ;;  %1803 = vst.msk [vmem:[%s3671_s3 + $0x1b0] sm:$0xff] %vm733_vm2, %v1731_v59  ;;  %v1655_v0 = vadd.f32 %v2345_v46, %v866_v61  ;;  %v1654_v1 = vadd.f32 %v1519_v50, %v865_v63  ;;  %v2238_v3 = vpop.f32.mrf.mxu0  ;;  %v1539_v6 = vpop.f32.mrf.mxu1 }
 0x147   :  { %797 = vst.msk [vmem:[%s3671_s3 + $0x1f9] sm:$0xff] %vm733_vm2, %v2238_v3 }
 0x148   :  { %v1734_v4 = vadd.f32 %v2806_v28, %v1655_v0  ;;  %v1733_v5 = vadd.f32 %v2806_v28, %v1654_v1  ;;  %v684_v8 = vpop.f32.mrf.mxu0  ;;  %v2354_v12 = vpop.f32.mrf.mxu1 }
 0x149   :  { %v868_v7 = vld [vmem:[%s3671_s3 + $0x1d8] sm:$0xff]  ;;  %v867_v9 = vld [vmem:[%s3671_s3 + $0x1d0] sm:$0xff]  ;;  %796 = vst.msk [vmem:[%s3671_s3 + $0x1f1] sm:$0xff] %vm733_vm2, %v684_v8 }
 0x14a   :  { %1806 = vst.msk [vmem:[%s3671_s3 + $0x1c8] sm:$0xff] %vm733_vm2, %v1734_v4  ;;  %1805 = vst.msk [vmem:[%s3671_s3 + $0x1c0] sm:$0xff] %vm733_vm2, %v1733_v5  ;;  %v1657_v10 = vadd.f32 %v2348_v56, %v868_v7  ;;  %v1656_v11 = vadd.f32 %v1529_v60, %v867_v9  ;;  %v2241_v13 = vpop.f32.mrf.mxu0  ;;  %v1549_v16 = vpop.f32.mrf.mxu1 }
 0x14b   :  { %799 = vst.msk [vmem:[%s3671_s3 + $0x209] sm:$0xff] %vm733_vm2, %v2241_v13 }
 0x14c   :  { %v1736_v14 = vadd.f32 %v2806_v28, %v1657_v10  ;;  %v1735_v15 = vadd.f32 %v2806_v28, %v1656_v11  ;;  %v870_v17 = vld [vmem:[%s3671_s3 + $0x1e8] sm:$0xff]  ;;  %v694_v18 = vpop.f32.mrf.mxu0  ;;  %v869_v19 = vld [vmem:[%s3671_s3 + $0x1e0] sm:$0xff]  ;;  %v2357_v22 = vpop.f32.mrf.mxu1 }
 0x14d   :  { %v1659_v20 = vadd.f32 %v2351_v2, %v870_v17  ;;  %798 = vst.msk [vmem:[%s3671_s3 + $0x201] sm:$0xff] %vm733_vm2, %v694_v18  ;;  %v1658_v21 = vadd.f32 %v1539_v6, %v869_v19 }
 0x14e   :  { %1808 = vst.msk [vmem:[%s3671_s3 + $0x1d8] sm:$0xff] %vm733_vm2, %v1736_v14  ;;  %1807 = vst.msk [vmem:[%s3671_s3 + $0x1d0] sm:$0xff] %vm733_vm2, %v1735_v15  ;;  %v2244_v23 = vpop.f32.mrf.mxu0  ;;  %v1559_v27 = vpop.f32.mrf.mxu1 }
 0x14f   :  { %v1738_v24 = vadd.f32 %v2806_v28, %v1659_v20  ;;  %v1737_v26 = vadd.f32 %v2806_v28, %v1658_v21  ;;  %801 = vst.msk [vmem:[%s3671_s3 + $0x219] sm:$0xff] %vm733_vm2, %v2244_v23 }
 0x150   :  { %v872_v29 = vld [vmem:[%s3671_s3 + $0x1f8] sm:$0xff]  ;;  %v704_v30 = vpop.f32.mrf.mxu0  ;;  %v871_v31 = vld [vmem:[%s3671_s3 + $0x1f0] sm:$0xff]  ;;  %v2360_v34 = vpop.f32.mrf.mxu1 }
 0x151   :  { %1810 = vst.msk [vmem:[%s3671_s3 + $0x1e8] sm:$0xff] %vm733_vm2, %v1738_v24  ;;  %1809 = vst.msk [vmem:[%s3671_s3 + $0x1e0] sm:$0xff] %vm733_vm2, %v1737_v26  ;;  %v1661_v32 = vadd.f32 %v2354_v12, %v872_v29  ;;  %v1660_v33 = vadd.f32 %v1549_v16, %v871_v31 }
 0x152   :  { %800 = vst.msk [vmem:[%s3671_s3 + $0x211] sm:$0xff] %vm733_vm2, %v704_v30  ;;  %v2247_v35 = vpop.f32.mrf.mxu0  ;;  %v1569_v38 = vpop.f32.mrf.mxu1 }
 0x153   :  { %v1740_v36 = vadd.f32 %v2806_v28, %v1661_v32  ;;  %v1739_v37 = vadd.f32 %v2806_v28, %v1660_v33  ;;  %803 = vst.msk [vmem:[%s3671_s3 + $0x229] sm:$0xff] %vm733_vm2, %v2247_v35 }
 0x154   :  { %v874_v39 = vld [vmem:[%s3671_s3 + $0x208] sm:$0xff]  ;;  %v714_v40 = vpop.f32.mrf.mxu0  ;;  %v873_v41 = vld [vmem:[%s3671_s3 + $0x200] sm:$0xff]  ;;  %v2363_v44 = vpop.f32.mrf.mxu1 }
 0x155   :  { %1812 = vst.msk [vmem:[%s3671_s3 + $0x1f8] sm:$0xff] %vm733_vm2, %v1740_v36  ;;  %1811 = vst.msk [vmem:[%s3671_s3 + $0x1f0] sm:$0xff] %vm733_vm2, %v1739_v37  ;;  %v1663_v42 = vadd.f32 %v2357_v22, %v874_v39  ;;  %v1662_v43 = vadd.f32 %v1559_v27, %v873_v41 }
 0x156   :  { %802 = vst.msk [vmem:[%s3671_s3 + $0x221] sm:$0xff] %vm733_vm2, %v714_v40  ;;  %v2250_v45 = vpop.f32.mrf.mxu0  ;;  %v1579_v48 = vpop.f32.mrf.mxu1 }
 0x157   :  { %v1742_v46 = vadd.f32 %v2806_v28, %v1663_v42  ;;  %v1741_v47 = vadd.f32 %v2806_v28, %v1662_v43  ;;  %806 = vst.msk [vmem:[%s3671_s3 + $0x239] sm:$0x7f] %vm805_vm4, %v2250_v45 }
 0x158   :  { %v724_v50 = vpop.f32.mrf.mxu0  ;;  %v2366_v54 = vpop.f32.mrf.mxu1 }
 0x159   :  { %v876_v49 = vld [vmem:[%s3671_s3 + $0x218] sm:$0xff]  ;;  %v875_v51 = vld [vmem:[%s3671_s3 + $0x210] sm:$0xff]  ;;  %1814 = vst.msk [vmem:[%s3671_s3 + $0x208] sm:$0xff] %vm733_vm2, %v1742_v46  ;;  %1813 = vst.msk [vmem:[%s3671_s3 + $0x200] sm:$0xff] %vm733_vm2, %v1741_v47 }
 0x15a   :  { %v1665_v52 = vadd.f32 %v2360_v34, %v876_v49  ;;  %804 = vst.msk [vmem:[%s3671_s3 + $0x231] sm:$0xff] %vm733_vm2, %v724_v50  ;;  %v1664_v53 = vadd.f32 %v1569_v38, %v875_v51  ;;  %v1589_v61 = vpop.f32.mrf.mxu1 }
 0x15c   :  { %v1744_v55 = vadd.f32 %v2806_v28, %v1665_v52  ;;  %v1743_v56 = vadd.f32 %v2806_v28, %v1664_v53 }
 0x15d   :  { %v878_v57 = vld [vmem:[%s3671_s3 + $0x228] sm:$0xff]  ;;  %v877_v58 = vld [vmem:[%s3671_s3 + $0x220] sm:$0xff] }
 0x15e   :  { %1816 = vst.msk [vmem:[%s3671_s3 + $0x218] sm:$0xff] %vm733_vm2, %v1744_v55  ;;  %1815 = vst.msk [vmem:[%s3671_s3 + $0x210] sm:$0xff] %vm733_vm2, %v1743_v56  ;;  %v1667_v59 = vadd.f32 %v2363_v44, %v878_v57  ;;  %v1666_v60 = vadd.f32 %v1579_v48, %v877_v58 }
 0x160   :  { %v1746_v62 = vadd.f32 %v2806_v28, %v1667_v59  ;;  %v1745_v63 = vadd.f32 %v2806_v28, %v1666_v60 }
 0x161   :  { %v880_v0 = vld [vmem:[%s3671_s3 + $0x238] sm:$0xff]  ;;  %v879_v1 = vld [vmem:[%s3671_s3 + $0x230] sm:$0xff] }
 0x162   :  { %1818 = vst.msk [vmem:[%s3671_s3 + $0x228] sm:$0xff] %vm733_vm2, %v1746_v62  ;;  %1817 = vst.msk [vmem:[%s3671_s3 + $0x220] sm:$0xff] %vm733_vm2, %v1745_v63  ;;  %v1669_v2 = vadd.f32 %v2366_v54, %v880_v0  ;;  %v1668_v3 = vadd.f32 %v1589_v61, %v879_v1 }
 0x164   :  { %v1748_v4 = vadd.f32 %v2806_v28, %v1669_v2  ;;  %v1747_v5 = vadd.f32 %v2806_v28, %v1668_v3 }
 0x166   :  { %1820 = vst.msk [vmem:[%s3671_s3 + $0x238] sm:$0xff] %vm733_vm2, %v1748_v4  ;;  %1819 = vst.msk [vmem:[%s3671_s3 + $0x230] sm:$0xff] %vm733_vm2, %v1747_v5 }
 0x16d   :  { %v1827_v6 = vld [vmem:[%s3671_s3 + $0x23f] sm:$0x1] }
 0x16e   :  { %v1828_v7 = vsel %vm1823_vm3, %v1827_v6, 0.0 }
 0x16f   :  { %1829 = vst.msk [vmem:[%s3671_s3 + $0x23f] sm:$0x1] %vm807_vm1, %v1828_v7 }

// kernel: _lambda_.13
= control target key start
LH: loop header
LB: loop body
LE: loop exit
PB: predicated region body
PF: predicated region fallthrough
CT: control target
= control target key end

     0   :  { %vm163_vm0 = vcmask 261120   ;;  %vm1527_vm1 = vcmask 32768   ;;  %v4521_v45 = vmov 0.0   ;;  %vm1381_vm2 = vcmask 39936   ;;  %s7034_s1 = inlined_call_operand.vmem [shape: f32[2,32,5], index: 1, kind: input, shape index: {}]   ;;  %s7035_s0 = inlined_call_operand.vmem [shape: f32[1152,32], index: 0, kind: input, shape index: {}]   ;;  %s7036_s3 = inlined_call_operand.vmem [shape: f32[1152,5], index: 3, kind: output, shape index: {}]   ;;  %s7037_s2 = inlined_call_operand.vmem [shape: f32[1,5], index: 2, kind: input, shape index: {}]  }
   0x1   :  { %v3484_v0 = vld [vmem:[%s7034_s1 + $0x38] sm:$0xff]  ;;  %v3483_v1 = vld [vmem:[%s7034_s1 + $0x30] sm:$0xff]  ;;  %v14_v3 = vld [vmem:[%s7035_s0] sm:$0xff]  ;;  %1528 = vst.msk [vmem:[%s7036_s3] sm:$0x1] %vm1527_vm1, %v4521_v45  ;;  %vm1525_vm3 = vcmask 38912  }
   0x2   :  { %4070 = vmatprep.subr.mxu0 %v3484_v0  ;;  %v1820_v2 = vld [vmem:[%s7034_s1 + $0x18] sm:$0xff]  ;;  %v3482_v4 = vld [vmem:[%s7034_s1 + $0x28] sm:$0xff]  ;;  %v1819_v5 = vld [vmem:[%s7034_s1 + $0x10] sm:$0xff]  ;;  %4078 = vmatprep.mubr.msk.f32.mxu0 %vm163_vm0, %v14_v3 }
   0x3   :  { %4071 = vmatpush3.msra.mxu0 %v3484_v0  ;;  %4294 = vmatprep.subr.mxu1 %v1820_v2  ;;  %v3481_v6 = vld [vmem:[%s7034_s1 + $0x20] sm:$0xff]  ;;  %v1818_v7 = vld [vmem:[%s7034_s1 + $0x8] sm:$0xff]  ;;  %v16_v10 = vld [vmem:[%s7035_s0 + $0x10] sm:$0xff] }
   0x4   :  { %4072 = vmatprep.subr.mxu0 %v3483_v1  ;;  %4295 = vmatpush3.msra.mxu1 %v1820_v2  ;;  %v15_v8 = vld [vmem:[%s7035_s0 + $0x8] sm:$0xff]  ;;  %v1817_v9 = vld [vmem:[%s7034_s1] sm:$0xff]  ;;  %v17_v11 = vld [vmem:[%s7035_s0 + $0x18] sm:$0xff] }
   0x5   :  { %4073 = vmatpush3.msra.mxu0 %v3483_v1  ;;  %4296 = vmatprep.subr.mxu1 %v1819_v5  ;;  %v18_v12 = vld [vmem:[%s7035_s0 + $0x20] sm:$0xff]  ;;  %v19_v13 = vld [vmem:[%s7035_s0 + $0x28] sm:$0xff]  ;;  %v20_v14 = vld [vmem:[%s7035_s0 + $0x30] sm:$0xff] }
   0x6   :  { %4074 = vmatprep.subr.mxu0 %v3482_v4  ;;  %4297 = vmatpush3.msra.mxu1 %v1819_v5  ;;  %v21_v15 = vld [vmem:[%s7035_s0 + $0x38] sm:$0xff]  ;;  %v22_v16 = vld [vmem:[%s7035_s0 + $0x40] sm:$0xff]  ;;  %v23_v17 = vld [vmem:[%s7035_s0 + $0x48] sm:$0xff] }
   0x7   :  { %4075 = vmatpush3.msra.mxu0 %v3482_v4  ;;  %4298 = vmatprep.subr.mxu1 %v1818_v7  ;;  %v24_v18 = vld [vmem:[%s7035_s0 + $0x50] sm:$0xff]  ;;  %v25_v19 = vld [vmem:[%s7035_s0 + $0x58] sm:$0xff]  ;;  %v26_v20 = vld [vmem:[%s7035_s0 + $0x60] sm:$0xff] }
   0x8   :  { %4076 = vmatprep.subr.mxu0 %v3481_v6  ;;  %4299 = vmatpush3.msra.mxu1 %v1818_v7  ;;  %v27_v21 = vld [vmem:[%s7035_s0 + $0x68] sm:$0xff]  ;;  %v28_v22 = vld [vmem:[%s7035_s0 + $0x70] sm:$0xff]  ;;  %v29_v23 = vld [vmem:[%s7035_s0 + $0x78] sm:$0xff] }
   0x9   :  { %4077 = vmatpush3.msra.mxu0 %v3481_v6  ;;  %4300 = vmatprep.subr.mxu1 %v1817_v9  ;;  %v30_v24 = vld [vmem:[%s7035_s0 + $0x80] sm:$0xff]  ;;  %v31_v25 = vld [vmem:[%s7035_s0 + $0x88] sm:$0xff]  ;;  %v32_v26 = vld [vmem:[%s7035_s0 + $0x90] sm:$0xff] }
   0xa   :  { %4079 = vmatmul.mubr.msk.f32.vlgmr.msra.gmra.mxu0 %vm163_vm0, %v15_v8  ;;  %4301 = vmatpush3.msra.mxu1 %v1817_v9  ;;  %v33_v27 = vld [vmem:[%s7035_s0 + $0x98] sm:$0xff]  ;;  %v34_v28 = vld [vmem:[%s7035_s0 + $0xa0] sm:$0xff]  ;;  %v35_v29 = vld [vmem:[%s7035_s0 + $0xa8] sm:$0xff] }
   0xb   :  { %4081 = vmatprep.mubr.msk.f32.mxu0 %vm163_vm0, %v16_v10  ;;  %4302 = vmatprep.mubr.msk.f32.mxu1 %vm163_vm0, %v14_v3  ;;  %v36_v30 = vld [vmem:[%s7035_s0 + $0xb0] sm:$0xff]  ;;  %v37_v31 = vld [vmem:[%s7035_s0 + $0xb8] sm:$0xff]  ;;  %v38_v32 = vld [vmem:[%s7035_s0 + $0xc0] sm:$0xff] }
   0xc   :  { %4303 = vmatmul.mubr.msk.f32.vlgmr.msra.gmra.mxu1 %vm163_vm0, %v15_v8  ;;  %v39_v33 = vld [vmem:[%s7035_s0 + $0xc8] sm:$0xff]  ;;  %v40_v34 = vld [vmem:[%s7035_s0 + $0xd0] sm:$0xff]  ;;  %v41_v35 = vld [vmem:[%s7035_s0 + $0xd8] sm:$0xff] }
   0xd   :  { %4305 = vmatprep.mubr.msk.f32.mxu1 %vm163_vm0, %v16_v10  ;;  %v42_v36 = vld [vmem:[%s7035_s0 + $0xe0] sm:$0xff]  ;;  %v43_v37 = vld [vmem:[%s7035_s0 + $0xe8] sm:$0xff]  ;;  %v44_v38 = vld [vmem:[%s7035_s0 + $0xf0] sm:$0xff] }
   0xe   :  { %4082 = vmatmul.mubr.msk.f32.gmra.mxu0 %vm163_vm0, %v17_v11  ;;  %v45_v39 = vld [vmem:[%s7035_s0 + $0xf8] sm:$0xff]  ;;  %v46_v40 = vld [vmem:[%s7035_s0 + $0x100] sm:$0xff]  ;;  %v47_v41 = vld [vmem:[%s7035_s0 + $0x108] sm:$0xff] }
   0xf   :  { %4084 = vmatprep.mubr.msk.f32.mxu0 %vm163_vm0, %v18_v12  ;;  %v48_v42 = vld [vmem:[%s7035_s0 + $0x110] sm:$0xff]  ;;  %v49_v43 = vld [vmem:[%s7035_s0 + $0x118] sm:$0xff]  ;;  %v50_v44 = vld [vmem:[%s7035_s0 + $0x120] sm:$0xff] }
  0x10   :  { %4306 = vmatmul.mubr.msk.f32.gmra.mxu1 %vm163_vm0, %v17_v11  ;;  %v51_v46 = vld [vmem:[%s7035_s0 + $0x128] sm:$0xff]  ;;  %v52_v47 = vld [vmem:[%s7035_s0 + $0x130] sm:$0xff]  ;;  %v53_v48 = vld [vmem:[%s7035_s0 + $0x138] sm:$0xff] }
  0x11   :  { %4308 = vmatprep.mubr.msk.f32.mxu1 %vm163_vm0, %v18_v12  ;;  %v54_v49 = vld [vmem:[%s7035_s0 + $0x140] sm:$0xff]  ;;  %v55_v50 = vld [vmem:[%s7035_s0 + $0x148] sm:$0xff]  ;;  %v56_v51 = vld [vmem:[%s7035_s0 + $0x150] sm:$0xff] }
  0x12   :  { %4085 = vmatmul.mubr.msk.f32.gmra.mxu0 %vm163_vm0, %v19_v13  ;;  %v57_v52 = vld [vmem:[%s7035_s0 + $0x158] sm:$0xff]  ;;  %v58_v53 = vld [vmem:[%s7035_s0 + $0x160] sm:$0xff]  ;;  %v59_v54 = vld [vmem:[%s7035_s0 + $0x168] sm:$0xff] }
  0x13   :  { %4087 = vmatprep.mubr.msk.f32.mxu0 %vm163_vm0, %v20_v14  ;;  %v60_v55 = vld [vmem:[%s7035_s0 + $0x170] sm:$0xff]  ;;  %v61_v56 = vld [vmem:[%s7035_s0 + $0x178] sm:$0xff]  ;;  %v62_v57 = vld [vmem:[%s7035_s0 + $0x180] sm:$0xff] }
  0x14   :  { %4309 = vmatmul.mubr.msk.f32.gmra.mxu1 %vm163_vm0, %v19_v13  ;;  %v63_v58 = vld [vmem:[%s7035_s0 + $0x188] sm:$0xff]  ;;  %v64_v59 = vld [vmem:[%s7035_s0 + $0x190] sm:$0xff]  ;;  %v65_v60 = vld [vmem:[%s7035_s0 + $0x198] sm:$0xff] }
  0x15   :  { %4311 = vmatprep.mubr.msk.f32.mxu1 %vm163_vm0, %v20_v14  ;;  %v66_v61 = vld [vmem:[%s7035_s0 + $0x1a0] sm:$0xff]  ;;  %v67_v62 = vld [vmem:[%s7035_s0 + $0x1a8] sm:$0xff]  ;;  %v68_v63 = vld [vmem:[%s7035_s0 + $0x1b0] sm:$0xff] }
  0x16   :  { %4088 = vmatmul.mubr.msk.f32.gmra.mxu0 %vm163_vm0, %v21_v15  ;;  %v69_v0 = vld [vmem:[%s7035_s0 + $0x1b8] sm:$0xff]  ;;  %v70_v1 = vld [vmem:[%s7035_s0 + $0x1c0] sm:$0xff]  ;;  %v71_v2 = vld [vmem:[%s7035_s0 + $0x1c8] sm:$0xff] }
  0x17   :  { %4090 = vmatprep.mubr.msk.f32.mxu0 %vm163_vm0, %v22_v16  ;;  %v72_v3 = vld [vmem:[%s7035_s0 + $0x1d0] sm:$0xff]  ;;  %v73_v4 = vld [vmem:[%s7035_s0 + $0x1d8] sm:$0xff]  ;;  %v74_v5 = vld [vmem:[%s7035_s0 + $0x1e0] sm:$0xff] }
  0x18   :  { %4312 = vmatmul.mubr.msk.f32.gmra.mxu1 %vm163_vm0, %v21_v15  ;;  %v75_v6 = vld [vmem:[%s7035_s0 + $0x1e8] sm:$0xff]  ;;  %v76_v7 = vld [vmem:[%s7035_s0 + $0x1f0] sm:$0xff]  ;;  %v77_v8 = vld [vmem:[%s7035_s0 + $0x1f8] sm:$0xff] }
  0x19   :  { %4314 = vmatprep.mubr.msk.f32.mxu1 %vm163_vm0, %v22_v16  ;;  %v78_v9 = vld [vmem:[%s7035_s0 + $0x200] sm:$0xff]  ;;  %v79_v10 = vld [vmem:[%s7035_s0 + $0x208] sm:$0xff]  ;;  %v80_v11 = vld [vmem:[%s7035_s0 + $0x210] sm:$0xff] }
  0x1a   :  { %4091 = vmatmul.mubr.msk.f32.gmra.mxu0 %vm163_vm0, %v23_v17  ;;  %v81_v12 = vld [vmem:[%s7035_s0 + $0x218] sm:$0xff]  ;;  %v82_v13 = vld [vmem:[%s7035_s0 + $0x220] sm:$0xff]  ;;  %v83_v14 = vld [vmem:[%s7035_s0 + $0x228] sm:$0xff] }
  0x1b   :  { %4093 = vmatprep.mubr.msk.f32.mxu0 %vm163_vm0, %v24_v18  ;;  %v84_v15 = vld [vmem:[%s7035_s0 + $0x230] sm:$0xff]  ;;  %v85_v16 = vld [vmem:[%s7035_s0 + $0x238] sm:$0xff] }
  0x1c   :  { %4315 = vmatmul.mubr.msk.f32.gmra.mxu1 %vm163_vm0, %v23_v17  ;;  %v86_v17 = vld [vmem:[%s7035_s0 + $0x240] sm:$0xff]  ;;  %v113_v45 = vld [vmem:[%s7035_s0 + $0x318] sm:$0xff] }
  0x1d   :  { %4317 = vmatprep.mubr.msk.f32.mxu1 %vm163_vm0, %v24_v18  ;;  %v87_v18 = vld [vmem:[%s7035_s0 + $0x248] sm:$0xff] }
  0x1e   :  { %4094 = vmatmul.mubr.msk.f32.gmra.mxu0 %vm163_vm0, %v25_v19 }
  0x1f   :  { %4096 = vmatprep.mubr.msk.f32.mxu0 %vm163_vm0, %v26_v20 }
  0x20   :  { %4318 = vmatmul.mubr.msk.f32.gmra.mxu1 %vm163_vm0, %v25_v19  ;;  %v88_v19 = vld [vmem:[%s7035_s0 + $0x250] sm:$0xff] }
  0x21   :  { %4320 = vmatprep.mubr.msk.f32.mxu1 %vm163_vm0, %v26_v20  ;;  %v89_v20 = vld [vmem:[%s7035_s0 + $0x258] sm:$0xff] }
  0x22   :  { %4097 = vmatmul.mubr.msk.f32.gmra.mxu0 %vm163_vm0, %v27_v21 }
  0x23   :  { %4099 = vmatprep.mubr.msk.f32.mxu0 %vm163_vm0, %v28_v22 }
  0x24   :  { %4321 = vmatmul.mubr.msk.f32.gmra.mxu1 %vm163_vm0, %v27_v21  ;;  %v90_v21 = vld [vmem:[%s7035_s0 + $0x260] sm:$0xff] }
  0x25   :  { %4323 = vmatprep.mubr.msk.f32.mxu1 %vm163_vm0, %v28_v22  ;;  %v91_v22 = vld [vmem:[%s7035_s0 + $0x268] sm:$0xff] }
  0x26   :  { %4100 = vmatmul.mubr.msk.f32.gmra.mxu0 %vm163_vm0, %v29_v23 }
  0x27   :  { %4102 = vmatprep.mubr.msk.f32.mxu0 %vm163_vm0, %v30_v24 }
  0x28   :  { %4324 = vmatmul.mubr.msk.f32.gmra.mxu1 %vm163_vm0, %v29_v23  ;;  %v92_v23 = vld [vmem:[%s7035_s0 + $0x270] sm:$0xff] }
  0x29   :  { %4326 = vmatprep.mubr.msk.f32.mxu1 %vm163_vm0, %v30_v24  ;;  %v93_v24 = vld [vmem:[%s7035_s0 + $0x278] sm:$0xff] }
  0x2a   :  { %4103 = vmatmul.mubr.msk.f32.gmra.mxu0 %vm163_vm0, %v31_v25 }
  0x2b   :  { %4105 = vmatprep.mubr.msk.f32.mxu0 %vm163_vm0, %v32_v26 }
  0x2c   :  { %4327 = vmatmul.mubr.msk.f32.gmra.mxu1 %vm163_vm0, %v31_v25  ;;  %v94_v25 = vld [vmem:[%s7035_s0 + $0x280] sm:$0xff] }
  0x2d   :  { %4329 = vmatprep.mubr.msk.f32.mxu1 %vm163_vm0, %v32_v26  ;;  %v95_v26 = vld [vmem:[%s7035_s0 + $0x288] sm:$0xff] }
  0x2e   :  { %4106 = vmatmul.mubr.msk.f32.gmra.mxu0 %vm163_vm0, %v33_v27 }
  0x2f   :  { %4108 = vmatprep.mubr.msk.f32.mxu0 %vm163_vm0, %v34_v28 }
  0x30   :  { %4330 = vmatmul.mubr.msk.f32.gmra.mxu1 %vm163_vm0, %v33_v27  ;;  %v96_v27 = vld [vmem:[%s7035_s0 + $0x290] sm:$0xff] }
  0x31   :  { %4332 = vmatprep.mubr.msk.f32.mxu1 %vm163_vm0, %v34_v28  ;;  %v97_v28 = vld [vmem:[%s7035_s0 + $0x298] sm:$0xff] }
  0x32   :  { %4109 = vmatmul.mubr.msk.f32.gmra.mxu0 %vm163_vm0, %v35_v29 }
  0x33   :  { %4111 = vmatprep.mubr.msk.f32.mxu0 %vm163_vm0, %v36_v30 }
  0x34   :  { %4333 = vmatmul.mubr.msk.f32.gmra.mxu1 %vm163_vm0, %v35_v29  ;;  %v98_v29 = vld [vmem:[%s7035_s0 + $0x2a0] sm:$0xff] }
  0x35   :  { %4335 = vmatprep.mubr.msk.f32.mxu1 %vm163_vm0, %v36_v30  ;;  %v99_v30 = vld [vmem:[%s7035_s0 + $0x2a8] sm:$0xff] }
  0x36   :  { %4112 = vmatmul.mubr.msk.f32.gmra.mxu0 %vm163_vm0, %v37_v31 }
  0x37   :  { %4114 = vmatprep.mubr.msk.f32.mxu0 %vm163_vm0, %v38_v32 }
  0x38   :  { %4336 = vmatmul.mubr.msk.f32.gmra.mxu1 %vm163_vm0, %v37_v31  ;;  %v100_v31 = vld [vmem:[%s7035_s0 + $0x2b0] sm:$0xff] }
  0x39   :  { %4338 = vmatprep.mubr.msk.f32.mxu1 %vm163_vm0, %v38_v32  ;;  %v101_v32 = vld [vmem:[%s7035_s0 + $0x2b8] sm:$0xff] }
  0x3a   :  { %4115 = vmatmul.mubr.msk.f32.gmra.mxu0 %vm163_vm0, %v39_v33 }
  0x3b   :  { %4117 = vmatprep.mubr.msk.f32.mxu0 %vm163_vm0, %v40_v34 }
  0x3c   :  { %4339 = vmatmul.mubr.msk.f32.gmra.mxu1 %vm163_vm0, %v39_v33  ;;  %v102_v33 = vld [vmem:[%s7035_s0 + $0x2c0] sm:$0xff] }
  0x3d   :  { %4341 = vmatprep.mubr.msk.f32.mxu1 %vm163_vm0, %v40_v34  ;;  %v103_v34 = vld [vmem:[%s7035_s0 + $0x2c8] sm:$0xff] }
  0x3e   :  { %4118 = vmatmul.mubr.msk.f32.gmra.mxu0 %vm163_vm0, %v41_v35 }
  0x3f   :  { %4120 = vmatprep.mubr.msk.f32.mxu0 %vm163_vm0, %v42_v36 }
  0x40   :  { %4342 = vmatmul.mubr.msk.f32.gmra.mxu1 %vm163_vm0, %v41_v35  ;;  %v104_v35 = vld [vmem:[%s7035_s0 + $0x2d0] sm:$0xff] }
  0x41   :  { %4344 = vmatprep.mubr.msk.f32.mxu1 %vm163_vm0, %v42_v36  ;;  %v105_v36 = vld [vmem:[%s7035_s0 + $0x2d8] sm:$0xff] }
  0x42   :  { %4121 = vmatmul.mubr.msk.f32.gmra.mxu0 %vm163_vm0, %v43_v37 }
  0x43   :  { %4123 = vmatprep.mubr.msk.f32.mxu0 %vm163_vm0, %v44_v38 }
  0x44   :  { %4345 = vmatmul.mubr.msk.f32.gmra.mxu1 %vm163_vm0, %v43_v37  ;;  %v106_v37 = vld [vmem:[%s7035_s0 + $0x2e0] sm:$0xff] }
  0x45   :  { %4347 = vmatprep.mubr.msk.f32.mxu1 %vm163_vm0, %v44_v38  ;;  %v107_v38 = vld [vmem:[%s7035_s0 + $0x2e8] sm:$0xff] }
  0x46   :  { %4124 = vmatmul.mubr.msk.f32.gmra.mxu0 %vm163_vm0, %v45_v39 }
  0x47   :  { %4126 = vmatprep.mubr.msk.f32.mxu0 %vm163_vm0, %v46_v40 }
  0x48   :  { %4348 = vmatmul.mubr.msk.f32.gmra.mxu1 %vm163_vm0, %v45_v39  ;;  %v108_v39 = vld [vmem:[%s7035_s0 + $0x2f0] sm:$0xff] }
  0x49   :  { %4350 = vmatprep.mubr.msk.f32.mxu1 %vm163_vm0, %v46_v40  ;;  %v109_v40 = vld [vmem:[%s7035_s0 + $0x2f8] sm:$0xff] }
  0x4a   :  { %4127 = vmatmul.mubr.msk.f32.gmra.mxu0 %vm163_vm0, %v47_v41 }
  0x4b   :  { %4129 = vmatprep.mubr.msk.f32.mxu0 %vm163_vm0, %v48_v42 }
  0x4c   :  { %4351 = vmatmul.mubr.msk.f32.gmra.mxu1 %vm163_vm0, %v47_v41  ;;  %v110_v41 = vld [vmem:[%s7035_s0 + $0x300] sm:$0xff] }
  0x4d   :  { %4353 = vmatprep.mubr.msk.f32.mxu1 %vm163_vm0, %v48_v42  ;;  %v111_v42 = vld [vmem:[%s7035_s0 + $0x308] sm:$0xff] }
  0x4e   :  { %4130 = vmatmul.mubr.msk.f32.gmra.mxu0 %vm163_vm0, %v49_v43 }
  0x4f   :  { %4132 = vmatprep.mubr.msk.f32.mxu0 %vm163_vm0, %v50_v44 }
  0x50   :  { %4354 = vmatmul.mubr.msk.f32.gmra.mxu1 %vm163_vm0, %v49_v43  ;;  %v112_v43 = vld [vmem:[%s7035_s0 + $0x310] sm:$0xff] }
  0x51   :  { %4356 = vmatprep.mubr.msk.f32.mxu1 %vm163_vm0, %v50_v44 }
  0x52   :  { %4133 = vmatmul.mubr.msk.f32.gmra.mxu0 %vm163_vm0, %v51_v46 }
  0x53   :  { %4135 = vmatprep.mubr.msk.f32.mxu0 %vm163_vm0, %v52_v47 }
  0x54   :  { %4357 = vmatmul.mubr.msk.f32.gmra.mxu1 %vm163_vm0, %v51_v46 }
  0x55   :  { %4359 = vmatprep.mubr.msk.f32.mxu1 %vm163_vm0, %v52_v47  ;;  %v114_v47 = vld [vmem:[%s7035_s0 + $0x320] sm:$0xff] }
  0x56   :  { %4136 = vmatmul.mubr.msk.f32.gmra.mxu0 %vm163_vm0, %v53_v48 }
  0x57   :  { %4138 = vmatprep.mubr.msk.f32.mxu0 %vm163_vm0, %v54_v49 }
  0x58   :  { %4360 = vmatmul.mubr.msk.f32.gmra.mxu1 %vm163_vm0, %v53_v48 }
  0x59   :  { %4362 = vmatprep.mubr.msk.f32.mxu1 %vm163_vm0, %v54_v49 }
  0x5a   :  { %4139 = vmatmul.mubr.msk.f32.gmra.mxu0 %vm163_vm0, %v55_v50 }
  0x5b   :  { %4141 = vmatprep.mubr.msk.f32.mxu0 %vm163_vm0, %v56_v51 }
  0x5c   :  { %4363 = vmatmul.mubr.msk.f32.gmra.mxu1 %vm163_vm0, %v55_v50  ;;  %v115_v50 = vld [vmem:[%s7035_s0 + $0x328] sm:$0xff] }
  0x5d   :  { %4365 = vmatprep.mubr.msk.f32.mxu1 %vm163_vm0, %v56_v51 }
  0x5e   :  { %4142 = vmatmul.mubr.msk.f32.gmra.mxu0 %vm163_vm0, %v57_v52 }
  0x5f   :  { %4144 = vmatprep.mubr.msk.f32.mxu0 %vm163_vm0, %v58_v53 }
  0x60   :  { %4366 = vmatmul.mubr.msk.f32.gmra.mxu1 %vm163_vm0, %v57_v52 }
  0x61   :  { %4368 = vmatprep.mubr.msk.f32.mxu1 %vm163_vm0, %v58_v53  ;;  %v116_v53 = vld [vmem:[%s7035_s0 + $0x330] sm:$0xff] }
  0x62   :  { %4145 = vmatmul.mubr.msk.f32.gmra.mxu0 %vm163_vm0, %v59_v54 }
  0x63   :  { %4147 = vmatprep.mubr.msk.f32.mxu0 %vm163_vm0, %v60_v55 }
  0x64   :  { %4369 = vmatmul.mubr.msk.f32.gmra.mxu1 %vm163_vm0, %v59_v54 }
  0x65   :  { %4371 = vmatprep.mubr.msk.f32.mxu1 %vm163_vm0, %v60_v55 }
  0x66   :  { %4148 = vmatmul.mubr.msk.f32.gmra.mxu0 %vm163_vm0, %v61_v56 }
  0x67   :  { %4150 = vmatprep.mubr.msk.f32.mxu0 %vm163_vm0, %v62_v57 }
  0x68   :  { %4372 = vmatmul.mubr.msk.f32.gmra.mxu1 %vm163_vm0, %v61_v56  ;;  %v5100_v56 = vld [vmem:[%s7037_s2] ss:$0 sm:$0xff] }
  0x69   :  { %4374 = vmatprep.mubr.msk.f32.mxu1 %vm163_vm0, %v62_v57  ;;  %v117_v57 = vld [vmem:[%s7035_s0 + $0x338] sm:$0xff] }
  0x6a   :  { %4151 = vmatmul.mubr.msk.f32.gmra.mxu0 %vm163_vm0, %v63_v58 }
  0x6b   :  { %4153 = vmatprep.mubr.msk.f32.mxu0 %vm163_vm0, %v64_v59 }
  0x6c   :  { %4375 = vmatmul.mubr.msk.f32.gmra.mxu1 %vm163_vm0, %v63_v58 }
  0x6d   :  { %4377 = vmatprep.mubr.msk.f32.mxu1 %vm163_vm0, %v64_v59 }
  0x6e   :  { %4154 = vmatmul.mubr.msk.f32.gmra.mxu0 %vm163_vm0, %v65_v60 }
  0x6f   :  { %4156 = vmatprep.mubr.msk.f32.mxu0 %vm163_vm0, %v66_v61 }
  0x70   :  { %4378 = vmatmul.mubr.msk.f32.gmra.mxu1 %vm163_vm0, %v65_v60 }
  0x71   :  { %4380 = vmatprep.mubr.msk.f32.mxu1 %vm163_vm0, %v66_v61 }
  0x72   :  { %4157 = vmatmul.mubr.msk.f32.gmra.mxu0 %vm163_vm0, %v67_v62 }
  0x73   :  { %4159 = vmatprep.mubr.msk.f32.mxu0 %vm163_vm0, %v68_v63 }
  0x74   :  { %4381 = vmatmul.mubr.msk.f32.gmra.mxu1 %vm163_vm0, %v67_v62  ;;  %v118_v62 = vld [vmem:[%s7035_s0 + $0x340] sm:$0xff] }
  0x75   :  { %4383 = vmatprep.mubr.msk.f32.mxu1 %vm163_vm0, %v68_v63 }
  0x76   :  { %4160 = vmatmul.mubr.msk.f32.gmra.mxu0 %vm163_vm0, %v69_v0 }
  0x77   :  { %4162 = vmatprep.mubr.msk.f32.mxu0 %vm163_vm0, %v70_v1 }
  0x78   :  { %4384 = vmatmul.mubr.msk.f32.gmra.mxu1 %vm163_vm0, %v69_v0 }
  0x79   :  { %4386 = vmatprep.mubr.msk.f32.mxu1 %vm163_vm0, %v70_v1 }
  0x7a   :  { %4163 = vmatmul.mubr.msk.f32.gmra.mxu0 %vm163_vm0, %v71_v2 }
  0x7b   :  { %4165 = vmatprep.mubr.msk.f32.mxu0 %vm163_vm0, %v72_v3 }
  0x7c   :  { %4387 = vmatmul.mubr.msk.f32.gmra.mxu1 %vm163_vm0, %v71_v2 }
  0x7d   :  { %4389 = vmatprep.mubr.msk.f32.mxu1 %vm163_vm0, %v72_v3 }
  0x7e   :  { %4166 = vmatmul.mubr.msk.f32.gmra.mxu0 %vm163_vm0, %v73_v4 }
  0x7f   :  { %4168 = vmatprep.mubr.msk.f32.mxu0 %vm163_vm0, %v74_v5 }
  0x80   :  { %4390 = vmatmul.mubr.msk.f32.gmra.mxu1 %vm163_vm0, %v73_v4 }
  0x81   :  { %4392 = vmatprep.mubr.msk.f32.mxu1 %vm163_vm0, %v74_v5  ;;  %v119_v5 = vld [vmem:[%s7035_s0 + $0x348] sm:$0xff] }
  0x82   :  { %4169 = vmatmul.mubr.msk.f32.gmra.mxu0 %vm163_vm0, %v75_v6 }
  0x83   :  { %4171 = vmatprep.mubr.msk.f32.mxu0 %vm163_vm0, %v76_v7 }
  0x84   :  { %4393 = vmatmul.mubr.msk.f32.gmra.mxu1 %vm163_vm0, %v75_v6 }
  0x85   :  { %4395 = vmatprep.mubr.msk.f32.mxu1 %vm163_vm0, %v76_v7 }
  0x86   :  { %4172 = vmatmul.mubr.msk.f32.gmra.mxu0 %vm163_vm0, %v77_v8 }
  0x87   :  { %4174 = vmatprep.mubr.msk.f32.mxu0 %vm163_vm0, %v78_v9 }
  0x88   :  { %4396 = vmatmul.mubr.msk.f32.gmra.mxu1 %vm163_vm0, %v77_v8 }
  0x89   :  { %4398 = vmatprep.mubr.msk.f32.mxu1 %vm163_vm0, %v78_v9 }
  0x8a   :  { %4175 = vmatmul.mubr.msk.f32.gmra.mxu0 %vm163_vm0, %v79_v10 }
  0x8b   :  { %4177 = vmatprep.mubr.msk.f32.mxu0 %vm163_vm0, %v80_v11 }
  0x8c   :  { %4399 = vmatmul.mubr.msk.f32.gmra.mxu1 %vm163_vm0, %v79_v10  ;;  %v120_v10 = vld [vmem:[%s7035_s0 + $0x350] sm:$0xff] }
  0x8d   :  { %4401 = vmatprep.mubr.msk.f32.mxu1 %vm163_vm0, %v80_v11 }
  0x8e   :  { %4178 = vmatmul.mubr.msk.f32.gmra.mxu0 %vm163_vm0, %v81_v12 }
  0x8f   :  { %4180 = vmatprep.mubr.msk.f32.mxu0 %vm163_vm0, %v82_v13 }
  0x90   :  { %4402 = vmatmul.mubr.msk.f32.gmra.mxu1 %vm163_vm0, %v81_v12 }
  0x91   :  { %4404 = vmatprep.mubr.msk.f32.mxu1 %vm163_vm0, %v82_v13 }
  0x92   :  { %4181 = vmatmul.mubr.msk.f32.gmra.mxu0 %vm163_vm0, %v83_v14 }
  0x93   :  { %4183 = vmatprep.mubr.msk.f32.mxu0 %vm163_vm0, %v84_v15 }
  0x94   :  { %4405 = vmatmul.mubr.msk.f32.gmra.mxu1 %vm163_vm0, %v83_v14 }
  0x95   :  { %4407 = vmatprep.mubr.msk.f32.mxu1 %vm163_vm0, %v84_v15 }
  0x96   :  { %4184 = vmatmul.mubr.msk.f32.gmra.mxu0 %vm163_vm0, %v85_v16 }
  0x97   :  { %4186 = vmatprep.mubr.msk.f32.mxu0 %vm163_vm0, %v86_v17 }
  0x98   :  { %4408 = vmatmul.mubr.msk.f32.gmra.mxu1 %vm163_vm0, %v85_v16 }
  0x99   :  { %4410 = vmatprep.mubr.msk.f32.mxu1 %vm163_vm0, %v86_v17  ;;  %v121_v17 = vld [vmem:[%s7035_s0 + $0x358] sm:$0xff] }
  0x9a   :  { %4187 = vmatmul.mubr.msk.f32.gmra.mxu0 %vm163_vm0, %v87_v18 }
  0x9b   :  { %4189 = vmatprep.mubr.msk.f32.mxu0 %vm163_vm0, %v88_v19 }
  0x9c   :  { %4411 = vmatmul.mubr.msk.f32.gmra.mxu1 %vm163_vm0, %v87_v18 }
  0x9d   :  { %4413 = vmatprep.mubr.msk.f32.mxu1 %vm163_vm0, %v88_v19 }
  0x9e   :  { %4190 = vmatmul.mubr.msk.f32.gmra.mxu0 %vm163_vm0, %v89_v20 }
  0x9f   :  { %4192 = vmatprep.mubr.msk.f32.mxu0 %vm163_vm0, %v90_v21 }
  0xa0   :  { %4414 = vmatmul.mubr.msk.f32.gmra.mxu1 %vm163_vm0, %v89_v20 }
  0xa1   :  { %4416 = vmatprep.mubr.msk.f32.mxu1 %vm163_vm0, %v90_v21 }
  0xa2   :  { %4193 = vmatmul.mubr.msk.f32.gmra.mxu0 %vm163_vm0, %v91_v22 }
  0xa3   :  { %4195 = vmatprep.mubr.msk.f32.mxu0 %vm163_vm0, %v92_v23 }
  0xa4   :  { %4417 = vmatmul.mubr.msk.f32.gmra.mxu1 %vm163_vm0, %v91_v22  ;;  %v122_v22 = vld [vmem:[%s7035_s0 + $0x360] sm:$0xff] }
  0xa5   :  { %4419 = vmatprep.mubr.msk.f32.mxu1 %vm163_vm0, %v92_v23 }
  0xa6   :  { %4196 = vmatmul.mubr.msk.f32.gmra.mxu0 %vm163_vm0, %v93_v24 }
  0xa7   :  { %4198 = vmatprep.mubr.msk.f32.mxu0 %vm163_vm0, %v94_v25 }
  0xa8   :  { %4420 = vmatmul.mubr.msk.f32.gmra.mxu1 %vm163_vm0, %v93_v24 }
  0xa9   :  { %4422 = vmatprep.mubr.msk.f32.mxu1 %vm163_vm0, %v94_v25 }
  0xaa   :  { %4199 = vmatmul.mubr.msk.f32.gmra.mxu0 %vm163_vm0, %v95_v26 }
  0xab   :  { %4201 = vmatprep.mubr.msk.f32.mxu0 %vm163_vm0, %v96_v27 }
  0xac   :  { %4423 = vmatmul.mubr.msk.f32.gmra.mxu1 %vm163_vm0, %v95_v26 }
  0xad   :  { %4425 = vmatprep.mubr.msk.f32.mxu1 %vm163_vm0, %v96_v27 }
  0xae   :  { %4202 = vmatmul.mubr.msk.f32.gmra.mxu0 %vm163_vm0, %v97_v28 }
  0xaf   :  { %4204 = vmatprep.mubr.msk.f32.mxu0 %vm163_vm0, %v98_v29 }
  0xb0   :  { %4426 = vmatmul.mubr.msk.f32.gmra.mxu1 %vm163_vm0, %v97_v28 }
  0xb1   :  { %4428 = vmatprep.mubr.msk.f32.mxu1 %vm163_vm0, %v98_v29  ;;  %v123_v29 = vld [vmem:[%s7035_s0 + $0x368] sm:$0xff] }
  0xb2   :  { %4205 = vmatmul.mubr.msk.f32.gmra.mxu0 %vm163_vm0, %v99_v30 }
  0xb3   :  { %4207 = vmatprep.mubr.msk.f32.mxu0 %vm163_vm0, %v100_v31 }
  0xb4   :  { %4429 = vmatmul.mubr.msk.f32.gmra.mxu1 %vm163_vm0, %v99_v30 }
  0xb5   :  { %4431 = vmatprep.mubr.msk.f32.mxu1 %vm163_vm0, %v100_v31 }
  0xb6   :  { %4208 = vmatmul.mubr.msk.f32.gmra.mxu0 %vm163_vm0, %v101_v32 }
  0xb7   :  { %4210 = vmatprep.mubr.msk.f32.mxu0 %vm163_vm0, %v102_v33 }
  0xb8   :  { %4432 = vmatmul.mubr.msk.f32.gmra.mxu1 %vm163_vm0, %v101_v32 }
  0xb9   :  { %4434 = vmatprep.mubr.msk.f32.mxu1 %vm163_vm0, %v102_v33 }
  0xba   :  { %4211 = vmatmul.mubr.msk.f32.gmra.mxu0 %vm163_vm0, %v103_v34 }
  0xbb   :  { %4213 = vmatprep.mubr.msk.f32.mxu0 %vm163_vm0, %v104_v35 }
  0xbc   :  { %4435 = vmatmul.mubr.msk.f32.gmra.mxu1 %vm163_vm0, %v103_v34  ;;  %v124_v34 = vld [vmem:[%s7035_s0 + $0x370] sm:$0xff] }
  0xbd   :  { %4437 = vmatprep.mubr.msk.f32.mxu1 %vm163_vm0, %v104_v35 }
  0xbe   :  { %4214 = vmatmul.mubr.msk.f32.gmra.mxu0 %vm163_vm0, %v105_v36 }
  0xbf   :  { %4216 = vmatprep.mubr.msk.f32.mxu0 %vm163_vm0, %v106_v37 }
  0xc0   :  { %4438 = vmatmul.mubr.msk.f32.gmra.mxu1 %vm163_vm0, %v105_v36 }
  0xc1   :  { %4440 = vmatprep.mubr.msk.f32.mxu1 %vm163_vm0, %v106_v37 }
  0xc2   :  { %4217 = vmatmul.mubr.msk.f32.gmra.mxu0 %vm163_vm0, %v107_v38 }
  0xc3   :  { %4219 = vmatprep.mubr.msk.f32.mxu0 %vm163_vm0, %v108_v39 }
  0xc4   :  { %4441 = vmatmul.mubr.msk.f32.gmra.mxu1 %vm163_vm0, %v107_v38 }
  0xc5   :  { %4443 = vmatprep.mubr.msk.f32.mxu1 %vm163_vm0, %v108_v39 }
  0xc6   :  { %4220 = vmatmul.mubr.msk.f32.gmra.mxu0 %vm163_vm0, %v109_v40 }
  0xc7   :  { %4222 = vmatprep.mubr.msk.f32.mxu0 %vm163_vm0, %v110_v41 }
  0xc8   :  { %4444 = vmatmul.mubr.msk.f32.gmra.mxu1 %vm163_vm0, %v109_v40 }
  0xc9   :  { %4446 = vmatprep.mubr.msk.f32.mxu1 %vm163_vm0, %v110_v41  ;;  %v125_v41 = vld [vmem:[%s7035_s0 + $0x378] sm:$0xff] }
  0xca   :  { %v4080_v44 = vpop.f32.mrf.mxu0  ;;  %4223 = vmatmul.mubr.msk.f32.gmra.mxu0 %vm163_vm0, %v111_v42 }
  0xcb   :  { %1383 = vst.msk [vmem:[%s7036_s3 + $0x9] sm:$0xff] %vm1381_vm2, %v4080_v44  ;;  %4225 = vmatprep.mubr.msk.f32.mxu0 %vm163_vm0, %v112_v43 }
  0xcc   :  { %v662_v46 = vpop.f32.mrf.mxu0  ;;  %v4304_v48 = vpop.f32.mrf.mxu1  ;;  %4447 = vmatmul.mubr.msk.f32.gmra.mxu1 %vm163_vm0, %v111_v42 }
  0xcd   :  { %1382 = vst.msk [vmem:[%s7036_s3 + $0x1] sm:$0xff] %vm1381_vm2, %v662_v46  ;;  %4449 = vmatprep.mubr.msk.f32.mxu1 %vm163_vm0, %v112_v43  ;;  %v126_v46 = vld [vmem:[%s7035_s0 + $0x380] sm:$0xff] }
  0xce   :  { %v4083_v49 = vpop.f32.mrf.mxu0  ;;  %4226 = vmatmul.mubr.msk.f32.gmra.mxu0 %vm163_vm0, %v113_v45  ;;  %v2319_v51 = vpop.f32.mrf.mxu1 }
  0xcf   :  { %1385 = vst.msk [vmem:[%s7036_s3 + $0x19] sm:$0xff] %vm1381_vm2, %v4083_v49  ;;  %4228 = vmatprep.mubr.msk.f32.mxu0 %vm163_vm0, %v114_v47 }
  0xd0   :  { %v672_v52 = vpop.f32.mrf.mxu0  ;;  %v4307_v54 = vpop.f32.mrf.mxu1  ;;  %4450 = vmatmul.mubr.msk.f32.gmra.mxu1 %vm163_vm0, %v113_v45 }
  0xd1   :  { %1384 = vst.msk [vmem:[%s7036_s3 + $0x11] sm:$0xff] %vm1381_vm2, %v672_v52  ;;  %4452 = vmatprep.mubr.msk.f32.mxu1 %vm163_vm0, %v114_v47 }
  0xd2   :  { %v4086_v55 = vpop.f32.mrf.mxu0  ;;  %4229 = vmatmul.mubr.msk.f32.gmra.mxu0 %vm163_vm0, %v115_v50  ;;  %v2329_v58 = vpop.f32.mrf.mxu1 }
  0xd3   :  { %1387 = vst.msk [vmem:[%s7036_s3 + $0x29] sm:$0xff] %vm1381_vm2, %v4086_v55  ;;  %4231 = vmatprep.mubr.msk.f32.mxu0 %vm163_vm0, %v116_v53 }
  0xd4   :  { %v1530_v59 = vld [vmem:[%s7036_s3 + $0x8] sm:$0xff]  ;;  %v1529_v60 = vld [vmem:[%s7036_s3] sm:$0xff]  ;;  %v682_v61 = vpop.f32.mrf.mxu0  ;;  %v4310_v1 = vpop.f32.mrf.mxu1  ;;  %4453 = vmatmul.mubr.msk.f32.gmra.mxu1 %vm163_vm0, %v115_v50 }
  0xd5   :  { %v3039_v63 = vadd.f32 %v4304_v48, %v1530_v59  ;;  %v3038_v0 = vadd.f32 %v2319_v51, %v1529_v60  ;;  %1386 = vst.msk [vmem:[%s7036_s3 + $0x21] sm:$0xff] %vm1381_vm2, %v682_v61  ;;  %4455 = vmatprep.mubr.msk.f32.mxu1 %vm163_vm0, %v116_v53  ;;  %v127_v53 = vld [vmem:[%s7035_s0 + $0x388] sm:$0xff]  ;;  %v128_v59 = vld [vmem:[%s7035_s0 + $0x390] sm:$0xff] }
  0xd6   :  { %v4089_v2 = vpop.f32.mrf.mxu0  ;;  %4232 = vmatmul.mubr.msk.f32.gmra.mxu0 %vm163_vm0, %v117_v57  ;;  %v2339_v6 = vpop.f32.mrf.mxu1 }
  0xd7   :  { %v3190_v3 = vadd.f32 %v5100_v56, %v3039_v63  ;;  %v3189_v4 = vadd.f32 %v5100_v56, %v3038_v0  ;;  %1389 = vst.msk [vmem:[%s7036_s3 + $0x39] sm:$0xff] %vm1381_vm2, %v4089_v2  ;;  %4234 = vmatprep.mubr.msk.f32.mxu0 %vm163_vm0, %v118_v62  ;;  %v129_v2 = vld [vmem:[%s7035_s0 + $0x398] sm:$0xff] }
  0xd8   :  { %v1532_v7 = vld [vmem:[%s7036_s3 + $0x18] sm:$0xff]  ;;  %v1531_v8 = vld [vmem:[%s7036_s3 + $0x10] sm:$0xff]  ;;  %v692_v9 = vpop.f32.mrf.mxu0  ;;  %v4313_v13 = vpop.f32.mrf.mxu1  ;;  %4456 = vmatmul.mubr.msk.f32.gmra.mxu1 %vm163_vm0, %v117_v57 }
  0xd9   :  { %3334 = vst.msk [vmem:[%s7036_s3 + $0x8] sm:$0xff] %vm1381_vm2, %v3190_v3  ;;  %3333 = vst.msk [vmem:[%s7036_s3] sm:$0xff] %vm1381_vm2, %v3189_v4  ;;  %v3041_v11 = vadd.f32 %v4307_v54, %v1532_v7  ;;  %v3040_v12 = vadd.f32 %v2329_v58, %v1531_v8  ;;  %4458 = vmatprep.mubr.msk.f32.mxu1 %vm163_vm0, %v118_v62  ;;  %v130_v7 = vld [vmem:[%s7035_s0 + $0x3a0] sm:$0xff] }
  0xda   :  { %1388 = vst.msk [vmem:[%s7036_s3 + $0x31] sm:$0xff] %vm1381_vm2, %v692_v9  ;;  %v4092_v14 = vpop.f32.mrf.mxu0  ;;  %4235 = vmatmul.mubr.msk.f32.gmra.mxu0 %vm163_vm0, %v119_v5  ;;  %v2349_v18 = vpop.f32.mrf.mxu1 }
  0xdb   :  { %v3192_v15 = vadd.f32 %v5100_v56, %v3041_v11  ;;  %v3191_v16 = vadd.f32 %v5100_v56, %v3040_v12  ;;  %1391 = vst.msk [vmem:[%s7036_s3 + $0x49] sm:$0xff] %vm1381_vm2, %v4092_v14  ;;  %4237 = vmatprep.mubr.msk.f32.mxu0 %vm163_vm0, %v120_v10  ;;  %v131_v14 = vld [vmem:[%s7035_s0 + $0x3a8] sm:$0xff] }
  0xdc   :  { %v1534_v19 = vld [vmem:[%s7036_s3 + $0x28] sm:$0xff]  ;;  %v1533_v20 = vld [vmem:[%s7036_s3 + $0x20] sm:$0xff]  ;;  %v702_v21 = vpop.f32.mrf.mxu0  ;;  %v4316_v25 = vpop.f32.mrf.mxu1  ;;  %4459 = vmatmul.mubr.msk.f32.gmra.mxu1 %vm163_vm0, %v119_v5 }
  0xdd   :  { %3336 = vst.msk [vmem:[%s7036_s3 + $0x18] sm:$0xff] %vm1381_vm2, %v3192_v15  ;;  %3335 = vst.msk [vmem:[%s7036_s3 + $0x10] sm:$0xff] %vm1381_vm2, %v3191_v16  ;;  %v3043_v23 = vadd.f32 %v4310_v1, %v1534_v19  ;;  %v3042_v24 = vadd.f32 %v2339_v6, %v1533_v20  ;;  %4461 = vmatprep.mubr.msk.f32.mxu1 %vm163_vm0, %v120_v10  ;;  %v132_v19 = vld [vmem:[%s7035_s0 + $0x3b0] sm:$0xff] }
  0xde   :  { %1390 = vst.msk [vmem:[%s7036_s3 + $0x41] sm:$0xff] %vm1381_vm2, %v702_v21  ;;  %v4095_v26 = vpop.f32.mrf.mxu0  ;;  %4238 = vmatmul.mubr.msk.f32.gmra.mxu0 %vm163_vm0, %v121_v17  ;;  %v2359_v30 = vpop.f32.mrf.mxu1 }
  0xdf   :  { %v3194_v27 = vadd.f32 %v5100_v56, %v3043_v23  ;;  %v3193_v28 = vadd.f32 %v5100_v56, %v3042_v24  ;;  %1393 = vst.msk [vmem:[%s7036_s3 + $0x59] sm:$0xff] %vm1381_vm2, %v4095_v26  ;;  %4240 = vmatprep.mubr.msk.f32.mxu0 %vm163_vm0, %v122_v22  ;;  %v133_v26 = vld [vmem:[%s7035_s0 + $0x3b8] sm:$0xff] }
  0xe0   :  { %v712_v33 = vpop.f32.mrf.mxu0  ;;  %v4319_v37 = vpop.f32.mrf.mxu1  ;;  %4462 = vmatmul.mubr.msk.f32.gmra.mxu1 %vm163_vm0, %v121_v17 }
  0xe1   :  { %v1536_v31 = vld [vmem:[%s7036_s3 + $0x38] sm:$0xff]  ;;  %v1535_v32 = vld [vmem:[%s7036_s3 + $0x30] sm:$0xff]  ;;  %3338 = vst.msk [vmem:[%s7036_s3 + $0x28] sm:$0xff] %vm1381_vm2, %v3194_v27  ;;  %3337 = vst.msk [vmem:[%s7036_s3 + $0x20] sm:$0xff] %vm1381_vm2, %v3193_v28  ;;  %4464 = vmatprep.mubr.msk.f32.mxu1 %vm163_vm0, %v122_v22 }
  0xe2   :  { %v3045_v35 = vadd.f32 %v4313_v13, %v1536_v31  ;;  %v3044_v36 = vadd.f32 %v2349_v18, %v1535_v32  ;;  %1392 = vst.msk [vmem:[%s7036_s3 + $0x51] sm:$0xff] %vm1381_vm2, %v712_v33  ;;  %v4098_v38 = vpop.f32.mrf.mxu0  ;;  %4241 = vmatmul.mubr.msk.f32.gmra.mxu0 %vm163_vm0, %v123_v29  ;;  %v2369_v42 = vpop.f32.mrf.mxu1  ;;  %v134_v31 = vld [vmem:[%s7035_s0 + $0x3c0] sm:$0xff] }
  0xe3   :  { %1395 = vst.msk [vmem:[%s7036_s3 + $0x69] sm:$0xff] %vm1381_vm2, %v4098_v38  ;;  %4243 = vmatprep.mubr.msk.f32.mxu0 %vm163_vm0, %v124_v34  ;;  %v135_v38 = vld [vmem:[%s7035_s0 + $0x3c8] sm:$0xff] }
  0xe4   :  { %v3196_v39 = vadd.f32 %v5100_v56, %v3045_v35  ;;  %v3195_v40 = vadd.f32 %v5100_v56, %v3044_v36  ;;  %v722_v45 = vpop.f32.mrf.mxu0  ;;  %v4322_v49 = vpop.f32.mrf.mxu1  ;;  %4465 = vmatmul.mubr.msk.f32.gmra.mxu1 %vm163_vm0, %v123_v29 }
  0xe5   :  { %v1538_v43 = vld [vmem:[%s7036_s3 + $0x48] sm:$0xff]  ;;  %v1537_v44 = vld [vmem:[%s7036_s3 + $0x40] sm:$0xff]  ;;  %1394 = vst.msk [vmem:[%s7036_s3 + $0x61] sm:$0xff] %vm1381_vm2, %v722_v45  ;;  %4467 = vmatprep.mubr.msk.f32.mxu1 %vm163_vm0, %v124_v34 }
  0xe6   :  { %3340 = vst.msk [vmem:[%s7036_s3 + $0x38] sm:$0xff] %vm1381_vm2, %v3196_v39  ;;  %3339 = vst.msk [vmem:[%s7036_s3 + $0x30] sm:$0xff] %vm1381_vm2, %v3195_v40  ;;  %v3047_v47 = vadd.f32 %v4316_v25, %v1538_v43  ;;  %v3046_v48 = vadd.f32 %v2359_v30, %v1537_v44  ;;  %v4101_v50 = vpop.f32.mrf.mxu0  ;;  %4244 = vmatmul.mubr.msk.f32.gmra.mxu0 %vm163_vm0, %v125_v41  ;;  %v2379_v54 = vpop.f32.mrf.mxu1  ;;  %v136_v43 = vld [vmem:[%s7035_s0 + $0x3d0] sm:$0xff] }
  0xe7   :  { %1397 = vst.msk [vmem:[%s7036_s3 + $0x79] sm:$0xff] %vm1381_vm2, %v4101_v50  ;;  %4246 = vmatprep.mubr.msk.f32.mxu0 %vm163_vm0, %v126_v46  ;;  %v137_v50 = vld [vmem:[%s7035_s0 + $0x3d8] sm:$0xff] }
  0xe8   :  { %v3198_v51 = vadd.f32 %v5100_v56, %v3047_v47  ;;  %v3197_v52 = vadd.f32 %v5100_v56, %v3046_v48  ;;  %v732_v58 = vpop.f32.mrf.mxu0  ;;  %v4325_v62 = vpop.f32.mrf.mxu1  ;;  %4468 = vmatmul.mubr.msk.f32.gmra.mxu1 %vm163_vm0, %v125_v41 }
  0xe9   :  { %v1540_v55 = vld [vmem:[%s7036_s3 + $0x58] sm:$0xff]  ;;  %v1539_v57 = vld [vmem:[%s7036_s3 + $0x50] sm:$0xff]  ;;  %1396 = vst.msk [vmem:[%s7036_s3 + $0x71] sm:$0xff] %vm1381_vm2, %v732_v58  ;;  %4470 = vmatprep.mubr.msk.f32.mxu1 %vm163_vm0, %v126_v46 }
  0xea   :  { %3342 = vst.msk [vmem:[%s7036_s3 + $0x48] sm:$0xff] %vm1381_vm2, %v3198_v51  ;;  %3341 = vst.msk [vmem:[%s7036_s3 + $0x40] sm:$0xff] %vm1381_vm2, %v3197_v52  ;;  %v3049_v60 = vadd.f32 %v4319_v37, %v1540_v55  ;;  %v3048_v61 = vadd.f32 %v2369_v42, %v1539_v57  ;;  %v4104_v63 = vpop.f32.mrf.mxu0  ;;  %4247 = vmatmul.mubr.msk.f32.gmra.mxu0 %vm163_vm0, %v127_v53  ;;  %v2389_v3 = vpop.f32.mrf.mxu1  ;;  %v138_v55 = vld [vmem:[%s7035_s0 + $0x3e0] sm:$0xff] }
  0xeb   :  { %1399 = vst.msk [vmem:[%s7036_s3 + $0x89] sm:$0xff] %vm1381_vm2, %v4104_v63  ;;  %4249 = vmatprep.mubr.msk.f32.mxu0 %vm163_vm0, %v128_v59  ;;  %v139_v63 = vld [vmem:[%s7035_s0 + $0x3e8] sm:$0xff] }
  0xec   :  { %v3200_v0 = vadd.f32 %v5100_v56, %v3049_v60  ;;  %v3199_v1 = vadd.f32 %v5100_v56, %v3048_v61  ;;  %v1542_v4 = vld [vmem:[%s7036_s3 + $0x68] sm:$0xff]  ;;  %v1541_v5 = vld [vmem:[%s7036_s3 + $0x60] sm:$0xff]  ;;  %v742_v6 = vpop.f32.mrf.mxu0  ;;  %v4328_v10 = vpop.f32.mrf.mxu1  ;;  %4471 = vmatmul.mubr.msk.f32.gmra.mxu1 %vm163_vm0, %v127_v53 }
  0xed   :  { %v3051_v8 = vadd.f32 %v4322_v49, %v1542_v4  ;;  %v3050_v9 = vadd.f32 %v2379_v54, %v1541_v5  ;;  %1398 = vst.msk [vmem:[%s7036_s3 + $0x81] sm:$0xff] %vm1381_vm2, %v742_v6  ;;  %4473 = vmatprep.mubr.msk.f32.mxu1 %vm163_vm0, %v128_v59  ;;  %v140_v4 = vld [vmem:[%s7035_s0 + $0x3f0] sm:$0xff] }
  0xee   :  { %3344 = vst.msk [vmem:[%s7036_s3 + $0x58] sm:$0xff] %vm1381_vm2, %v3200_v0  ;;  %3343 = vst.msk [vmem:[%s7036_s3 + $0x50] sm:$0xff] %vm1381_vm2, %v3199_v1  ;;  %v4107_v11 = vpop.f32.mrf.mxu0  ;;  %4250 = vmatmul.mubr.msk.f32.gmra.mxu0 %vm163_vm0, %v129_v2  ;;  %v2399_v15 = vpop.f32.mrf.mxu1 }
  0xef   :  { %v3202_v12 = vadd.f32 %v5100_v56, %v3051_v8  ;;  %v3201_v13 = vadd.f32 %v5100_v56, %v3050_v9  ;;  %1401 = vst.msk [vmem:[%s7036_s3 + $0x99] sm:$0xff] %vm1381_vm2, %v4107_v11  ;;  %4252 = vmatprep.mubr.msk.f32.mxu0 %vm163_vm0, %v130_v7  ;;  %v141_v11 = vld [vmem:[%s7035_s0 + $0x3f8] sm:$0xff] }
  0xf0   :  { %v1544_v16 = vld [vmem:[%s7036_s3 + $0x78] sm:$0xff]  ;;  %v1543_v17 = vld [vmem:[%s7036_s3 + $0x70] sm:$0xff]  ;;  %v752_v18 = vpop.f32.mrf.mxu0  ;;  %v4331_v22 = vpop.f32.mrf.mxu1  ;;  %4474 = vmatmul.mubr.msk.f32.gmra.mxu1 %vm163_vm0, %v129_v2 }
  0xf1   :  { %3346 = vst.msk [vmem:[%s7036_s3 + $0x68] sm:$0xff] %vm1381_vm2, %v3202_v12  ;;  %3345 = vst.msk [vmem:[%s7036_s3 + $0x60] sm:$0xff] %vm1381_vm2, %v3201_v13  ;;  %v3053_v20 = vadd.f32 %v4325_v62, %v1544_v16  ;;  %v3052_v21 = vadd.f32 %v2389_v3, %v1543_v17  ;;  %4476 = vmatprep.mubr.msk.f32.mxu1 %vm163_vm0, %v130_v7  ;;  %v142_v16 = vld [vmem:[%s7035_s0 + $0x400] sm:$0xff] }
  0xf2   :  { %1400 = vst.msk [vmem:[%s7036_s3 + $0x91] sm:$0xff] %vm1381_vm2, %v752_v18  ;;  %v4110_v23 = vpop.f32.mrf.mxu0  ;;  %4253 = vmatmul.mubr.msk.f32.gmra.mxu0 %vm163_vm0, %v131_v14  ;;  %v2409_v27 = vpop.f32.mrf.mxu1 }
  0xf3   :  { %v3204_v24 = vadd.f32 %v5100_v56, %v3053_v20  ;;  %v3203_v25 = vadd.f32 %v5100_v56, %v3052_v21  ;;  %1403 = vst.msk [vmem:[%s7036_s3 + $0xa9] sm:$0xff] %vm1381_vm2, %v4110_v23  ;;  %4255 = vmatprep.mubr.msk.f32.mxu0 %vm163_vm0, %v132_v19  ;;  %v143_v23 = vld [vmem:[%s7035_s0 + $0x408] sm:$0xff] }
  0xf4   :  { %v1546_v28 = vld [vmem:[%s7036_s3 + $0x88] sm:$0xff]  ;;  %v1545_v29 = vld [vmem:[%s7036_s3 + $0x80] sm:$0xff]  ;;  %v762_v30 = vpop.f32.mrf.mxu0  ;;  %v4334_v34 = vpop.f32.mrf.mxu1  ;;  %4477 = vmatmul.mubr.msk.f32.gmra.mxu1 %vm163_vm0, %v131_v14 }
  0xf5   :  { %3348 = vst.msk [vmem:[%s7036_s3 + $0x78] sm:$0xff] %vm1381_vm2, %v3204_v24  ;;  %3347 = vst.msk [vmem:[%s7036_s3 + $0x70] sm:$0xff] %vm1381_vm2, %v3203_v25  ;;  %v3055_v32 = vadd.f32 %v4328_v10, %v1546_v28  ;;  %v3054_v33 = vadd.f32 %v2399_v15, %v1545_v29  ;;  %4479 = vmatprep.mubr.msk.f32.mxu1 %vm163_vm0, %v132_v19  ;;  %v144_v28 = vld [vmem:[%s7035_s0 + $0x410] sm:$0xff] }
  0xf6   :  { %1402 = vst.msk [vmem:[%s7036_s3 + $0xa1] sm:$0xff] %vm1381_vm2, %v762_v30  ;;  %v4113_v35 = vpop.f32.mrf.mxu0  ;;  %4256 = vmatmul.mubr.msk.f32.gmra.mxu0 %vm163_vm0, %v133_v26  ;;  %v2419_v39 = vpop.f32.mrf.mxu1 }
  0xf7   :  { %v3206_v36 = vadd.f32 %v5100_v56, %v3055_v32  ;;  %v3205_v37 = vadd.f32 %v5100_v56, %v3054_v33  ;;  %1405 = vst.msk [vmem:[%s7036_s3 + $0xb9] sm:$0xff] %vm1381_vm2, %v4113_v35  ;;  %4258 = vmatprep.mubr.msk.f32.mxu0 %vm163_vm0, %v134_v31  ;;  %v145_v35 = vld [vmem:[%s7035_s0 + $0x418] sm:$0xff] }
  0xf8   :  { %v772_v42 = vpop.f32.mrf.mxu0  ;;  %v4337_v46 = vpop.f32.mrf.mxu1  ;;  %4480 = vmatmul.mubr.msk.f32.gmra.mxu1 %vm163_vm0, %v133_v26 }
  0xf9   :  { %v1548_v40 = vld [vmem:[%s7036_s3 + $0x98] sm:$0xff]  ;;  %v1547_v41 = vld [vmem:[%s7036_s3 + $0x90] sm:$0xff]  ;;  %3350 = vst.msk [vmem:[%s7036_s3 + $0x88] sm:$0xff] %vm1381_vm2, %v3206_v36  ;;  %3349 = vst.msk [vmem:[%s7036_s3 + $0x80] sm:$0xff] %vm1381_vm2, %v3205_v37  ;;  %4482 = vmatprep.mubr.msk.f32.mxu1 %vm163_vm0, %v134_v31 }
  0xfa   :  { %v3057_v44 = vadd.f32 %v4331_v22, %v1548_v40  ;;  %v3056_v45 = vadd.f32 %v2409_v27, %v1547_v41  ;;  %1404 = vst.msk [vmem:[%s7036_s3 + $0xb1] sm:$0xff] %vm1381_vm2, %v772_v42  ;;  %v4116_v47 = vpop.f32.mrf.mxu0  ;;  %4259 = vmatmul.mubr.msk.f32.gmra.mxu0 %vm163_vm0, %v135_v38  ;;  %v2429_v51 = vpop.f32.mrf.mxu1  ;;  %v146_v40 = vld [vmem:[%s7035_s0 + $0x420] sm:$0xff] }
  0xfb   :  { %1407 = vst.msk [vmem:[%s7036_s3 + $0xc9] sm:$0xff] %vm1381_vm2, %v4116_v47  ;;  %4261 = vmatprep.mubr.msk.f32.mxu0 %vm163_vm0, %v136_v43  ;;  %v147_v47 = vld [vmem:[%s7035_s0 + $0x428] sm:$0xff] }
  0xfc   :  { %v3208_v48 = vadd.f32 %v5100_v56, %v3057_v44  ;;  %v3207_v49 = vadd.f32 %v5100_v56, %v3056_v45  ;;  %v782_v54 = vpop.f32.mrf.mxu0  ;;  %v4340_v59 = vpop.f32.mrf.mxu1  ;;  %4483 = vmatmul.mubr.msk.f32.gmra.mxu1 %vm163_vm0, %v135_v38 }
  0xfd   :  { %v1550_v52 = vld [vmem:[%s7036_s3 + $0xa8] sm:$0xff]  ;;  %v1549_v53 = vld [vmem:[%s7036_s3 + $0xa0] sm:$0xff]  ;;  %1406 = vst.msk [vmem:[%s7036_s3 + $0xc1] sm:$0xff] %vm1381_vm2, %v782_v54  ;;  %4485 = vmatprep.mubr.msk.f32.mxu1 %vm163_vm0, %v136_v43 }
  0xfe   :  { %3352 = vst.msk [vmem:[%s7036_s3 + $0x98] sm:$0xff] %vm1381_vm2, %v3208_v48  ;;  %3351 = vst.msk [vmem:[%s7036_s3 + $0x90] sm:$0xff] %vm1381_vm2, %v3207_v49  ;;  %v3059_v57 = vadd.f32 %v4334_v34, %v1550_v52  ;;  %v3058_v58 = vadd.f32 %v2419_v39, %v1549_v53  ;;  %v4119_v60 = vpop.f32.mrf.mxu0  ;;  %4262 = vmatmul.mubr.msk.f32.gmra.mxu0 %vm163_vm0, %v137_v50  ;;  %v2439_v0 = vpop.f32.mrf.mxu1  ;;  %v148_v52 = vld [vmem:[%s7035_s0 + $0x430] sm:$0xff] }
  0xff   :  { %1409 = vst.msk [vmem:[%s7036_s3 + $0xd9] sm:$0xff] %vm1381_vm2, %v4119_v60  ;;  %4264 = vmatprep.mubr.msk.f32.mxu0 %vm163_vm0, %v138_v55  ;;  %v149_v60 = vld [vmem:[%s7035_s0 + $0x438] sm:$0xff] }
 0x100   :  { %v3210_v61 = vadd.f32 %v5100_v56, %v3059_v57  ;;  %v3209_v62 = vadd.f32 %v5100_v56, %v3058_v58  ;;  %v792_v3 = vpop.f32.mrf.mxu0  ;;  %v4343_v7 = vpop.f32.mrf.mxu1  ;;  %4486 = vmatmul.mubr.msk.f32.gmra.mxu1 %vm163_vm0, %v137_v50 }
 0x101   :  { %v1552_v1 = vld [vmem:[%s7036_s3 + $0xb8] sm:$0xff]  ;;  %v1551_v2 = vld [vmem:[%s7036_s3 + $0xb0] sm:$0xff]  ;;  %1408 = vst.msk [vmem:[%s7036_s3 + $0xd1] sm:$0xff] %vm1381_vm2, %v792_v3  ;;  %4488 = vmatprep.mubr.msk.f32.mxu1 %vm163_vm0, %v138_v55 }
 0x102   :  { %3354 = vst.msk [vmem:[%s7036_s3 + $0xa8] sm:$0xff] %vm1381_vm2, %v3210_v61  ;;  %3353 = vst.msk [vmem:[%s7036_s3 + $0xa0] sm:$0xff] %vm1381_vm2, %v3209_v62  ;;  %v3061_v5 = vadd.f32 %v4337_v46, %v1552_v1  ;;  %v3060_v6 = vadd.f32 %v2429_v51, %v1551_v2  ;;  %v4122_v8 = vpop.f32.mrf.mxu0  ;;  %4265 = vmatmul.mubr.msk.f32.gmra.mxu0 %vm163_vm0, %v139_v63  ;;  %v2449_v12 = vpop.f32.mrf.mxu1  ;;  %v150_v1 = vld [vmem:[%s7035_s0 + $0x440] sm:$0xff] }
 0x103   :  { %1411 = vst.msk [vmem:[%s7036_s3 + $0xe9] sm:$0xff] %vm1381_vm2, %v4122_v8  ;;  %4267 = vmatprep.mubr.msk.f32.mxu0 %vm163_vm0, %v140_v4  ;;  %v151_v8 = vld [vmem:[%s7035_s0 + $0x448] sm:$0xff] }
 0x104   :  { %v3212_v9 = vadd.f32 %v5100_v56, %v3061_v5  ;;  %v3211_v10 = vadd.f32 %v5100_v56, %v3060_v6  ;;  %v1554_v13 = vld [vmem:[%s7036_s3 + $0xc8] sm:$0xff]  ;;  %v1553_v14 = vld [vmem:[%s7036_s3 + $0xc0] sm:$0xff]  ;;  %v802_v15 = vpop.f32.mrf.mxu0  ;;  %v4346_v19 = vpop.f32.mrf.mxu1  ;;  %4489 = vmatmul.mubr.msk.f32.gmra.mxu1 %vm163_vm0, %v139_v63 }
 0x105   :  { %v3063_v17 = vadd.f32 %v4340_v59, %v1554_v13  ;;  %v3062_v18 = vadd.f32 %v2439_v0, %v1553_v14  ;;  %1410 = vst.msk [vmem:[%s7036_s3 + $0xe1] sm:$0xff] %vm1381_vm2, %v802_v15  ;;  %4491 = vmatprep.mubr.msk.f32.mxu1 %vm163_vm0, %v140_v4  ;;  %v152_v13 = vld [vmem:[%s7035_s0 + $0x450] sm:$0xff] }
 0x106   :  { %3356 = vst.msk [vmem:[%s7036_s3 + $0xb8] sm:$0xff] %vm1381_vm2, %v3212_v9  ;;  %3355 = vst.msk [vmem:[%s7036_s3 + $0xb0] sm:$0xff] %vm1381_vm2, %v3211_v10  ;;  %v4125_v20 = vpop.f32.mrf.mxu0  ;;  %4268 = vmatmul.mubr.msk.f32.gmra.mxu0 %vm163_vm0, %v141_v11  ;;  %v2459_v24 = vpop.f32.mrf.mxu1 }
 0x107   :  { %v3214_v21 = vadd.f32 %v5100_v56, %v3063_v17  ;;  %v3213_v22 = vadd.f32 %v5100_v56, %v3062_v18  ;;  %1413 = vst.msk [vmem:[%s7036_s3 + $0xf9] sm:$0xff] %vm1381_vm2, %v4125_v20  ;;  %4270 = vmatprep.mubr.msk.f32.mxu0 %vm163_vm0, %v142_v16  ;;  %v153_v20 = vld [vmem:[%s7035_s0 + $0x458] sm:$0xff] }
 0x108   :  { %v1556_v25 = vld [vmem:[%s7036_s3 + $0xd8] sm:$0xff]  ;;  %v1555_v26 = vld [vmem:[%s7036_s3 + $0xd0] sm:$0xff]  ;;  %v812_v27 = vpop.f32.mrf.mxu0  ;;  %v4349_v31 = vpop.f32.mrf.mxu1  ;;  %4492 = vmatmul.mubr.msk.f32.gmra.mxu1 %vm163_vm0, %v141_v11 }
 0x109   :  { %3358 = vst.msk [vmem:[%s7036_s3 + $0xc8] sm:$0xff] %vm1381_vm2, %v3214_v21  ;;  %3357 = vst.msk [vmem:[%s7036_s3 + $0xc0] sm:$0xff] %vm1381_vm2, %v3213_v22  ;;  %v3065_v29 = vadd.f32 %v4343_v7, %v1556_v25  ;;  %v3064_v30 = vadd.f32 %v2449_v12, %v1555_v26  ;;  %4494 = vmatprep.mubr.msk.f32.mxu1 %vm163_vm0, %v142_v16  ;;  %v154_v25 = vld [vmem:[%s7035_s0 + $0x460] sm:$0xff] }
 0x10a   :  { %1412 = vst.msk [vmem:[%s7036_s3 + $0xf1] sm:$0xff] %vm1381_vm2, %v812_v27  ;;  %v4128_v32 = vpop.f32.mrf.mxu0  ;;  %4271 = vmatmul.mubr.msk.f32.gmra.mxu0 %vm163_vm0, %v143_v23  ;;  %v2469_v36 = vpop.f32.mrf.mxu1 }
 0x10b   :  { %v3216_v33 = vadd.f32 %v5100_v56, %v3065_v29  ;;  %v3215_v34 = vadd.f32 %v5100_v56, %v3064_v30  ;;  %1415 = vst.msk [vmem:[%s7036_s3 + $0x109] sm:$0xff] %vm1381_vm2, %v4128_v32  ;;  %4273 = vmatprep.mubr.msk.f32.mxu0 %vm163_vm0, %v144_v28  ;;  %v155_v32 = vld [vmem:[%s7035_s0 + $0x468] sm:$0xff] }
 0x10c   :  { %v1558_v37 = vld [vmem:[%s7036_s3 + $0xe8] sm:$0xff]  ;;  %v1557_v38 = vld [vmem:[%s7036_s3 + $0xe0] sm:$0xff]  ;;  %v822_v39 = vpop.f32.mrf.mxu0  ;;  %v4352_v43 = vpop.f32.mrf.mxu1  ;;  %4495 = vmatmul.mubr.msk.f32.gmra.mxu1 %vm163_vm0, %v143_v23 }
 0x10d   :  { %3360 = vst.msk [vmem:[%s7036_s3 + $0xd8] sm:$0xff] %vm1381_vm2, %v3216_v33  ;;  %3359 = vst.msk [vmem:[%s7036_s3 + $0xd0] sm:$0xff] %vm1381_vm2, %v3215_v34  ;;  %v3067_v41 = vadd.f32 %v4346_v19, %v1558_v37  ;;  %v3066_v42 = vadd.f32 %v2459_v24, %v1557_v38  ;;  %4497 = vmatprep.mubr.msk.f32.mxu1 %vm163_vm0, %v144_v28  ;;  %v156_v37 = vld [vmem:[%s7035_s0 + $0x470] sm:$0xff] }
 0x10e   :  { %1414 = vst.msk [vmem:[%s7036_s3 + $0x101] sm:$0xff] %vm1381_vm2, %v822_v39  ;;  %v4131_v44 = vpop.f32.mrf.mxu0  ;;  %4274 = vmatmul.mubr.msk.f32.gmra.mxu0 %vm163_vm0, %v145_v35  ;;  %v2479_v48 = vpop.f32.mrf.mxu1 }
 0x10f   :  { %v3218_v45 = vadd.f32 %v5100_v56, %v3067_v41  ;;  %v3217_v46 = vadd.f32 %v5100_v56, %v3066_v42  ;;  %1417 = vst.msk [vmem:[%s7036_s3 + $0x119] sm:$0xff] %vm1381_vm2, %v4131_v44  ;;  %4276 = vmatprep.mubr.msk.f32.mxu0 %vm163_vm0, %v146_v40  ;;  %v157_v44 = vld [vmem:[%s7035_s0 + $0x478] sm:$0x7f] }
 0x110   :  { %v832_v51 = vpop.f32.mrf.mxu0  ;;  %v4355_v55 = vpop.f32.mrf.mxu1  ;;  %4498 = vmatmul.mubr.msk.f32.gmra.mxu1 %vm163_vm0, %v145_v35 }
 0x111   :  { %v1560_v49 = vld [vmem:[%s7036_s3 + $0xf8] sm:$0xff]  ;;  %v1559_v50 = vld [vmem:[%s7036_s3 + $0xf0] sm:$0xff]  ;;  %3362 = vst.msk [vmem:[%s7036_s3 + $0xe8] sm:$0xff] %vm1381_vm2, %v3218_v45  ;;  %3361 = vst.msk [vmem:[%s7036_s3 + $0xe0] sm:$0xff] %vm1381_vm2, %v3217_v46  ;;  %4500 = vmatprep.mubr.msk.f32.mxu1 %vm163_vm0, %v146_v40 }
 0x112   :  { %v3069_v53 = vadd.f32 %v4349_v31, %v1560_v49  ;;  %v3068_v54 = vadd.f32 %v2469_v36, %v1559_v50  ;;  %1416 = vst.msk [vmem:[%s7036_s3 + $0x111] sm:$0xff] %vm1381_vm2, %v832_v51  ;;  %v4134_v57 = vpop.f32.mrf.mxu0  ;;  %4277 = vmatmul.mubr.msk.f32.gmra.mxu0 %vm163_vm0, %v147_v47  ;;  %v2489_v61 = vpop.f32.mrf.mxu1 }
 0x113   :  { %1419 = vst.msk [vmem:[%s7036_s3 + $0x129] sm:$0xff] %vm1381_vm2, %v4134_v57  ;;  %4279 = vmatprep.mubr.msk.f32.mxu0 %vm163_vm0, %v148_v52 }
 0x114   :  { %v3220_v58 = vadd.f32 %v5100_v56, %v3069_v53  ;;  %v3219_v59 = vadd.f32 %v5100_v56, %v3068_v54  ;;  %v842_v0 = vpop.f32.mrf.mxu0  ;;  %v4358_v4 = vpop.f32.mrf.mxu1  ;;  %4501 = vmatmul.mubr.msk.f32.gmra.mxu1 %vm163_vm0, %v147_v47  ;;  %v1816_v53 = vld [vmem:[%s7035_s0 + $0x478] sm:$0xff] }
 0x115   :  { %v1562_v62 = vld [vmem:[%s7036_s3 + $0x108] sm:$0xff]  ;;  %v1561_v63 = vld [vmem:[%s7036_s3 + $0x100] sm:$0xff]  ;;  %1418 = vst.msk [vmem:[%s7036_s3 + $0x121] sm:$0xff] %vm1381_vm2, %v842_v0  ;;  %4503 = vmatprep.mubr.msk.f32.mxu1 %vm163_vm0, %v148_v52 }
 0x116   :  { %3364 = vst.msk [vmem:[%s7036_s3 + $0xf8] sm:$0xff] %vm1381_vm2, %v3220_v58  ;;  %3363 = vst.msk [vmem:[%s7036_s3 + $0xf0] sm:$0xff] %vm1381_vm2, %v3219_v59  ;;  %v3071_v2 = vadd.f32 %v4352_v43, %v1562_v62  ;;  %v3070_v3 = vadd.f32 %v2479_v48, %v1561_v63  ;;  %v4137_v5 = vpop.f32.mrf.mxu0  ;;  %4280 = vmatmul.mubr.msk.f32.gmra.mxu0 %vm163_vm0, %v149_v60  ;;  %v2499_v9 = vpop.f32.mrf.mxu1 }
 0x117   :  { %1421 = vst.msk [vmem:[%s7036_s3 + $0x139] sm:$0xff] %vm1381_vm2, %v4137_v5  ;;  %4282 = vmatprep.mubr.msk.f32.mxu0 %vm163_vm0, %v150_v1 }
 0x118   :  { %v3222_v6 = vadd.f32 %v5100_v56, %v3071_v2  ;;  %v3221_v7 = vadd.f32 %v5100_v56, %v3070_v3  ;;  %v852_v12 = vpop.f32.mrf.mxu0  ;;  %v4361_v16 = vpop.f32.mrf.mxu1  ;;  %4504 = vmatmul.mubr.msk.f32.gmra.mxu1 %vm163_vm0, %v149_v60 }
 0x119   :  { %v1564_v10 = vld [vmem:[%s7036_s3 + $0x118] sm:$0xff]  ;;  %v1563_v11 = vld [vmem:[%s7036_s3 + $0x110] sm:$0xff]  ;;  %1420 = vst.msk [vmem:[%s7036_s3 + $0x131] sm:$0xff] %vm1381_vm2, %v852_v12  ;;  %4506 = vmatprep.mubr.msk.f32.mxu1 %vm163_vm0, %v150_v1 }
 0x11a   :  { %3366 = vst.msk [vmem:[%s7036_s3 + $0x108] sm:$0xff] %vm1381_vm2, %v3222_v6  ;;  %3365 = vst.msk [vmem:[%s7036_s3 + $0x100] sm:$0xff] %vm1381_vm2, %v3221_v7  ;;  %v3073_v14 = vadd.f32 %v4355_v55, %v1564_v10  ;;  %v3072_v15 = vadd.f32 %v2489_v61, %v1563_v11  ;;  %v4140_v17 = vpop.f32.mrf.mxu0  ;;  %4283 = vmatmul.mubr.msk.f32.gmra.mxu0 %vm163_vm0, %v151_v8  ;;  %v2509_v21 = vpop.f32.mrf.mxu1 }
 0x11b   :  { %1423 = vst.msk [vmem:[%s7036_s3 + $0x149] sm:$0xff] %vm1381_vm2, %v4140_v17  ;;  %4285 = vmatprep.mubr.msk.f32.mxu0 %vm163_vm0, %v152_v13 }
 0x11c   :  { %v3224_v18 = vadd.f32 %v5100_v56, %v3073_v14  ;;  %v3223_v19 = vadd.f32 %v5100_v56, %v3072_v15  ;;  %v1566_v22 = vld [vmem:[%s7036_s3 + $0x128] sm:$0xff]  ;;  %v1565_v23 = vld [vmem:[%s7036_s3 + $0x120] sm:$0xff]  ;;  %v862_v24 = vpop.f32.mrf.mxu0  ;;  %v4364_v28 = vpop.f32.mrf.mxu1  ;;  %4507 = vmatmul.mubr.msk.f32.gmra.mxu1 %vm163_vm0, %v151_v8 }
 0x11d   :  { %v3075_v26 = vadd.f32 %v4358_v4, %v1566_v22  ;;  %v3074_v27 = vadd.f32 %v2499_v9, %v1565_v23  ;;  %1422 = vst.msk [vmem:[%s7036_s3 + $0x141] sm:$0xff] %vm1381_vm2, %v862_v24  ;;  %4509 = vmatprep.mubr.msk.f32.mxu1 %vm163_vm0, %v152_v13 }
 0x11e   :  { %3368 = vst.msk [vmem:[%s7036_s3 + $0x118] sm:$0xff] %vm1381_vm2, %v3224_v18  ;;  %3367 = vst.msk [vmem:[%s7036_s3 + $0x110] sm:$0xff] %vm1381_vm2, %v3223_v19  ;;  %v4143_v29 = vpop.f32.mrf.mxu0  ;;  %4286 = vmatmul.mubr.msk.f32.gmra.mxu0 %vm163_vm0, %v153_v20  ;;  %v2519_v33 = vpop.f32.mrf.mxu1 }
 0x11f   :  { %v3226_v30 = vadd.f32 %v5100_v56, %v3075_v26  ;;  %v3225_v31 = vadd.f32 %v5100_v56, %v3074_v27  ;;  %1425 = vst.msk [vmem:[%s7036_s3 + $0x159] sm:$0xff] %vm1381_vm2, %v4143_v29  ;;  %4288 = vmatprep.mubr.msk.f32.mxu0 %vm163_vm0, %v154_v25 }
 0x120   :  { %v1568_v34 = vld [vmem:[%s7036_s3 + $0x138] sm:$0xff]  ;;  %v1567_v35 = vld [vmem:[%s7036_s3 + $0x130] sm:$0xff]  ;;  %v872_v36 = vpop.f32.mrf.mxu0  ;;  %v4367_v40 = vpop.f32.mrf.mxu1  ;;  %4510 = vmatmul.mubr.msk.f32.gmra.mxu1 %vm163_vm0, %v153_v20 }
 0x121   :  { %3370 = vst.msk [vmem:[%s7036_s3 + $0x128] sm:$0xff] %vm1381_vm2, %v3226_v30  ;;  %3369 = vst.msk [vmem:[%s7036_s3 + $0x120] sm:$0xff] %vm1381_vm2, %v3225_v31  ;;  %v3077_v38 = vadd.f32 %v4361_v16, %v1568_v34  ;;  %v3076_v39 = vadd.f32 %v2509_v21, %v1567_v35  ;;  %4512 = vmatprep.mubr.msk.f32.mxu1 %vm163_vm0, %v154_v25 }
 0x122   :  { %1424 = vst.msk [vmem:[%s7036_s3 + $0x151] sm:$0xff] %vm1381_vm2, %v872_v36  ;;  %v4146_v41 = vpop.f32.mrf.mxu0  ;;  %4289 = vmatmul.mubr.msk.f32.gmra.mxu0 %vm163_vm0, %v155_v32  ;;  %v2529_v45 = vpop.f32.mrf.mxu1 }
 0x123   :  { %v3228_v42 = vadd.f32 %v5100_v56, %v3077_v38  ;;  %v3227_v43 = vadd.f32 %v5100_v56, %v3076_v39  ;;  %1427 = vst.msk [vmem:[%s7036_s3 + $0x169] sm:$0xff] %vm1381_vm2, %v4146_v41  ;;  %4291 = vmatprep.mubr.msk.f32.mxu0 %vm163_vm0, %v156_v37 }
 0x124   :  { %v1570_v46 = vld [vmem:[%s7036_s3 + $0x148] sm:$0xff]  ;;  %v1569_v47 = vld [vmem:[%s7036_s3 + $0x140] sm:$0xff]  ;;  %v882_v48 = vpop.f32.mrf.mxu0  ;;  %v4370_v51 = vpop.f32.mrf.mxu1  ;;  %4513 = vmatmul.mubr.msk.f32.gmra.mxu1 %vm163_vm0, %v155_v32 }
 0x125   :  { %3372 = vst.msk [vmem:[%s7036_s3 + $0x138] sm:$0xff] %vm1381_vm2, %v3228_v42  ;;  %3371 = vst.msk [vmem:[%s7036_s3 + $0x130] sm:$0xff] %vm1381_vm2, %v3227_v43  ;;  %v3079_v49 = vadd.f32 %v4364_v28, %v1570_v46  ;;  %v3078_v50 = vadd.f32 %v2519_v33, %v1569_v47  ;;  %4515 = vmatprep.mubr.msk.f32.mxu1 %vm163_vm0, %v156_v37 }
 0x126   :  { %1426 = vst.msk [vmem:[%s7036_s3 + $0x161] sm:$0xff] %vm1381_vm2, %v882_v48  ;;  %v4149_v52 = vpop.f32.mrf.mxu0  ;;  %4292 = vmatmul.mubr.msk.f32.gmra.mxu0 %vm163_vm0, %v157_v44  ;;  %v2539_v57 = vpop.f32.mrf.mxu1 }
 0x127   :  { %v3230_v54 = vadd.f32 %v5100_v56, %v3079_v49  ;;  %v3229_v55 = vadd.f32 %v5100_v56, %v3078_v50  ;;  %1429 = vst.msk [vmem:[%s7036_s3 + $0x179] sm:$0xff] %vm1381_vm2, %v4149_v52 }
 0x128   :  { %v892_v60 = vpop.f32.mrf.mxu0  ;;  %v4373_v63 = vpop.f32.mrf.mxu1  ;;  %4516 = vmatmul.mubr.msk.f32.gmra.mxu1 %vm163_vm0, %v1816_v53 }
 0x129   :  { %v1572_v58 = vld [vmem:[%s7036_s3 + $0x158] sm:$0xff]  ;;  %v1571_v59 = vld [vmem:[%s7036_s3 + $0x150] sm:$0xff]  ;;  %3374 = vst.msk [vmem:[%s7036_s3 + $0x148] sm:$0xff] %vm1381_vm2, %v3230_v54  ;;  %3373 = vst.msk [vmem:[%s7036_s3 + $0x140] sm:$0xff] %vm1381_vm2, %v3229_v55 }
 0x12a   :  { %v3081_v61 = vadd.f32 %v4367_v40, %v1572_v58  ;;  %v3080_v62 = vadd.f32 %v2529_v45, %v1571_v59  ;;  %1428 = vst.msk [vmem:[%s7036_s3 + $0x171] sm:$0xff] %vm1381_vm2, %v892_v60  ;;  %v4152_v0 = vpop.f32.mrf.mxu0  ;;  %v2549_v3 = vpop.f32.mrf.mxu1 }
 0x12b   :  { %1431 = vst.msk [vmem:[%s7036_s3 + $0x189] sm:$0xff] %vm1381_vm2, %v4152_v0 }
 0x12c   :  { %v3232_v1 = vadd.f32 %v5100_v56, %v3081_v61  ;;  %v3231_v2 = vadd.f32 %v5100_v56, %v3080_v62  ;;  %v902_v6 = vpop.f32.mrf.mxu0  ;;  %v4376_v9 = vpop.f32.mrf.mxu1  ;;  %v5978_v61 = vld [vmem:[%s7037_s2] ss:$0 sm:$0xff] }
 0x12d   :  { %v1574_v4 = vld [vmem:[%s7036_s3 + $0x168] sm:$0xff]  ;;  %v1573_v5 = vld [vmem:[%s7036_s3 + $0x160] sm:$0xff]  ;;  %1430 = vst.msk [vmem:[%s7036_s3 + $0x181] sm:$0xff] %vm1381_vm2, %v902_v6 }
 0x12e   :  { %3376 = vst.msk [vmem:[%s7036_s3 + $0x158] sm:$0xff] %vm1381_vm2, %v3232_v1  ;;  %3375 = vst.msk [vmem:[%s7036_s3 + $0x150] sm:$0xff] %vm1381_vm2, %v3231_v2  ;;  %v3083_v7 = vadd.f32 %v4370_v51, %v1574_v4  ;;  %v3082_v8 = vadd.f32 %v2539_v57, %v1573_v5  ;;  %v4155_v10 = vpop.f32.mrf.mxu0  ;;  %v2559_v13 = vpop.f32.mrf.mxu1 }
 0x12f   :  { %1433 = vst.msk [vmem:[%s7036_s3 + $0x199] sm:$0xff] %vm1381_vm2, %v4155_v10 }
 0x130   :  { %v3234_v11 = vadd.f32 %v5100_v56, %v3083_v7  ;;  %v3233_v12 = vadd.f32 %v5100_v56, %v3082_v8  ;;  %v912_v16 = vpop.f32.mrf.mxu0  ;;  %v4379_v19 = vpop.f32.mrf.mxu1 }
 0x131   :  { %v1576_v14 = vld [vmem:[%s7036_s3 + $0x178] sm:$0xff]  ;;  %v1575_v15 = vld [vmem:[%s7036_s3 + $0x170] sm:$0xff]  ;;  %1432 = vst.msk [vmem:[%s7036_s3 + $0x191] sm:$0xff] %vm1381_vm2, %v912_v16 }
 0x132   :  { %3378 = vst.msk [vmem:[%s7036_s3 + $0x168] sm:$0xff] %vm1381_vm2, %v3234_v11  ;;  %3377 = vst.msk [vmem:[%s7036_s3 + $0x160] sm:$0xff] %vm1381_vm2, %v3233_v12  ;;  %v3085_v17 = vadd.f32 %v4373_v63, %v1576_v14  ;;  %v3084_v18 = vadd.f32 %v2549_v3, %v1575_v15  ;;  %v4158_v20 = vpop.f32.mrf.mxu0  ;;  %v2569_v23 = vpop.f32.mrf.mxu1 }
 0x133   :  { %1435 = vst.msk [vmem:[%s7036_s3 + $0x1a9] sm:$0xff] %vm1381_vm2, %v4158_v20 }
 0x134   :  { %v3236_v21 = vadd.f32 %v5100_v56, %v3085_v17  ;;  %v3235_v22 = vadd.f32 %v5100_v56, %v3084_v18  ;;  %v1578_v24 = vld [vmem:[%s7036_s3 + $0x188] sm:$0xff]  ;;  %v1577_v25 = vld [vmem:[%s7036_s3 + $0x180] sm:$0xff]  ;;  %v922_v26 = vpop.f32.mrf.mxu0  ;;  %v4382_v29 = vpop.f32.mrf.mxu1 }
 0x135   :  { %v3087_v27 = vadd.f32 %v4376_v9, %v1578_v24  ;;  %v3086_v28 = vadd.f32 %v2559_v13, %v1577_v25  ;;  %1434 = vst.msk [vmem:[%s7036_s3 + $0x1a1] sm:$0xff] %vm1381_vm2, %v922_v26 }
 0x136   :  { %3380 = vst.msk [vmem:[%s7036_s3 + $0x178] sm:$0xff] %vm1381_vm2, %v3236_v21  ;;  %3379 = vst.msk [vmem:[%s7036_s3 + $0x170] sm:$0xff] %vm1381_vm2, %v3235_v22  ;;  %v4161_v30 = vpop.f32.mrf.mxu0  ;;  %v2579_v33 = vpop.f32.mrf.mxu1 }
 0x137   :  { %v3238_v31 = vadd.f32 %v5100_v56, %v3087_v27  ;;  %v3237_v32 = vadd.f32 %v5100_v56, %v3086_v28  ;;  %1437 = vst.msk [vmem:[%s7036_s3 + $0x1b9] sm:$0xff] %vm1381_vm2, %v4161_v30 }
 0x138   :  { %v1580_v34 = vld [vmem:[%s7036_s3 + $0x198] sm:$0xff]  ;;  %v1579_v35 = vld [vmem:[%s7036_s3 + $0x190] sm:$0xff]  ;;  %v932_v36 = vpop.f32.mrf.mxu0  ;;  %v4385_v39 = vpop.f32.mrf.mxu1 }
 0x139   :  { %3382 = vst.msk [vmem:[%s7036_s3 + $0x188] sm:$0xff] %vm1381_vm2, %v3238_v31  ;;  %3381 = vst.msk [vmem:[%s7036_s3 + $0x180] sm:$0xff] %vm1381_vm2, %v3237_v32  ;;  %v3089_v37 = vadd.f32 %v4379_v19, %v1580_v34  ;;  %v3088_v38 = vadd.f32 %v2569_v23, %v1579_v35 }
 0x13a   :  { %1436 = vst.msk [vmem:[%s7036_s3 + $0x1b1] sm:$0xff] %vm1381_vm2, %v932_v36  ;;  %v4164_v40 = vpop.f32.mrf.mxu0  ;;  %v2589_v43 = vpop.f32.mrf.mxu1 }
 0x13b   :  { %v3240_v41 = vadd.f32 %v5100_v56, %v3089_v37  ;;  %v3239_v42 = vadd.f32 %v5100_v56, %v3088_v38  ;;  %1439 = vst.msk [vmem:[%s7036_s3 + $0x1c9] sm:$0xff] %vm1381_vm2, %v4164_v40 }
 0x13c   :  { %v1582_v44 = vld [vmem:[%s7036_s3 + $0x1a8] sm:$0xff]  ;;  %v1581_v45 = vld [vmem:[%s7036_s3 + $0x1a0] sm:$0xff]  ;;  %v942_v46 = vpop.f32.mrf.mxu0  ;;  %v4388_v49 = vpop.f32.mrf.mxu1 }
 0x13d   :  { %3384 = vst.msk [vmem:[%s7036_s3 + $0x198] sm:$0xff] %vm1381_vm2, %v3240_v41  ;;  %3383 = vst.msk [vmem:[%s7036_s3 + $0x190] sm:$0xff] %vm1381_vm2, %v3239_v42  ;;  %v3091_v47 = vadd.f32 %v4382_v29, %v1582_v44  ;;  %v3090_v48 = vadd.f32 %v2579_v33, %v1581_v45 }
 0x13e   :  { %1438 = vst.msk [vmem:[%s7036_s3 + $0x1c1] sm:$0xff] %vm1381_vm2, %v942_v46  ;;  %v4167_v50 = vpop.f32.mrf.mxu0  ;;  %v2599_v53 = vpop.f32.mrf.mxu1 }
 0x13f   :  { %v3242_v51 = vadd.f32 %v5100_v56, %v3091_v47  ;;  %v3241_v52 = vadd.f32 %v5100_v56, %v3090_v48  ;;  %1441 = vst.msk [vmem:[%s7036_s3 + $0x1d9] sm:$0xff] %vm1381_vm2, %v4167_v50 }
 0x140   :  { %v952_v57 = vpop.f32.mrf.mxu0  ;;  %v4391_v59 = vpop.f32.mrf.mxu1 }
 0x141   :  { %v1584_v54 = vld [vmem:[%s7036_s3 + $0x1b8] sm:$0xff]  ;;  %v1583_v55 = vld [vmem:[%s7036_s3 + $0x1b0] sm:$0xff]  ;;  %3386 = vst.msk [vmem:[%s7036_s3 + $0x1a8] sm:$0xff] %vm1381_vm2, %v3242_v51  ;;  %3385 = vst.msk [vmem:[%s7036_s3 + $0x1a0] sm:$0xff] %vm1381_vm2, %v3241_v52 }
 0x142   :  { %v3093_v56 = vadd.f32 %v4385_v39, %v1584_v54  ;;  %v3092_v58 = vadd.f32 %v2589_v43, %v1583_v55  ;;  %1440 = vst.msk [vmem:[%s7036_s3 + $0x1d1] sm:$0xff] %vm1381_vm2, %v952_v57  ;;  %v4170_v60 = vpop.f32.mrf.mxu0  ;;  %v2609_v0 = vpop.f32.mrf.mxu1 }
 0x143   :  { %1443 = vst.msk [vmem:[%s7036_s3 + $0x1e9] sm:$0xff] %vm1381_vm2, %v4170_v60 }
 0x144   :  { %v3244_v62 = vadd.f32 %v5978_v61, %v3093_v56  ;;  %v3243_v63 = vadd.f32 %v5978_v61, %v3092_v58  ;;  %v962_v3 = vpop.f32.mrf.mxu0  ;;  %v4394_v6 = vpop.f32.mrf.mxu1 }
 0x145   :  { %v1586_v1 = vld [vmem:[%s7036_s3 + $0x1c8] sm:$0xff]  ;;  %v1585_v2 = vld [vmem:[%s7036_s3 + $0x1c0] sm:$0xff]  ;;  %1442 = vst.msk [vmem:[%s7036_s3 + $0x1e1] sm:$0xff] %vm1381_vm2, %v962_v3 }
 0x146   :  { %3388 = vst.msk [vmem:[%s7036_s3 + $0x1b8] sm:$0xff] %vm1381_vm2, %v3244_v62  ;;  %3387 = vst.msk [vmem:[%s7036_s3 + $0x1b0] sm:$0xff] %vm1381_vm2, %v3243_v63  ;;  %v3095_v4 = vadd.f32 %v4388_v49, %v1586_v1  ;;  %v3094_v5 = vadd.f32 %v2599_v53, %v1585_v2  ;;  %v4173_v7 = vpop.f32.mrf.mxu0  ;;  %v2619_v10 = vpop.f32.mrf.mxu1 }
 0x147   :  { %1445 = vst.msk [vmem:[%s7036_s3 + $0x1f9] sm:$0xff] %vm1381_vm2, %v4173_v7 }
 0x148   :  { %v3246_v8 = vadd.f32 %v5978_v61, %v3095_v4  ;;  %v3245_v9 = vadd.f32 %v5978_v61, %v3094_v5  ;;  %v972_v13 = vpop.f32.mrf.mxu0  ;;  %v4397_v16 = vpop.f32.mrf.mxu1 }
 0x149   :  { %v1588_v11 = vld [vmem:[%s7036_s3 + $0x1d8] sm:$0xff]  ;;  %v1587_v12 = vld [vmem:[%s7036_s3 + $0x1d0] sm:$0xff]  ;;  %1444 = vst.msk [vmem:[%s7036_s3 + $0x1f1] sm:$0xff] %vm1381_vm2, %v972_v13 }
 0x14a   :  { %3390 = vst.msk [vmem:[%s7036_s3 + $0x1c8] sm:$0xff] %vm1381_vm2, %v3246_v8  ;;  %3389 = vst.msk [vmem:[%s7036_s3 + $0x1c0] sm:$0xff] %vm1381_vm2, %v3245_v9  ;;  %v3097_v14 = vadd.f32 %v4391_v59, %v1588_v11  ;;  %v3096_v15 = vadd.f32 %v2609_v0, %v1587_v12  ;;  %v4176_v17 = vpop.f32.mrf.mxu0  ;;  %v2629_v20 = vpop.f32.mrf.mxu1 }
 0x14b   :  { %1447 = vst.msk [vmem:[%s7036_s3 + $0x209] sm:$0xff] %vm1381_vm2, %v4176_v17 }
 0x14c   :  { %v3248_v18 = vadd.f32 %v5978_v61, %v3097_v14  ;;  %v3247_v19 = vadd.f32 %v5978_v61, %v3096_v15  ;;  %v1590_v21 = vld [vmem:[%s7036_s3 + $0x1e8] sm:$0xff]  ;;  %v1589_v22 = vld [vmem:[%s7036_s3 + $0x1e0] sm:$0xff]  ;;  %v982_v23 = vpop.f32.mrf.mxu0  ;;  %v4400_v26 = vpop.f32.mrf.mxu1 }
 0x14d   :  { %v3099_v24 = vadd.f32 %v4394_v6, %v1590_v21  ;;  %v3098_v25 = vadd.f32 %v2619_v10, %v1589_v22  ;;  %1446 = vst.msk [vmem:[%s7036_s3 + $0x201] sm:$0xff] %vm1381_vm2, %v982_v23 }
 0x14e   :  { %3392 = vst.msk [vmem:[%s7036_s3 + $0x1d8] sm:$0xff] %vm1381_vm2, %v3248_v18  ;;  %3391 = vst.msk [vmem:[%s7036_s3 + $0x1d0] sm:$0xff] %vm1381_vm2, %v3247_v19  ;;  %v4179_v27 = vpop.f32.mrf.mxu0  ;;  %v2639_v30 = vpop.f32.mrf.mxu1 }
 0x14f   :  { %v3250_v28 = vadd.f32 %v5978_v61, %v3099_v24  ;;  %v3249_v29 = vadd.f32 %v5978_v61, %v3098_v25  ;;  %1449 = vst.msk [vmem:[%s7036_s3 + $0x219] sm:$0xff] %vm1381_vm2, %v4179_v27 }
 0x150   :  { %v1592_v31 = vld [vmem:[%s7036_s3 + $0x1f8] sm:$0xff]  ;;  %v1591_v32 = vld [vmem:[%s7036_s3 + $0x1f0] sm:$0xff]  ;;  %v992_v33 = vpop.f32.mrf.mxu0  ;;  %v4403_v36 = vpop.f32.mrf.mxu1 }
 0x151   :  { %3394 = vst.msk [vmem:[%s7036_s3 + $0x1e8] sm:$0xff] %vm1381_vm2, %v3250_v28  ;;  %3393 = vst.msk [vmem:[%s7036_s3 + $0x1e0] sm:$0xff] %vm1381_vm2, %v3249_v29  ;;  %v3101_v34 = vadd.f32 %v4397_v16, %v1592_v31  ;;  %v3100_v35 = vadd.f32 %v2629_v20, %v1591_v32 }
 0x152   :  { %1448 = vst.msk [vmem:[%s7036_s3 + $0x211] sm:$0xff] %vm1381_vm2, %v992_v33  ;;  %v4182_v37 = vpop.f32.mrf.mxu0  ;;  %v2649_v40 = vpop.f32.mrf.mxu1 }
 0x153   :  { %v3252_v38 = vadd.f32 %v5978_v61, %v3101_v34  ;;  %v3251_v39 = vadd.f32 %v5978_v61, %v3100_v35  ;;  %1451 = vst.msk [vmem:[%s7036_s3 + $0x229] sm:$0xff] %vm1381_vm2, %v4182_v37 }
 0x154   :  { %v1594_v41 = vld [vmem:[%s7036_s3 + $0x208] sm:$0xff]  ;;  %v1593_v42 = vld [vmem:[%s7036_s3 + $0x200] sm:$0xff]  ;;  %v1002_v43 = vpop.f32.mrf.mxu0  ;;  %v4406_v46 = vpop.f32.mrf.mxu1 }
 0x155   :  { %3396 = vst.msk [vmem:[%s7036_s3 + $0x1f8] sm:$0xff] %vm1381_vm2, %v3252_v38  ;;  %3395 = vst.msk [vmem:[%s7036_s3 + $0x1f0] sm:$0xff] %vm1381_vm2, %v3251_v39  ;;  %v3103_v44 = vadd.f32 %v4400_v26, %v1594_v41  ;;  %v3102_v45 = vadd.f32 %v2639_v30, %v1593_v42 }
 0x156   :  { %1450 = vst.msk [vmem:[%s7036_s3 + $0x221] sm:$0xff] %vm1381_vm2, %v1002_v43  ;;  %v4185_v47 = vpop.f32.mrf.mxu0  ;;  %v2659_v50 = vpop.f32.mrf.mxu1 }
 0x157   :  { %v3254_v48 = vadd.f32 %v5978_v61, %v3103_v44  ;;  %v3253_v49 = vadd.f32 %v5978_v61, %v3102_v45  ;;  %1453 = vst.msk [vmem:[%s7036_s3 + $0x239] sm:$0xff] %vm1381_vm2, %v4185_v47 }
 0x158   :  { %v1012_v53 = vpop.f32.mrf.mxu0  ;;  %v4409_v57 = vpop.f32.mrf.mxu1 }
 0x159   :  { %v1596_v51 = vld [vmem:[%s7036_s3 + $0x218] sm:$0xff]  ;;  %v1595_v52 = vld [vmem:[%s7036_s3 + $0x210] sm:$0xff]  ;;  %3398 = vst.msk [vmem:[%s7036_s3 + $0x208] sm:$0xff] %vm1381_vm2, %v3254_v48  ;;  %3397 = vst.msk [vmem:[%s7036_s3 + $0x200] sm:$0xff] %vm1381_vm2, %v3253_v49 }
 0x15a   :  { %v3105_v54 = vadd.f32 %v4403_v36, %v1596_v51  ;;  %v3104_v55 = vadd.f32 %v2649_v40, %v1595_v52  ;;  %1452 = vst.msk [vmem:[%s7036_s3 + $0x231] sm:$0xff] %vm1381_vm2, %v1012_v53  ;;  %v4188_v56 = vpop.f32.mrf.mxu0  ;;  %v2669_v60 = vpop.f32.mrf.mxu1 }
 0x15b   :  { %1455 = vst.msk [vmem:[%s7036_s3 + $0x249] sm:$0xff] %vm1381_vm2, %v4188_v56 }
 0x15c   :  { %v3256_v58 = vadd.f32 %v5978_v61, %v3105_v54  ;;  %v3255_v59 = vadd.f32 %v5978_v61, %v3104_v55  ;;  %v1022_v0 = vpop.f32.mrf.mxu0  ;;  %v4412_v3 = vpop.f32.mrf.mxu1 }
 0x15d   :  { %v1598_v62 = vld [vmem:[%s7036_s3 + $0x228] sm:$0xff]  ;;  %v1597_v63 = vld [vmem:[%s7036_s3 + $0x220] sm:$0xff]  ;;  %1454 = vst.msk [vmem:[%s7036_s3 + $0x241] sm:$0xff] %vm1381_vm2, %v1022_v0 }
 0x15e   :  { %3400 = vst.msk [vmem:[%s7036_s3 + $0x218] sm:$0xff] %vm1381_vm2, %v3256_v58  ;;  %3399 = vst.msk [vmem:[%s7036_s3 + $0x210] sm:$0xff] %vm1381_vm2, %v3255_v59  ;;  %v3107_v1 = vadd.f32 %v4406_v46, %v1598_v62  ;;  %v3106_v2 = vadd.f32 %v2659_v50, %v1597_v63  ;;  %v4191_v4 = vpop.f32.mrf.mxu0  ;;  %v2679_v7 = vpop.f32.mrf.mxu1 }
 0x15f   :  { %1457 = vst.msk [vmem:[%s7036_s3 + $0x259] sm:$0xff] %vm1381_vm2, %v4191_v4 }
 0x160   :  { %v3258_v5 = vadd.f32 %v5978_v61, %v3107_v1  ;;  %v3257_v6 = vadd.f32 %v5978_v61, %v3106_v2  ;;  %v1032_v10 = vpop.f32.mrf.mxu0  ;;  %v4415_v13 = vpop.f32.mrf.mxu1 }
 0x161   :  { %v1600_v8 = vld [vmem:[%s7036_s3 + $0x238] sm:$0xff]  ;;  %v1599_v9 = vld [vmem:[%s7036_s3 + $0x230] sm:$0xff]  ;;  %1456 = vst.msk [vmem:[%s7036_s3 + $0x251] sm:$0xff] %vm1381_vm2, %v1032_v10 }
 0x162   :  { %3402 = vst.msk [vmem:[%s7036_s3 + $0x228] sm:$0xff] %vm1381_vm2, %v3258_v5  ;;  %3401 = vst.msk [vmem:[%s7036_s3 + $0x220] sm:$0xff] %vm1381_vm2, %v3257_v6  ;;  %v3109_v11 = vadd.f32 %v4409_v57, %v1600_v8  ;;  %v3108_v12 = vadd.f32 %v2669_v60, %v1599_v9  ;;  %v4194_v14 = vpop.f32.mrf.mxu0  ;;  %v2689_v17 = vpop.f32.mrf.mxu1 }
 0x163   :  { %1459 = vst.msk [vmem:[%s7036_s3 + $0x269] sm:$0xff] %vm1381_vm2, %v4194_v14 }
 0x164   :  { %v3260_v15 = vadd.f32 %v5978_v61, %v3109_v11  ;;  %v3259_v16 = vadd.f32 %v5978_v61, %v3108_v12  ;;  %v1602_v18 = vld [vmem:[%s7036_s3 + $0x248] sm:$0xff]  ;;  %v1601_v19 = vld [vmem:[%s7036_s3 + $0x240] sm:$0xff]  ;;  %v1042_v20 = vpop.f32.mrf.mxu0  ;;  %v4418_v23 = vpop.f32.mrf.mxu1 }
 0x165   :  { %v3111_v21 = vadd.f32 %v4412_v3, %v1602_v18  ;;  %v3110_v22 = vadd.f32 %v2679_v7, %v1601_v19  ;;  %1458 = vst.msk [vmem:[%s7036_s3 + $0x261] sm:$0xff] %vm1381_vm2, %v1042_v20 }
 0x166   :  { %3404 = vst.msk [vmem:[%s7036_s3 + $0x238] sm:$0xff] %vm1381_vm2, %v3260_v15  ;;  %3403 = vst.msk [vmem:[%s7036_s3 + $0x230] sm:$0xff] %vm1381_vm2, %v3259_v16  ;;  %v4197_v24 = vpop.f32.mrf.mxu0  ;;  %v2699_v27 = vpop.f32.mrf.mxu1 }
 0x167   :  { %v3262_v25 = vadd.f32 %v5978_v61, %v3111_v21  ;;  %v3261_v26 = vadd.f32 %v5978_v61, %v3110_v22  ;;  %1461 = vst.msk [vmem:[%s7036_s3 + $0x279] sm:$0xff] %vm1381_vm2, %v4197_v24 }
 0x168   :  { %v1604_v28 = vld [vmem:[%s7036_s3 + $0x258] sm:$0xff]  ;;  %v1603_v29 = vld [vmem:[%s7036_s3 + $0x250] sm:$0xff]  ;;  %v1052_v30 = vpop.f32.mrf.mxu0  ;;  %v4421_v33 = vpop.f32.mrf.mxu1 }
 0x169   :  { %3406 = vst.msk [vmem:[%s7036_s3 + $0x248] sm:$0xff] %vm1381_vm2, %v3262_v25  ;;  %3405 = vst.msk [vmem:[%s7036_s3 + $0x240] sm:$0xff] %vm1381_vm2, %v3261_v26  ;;  %v3113_v31 = vadd.f32 %v4415_v13, %v1604_v28  ;;  %v3112_v32 = vadd.f32 %v2689_v17, %v1603_v29 }
 0x16a   :  { %1460 = vst.msk [vmem:[%s7036_s3 + $0x271] sm:$0xff] %vm1381_vm2, %v1052_v30  ;;  %v4200_v34 = vpop.f32.mrf.mxu0  ;;  %v2709_v37 = vpop.f32.mrf.mxu1 }
 0x16b   :  { %v3264_v35 = vadd.f32 %v5978_v61, %v3113_v31  ;;  %v3263_v36 = vadd.f32 %v5978_v61, %v3112_v32  ;;  %1463 = vst.msk [vmem:[%s7036_s3 + $0x289] sm:$0xff] %vm1381_vm2, %v4200_v34 }
 0x16c   :  { %v1606_v38 = vld [vmem:[%s7036_s3 + $0x268] sm:$0xff]  ;;  %v1605_v39 = vld [vmem:[%s7036_s3 + $0x260] sm:$0xff]  ;;  %v1062_v40 = vpop.f32.mrf.mxu0  ;;  %v4424_v43 = vpop.f32.mrf.mxu1 }
 0x16d   :  { %3408 = vst.msk [vmem:[%s7036_s3 + $0x258] sm:$0xff] %vm1381_vm2, %v3264_v35  ;;  %3407 = vst.msk [vmem:[%s7036_s3 + $0x250] sm:$0xff] %vm1381_vm2, %v3263_v36  ;;  %v3115_v41 = vadd.f32 %v4418_v23, %v1606_v38  ;;  %v3114_v42 = vadd.f32 %v2699_v27, %v1605_v39 }
 0x16e   :  { %1462 = vst.msk [vmem:[%s7036_s3 + $0x281] sm:$0xff] %vm1381_vm2, %v1062_v40  ;;  %v4203_v44 = vpop.f32.mrf.mxu0  ;;  %v2719_v47 = vpop.f32.mrf.mxu1 }
 0x16f   :  { %v3266_v45 = vadd.f32 %v5978_v61, %v3115_v41  ;;  %v3265_v46 = vadd.f32 %v5978_v61, %v3114_v42  ;;  %1465 = vst.msk [vmem:[%s7036_s3 + $0x299] sm:$0xff] %vm1381_vm2, %v4203_v44 }
 0x170   :  { %v1072_v50 = vpop.f32.mrf.mxu0  ;;  %v4427_v53 = vpop.f32.mrf.mxu1 }
 0x171   :  { %v1608_v48 = vld [vmem:[%s7036_s3 + $0x278] sm:$0xff]  ;;  %v1607_v49 = vld [vmem:[%s7036_s3 + $0x270] sm:$0xff]  ;;  %3410 = vst.msk [vmem:[%s7036_s3 + $0x268] sm:$0xff] %vm1381_vm2, %v3266_v45  ;;  %3409 = vst.msk [vmem:[%s7036_s3 + $0x260] sm:$0xff] %vm1381_vm2, %v3265_v46 }
 0x172   :  { %v3117_v51 = vadd.f32 %v4421_v33, %v1608_v48  ;;  %v3116_v52 = vadd.f32 %v2709_v37, %v1607_v49  ;;  %1464 = vst.msk [vmem:[%s7036_s3 + $0x291] sm:$0xff] %vm1381_vm2, %v1072_v50  ;;  %v4206_v54 = vpop.f32.mrf.mxu0  ;;  %v2729_v56 = vpop.f32.mrf.mxu1 }
 0x173   :  { %1467 = vst.msk [vmem:[%s7036_s3 + $0x2a9] sm:$0xff] %vm1381_vm2, %v4206_v54 }
 0x174   :  { %v3268_v55 = vadd.f32 %v5978_v61, %v3117_v51  ;;  %v3267_v57 = vadd.f32 %v5978_v61, %v3116_v52  ;;  %v1082_v60 = vpop.f32.mrf.mxu0  ;;  %v4430_v0 = vpop.f32.mrf.mxu1 }
 0x175   :  { %v1610_v58 = vld [vmem:[%s7036_s3 + $0x288] sm:$0xff]  ;;  %v1609_v59 = vld [vmem:[%s7036_s3 + $0x280] sm:$0xff]  ;;  %1466 = vst.msk [vmem:[%s7036_s3 + $0x2a1] sm:$0xff] %vm1381_vm2, %v1082_v60 }
 0x176   :  { %3412 = vst.msk [vmem:[%s7036_s3 + $0x278] sm:$0xff] %vm1381_vm2, %v3268_v55  ;;  %3411 = vst.msk [vmem:[%s7036_s3 + $0x270] sm:$0xff] %vm1381_vm2, %v3267_v57  ;;  %v3119_v62 = vadd.f32 %v4424_v43, %v1610_v58  ;;  %v3118_v63 = vadd.f32 %v2719_v47, %v1609_v59  ;;  %v4209_v1 = vpop.f32.mrf.mxu0  ;;  %v2739_v4 = vpop.f32.mrf.mxu1 }
 0x177   :  { %1469 = vst.msk [vmem:[%s7036_s3 + $0x2b9] sm:$0xff] %vm1381_vm2, %v4209_v1 }
 0x178   :  { %v3270_v2 = vadd.f32 %v5978_v61, %v3119_v62  ;;  %v3269_v3 = vadd.f32 %v5978_v61, %v3118_v63  ;;  %v1092_v7 = vpop.f32.mrf.mxu0  ;;  %v4433_v10 = vpop.f32.mrf.mxu1 }
 0x179   :  { %v1612_v5 = vld [vmem:[%s7036_s3 + $0x298] sm:$0xff]  ;;  %v1611_v6 = vld [vmem:[%s7036_s3 + $0x290] sm:$0xff]  ;;  %1468 = vst.msk [vmem:[%s7036_s3 + $0x2b1] sm:$0xff] %vm1381_vm2, %v1092_v7 }
 0x17a   :  { %3414 = vst.msk [vmem:[%s7036_s3 + $0x288] sm:$0xff] %vm1381_vm2, %v3270_v2  ;;  %3413 = vst.msk [vmem:[%s7036_s3 + $0x280] sm:$0xff] %vm1381_vm2, %v3269_v3  ;;  %v3121_v8 = vadd.f32 %v4427_v53, %v1612_v5  ;;  %v3120_v9 = vadd.f32 %v2729_v56, %v1611_v6  ;;  %v4212_v11 = vpop.f32.mrf.mxu0  ;;  %v2749_v14 = vpop.f32.mrf.mxu1 }
 0x17b   :  { %1471 = vst.msk [vmem:[%s7036_s3 + $0x2c9] sm:$0xff] %vm1381_vm2, %v4212_v11 }
 0x17c   :  { %v3272_v12 = vadd.f32 %v5978_v61, %v3121_v8  ;;  %v3271_v13 = vadd.f32 %v5978_v61, %v3120_v9  ;;  %v1614_v15 = vld [vmem:[%s7036_s3 + $0x2a8] sm:$0xff]  ;;  %v1613_v16 = vld [vmem:[%s7036_s3 + $0x2a0] sm:$0xff]  ;;  %v1102_v17 = vpop.f32.mrf.mxu0  ;;  %v4436_v20 = vpop.f32.mrf.mxu1 }
 0x17d   :  { %v3123_v18 = vadd.f32 %v4430_v0, %v1614_v15  ;;  %v3122_v19 = vadd.f32 %v2739_v4, %v1613_v16  ;;  %1470 = vst.msk [vmem:[%s7036_s3 + $0x2c1] sm:$0xff] %vm1381_vm2, %v1102_v17 }
 0x17e   :  { %3416 = vst.msk [vmem:[%s7036_s3 + $0x298] sm:$0xff] %vm1381_vm2, %v3272_v12  ;;  %3415 = vst.msk [vmem:[%s7036_s3 + $0x290] sm:$0xff] %vm1381_vm2, %v3271_v13  ;;  %v4215_v21 = vpop.f32.mrf.mxu0  ;;  %v2759_v24 = vpop.f32.mrf.mxu1 }
 0x17f   :  { %v3274_v22 = vadd.f32 %v5978_v61, %v3123_v18  ;;  %v3273_v23 = vadd.f32 %v5978_v61, %v3122_v19  ;;  %1473 = vst.msk [vmem:[%s7036_s3 + $0x2d9] sm:$0xff] %vm1381_vm2, %v4215_v21 }
 0x180   :  { %v1616_v25 = vld [vmem:[%s7036_s3 + $0x2b8] sm:$0xff]  ;;  %v1615_v26 = vld [vmem:[%s7036_s3 + $0x2b0] sm:$0xff]  ;;  %v1112_v27 = vpop.f32.mrf.mxu0  ;;  %v4439_v30 = vpop.f32.mrf.mxu1 }
 0x181   :  { %3418 = vst.msk [vmem:[%s7036_s3 + $0x2a8] sm:$0xff] %vm1381_vm2, %v3274_v22  ;;  %3417 = vst.msk [vmem:[%s7036_s3 + $0x2a0] sm:$0xff] %vm1381_vm2, %v3273_v23  ;;  %v3125_v28 = vadd.f32 %v4433_v10, %v1616_v25  ;;  %v3124_v29 = vadd.f32 %v2749_v14, %v1615_v26 }
 0x182   :  { %1472 = vst.msk [vmem:[%s7036_s3 + $0x2d1] sm:$0xff] %vm1381_vm2, %v1112_v27  ;;  %v4218_v31 = vpop.f32.mrf.mxu0  ;;  %v2769_v34 = vpop.f32.mrf.mxu1 }
 0x183   :  { %v3276_v32 = vadd.f32 %v5978_v61, %v3125_v28  ;;  %v3275_v33 = vadd.f32 %v5978_v61, %v3124_v29  ;;  %1475 = vst.msk [vmem:[%s7036_s3 + $0x2e9] sm:$0xff] %vm1381_vm2, %v4218_v31 }
 0x184   :  { %v1618_v35 = vld [vmem:[%s7036_s3 + $0x2c8] sm:$0xff]  ;;  %v1617_v36 = vld [vmem:[%s7036_s3 + $0x2c0] sm:$0xff]  ;;  %v1122_v37 = vpop.f32.mrf.mxu0  ;;  %v4442_v40 = vpop.f32.mrf.mxu1 }
 0x185   :  { %3420 = vst.msk [vmem:[%s7036_s3 + $0x2b8] sm:$0xff] %vm1381_vm2, %v3276_v32  ;;  %3419 = vst.msk [vmem:[%s7036_s3 + $0x2b0] sm:$0xff] %vm1381_vm2, %v3275_v33  ;;  %v3127_v38 = vadd.f32 %v4436_v20, %v1618_v35  ;;  %v3126_v39 = vadd.f32 %v2759_v24, %v1617_v36 }
 0x186   :  { %1474 = vst.msk [vmem:[%s7036_s3 + $0x2e1] sm:$0xff] %vm1381_vm2, %v1122_v37  ;;  %v4221_v41 = vpop.f32.mrf.mxu0  ;;  %v2779_v44 = vpop.f32.mrf.mxu1 }
 0x187   :  { %v3278_v42 = vadd.f32 %v5978_v61, %v3127_v38  ;;  %v3277_v43 = vadd.f32 %v5978_v61, %v3126_v39  ;;  %1477 = vst.msk [vmem:[%s7036_s3 + $0x2f9] sm:$0xff] %vm1381_vm2, %v4221_v41 }
 0x188   :  { %v1132_v47 = vpop.f32.mrf.mxu0  ;;  %v4445_v50 = vpop.f32.mrf.mxu1 }
 0x189   :  { %v1620_v45 = vld [vmem:[%s7036_s3 + $0x2d8] sm:$0xff]  ;;  %v1619_v46 = vld [vmem:[%s7036_s3 + $0x2d0] sm:$0xff]  ;;  %3422 = vst.msk [vmem:[%s7036_s3 + $0x2c8] sm:$0xff] %vm1381_vm2, %v3278_v42  ;;  %3421 = vst.msk [vmem:[%s7036_s3 + $0x2c0] sm:$0xff] %vm1381_vm2, %v3277_v43 }
 0x18a   :  { %v3129_v48 = vadd.f32 %v4439_v30, %v1620_v45  ;;  %v3128_v49 = vadd.f32 %v2769_v34, %v1619_v46  ;;  %1476 = vst.msk [vmem:[%s7036_s3 + $0x2f1] sm:$0xff] %vm1381_vm2, %v1132_v47  ;;  %v4224_v51 = vpop.f32.mrf.mxu0  ;;  %v2789_v54 = vpop.f32.mrf.mxu1 }
 0x18b   :  { %1479 = vst.msk [vmem:[%s7036_s3 + $0x309] sm:$0xff] %vm1381_vm2, %v4224_v51 }
 0x18c   :  { %v3280_v52 = vadd.f32 %v5978_v61, %v3129_v48  ;;  %v3279_v53 = vadd.f32 %v5978_v61, %v3128_v49  ;;  %v1142_v56 = vpop.f32.mrf.mxu0  ;;  %v4448_v60 = vpop.f32.mrf.mxu1 }
 0x18d   :  { %v1622_v55 = vld [vmem:[%s7036_s3 + $0x2e8] sm:$0xff]  ;;  %v1621_v57 = vld [vmem:[%s7036_s3 + $0x2e0] sm:$0xff]  ;;  %1478 = vst.msk [vmem:[%s7036_s3 + $0x301] sm:$0xff] %vm1381_vm2, %v1142_v56 }
 0x18e   :  { %3424 = vst.msk [vmem:[%s7036_s3 + $0x2d8] sm:$0xff] %vm1381_vm2, %v3280_v52  ;;  %3423 = vst.msk [vmem:[%s7036_s3 + $0x2d0] sm:$0xff] %vm1381_vm2, %v3279_v53  ;;  %v3131_v58 = vadd.f32 %v4442_v40, %v1622_v55  ;;  %v3130_v59 = vadd.f32 %v2779_v44, %v1621_v57  ;;  %v4227_v62 = vpop.f32.mrf.mxu0  ;;  %v2799_v1 = vpop.f32.mrf.mxu1 }
 0x18f   :  { %1481 = vst.msk [vmem:[%s7036_s3 + $0x319] sm:$0xff] %vm1381_vm2, %v4227_v62 }
 0x190   :  { %v3282_v63 = vadd.f32 %v5978_v61, %v3131_v58  ;;  %v3281_v0 = vadd.f32 %v5978_v61, %v3130_v59  ;;  %v1152_v4 = vpop.f32.mrf.mxu0  ;;  %v4451_v7 = vpop.f32.mrf.mxu1 }
 0x191   :  { %v1624_v2 = vld [vmem:[%s7036_s3 + $0x2f8] sm:$0xff]  ;;  %v1623_v3 = vld [vmem:[%s7036_s3 + $0x2f0] sm:$0xff]  ;;  %1480 = vst.msk [vmem:[%s7036_s3 + $0x311] sm:$0xff] %vm1381_vm2, %v1152_v4 }
 0x192   :  { %3426 = vst.msk [vmem:[%s7036_s3 + $0x2e8] sm:$0xff] %vm1381_vm2, %v3282_v63  ;;  %3425 = vst.msk [vmem:[%s7036_s3 + $0x2e0] sm:$0xff] %vm1381_vm2, %v3281_v0  ;;  %v3133_v5 = vadd.f32 %v4445_v50, %v1624_v2  ;;  %v3132_v6 = vadd.f32 %v2789_v54, %v1623_v3  ;;  %v4230_v8 = vpop.f32.mrf.mxu0  ;;  %v2809_v11 = vpop.f32.mrf.mxu1 }
 0x193   :  { %1483 = vst.msk [vmem:[%s7036_s3 + $0x329] sm:$0xff] %vm1381_vm2, %v4230_v8 }
 0x194   :  { %v3284_v9 = vadd.f32 %v5978_v61, %v3133_v5  ;;  %v3283_v10 = vadd.f32 %v5978_v61, %v3132_v6  ;;  %v1626_v12 = vld [vmem:[%s7036_s3 + $0x308] sm:$0xff]  ;;  %v1625_v13 = vld [vmem:[%s7036_s3 + $0x300] sm:$0xff]  ;;  %v1162_v14 = vpop.f32.mrf.mxu0  ;;  %v4454_v17 = vpop.f32.mrf.mxu1 }
 0x195   :  { %v3135_v15 = vadd.f32 %v4448_v60, %v1626_v12  ;;  %v3134_v16 = vadd.f32 %v2799_v1, %v1625_v13  ;;  %1482 = vst.msk [vmem:[%s7036_s3 + $0x321] sm:$0xff] %vm1381_vm2, %v1162_v14 }
 0x196   :  { %3428 = vst.msk [vmem:[%s7036_s3 + $0x2f8] sm:$0xff] %vm1381_vm2, %v3284_v9  ;;  %3427 = vst.msk [vmem:[%s7036_s3 + $0x2f0] sm:$0xff] %vm1381_vm2, %v3283_v10  ;;  %v4233_v18 = vpop.f32.mrf.mxu0  ;;  %v2819_v21 = vpop.f32.mrf.mxu1 }
 0x197   :  { %v3286_v19 = vadd.f32 %v5978_v61, %v3135_v15  ;;  %v3285_v20 = vadd.f32 %v5978_v61, %v3134_v16  ;;  %1485 = vst.msk [vmem:[%s7036_s3 + $0x339] sm:$0xff] %vm1381_vm2, %v4233_v18 }
 0x198   :  { %v1628_v22 = vld [vmem:[%s7036_s3 + $0x318] sm:$0xff]  ;;  %v1627_v23 = vld [vmem:[%s7036_s3 + $0x310] sm:$0xff]  ;;  %v1172_v24 = vpop.f32.mrf.mxu0  ;;  %v4457_v27 = vpop.f32.mrf.mxu1 }
 0x199   :  { %3430 = vst.msk [vmem:[%s7036_s3 + $0x308] sm:$0xff] %vm1381_vm2, %v3286_v19  ;;  %3429 = vst.msk [vmem:[%s7036_s3 + $0x300] sm:$0xff] %vm1381_vm2, %v3285_v20  ;;  %v3137_v25 = vadd.f32 %v4451_v7, %v1628_v22  ;;  %v3136_v26 = vadd.f32 %v2809_v11, %v1627_v23 }
 0x19a   :  { %1484 = vst.msk [vmem:[%s7036_s3 + $0x331] sm:$0xff] %vm1381_vm2, %v1172_v24  ;;  %v4236_v28 = vpop.f32.mrf.mxu0  ;;  %v2829_v31 = vpop.f32.mrf.mxu1 }
 0x19b   :  { %v3288_v29 = vadd.f32 %v5978_v61, %v3137_v25  ;;  %v3287_v30 = vadd.f32 %v5978_v61, %v3136_v26  ;;  %1487 = vst.msk [vmem:[%s7036_s3 + $0x349] sm:$0xff] %vm1381_vm2, %v4236_v28 }
 0x19c   :  { %v1630_v32 = vld [vmem:[%s7036_s3 + $0x328] sm:$0xff]  ;;  %v1629_v33 = vld [vmem:[%s7036_s3 + $0x320] sm:$0xff]  ;;  %v1182_v34 = vpop.f32.mrf.mxu0  ;;  %v4460_v37 = vpop.f32.mrf.mxu1 }
 0x19d   :  { %3432 = vst.msk [vmem:[%s7036_s3 + $0x318] sm:$0xff] %vm1381_vm2, %v3288_v29  ;;  %3431 = vst.msk [vmem:[%s7036_s3 + $0x310] sm:$0xff] %vm1381_vm2, %v3287_v30  ;;  %v3139_v35 = vadd.f32 %v4454_v17, %v1630_v32  ;;  %v3138_v36 = vadd.f32 %v2819_v21, %v1629_v33 }
 0x19e   :  { %1486 = vst.msk [vmem:[%s7036_s3 + $0x341] sm:$0xff] %vm1381_vm2, %v1182_v34  ;;  %v4239_v38 = vpop.f32.mrf.mxu0  ;;  %v2839_v41 = vpop.f32.mrf.mxu1 }
 0x19f   :  { %v3290_v39 = vadd.f32 %v5978_v61, %v3139_v35  ;;  %v3289_v40 = vadd.f32 %v5978_v61, %v3138_v36  ;;  %1489 = vst.msk [vmem:[%s7036_s3 + $0x359] sm:$0xff] %vm1381_vm2, %v4239_v38 }
 0x1a0   :  { %v1192_v44 = vpop.f32.mrf.mxu0  ;;  %v4463_v47 = vpop.f32.mrf.mxu1 }
 0x1a1   :  { %v1632_v42 = vld [vmem:[%s7036_s3 + $0x338] sm:$0xff]  ;;  %v1631_v43 = vld [vmem:[%s7036_s3 + $0x330] sm:$0xff]  ;;  %3434 = vst.msk [vmem:[%s7036_s3 + $0x328] sm:$0xff] %vm1381_vm2, %v3290_v39  ;;  %3433 = vst.msk [vmem:[%s7036_s3 + $0x320] sm:$0xff] %vm1381_vm2, %v3289_v40 }
 0x1a2   :  { %v3141_v45 = vadd.f32 %v4457_v27, %v1632_v42  ;;  %v3140_v46 = vadd.f32 %v2829_v31, %v1631_v43  ;;  %1488 = vst.msk [vmem:[%s7036_s3 + $0x351] sm:$0xff] %vm1381_vm2, %v1192_v44  ;;  %v4242_v48 = vpop.f32.mrf.mxu0  ;;  %v2849_v51 = vpop.f32.mrf.mxu1 }
 0x1a3   :  { %1491 = vst.msk [vmem:[%s7036_s3 + $0x369] sm:$0xff] %vm1381_vm2, %v4242_v48 }
 0x1a4   :  { %v3292_v49 = vadd.f32 %v5978_v61, %v3141_v45  ;;  %v3291_v50 = vadd.f32 %v5978_v61, %v3140_v46  ;;  %v1202_v54 = vpop.f32.mrf.mxu0  ;;  %v4466_v56 = vpop.f32.mrf.mxu1 }
 0x1a5   :  { %v1634_v52 = vld [vmem:[%s7036_s3 + $0x348] sm:$0xff]  ;;  %v1633_v53 = vld [vmem:[%s7036_s3 + $0x340] sm:$0xff]  ;;  %1490 = vst.msk [vmem:[%s7036_s3 + $0x361] sm:$0xff] %vm1381_vm2, %v1202_v54 }
 0x1a6   :  { %3436 = vst.msk [vmem:[%s7036_s3 + $0x338] sm:$0xff] %vm1381_vm2, %v3292_v49  ;;  %3435 = vst.msk [vmem:[%s7036_s3 + $0x330] sm:$0xff] %vm1381_vm2, %v3291_v50  ;;  %v3143_v55 = vadd.f32 %v4460_v37, %v1634_v52  ;;  %v3142_v57 = vadd.f32 %v2839_v41, %v1633_v53  ;;  %v4245_v58 = vpop.f32.mrf.mxu0  ;;  %v2859_v62 = vpop.f32.mrf.mxu1 }
 0x1a7   :  { %1493 = vst.msk [vmem:[%s7036_s3 + $0x379] sm:$0xff] %vm1381_vm2, %v4245_v58 }
 0x1a8   :  { %v3294_v59 = vadd.f32 %v5978_v61, %v3143_v55  ;;  %v3293_v60 = vadd.f32 %v5978_v61, %v3142_v57  ;;  %v1212_v1 = vpop.f32.mrf.mxu0  ;;  %v4469_v4 = vpop.f32.mrf.mxu1 }
 0x1a9   :  { %v1636_v63 = vld [vmem:[%s7036_s3 + $0x358] sm:$0xff]  ;;  %v1635_v0 = vld [vmem:[%s7036_s3 + $0x350] sm:$0xff]  ;;  %1492 = vst.msk [vmem:[%s7036_s3 + $0x371] sm:$0xff] %vm1381_vm2, %v1212_v1 }
 0x1aa   :  { %3438 = vst.msk [vmem:[%s7036_s3 + $0x348] sm:$0xff] %vm1381_vm2, %v3294_v59  ;;  %3437 = vst.msk [vmem:[%s7036_s3 + $0x340] sm:$0xff] %vm1381_vm2, %v3293_v60  ;;  %v3145_v2 = vadd.f32 %v4463_v47, %v1636_v63  ;;  %v3144_v3 = vadd.f32 %v2849_v51, %v1635_v0  ;;  %v4248_v5 = vpop.f32.mrf.mxu0  ;;  %v2869_v8 = vpop.f32.mrf.mxu1 }
 0x1ab   :  { %1495 = vst.msk [vmem:[%s7036_s3 + $0x389] sm:$0xff] %vm1381_vm2, %v4248_v5 }
 0x1ac   :  { %v3296_v6 = vadd.f32 %v5978_v61, %v3145_v2  ;;  %v3295_v7 = vadd.f32 %v5978_v61, %v3144_v3  ;;  %v1638_v9 = vld [vmem:[%s7036_s3 + $0x368] sm:$0xff]  ;;  %v1637_v10 = vld [vmem:[%s7036_s3 + $0x360] sm:$0xff]  ;;  %v1222_v11 = vpop.f32.mrf.mxu0  ;;  %v4472_v14 = vpop.f32.mrf.mxu1 }
 0x1ad   :  { %v3147_v12 = vadd.f32 %v4466_v56, %v1638_v9  ;;  %v3146_v13 = vadd.f32 %v2859_v62, %v1637_v10  ;;  %1494 = vst.msk [vmem:[%s7036_s3 + $0x381] sm:$0xff] %vm1381_vm2, %v1222_v11 }
 0x1ae   :  { %3440 = vst.msk [vmem:[%s7036_s3 + $0x358] sm:$0xff] %vm1381_vm2, %v3296_v6  ;;  %3439 = vst.msk [vmem:[%s7036_s3 + $0x350] sm:$0xff] %vm1381_vm2, %v3295_v7  ;;  %v4251_v15 = vpop.f32.mrf.mxu0  ;;  %v2879_v18 = vpop.f32.mrf.mxu1 }
 0x1af   :  { %v3298_v16 = vadd.f32 %v5978_v61, %v3147_v12  ;;  %v3297_v17 = vadd.f32 %v5978_v61, %v3146_v13  ;;  %1497 = vst.msk [vmem:[%s7036_s3 + $0x399] sm:$0xff] %vm1381_vm2, %v4251_v15 }
 0x1b0   :  { %v1640_v19 = vld [vmem:[%s7036_s3 + $0x378] sm:$0xff]  ;;  %v1639_v20 = vld [vmem:[%s7036_s3 + $0x370] sm:$0xff]  ;;  %v1232_v21 = vpop.f32.mrf.mxu0  ;;  %v4475_v24 = vpop.f32.mrf.mxu1 }
 0x1b1   :  { %3442 = vst.msk [vmem:[%s7036_s3 + $0x368] sm:$0xff] %vm1381_vm2, %v3298_v16  ;;  %3441 = vst.msk [vmem:[%s7036_s3 + $0x360] sm:$0xff] %vm1381_vm2, %v3297_v17  ;;  %v3149_v22 = vadd.f32 %v4469_v4, %v1640_v19  ;;  %v3148_v23 = vadd.f32 %v2869_v8, %v1639_v20 }
 0x1b2   :  { %1496 = vst.msk [vmem:[%s7036_s3 + $0x391] sm:$0xff] %vm1381_vm2, %v1232_v21  ;;  %v4254_v25 = vpop.f32.mrf.mxu0  ;;  %v2889_v28 = vpop.f32.mrf.mxu1 }
 0x1b3   :  { %v3300_v26 = vadd.f32 %v5978_v61, %v3149_v22  ;;  %v3299_v27 = vadd.f32 %v5978_v61, %v3148_v23  ;;  %1499 = vst.msk [vmem:[%s7036_s3 + $0x3a9] sm:$0xff] %vm1381_vm2, %v4254_v25 }
 0x1b4   :  { %v1642_v29 = vld [vmem:[%s7036_s3 + $0x388] sm:$0xff]  ;;  %v1641_v30 = vld [vmem:[%s7036_s3 + $0x380] sm:$0xff]  ;;  %v1242_v31 = vpop.f32.mrf.mxu0  ;;  %v4478_v34 = vpop.f32.mrf.mxu1 }
 0x1b5   :  { %3444 = vst.msk [vmem:[%s7036_s3 + $0x378] sm:$0xff] %vm1381_vm2, %v3300_v26  ;;  %3443 = vst.msk [vmem:[%s7036_s3 + $0x370] sm:$0xff] %vm1381_vm2, %v3299_v27  ;;  %v3151_v32 = vadd.f32 %v4472_v14, %v1642_v29  ;;  %v3150_v33 = vadd.f32 %v2879_v18, %v1641_v30 }
 0x1b6   :  { %1498 = vst.msk [vmem:[%s7036_s3 + $0x3a1] sm:$0xff] %vm1381_vm2, %v1242_v31  ;;  %v4257_v35 = vpop.f32.mrf.mxu0  ;;  %v2899_v38 = vpop.f32.mrf.mxu1 }
 0x1b7   :  { %v3302_v36 = vadd.f32 %v5978_v61, %v3151_v32  ;;  %v3301_v37 = vadd.f32 %v5978_v61, %v3150_v33  ;;  %1501 = vst.msk [vmem:[%s7036_s3 + $0x3b9] sm:$0xff] %vm1381_vm2, %v4257_v35 }
 0x1b8   :  { %v1252_v41 = vpop.f32.mrf.mxu0  ;;  %v4481_v44 = vpop.f32.mrf.mxu1 }
 0x1b9   :  { %v1644_v39 = vld [vmem:[%s7036_s3 + $0x398] sm:$0xff]  ;;  %v1643_v40 = vld [vmem:[%s7036_s3 + $0x390] sm:$0xff]  ;;  %3446 = vst.msk [vmem:[%s7036_s3 + $0x388] sm:$0xff] %vm1381_vm2, %v3302_v36  ;;  %3445 = vst.msk [vmem:[%s7036_s3 + $0x380] sm:$0xff] %vm1381_vm2, %v3301_v37 }
 0x1ba   :  { %v3153_v42 = vadd.f32 %v4475_v24, %v1644_v39  ;;  %v3152_v43 = vadd.f32 %v2889_v28, %v1643_v40  ;;  %1500 = vst.msk [vmem:[%s7036_s3 + $0x3b1] sm:$0xff] %vm1381_vm2, %v1252_v41  ;;  %v4260_v45 = vpop.f32.mrf.mxu0  ;;  %v2909_v48 = vpop.f32.mrf.mxu1 }
 0x1bb   :  { %1503 = vst.msk [vmem:[%s7036_s3 + $0x3c9] sm:$0xff] %vm1381_vm2, %v4260_v45 }
 0x1bc   :  { %v3304_v46 = vadd.f32 %v5978_v61, %v3153_v42  ;;  %v3303_v47 = vadd.f32 %v5978_v61, %v3152_v43  ;;  %v1262_v51 = vpop.f32.mrf.mxu0  ;;  %v4484_v54 = vpop.f32.mrf.mxu1 }
 0x1bd   :  { %v1646_v49 = vld [vmem:[%s7036_s3 + $0x3a8] sm:$0xff]  ;;  %v1645_v50 = vld [vmem:[%s7036_s3 + $0x3a0] sm:$0xff]  ;;  %1502 = vst.msk [vmem:[%s7036_s3 + $0x3c1] sm:$0xff] %vm1381_vm2, %v1262_v51 }
 0x1be   :  { %3448 = vst.msk [vmem:[%s7036_s3 + $0x398] sm:$0xff] %vm1381_vm2, %v3304_v46  ;;  %3447 = vst.msk [vmem:[%s7036_s3 + $0x390] sm:$0xff] %vm1381_vm2, %v3303_v47  ;;  %v3155_v52 = vadd.f32 %v4478_v34, %v1646_v49  ;;  %v3154_v53 = vadd.f32 %v2899_v38, %v1645_v50  ;;  %v4263_v55 = vpop.f32.mrf.mxu0  ;;  %v2919_v58 = vpop.f32.mrf.mxu1 }
 0x1bf   :  { %1505 = vst.msk [vmem:[%s7036_s3 + $0x3d9] sm:$0xff] %vm1381_vm2, %v4263_v55 }
 0x1c0   :  { %v3306_v57 = vadd.f32 %v5978_v61, %v3155_v52  ;;  %v3305_v56 = vadd.f32 %v5978_v61, %v3154_v53  ;;  %v1272_v62 = vpop.f32.mrf.mxu0  ;;  %v4487_v1 = vpop.f32.mrf.mxu1  ;;  %v6871_v52 = vld [vmem:[%s7037_s2] ss:$0 sm:$0xff] }
 0x1c1   :  { %v1648_v59 = vld [vmem:[%s7036_s3 + $0x3b8] sm:$0xff]  ;;  %v1647_v60 = vld [vmem:[%s7036_s3 + $0x3b0] sm:$0xff]  ;;  %1504 = vst.msk [vmem:[%s7036_s3 + $0x3d1] sm:$0xff] %vm1381_vm2, %v1272_v62 }
 0x1c2   :  { %3450 = vst.msk [vmem:[%s7036_s3 + $0x3a8] sm:$0xff] %vm1381_vm2, %v3306_v57  ;;  %3449 = vst.msk [vmem:[%s7036_s3 + $0x3a0] sm:$0xff] %vm1381_vm2, %v3305_v56  ;;  %v3157_v63 = vadd.f32 %v4481_v44, %v1648_v59  ;;  %v3156_v0 = vadd.f32 %v2909_v48, %v1647_v60  ;;  %v4266_v2 = vpop.f32.mrf.mxu0  ;;  %v2929_v5 = vpop.f32.mrf.mxu1 }
 0x1c3   :  { %1507 = vst.msk [vmem:[%s7036_s3 + $0x3e9] sm:$0xff] %vm1381_vm2, %v4266_v2 }
 0x1c4   :  { %v3308_v3 = vadd.f32 %v5978_v61, %v3157_v63  ;;  %v3307_v4 = vadd.f32 %v5978_v61, %v3156_v0  ;;  %v1650_v6 = vld [vmem:[%s7036_s3 + $0x3c8] sm:$0xff]  ;;  %v1649_v7 = vld [vmem:[%s7036_s3 + $0x3c0] sm:$0xff]  ;;  %v1282_v8 = vpop.f32.mrf.mxu0  ;;  %v4490_v11 = vpop.f32.mrf.mxu1 }
 0x1c5   :  { %v3159_v9 = vadd.f32 %v4484_v54, %v1650_v6  ;;  %v3158_v10 = vadd.f32 %v2919_v58, %v1649_v7  ;;  %1506 = vst.msk [vmem:[%s7036_s3 + $0x3e1] sm:$0xff] %vm1381_vm2, %v1282_v8 }
 0x1c6   :  { %3452 = vst.msk [vmem:[%s7036_s3 + $0x3b8] sm:$0xff] %vm1381_vm2, %v3308_v3  ;;  %3451 = vst.msk [vmem:[%s7036_s3 + $0x3b0] sm:$0xff] %vm1381_vm2, %v3307_v4  ;;  %v4269_v12 = vpop.f32.mrf.mxu0  ;;  %v2939_v15 = vpop.f32.mrf.mxu1 }
 0x1c7   :  { %v3310_v13 = vadd.f32 %v5978_v61, %v3159_v9  ;;  %v3309_v14 = vadd.f32 %v5978_v61, %v3158_v10  ;;  %1509 = vst.msk [vmem:[%s7036_s3 + $0x3f9] sm:$0xff] %vm1381_vm2, %v4269_v12 }
 0x1c8   :  { %v1652_v16 = vld [vmem:[%s7036_s3 + $0x3d8] sm:$0xff]  ;;  %v1651_v17 = vld [vmem:[%s7036_s3 + $0x3d0] sm:$0xff]  ;;  %v1292_v18 = vpop.f32.mrf.mxu0  ;;  %v4493_v21 = vpop.f32.mrf.mxu1 }
 0x1c9   :  { %3454 = vst.msk [vmem:[%s7036_s3 + $0x3c8] sm:$0xff] %vm1381_vm2, %v3310_v13  ;;  %3453 = vst.msk [vmem:[%s7036_s3 + $0x3c0] sm:$0xff] %vm1381_vm2, %v3309_v14  ;;  %v3161_v19 = vadd.f32 %v4487_v1, %v1652_v16  ;;  %v3160_v20 = vadd.f32 %v2929_v5, %v1651_v17 }
 0x1ca   :  { %1508 = vst.msk [vmem:[%s7036_s3 + $0x3f1] sm:$0xff] %vm1381_vm2, %v1292_v18  ;;  %v4272_v22 = vpop.f32.mrf.mxu0  ;;  %v2949_v25 = vpop.f32.mrf.mxu1 }
 0x1cb   :  { %v3312_v23 = vadd.f32 %v5978_v61, %v3161_v19  ;;  %v3311_v24 = vadd.f32 %v5978_v61, %v3160_v20  ;;  %1511 = vst.msk [vmem:[%s7036_s3 + $0x409] sm:$0xff] %vm1381_vm2, %v4272_v22 }
 0x1cc   :  { %v1654_v26 = vld [vmem:[%s7036_s3 + $0x3e8] sm:$0xff]  ;;  %v1653_v27 = vld [vmem:[%s7036_s3 + $0x3e0] sm:$0xff]  ;;  %v1302_v28 = vpop.f32.mrf.mxu0  ;;  %v4496_v31 = vpop.f32.mrf.mxu1 }
 0x1cd   :  { %3456 = vst.msk [vmem:[%s7036_s3 + $0x3d8] sm:$0xff] %vm1381_vm2, %v3312_v23  ;;  %3455 = vst.msk [vmem:[%s7036_s3 + $0x3d0] sm:$0xff] %vm1381_vm2, %v3311_v24  ;;  %v3163_v29 = vadd.f32 %v4490_v11, %v1654_v26  ;;  %v3162_v30 = vadd.f32 %v2939_v15, %v1653_v27 }
 0x1ce   :  { %1510 = vst.msk [vmem:[%s7036_s3 + $0x401] sm:$0xff] %vm1381_vm2, %v1302_v28  ;;  %v4275_v32 = vpop.f32.mrf.mxu0  ;;  %v2959_v35 = vpop.f32.mrf.mxu1 }
 0x1cf   :  { %v3314_v33 = vadd.f32 %v5978_v61, %v3163_v29  ;;  %v3313_v34 = vadd.f32 %v5978_v61, %v3162_v30  ;;  %1513 = vst.msk [vmem:[%s7036_s3 + $0x419] sm:$0xff] %vm1381_vm2, %v4275_v32 }
 0x1d0   :  { %v1312_v38 = vpop.f32.mrf.mxu0  ;;  %v4499_v41 = vpop.f32.mrf.mxu1 }
 0x1d1   :  { %v1656_v36 = vld [vmem:[%s7036_s3 + $0x3f8] sm:$0xff]  ;;  %v1655_v37 = vld [vmem:[%s7036_s3 + $0x3f0] sm:$0xff]  ;;  %3458 = vst.msk [vmem:[%s7036_s3 + $0x3e8] sm:$0xff] %vm1381_vm2, %v3314_v33  ;;  %3457 = vst.msk [vmem:[%s7036_s3 + $0x3e0] sm:$0xff] %vm1381_vm2, %v3313_v34 }
 0x1d2   :  { %v3165_v39 = vadd.f32 %v4493_v21, %v1656_v36  ;;  %v3164_v40 = vadd.f32 %v2949_v25, %v1655_v37  ;;  %1512 = vst.msk [vmem:[%s7036_s3 + $0x411] sm:$0xff] %vm1381_vm2, %v1312_v38  ;;  %v4278_v42 = vpop.f32.mrf.mxu0  ;;  %v2969_v45 = vpop.f32.mrf.mxu1 }
 0x1d3   :  { %1515 = vst.msk [vmem:[%s7036_s3 + $0x429] sm:$0xff] %vm1381_vm2, %v4278_v42 }
 0x1d4   :  { %v3316_v43 = vadd.f32 %v5978_v61, %v3165_v39  ;;  %v3315_v44 = vadd.f32 %v5978_v61, %v3164_v40  ;;  %v1322_v48 = vpop.f32.mrf.mxu0  ;;  %v4502_v50 = vpop.f32.mrf.mxu1 }
 0x1d5   :  { %v1658_v46 = vld [vmem:[%s7036_s3 + $0x408] sm:$0xff]  ;;  %v1657_v47 = vld [vmem:[%s7036_s3 + $0x400] sm:$0xff]  ;;  %1514 = vst.msk [vmem:[%s7036_s3 + $0x421] sm:$0xff] %vm1381_vm2, %v1322_v48 }
 0x1d6   :  { %3460 = vst.msk [vmem:[%s7036_s3 + $0x3f8] sm:$0xff] %vm1381_vm2, %v3316_v43  ;;  %3459 = vst.msk [vmem:[%s7036_s3 + $0x3f0] sm:$0xff] %vm1381_vm2, %v3315_v44  ;;  %v3167_v61 = vadd.f32 %v4496_v31, %v1658_v46  ;;  %v3166_v49 = vadd.f32 %v2959_v35, %v1657_v47  ;;  %v4281_v51 = vpop.f32.mrf.mxu0  ;;  %v2979_v55 = vpop.f32.mrf.mxu1 }
 0x1d7   :  { %1517 = vst.msk [vmem:[%s7036_s3 + $0x439] sm:$0xff] %vm1381_vm2, %v4281_v51 }
 0x1d8   :  { %v3318_v53 = vadd.f32 %v6871_v52, %v3167_v61  ;;  %v3317_v54 = vadd.f32 %v6871_v52, %v3166_v49  ;;  %v1332_v58 = vpop.f32.mrf.mxu0  ;;  %v4505_v62 = vpop.f32.mrf.mxu1 }
 0x1d9   :  { %v1660_v57 = vld [vmem:[%s7036_s3 + $0x418] sm:$0xff]  ;;  %v1659_v56 = vld [vmem:[%s7036_s3 + $0x410] sm:$0xff]  ;;  %1516 = vst.msk [vmem:[%s7036_s3 + $0x431] sm:$0xff] %vm1381_vm2, %v1332_v58 }
 0x1da   :  { %3462 = vst.msk [vmem:[%s7036_s3 + $0x408] sm:$0xff] %vm1381_vm2, %v3318_v53  ;;  %3461 = vst.msk [vmem:[%s7036_s3 + $0x400] sm:$0xff] %vm1381_vm2, %v3317_v54  ;;  %v3169_v59 = vadd.f32 %v4499_v41, %v1660_v57  ;;  %v3168_v60 = vadd.f32 %v2969_v45, %v1659_v56  ;;  %v4284_v63 = vpop.f32.mrf.mxu0  ;;  %v2989_v2 = vpop.f32.mrf.mxu1 }
 0x1db   :  { %1519 = vst.msk [vmem:[%s7036_s3 + $0x449] sm:$0xff] %vm1381_vm2, %v4284_v63 }
 0x1dc   :  { %v3320_v0 = vadd.f32 %v6871_v52, %v3169_v59  ;;  %v3319_v1 = vadd.f32 %v6871_v52, %v3168_v60  ;;  %v1662_v3 = vld [vmem:[%s7036_s3 + $0x428] sm:$0xff]  ;;  %v1661_v4 = vld [vmem:[%s7036_s3 + $0x420] sm:$0xff]  ;;  %v1342_v5 = vpop.f32.mrf.mxu0  ;;  %v4508_v8 = vpop.f32.mrf.mxu1 }
 0x1dd   :  { %v3171_v6 = vadd.f32 %v4502_v50, %v1662_v3  ;;  %v3170_v7 = vadd.f32 %v2979_v55, %v1661_v4  ;;  %1518 = vst.msk [vmem:[%s7036_s3 + $0x441] sm:$0xff] %vm1381_vm2, %v1342_v5 }
 0x1de   :  { %3464 = vst.msk [vmem:[%s7036_s3 + $0x418] sm:$0xff] %vm1381_vm2, %v3320_v0  ;;  %3463 = vst.msk [vmem:[%s7036_s3 + $0x410] sm:$0xff] %vm1381_vm2, %v3319_v1  ;;  %v4287_v9 = vpop.f32.mrf.mxu0  ;;  %v2999_v12 = vpop.f32.mrf.mxu1 }
 0x1df   :  { %v3322_v10 = vadd.f32 %v6871_v52, %v3171_v6  ;;  %v3321_v11 = vadd.f32 %v6871_v52, %v3170_v7  ;;  %1521 = vst.msk [vmem:[%s7036_s3 + $0x459] sm:$0xff] %vm1381_vm2, %v4287_v9 }
 0x1e0   :  { %v1664_v13 = vld [vmem:[%s7036_s3 + $0x438] sm:$0xff]  ;;  %v1663_v14 = vld [vmem:[%s7036_s3 + $0x430] sm:$0xff]  ;;  %v1352_v15 = vpop.f32.mrf.mxu0  ;;  %v4511_v18 = vpop.f32.mrf.mxu1 }
 0x1e1   :  { %3466 = vst.msk [vmem:[%s7036_s3 + $0x428] sm:$0xff] %vm1381_vm2, %v3322_v10  ;;  %3465 = vst.msk [vmem:[%s7036_s3 + $0x420] sm:$0xff] %vm1381_vm2, %v3321_v11  ;;  %v3173_v16 = vadd.f32 %v4505_v62, %v1664_v13  ;;  %v3172_v17 = vadd.f32 %v2989_v2, %v1663_v14 }
 0x1e2   :  { %1520 = vst.msk [vmem:[%s7036_s3 + $0x451] sm:$0xff] %vm1381_vm2, %v1352_v15  ;;  %v4290_v19 = vpop.f32.mrf.mxu0  ;;  %v3009_v22 = vpop.f32.mrf.mxu1 }
 0x1e3   :  { %v3324_v20 = vadd.f32 %v6871_v52, %v3173_v16  ;;  %v3323_v21 = vadd.f32 %v6871_v52, %v3172_v17  ;;  %1523 = vst.msk [vmem:[%s7036_s3 + $0x469] sm:$0xff] %vm1381_vm2, %v4290_v19 }
 0x1e4   :  { %v1666_v23 = vld [vmem:[%s7036_s3 + $0x448] sm:$0xff]  ;;  %v1665_v24 = vld [vmem:[%s7036_s3 + $0x440] sm:$0xff]  ;;  %v1362_v25 = vpop.f32.mrf.mxu0  ;;  %v4514_v28 = vpop.f32.mrf.mxu1 }
 0x1e5   :  { %3468 = vst.msk [vmem:[%s7036_s3 + $0x438] sm:$0xff] %vm1381_vm2, %v3324_v20  ;;  %3467 = vst.msk [vmem:[%s7036_s3 + $0x430] sm:$0xff] %vm1381_vm2, %v3323_v21  ;;  %v3175_v26 = vadd.f32 %v4508_v8, %v1666_v23  ;;  %v3174_v27 = vadd.f32 %v2999_v12, %v1665_v24 }
 0x1e6   :  { %1522 = vst.msk [vmem:[%s7036_s3 + $0x461] sm:$0xff] %vm1381_vm2, %v1362_v25  ;;  %v4293_v29 = vpop.f32.mrf.mxu0  ;;  %v3019_v35 = vpop.f32.mrf.mxu1 }
 0x1e7   :  { %v3326_v30 = vadd.f32 %v6871_v52, %v3175_v26  ;;  %v3325_v31 = vadd.f32 %v6871_v52, %v3174_v27  ;;  %1526 = vst.msk [vmem:[%s7036_s3 + $0x479] sm:$0x7f] %vm1525_vm3, %v4293_v29 }
 0x1e8   :  { %v1372_v34 = vpop.f32.mrf.mxu0  ;;  %v4517_v42 = vpop.f32.mrf.mxu1 }
 0x1e9   :  { %v1668_v32 = vld [vmem:[%s7036_s3 + $0x458] sm:$0xff]  ;;  %v1667_v33 = vld [vmem:[%s7036_s3 + $0x450] sm:$0xff]  ;;  %3470 = vst.msk [vmem:[%s7036_s3 + $0x448] sm:$0xff] %vm1381_vm2, %v3326_v30  ;;  %3469 = vst.msk [vmem:[%s7036_s3 + $0x440] sm:$0xff] %vm1381_vm2, %v3325_v31 }
 0x1ea   :  { %v3177_v36 = vadd.f32 %v4511_v18, %v1668_v32  ;;  %v3176_v37 = vadd.f32 %v3009_v22, %v1667_v33  ;;  %1524 = vst.msk [vmem:[%s7036_s3 + $0x471] sm:$0xff] %vm1381_vm2, %v1372_v34  ;;  %v3029_v61 = vpop.f32.mrf.mxu1 }
 0x1ec   :  { %v3328_v38 = vadd.f32 %v6871_v52, %v3177_v36  ;;  %v3327_v39 = vadd.f32 %v6871_v52, %v3176_v37 }
 0x1ed   :  { %v1670_v40 = vld [vmem:[%s7036_s3 + $0x468] sm:$0xff]  ;;  %v1669_v41 = vld [vmem:[%s7036_s3 + $0x460] sm:$0xff] }
 0x1ee   :  { %3472 = vst.msk [vmem:[%s7036_s3 + $0x458] sm:$0xff] %vm1381_vm2, %v3328_v38  ;;  %3471 = vst.msk [vmem:[%s7036_s3 + $0x450] sm:$0xff] %vm1381_vm2, %v3327_v39  ;;  %v3179_v43 = vadd.f32 %v4514_v28, %v1670_v40  ;;  %v3178_v44 = vadd.f32 %v3019_v35, %v1669_v41 }
 0x1f0   :  { %v3330_v45 = vadd.f32 %v6871_v52, %v3179_v43  ;;  %v3329_v46 = vadd.f32 %v6871_v52, %v3178_v44 }
 0x1f1   :  { %v1672_v47 = vld [vmem:[%s7036_s3 + $0x478] sm:$0xff]  ;;  %v1671_v48 = vld [vmem:[%s7036_s3 + $0x470] sm:$0xff] }
 0x1f2   :  { %3474 = vst.msk [vmem:[%s7036_s3 + $0x468] sm:$0xff] %vm1381_vm2, %v3330_v45  ;;  %3473 = vst.msk [vmem:[%s7036_s3 + $0x460] sm:$0xff] %vm1381_vm2, %v3329_v46  ;;  %v3181_v49 = vadd.f32 %v4517_v42, %v1672_v47  ;;  %v3180_v50 = vadd.f32 %v3029_v61, %v1671_v48 }
 0x1f4   :  { %v3332_v51 = vadd.f32 %v6871_v52, %v3181_v49  ;;  %v3331_v53 = vadd.f32 %v6871_v52, %v3180_v50 }
 0x1f6   :  { %3476 = vst.msk [vmem:[%s7036_s3 + $0x478] sm:$0xff] %vm1381_vm2, %v3332_v51  ;;  %3475 = vst.msk [vmem:[%s7036_s3 + $0x470] sm:$0xff] %vm1381_vm2, %v3331_v53 }

</bundles_post_ra>
